<compile_context>
chip_gen: v5e
topology: v5e:2x2
jax: 0.10.0
libtpu: 0.0.40
codegen_flags: <defaults>
</compile_context>

<pallas_src>
import jax
import jax.numpy as jnp
from jax import lax
from jax.experimental import pallas as pl
from jax.experimental.pallas import tpu as pltpu  # noqa: F401  (TPU backend)


# ------------------------------------------------------------------ #
# One fused, grid-less kernel over the merged sr+tg rows.             #
# ------------------------------------------------------------------ #
def gaea_fused_kernel(ent_ref, rel_emb_ref, adj_ref, rel_adj_ref,
                      w_ref, asrc_ref, adst_ref,
                      wq_ref, wk_ref, wv_ref, seg_ref, exp_ref,
                      fused_ref, rel_ref):
    ntot, d = ent_ref.shape                    # (2N, ent_dim)
    n_layer, n_head = w_ref.shape[0], w_ref.shape[1]
    rng = n_layer + 1                          # res=True -> range = layer + 1
    hd = n_head * d

    f32, bf16 = jnp.float32, jnp.bfloat16

    # -------- STEP: Relation Aggregator (direct=False) --------
    # rel_adj is block-diagonal across sr/tg, rel_emb is [rel_sr; rel_tg].
    rel_adj_b = rel_adj_ref[...].astype(bf16)                       # (2N, 2R)
    rel_emb_b = rel_emb_ref[...].astype(bf16)                       # (2R, rel_dim)
    rel_agg = jnp.dot(rel_adj_b, rel_emb_b,
                      preferred_element_type=f32)                   # (2N, rel_dim)
    # rowsum fused onto the (idle) MXU instead of a cross-lane XLU reduce.
    rowsum = jnp.dot(rel_adj_b, jnp.ones((rel_adj_b.shape[1], 1), bf16),
                     preferred_element_type=f32)                    # (2N, 1)
    rel_ref[...] = rel_agg / rowsum        # exact divide (feeds output directly)

    # -------- STEP: Attentive Neighbor Aggregator (GAT layers) --------
    # adjacency mask as an additive bias, hoisted out of the layer loop.
    bias = jnp.where(adj_ref[...] > 0.0, 0.0, -9e15).astype(f32)    # (2N, 2N)

    x = ent_ref[...]                           # (2N, D), dropout == identity (eval)
    emb_list = [x]
    inv_h = 1.0 / n_head

    for l in range(n_layer):
        xb = x.astype(bf16)
        x3 = jnp.broadcast_to(xb[None], (n_head, ntot, d))          # (H, 2N, D)
        w_l = w_ref[l].astype(bf16)                                 # (H, D, D)
        # all heads projected with one batched matmul
        wh = jnp.einsum('hnd,hdo->hno', x3, w_l,
                        preferred_element_type=f32)                 # (H, 2N, D)
        whb = wh.astype(bf16)
        asrc = asrc_ref[l].astype(bf16)                             # (H, 1, D)
        adst = adst_ref[l].astype(bf16)                             # (H, 1, D)
        # f_src column / f_dst row produced directly on the MXU (no transposes)
        f_src = jnp.einsum('hnd,hsd->hns', whb, asrc,
                           preferred_element_type=f32)              # (H, 2N, 1)
        f_dst = jnp.einsum('hsd,hnd->hsn', adst, whb,
                           preferred_element_type=f32)              # (H, 1, 2N)
        e = f_src + f_dst                                           # (H, 2N, 2N)
        e = jnp.where(e > 0, e, 0.2 * e) + bias                     # LeakyReLU(0.2) + mask
        e = e - jnp.max(e, axis=-1, keepdims=True)
        p = jnp.exp(e)
        attn = p * pl.reciprocal(jnp.sum(p, axis=-1, keepdims=True),
                                 approx=True)                       # row softmax (all heads)
        h_out = jnp.einsum('hnm,hmd->hnd', attn.astype(bf16), whb,
                           preferred_element_type=f32)              # (H, 2N, D)
        acc = jnp.sum(h_out, axis=0) * inv_h                        # mean over heads
        # F.normalize(x, dim=1, p=2) fused (rsqrt -> EUP)
        x = acc * lax.rsqrt(jnp.maximum(
            jnp.sum(acc * acc, axis=-1, keepdims=True), 1e-24))
        emb_list.append(x)

    # -------- STEP: multi-range neighborhood fusion (MHA over range) --------
    seg = seg_ref[...].astype(bf16)        # (H*D, H)  block-diag ones: segmented sum
    expand = exp_ref[...].astype(bf16)     # (H, H*D)  one-hot lane-expand
    wq = wq_ref[...].astype(bf16)
    wk = wk_ref[...].astype(bf16)
    wv = wv_ref[...].astype(bf16)

    q, k, v = [], [], []
    for r in range(rng):                                            # no (rng*N,D) concat
        xr = emb_list[r].astype(bf16)
        q.append(jnp.dot(xr, wq, preferred_element_type=f32))       # (2N, H*D)
        k.append(jnp.dot(xr, wk, preferred_element_type=f32))
        v.append(jnp.dot(xr, wv, preferred_element_type=f32))

    scale = 1.0 / (d ** 0.5)
    out_sum = jnp.zeros((ntot, hd), f32)
    for r in range(rng):
        # segmented per-head dot products on the MXU: (2N,H*D) -> (2N,H)
        scores = [jnp.dot((q[r] * k[s]).astype(bf16), seg,
                          preferred_element_type=f32) * scale
                  for s in range(rng)]                              # each (2N, H)
        m = scores[0]
        for s in range(1, rng):
            m = jnp.maximum(m, scores[s])
        ps = [jnp.exp(sc - m) for sc in scores]
        denom = ps[0]
        for s in range(1, rng):
            denom = denom + ps[s]
        inv_denom = pl.reciprocal(denom, approx=True)
        o_r = jnp.zeros((ntot, hd), f32)
        for s in range(rng):
            # expand per-head weights back to H*D lanes with a one-hot matmul
            w_exp = jnp.dot((ps[s] * inv_denom).astype(bf16), expand,
                            preferred_element_type=f32)             # (2N, H*D)
            o_r = o_r + w_exp * v[s]
        out_sum = out_sum + o_r
    fused_ref[...] = out_sum * (1.0 / rng)                          # mean over range


# ------------------------------------------------------------------ #
# Wrapper: merge sr/tg on rows, pack weights, launch one kernel.      #
# ------------------------------------------------------------------ #
@jax.jit
def gaea_forward(params, adj_sr, adj_tg, rel_adj_sr, rel_adj_tg):
    f32 = jnp.float32
    n_sr, d = params["ent_sr"].shape
    n_tg = params["ent_tg"].shape[0]
    rel_num, rel_dim = params["rel_sr"].shape
    n_head = params["wq"].shape[0]
    n_layer = len(params["gat"])
    ntot = n_sr + n_tg
    hd = n_head * d

    # merge sr/tg along the row (sublane) axis; adjacencies become block-diagonal
    ent = jnp.concatenate([params["ent_sr"], params["ent_tg"]], axis=0)       # (2N, D)
    rel_emb = jnp.concatenate([params["rel_sr"], params["rel_tg"]], axis=0)   # (2R, rel_dim)
    adj = jnp.zeros((ntot, ntot), f32)
    adj = adj.at[:n_sr, :n_sr].set(adj_sr).at[n_sr:, n_sr:].set(adj_tg)
    rel_adj = jnp.zeros((ntot, 2 * rel_num), f32)
    rel_adj = rel_adj.at[:n_sr, :rel_num].set(rel_adj_sr)
    rel_adj = rel_adj.at[n_sr:, rel_num:].set(rel_adj_tg)

    # GAT weights stacked per layer, heads kept as a batch dim
    w_stack = jnp.stack([g[0] for g in params["gat"]], axis=0)      # (L, H, D, D)
    asrc = jnp.stack([g[1] for g in params["gat"]], axis=0)         # (L, H, 1, D)
    adst = jnp.stack([g[2] for g in params["gat"]], axis=0)         # (L, H, 1, D)
    # MHA per-head projections packed lane-dense (D, H*D)
    wq = jnp.concatenate([params["wq"][h] for h in range(n_head)], axis=-1)
    wk = jnp.concatenate([params["wk"][h] for h in range(n_head)], axis=-1)
    wv = jnp.concatenate([params["wv"][h] for h in range(n_head)], axis=-1)

    # segmented-sum / lane-expand helper matrices (heads packed on lanes)
    head_of_lane = jnp.arange(hd, dtype=jnp.int32) // d
    seg = (head_of_lane[:, None] == jnp.arange(n_head)[None, :]).astype(f32)  # (H*D, H)
    expand = seg.T                                                             # (H, H*D)

    fused, rel_out = pl.pallas_call(
        gaea_fused_kernel,
        out_shape=(jax.ShapeDtypeStruct((ntot, hd), f32),
                   jax.ShapeDtypeStruct((ntot, rel_dim), f32)),
    )(ent, rel_emb, adj, rel_adj, w_stack, asrc, adst, wq, wk, wv, seg, expand)

    # final concat (80 lanes) done in the XLA wrapper, not in-kernel
    full = jnp.concatenate([fused, rel_out], axis=-1)               # (2N, H*D + rel_dim)
    return full[:n_sr], full[n_sr:]


if __name__ == "__main__":
    # args chosen for the synthetic run
    N_SR = N_TG = 64
    ENT_DIM = 32
    REL_DIM = 16
    REL_NUM = 16
    N_HEAD = 2
    N_LAYER = 2          # res=True -> range = N_LAYER + 1

    key = jax.random.PRNGKey(0)
    ks = jax.random.split(key, 20)

    # deterministic synthetic parameters (DoubleEmbedding init ~ small normal)
    params = {
        "ent_sr": 0.1 * jax.random.normal(ks[0], (N_SR, ENT_DIM), jnp.float32),
        "ent_tg": 0.1 * jax.random.normal(ks[1], (N_TG, ENT_DIM), jnp.float32),
        "rel_sr": 0.1 * jax.random.normal(ks[2], (REL_NUM, REL_DIM), jnp.float32),
        "rel_tg": 0.1 * jax.random.normal(ks[3], (REL_NUM, REL_DIM), jnp.float32),
        "wq": 0.1 * jax.random.normal(ks[4], (N_HEAD, ENT_DIM, ENT_DIM), jnp.float32),
        "wk": 0.1 * jax.random.normal(ks[5], (N_HEAD, ENT_DIM, ENT_DIM), jnp.float32),
        "wv": 0.1 * jax.random.normal(ks[6], (N_HEAD, ENT_DIM, ENT_DIM), jnp.float32),
        "gat": [],
    }
    for l in range(N_LAYER):
        kw, ksrc, kdst = jax.random.split(ks[7 + l], 3)
        params["gat"].append((
            0.1 * jax.random.normal(kw, (N_HEAD, ENT_DIM, ENT_DIM), jnp.float32),
            0.1 * jax.random.normal(ksrc, (N_HEAD, 1, ENT_DIM), jnp.float32),
            0.1 * jax.random.normal(kdst, (N_HEAD, 1, ENT_DIM), jnp.float32),
        ))

    # dense adjacency with self-loops (sparse tensors in torch -> densified here)
    adj_sr = (jax.random.uniform(ks[10], (N_SR, N_SR)) < 0.2).astype(jnp.float32)
    adj_sr = jnp.maximum(adj_sr, jnp.eye(N_SR, dtype=jnp.float32))
    adj_tg = (jax.random.uniform(ks[11], (N_TG, N_TG)) < 0.2).astype(jnp.float32)
    adj_tg = jnp.maximum(adj_tg, jnp.eye(N_TG, dtype=jnp.float32))

    rel_adj_sr = (jax.random.uniform(ks[12], (N_SR, REL_NUM)) < 0.4).astype(jnp.float32)
    rel_adj_sr = rel_adj_sr.at[:, 0].set(1.0)   # guarantee nonzero rowsum
    rel_adj_tg = (jax.random.uniform(ks[13], (N_TG, REL_NUM)) < 0.4).astype(jnp.float32)
    rel_adj_tg = rel_adj_tg.at[:, 0].set(1.0)

    sr_out, tg_out = gaea_forward(params, adj_sr, adj_tg, rel_adj_sr, rel_adj_tg)
    jax.block_until_ready((sr_out, tg_out))

    assert sr_out.shape == (N_SR, N_HEAD * ENT_DIM + REL_DIM)
    assert tg_out.shape == (N_TG, N_HEAD * ENT_DIM + REL_DIM)
    assert bool(jnp.all(jnp.isfinite(sr_out))) and bool(jnp.all(jnp.isfinite(tg_out)))
    print("KERNEL_OK")
</pallas_src>

<mosaic_0001>
module attributes {stable_mosaic.version = 11 : i64} {
  func.func @gaea_fused_kernel(%arg0: memref<128x32xf32, #tpu.memory_space<vmem>>, %arg1: memref<32x16xf32, #tpu.memory_space<vmem>>, %arg2: memref<128x128xf32, #tpu.memory_space<vmem>>, %arg3: memref<128x32xf32, #tpu.memory_space<vmem>>, %arg4: memref<2x2x32x32xf32, #tpu.memory_space<vmem>>, %arg5: memref<2x2x1x32xf32, #tpu.memory_space<vmem>>, %arg6: memref<2x2x1x32xf32, #tpu.memory_space<vmem>>, %arg7: memref<32x64xf32, #tpu.memory_space<vmem>>, %arg8: memref<32x64xf32, #tpu.memory_space<vmem>>, %arg9: memref<32x64xf32, #tpu.memory_space<vmem>>, %arg10: memref<64x2xf32, #tpu.memory_space<vmem>>, %arg11: memref<2x64xf32, #tpu.memory_space<vmem>>, %arg12: memref<128x64xf32, #tpu.memory_space<vmem>>, %arg13: memref<128x16xf32, #tpu.memory_space<vmem>>) attributes {dimension_semantics = [], scalar_prefetch = 0 : i64, scratch_operands = 0 : i64, tpu.core_type = #tpu.core_type<tc>} {
    %c0 = arith.constant 0 : index
    %c0_0 = arith.constant 0 : index
    %0 = vector.load %arg3[%c0, %c0_0] : memref<128x32xf32, #tpu.memory_space<vmem>>, vector<128x32xf32>
    %1 = arith.truncf %0 : vector<128x32xf32> to vector<128x32xbf16>
    %c0_1 = arith.constant 0 : index
    %c0_2 = arith.constant 0 : index
    %2 = vector.load %arg1[%c0_1, %c0_2] : memref<32x16xf32, #tpu.memory_space<vmem>>, vector<32x16xf32>
    %3 = arith.truncf %2 : vector<32x16xf32> to vector<32x16xbf16>
    %cst = arith.constant dense<0.000000e+00> : vector<128x16xf32>
    %4 = tpu.matmul %1, %3, %cst {dimension_numbers = #tpu.dot_dimension_numbers<[1], [0], [0], [1], [0, 0, 1, 1], [], []>} : vector<128x32xbf16>, vector<32x16xbf16>, vector<128x16xf32> -> vector<128x16xf32>
    %cst_3 = arith.constant 1.000000e+00 : bf16
    %5 = vector.broadcast %cst_3 : bf16 to vector<32x1xbf16>
    %cst_4 = arith.constant dense<0.000000e+00> : vector<128x1xf32>
    %6 = tpu.matmul %1, %5, %cst_4 {dimension_numbers = #tpu.dot_dimension_numbers<[1], [0], [0], [1], [0, 0, 1, 1], [], []>} : vector<128x32xbf16>, vector<32x1xbf16>, vector<128x1xf32> -> vector<128x1xf32>
    %7 = vector.broadcast %6 : vector<128x1xf32> to vector<128x16xf32>
    %8 = arith.divf %4, %7 : vector<128x16xf32>
    %c0_5 = arith.constant 0 : index
    %c0_6 = arith.constant 0 : index
    %9 = vector.load %arg13[%c0_5, %c0_6] : memref<128x16xf32, #tpu.memory_space<vmem>>, vector<128x16xf32>
    tpu.vector_store %arg13[%c0_5, %c0_6], %8 {strides = array<i32>} : memref<128x16xf32, #tpu.memory_space<vmem>>, vector<128x16xf32>,
    %c0_7 = arith.constant 0 : index
    %c0_8 = arith.constant 0 : index
    %10 = vector.load %arg2[%c0_7, %c0_8] : memref<128x128xf32, #tpu.memory_space<vmem>>, vector<128x128xf32>
    %cst_9 = arith.constant 0.000000e+00 : f32
    %11 = vector.broadcast %cst_9 : f32 to vector<128x128xf32>
    %12 = arith.cmpf ogt, %10, %11 : vector<128x128xf32>
    %cst_10 = arith.constant 0.000000e+00 : f32
    %cst_11 = arith.constant -9.000000e+15 : f32
    %13 = vector.broadcast %cst_10 : f32 to vector<128x128xf32>
    %14 = vector.broadcast %cst_11 : f32 to vector<128x128xf32>
    %15 = arith.select %12, %13, %14 : vector<128x128xi1>, vector<128x128xf32>
    %c0_12 = arith.constant 0 : index
    %c0_13 = arith.constant 0 : index
    %16 = vector.load %arg0[%c0_12, %c0_13] : memref<128x32xf32, #tpu.memory_space<vmem>>, vector<128x32xf32>
    %17 = arith.truncf %16 : vector<128x32xf32> to vector<128x32xbf16>
    %18 = vector.shape_cast %17 : vector<128x32xbf16> to vector<1x128x32xbf16>
    %19 = vector.shape_cast %18 : vector<1x128x32xbf16> to vector<1x128x32xbf16>
    %20 = vector.broadcast %19 : vector<1x128x32xbf16> to vector<2x128x32xbf16>
    %c0_14 = arith.constant 0 : index
    %c0_15 = arith.constant 0 : index
    %c0_16 = arith.constant 0 : index
    %c0_17 = arith.constant 0 : index
    %21 = vector.load %arg4[%c0_14, %c0_15, %c0_16, %c0_17] : memref<2x2x32x32xf32, #tpu.memory_space<vmem>>, vector<1x2x32x32xf32>
    %22 = vector.shape_cast %21 : vector<1x2x32x32xf32> to vector<2x32x32xf32>
    %23 = arith.truncf %22 : vector<2x32x32xf32> to vector<2x32x32xbf16>
    "tpu.trace_start"() <{level = 10 : i32, message = "hnd,hdo->hno"}> : () -> ()
    %cst_18 = arith.constant dense<0.000000e+00> : vector<2x128x32xf32>
    %24 = tpu.matmul %20, %23, %cst_18 {dimension_numbers = #tpu.dot_dimension_numbers<[2], [1], [1], [2], [0, 0, 0, 1, 1, 2], [0], [0]>} : vector<2x128x32xbf16>, vector<2x32x32xbf16>, vector<2x128x32xf32> -> vector<2x128x32xf32>
    "tpu.trace_stop"() : () -> ()
    %25 = arith.truncf %24 : vector<2x128x32xf32> to vector<2x128x32xbf16>
    %c0_19 = arith.constant 0 : index
    %c0_20 = arith.constant 0 : index
    %c0_21 = arith.constant 0 : index
    %c0_22 = arith.constant 0 : index
    %26 = vector.load %arg5[%c0_19, %c0_20, %c0_21, %c0_22] : memref<2x2x1x32xf32, #tpu.memory_space<vmem>>, vector<1x2x1x32xf32>
    %27 = vector.shape_cast %26 : vector<1x2x1x32xf32> to vector<2x1x32xf32>
    %28 = arith.truncf %27 : vector<2x1x32xf32> to vector<2x1x32xbf16>
    %c0_23 = arith.constant 0 : index
    %c0_24 = arith.constant 0 : index
    %c0_25 = arith.constant 0 : index
    %c0_26 = arith.constant 0 : index
    %29 = vector.load %arg6[%c0_23, %c0_24, %c0_25, %c0_26] : memref<2x2x1x32xf32, #tpu.memory_space<vmem>>, vector<1x2x1x32xf32>
    %30 = vector.shape_cast %29 : vector<1x2x1x32xf32> to vector<2x1x32xf32>
    %31 = arith.truncf %30 : vector<2x1x32xf32> to vector<2x1x32xbf16>
    "tpu.trace_start"() <{level = 10 : i32, message = "hnd,hsd->hns"}> : () -> ()
    %cst_27 = arith.constant dense<0.000000e+00> : vector<2x128x1xf32>
    %32 = tpu.matmul %25, %28, %cst_27 {dimension_numbers = #tpu.dot_dimension_numbers<[2], [2], [1], [1], [0, 0, 0, 1, 1, 1], [0], [0]>} : vector<2x128x32xbf16>, vector<2x1x32xbf16>, vector<2x128x1xf32> -> vector<2x128x1xf32>
    "tpu.trace_stop"() : () -> ()
    "tpu.trace_start"() <{level = 10 : i32, message = "hsd,hnd->hsn"}> : () -> ()
    %cst_28 = arith.constant dense<0.000000e+00> : vector<2x1x128xf32>
    %33 = tpu.matmul %31, %25, %cst_28 {dimension_numbers = #tpu.dot_dimension_numbers<[2], [2], [1], [1], [0, 0, 0, 1, 1, 1], [0], [0]>} : vector<2x1x32xbf16>, vector<2x128x32xbf16>, vector<2x1x128xf32> -> vector<2x1x128xf32>
    "tpu.trace_stop"() : () -> ()
    %34 = vector.broadcast %32 : vector<2x128x1xf32> to vector<2x128x128xf32>
    %35 = vector.broadcast %33 : vector<2x1x128xf32> to vector<2x128x128xf32>
    %36 = arith.addf %34, %35 : vector<2x128x128xf32>
    %cst_29 = arith.constant 0.000000e+00 : f32
    %37 = vector.broadcast %cst_29 : f32 to vector<2x128x128xf32>
    %38 = arith.cmpf ogt, %36, %37 : vector<2x128x128xf32>
    %cst_30 = arith.constant 2.000000e-01 : f32
    %39 = vector.broadcast %cst_30 : f32 to vector<2x128x128xf32>
    %40 = arith.mulf %39, %36 : vector<2x128x128xf32>
    %41 = arith.select %38, %36, %40 : vector<2x128x128xi1>, vector<2x128x128xf32>
    %42 = vector.shape_cast %15 : vector<128x128xf32> to vector<1x128x128xf32>
    %43 = vector.broadcast %42 : vector<1x128x128xf32> to vector<2x128x128xf32>
    %44 = arith.addf %41, %43 : vector<2x128x128xf32>
    %cst_31 = arith.constant dense<0xFF800000> : vector<2x128xf32>
    %45 = vector.multi_reduction <maximumf>, %44, %cst_31 [2] : vector<2x128x128xf32> to vector<2x128xf32>
    %46 = vector.shape_cast %45 : vector<2x128xf32> to vector<2x128x1xf32>
    %47 = vector.broadcast %46 : vector<2x128x1xf32> to vector<2x128x128xf32>
    %48 = arith.subf %44, %47 : vector<2x128x128xf32>
    %49 = math.exp %48 : vector<2x128x128xf32>
    %cst_32 = arith.constant dense<0.000000e+00> : vector<2x128xf32>
    %50 = vector.multi_reduction <add>, %49, %cst_32 [2] : vector<2x128x128xf32> to vector<2x128xf32>
    %51 = vector.shape_cast %50 : vector<2x128xf32> to vector<2x128x1xf32>
    %52 = tpu.reciprocal %51 {approx = true} : vector<2x128x1xf32> -> vector<2x128x1xf32>
    %53 = vector.broadcast %52 : vector<2x128x1xf32> to vector<2x128x128xf32>
    %54 = arith.mulf %49, %53 : vector<2x128x128xf32>
    %55 = arith.truncf %54 : vector<2x128x128xf32> to vector<2x128x128xbf16>
    "tpu.trace_start"() <{level = 10 : i32, message = "hnm,hmd->hnd"}> : () -> ()
    %cst_33 = arith.constant dense<0.000000e+00> : vector<2x128x32xf32>
    %56 = tpu.matmul %55, %25, %cst_33 {dimension_numbers = #tpu.dot_dimension_numbers<[2], [1], [1], [2], [0, 0, 0, 1, 1, 2], [0], [0]>} : vector<2x128x128xbf16>, vector<2x128x32xbf16>, vector<2x128x32xf32> -> vector<2x128x32xf32>
    "tpu.trace_stop"() : () -> ()
    %cst_34 = arith.constant dense<0.000000e+00> : vector<128x32xf32>
    %57 = vector.multi_reduction <add>, %56, %cst_34 [0] : vector<2x128x32xf32> to vector<128x32xf32>
    %cst_35 = arith.constant 5.000000e-01 : f32
    %58 = vector.broadcast %cst_35 : f32 to vector<128x32xf32>
    %59 = arith.mulf %57, %58 : vector<128x32xf32>
    %60 = arith.mulf %59, %59 : vector<128x32xf32>
    %cst_36 = arith.constant dense<0.000000e+00> : vector<128xf32>
    %61 = vector.multi_reduction <add>, %60, %cst_36 [1] : vector<128x32xf32> to vector<128xf32>
    %62 = vector.shape_cast %61 : vector<128xf32> to vector<128x1xf32>
    %cst_37 = arith.constant 1.000000e-24 : f32
    %63 = vector.broadcast %cst_37 : f32 to vector<128x1xf32>
    %64 = arith.maximumf %62, %63 : vector<128x1xf32>
    %65 = math.rsqrt %64 : vector<128x1xf32>
    %66 = vector.broadcast %65 : vector<128x1xf32> to vector<128x32xf32>
    %67 = arith.mulf %59, %66 : vector<128x32xf32>
    %68 = arith.truncf %67 : vector<128x32xf32> to vector<128x32xbf16>
    %69 = vector.shape_cast %68 : vector<128x32xbf16> to vector<1x128x32xbf16>
    %70 = vector.shape_cast %69 : vector<1x128x32xbf16> to vector<1x128x32xbf16>
    %71 = vector.broadcast %70 : vector<1x128x32xbf16> to vector<2x128x32xbf16>
    %c1 = arith.constant 1 : index
    %c0_38 = arith.constant 0 : index
    %c0_39 = arith.constant 0 : index
    %c0_40 = arith.constant 0 : index
    %72 = vector.load %arg4[%c1, %c0_38, %c0_39, %c0_40] : memref<2x2x32x32xf32, #tpu.memory_space<vmem>>, vector<1x2x32x32xf32>
    %73 = vector.shape_cast %72 : vector<1x2x32x32xf32> to vector<2x32x32xf32>
    %74 = arith.truncf %73 : vector<2x32x32xf32> to vector<2x32x32xbf16>
    "tpu.trace_start"() <{level = 10 : i32, message = "hnd,hdo->hno"}> : () -> ()
    %cst_41 = arith.constant dense<0.000000e+00> : vector<2x128x32xf32>
    %75 = tpu.matmul %71, %74, %cst_41 {dimension_numbers = #tpu.dot_dimension_numbers<[2], [1], [1], [2], [0, 0, 0, 1, 1, 2], [0], [0]>} : vector<2x128x32xbf16>, vector<2x32x32xbf16>, vector<2x128x32xf32> -> vector<2x128x32xf32>
    "tpu.trace_stop"() : () -> ()
    %76 = arith.truncf %75 : vector<2x128x32xf32> to vector<2x128x32xbf16>
    %c1_42 = arith.constant 1 : index
    %c0_43 = arith.constant 0 : index
    %c0_44 = arith.constant 0 : index
    %c0_45 = arith.constant 0 : index
    %77 = vector.load %arg5[%c1_42, %c0_43, %c0_44, %c0_45] : memref<2x2x1x32xf32, #tpu.memory_space<vmem>>, vector<1x2x1x32xf32>
    %78 = vector.shape_cast %77 : vector<1x2x1x32xf32> to vector<2x1x32xf32>
    %79 = arith.truncf %78 : vector<2x1x32xf32> to vector<2x1x32xbf16>
    %c1_46 = arith.constant 1 : index
    %c0_47 = arith.constant 0 : index
    %c0_48 = arith.constant 0 : index
    %c0_49 = arith.constant 0 : index
    %80 = vector.load %arg6[%c1_46, %c0_47, %c0_48, %c0_49] : memref<2x2x1x32xf32, #tpu.memory_space<vmem>>, vector<1x2x1x32xf32>
    %81 = vector.shape_cast %80 : vector<1x2x1x32xf32> to vector<2x1x32xf32>
    %82 = arith.truncf %81 : vector<2x1x32xf32> to vector<2x1x32xbf16>
    "tpu.trace_start"() <{level = 10 : i32, message = "hnd,hsd->hns"}> : () -> ()
    %cst_50 = arith.constant dense<0.000000e+00> : vector<2x128x1xf32>
    %83 = tpu.matmul %76, %79, %cst_50 {dimension_numbers = #tpu.dot_dimension_numbers<[2], [2], [1], [1], [0, 0, 0, 1, 1, 1], [0], [0]>} : vector<2x128x32xbf16>, vector<2x1x32xbf16>, vector<2x128x1xf32> -> vector<2x128x1xf32>
    "tpu.trace_stop"() : () -> ()
    "tpu.trace_start"() <{level = 10 : i32, message = "hsd,hnd->hsn"}> : () -> ()
    %cst_51 = arith.constant dense<0.000000e+00> : vector<2x1x128xf32>
    %84 = tpu.matmul %82, %76, %cst_51 {dimension_numbers = #tpu.dot_dimension_numbers<[2], [2], [1], [1], [0, 0, 0, 1, 1, 1], [0], [0]>} : vector<2x1x32xbf16>, vector<2x128x32xbf16>, vector<2x1x128xf32> -> vector<2x1x128xf32>
    "tpu.trace_stop"() : () -> ()
    %85 = vector.broadcast %83 : vector<2x128x1xf32> to vector<2x128x128xf32>
    %86 = vector.broadcast %84 : vector<2x1x128xf32> to vector<2x128x128xf32>
    %87 = arith.addf %85, %86 : vector<2x128x128xf32>
    %cst_52 = arith.constant 0.000000e+00 : f32
    %88 = vector.broadcast %cst_52 : f32 to vector<2x128x128xf32>
    %89 = arith.cmpf ogt, %87, %88 : vector<2x128x128xf32>
    %cst_53 = arith.constant 2.000000e-01 : f32
    %90 = vector.broadcast %cst_53 : f32 to vector<2x128x128xf32>
    %91 = arith.mulf %90, %87 : vector<2x128x128xf32>
    %92 = arith.select %89, %87, %91 : vector<2x128x128xi1>, vector<2x128x128xf32>
    %93 = vector.shape_cast %15 : vector<128x128xf32> to vector<1x128x128xf32>
    %94 = vector.broadcast %93 : vector<1x128x128xf32> to vector<2x128x128xf32>
    %95 = arith.addf %92, %94 : vector<2x128x128xf32>
    %cst_54 = arith.constant dense<0xFF800000> : vector<2x128xf32>
    %96 = vector.multi_reduction <maximumf>, %95, %cst_54 [2] : vector<2x128x128xf32> to vector<2x128xf32>
    %97 = vector.shape_cast %96 : vector<2x128xf32> to vector<2x128x1xf32>
    %98 = vector.broadcast %97 : vector<2x128x1xf32> to vector<2x128x128xf32>
    %99 = arith.subf %95, %98 : vector<2x128x128xf32>
    %100 = math.exp %99 : vector<2x128x128xf32>
    %cst_55 = arith.constant dense<0.000000e+00> : vector<2x128xf32>
    %101 = vector.multi_reduction <add>, %100, %cst_55 [2] : vector<2x128x128xf32> to vector<2x128xf32>
    %102 = vector.shape_cast %101 : vector<2x128xf32> to vector<2x128x1xf32>
    %103 = tpu.reciprocal %102 {approx = true} : vector<2x128x1xf32> -> vector<2x128x1xf32>
    %104 = vector.broadcast %103 : vector<2x128x1xf32> to vector<2x128x128xf32>
    %105 = arith.mulf %100, %104 : vector<2x128x128xf32>
    %106 = arith.truncf %105 : vector<2x128x128xf32> to vector<2x128x128xbf16>
    "tpu.trace_start"() <{level = 10 : i32, message = "hnm,hmd->hnd"}> : () -> ()
    %cst_56 = arith.constant dense<0.000000e+00> : vector<2x128x32xf32>
    %107 = tpu.matmul %106, %76, %cst_56 {dimension_numbers = #tpu.dot_dimension_numbers<[2], [1], [1], [2], [0, 0, 0, 1, 1, 2], [0], [0]>} : vector<2x128x128xbf16>, vector<2x128x32xbf16>, vector<2x128x32xf32> -> vector<2x128x32xf32>
    "tpu.trace_stop"() : () -> ()
    %cst_57 = arith.constant dense<0.000000e+00> : vector<128x32xf32>
    %108 = vector.multi_reduction <add>, %107, %cst_57 [0] : vector<2x128x32xf32> to vector<128x32xf32>
    %cst_58 = arith.constant 5.000000e-01 : f32
    %109 = vector.broadcast %cst_58 : f32 to vector<128x32xf32>
    %110 = arith.mulf %108, %109 : vector<128x32xf32>
    %111 = arith.mulf %110, %110 : vector<128x32xf32>
    %cst_59 = arith.constant dense<0.000000e+00> : vector<128xf32>
    %112 = vector.multi_reduction <add>, %111, %cst_59 [1] : vector<128x32xf32> to vector<128xf32>
    %113 = vector.shape_cast %112 : vector<128xf32> to vector<128x1xf32>
    %cst_60 = arith.constant 1.000000e-24 : f32
    %114 = vector.broadcast %cst_60 : f32 to vector<128x1xf32>
    %115 = arith.maximumf %113, %114 : vector<128x1xf32>
    %116 = math.rsqrt %115 : vector<128x1xf32>
    %117 = vector.broadcast %116 : vector<128x1xf32> to vector<128x32xf32>
    %118 = arith.mulf %110, %117 : vector<128x32xf32>
    %c0_61 = arith.constant 0 : index
    %c0_62 = arith.constant 0 : index
    %119 = vector.load %arg10[%c0_61, %c0_62] : memref<64x2xf32, #tpu.memory_space<vmem>>, vector<64x2xf32>
    %120 = arith.truncf %119 : vector<64x2xf32> to vector<64x2xbf16>
    %c0_63 = arith.constant 0 : index
    %c0_64 = arith.constant 0 : index
    %121 = vector.load %arg11[%c0_63, %c0_64] : memref<2x64xf32, #tpu.memory_space<vmem>>, vector<2x64xf32>
    %122 = arith.truncf %121 : vector<2x64xf32> to vector<2x64xbf16>
    %c0_65 = arith.constant 0 : index
    %c0_66 = arith.constant 0 : index
    %123 = vector.load %arg7[%c0_65, %c0_66] : memref<32x64xf32, #tpu.memory_space<vmem>>, vector<32x64xf32>
    %124 = arith.truncf %123 : vector<32x64xf32> to vector<32x64xbf16>
    %c0_67 = arith.constant 0 : index
    %c0_68 = arith.constant 0 : index
    %125 = vector.load %arg8[%c0_67, %c0_68] : memref<32x64xf32, #tpu.memory_space<vmem>>, vector<32x64xf32>
    %126 = arith.truncf %125 : vector<32x64xf32> to vector<32x64xbf16>
    %c0_69 = arith.constant 0 : index
    %c0_70 = arith.constant 0 : index
    %127 = vector.load %arg9[%c0_69, %c0_70] : memref<32x64xf32, #tpu.memory_space<vmem>>, vector<32x64xf32>
    %128 = arith.truncf %127 : vector<32x64xf32> to vector<32x64xbf16>
    %129 = arith.truncf %16 : vector<128x32xf32> to vector<128x32xbf16>
    %cst_71 = arith.constant dense<0.000000e+00> : vector<128x64xf32>
    %130 = tpu.matmul %129, %124, %cst_71 {dimension_numbers = #tpu.dot_dimension_numbers<[1], [0], [0], [1], [0, 0, 1, 1], [], []>} : vector<128x32xbf16>, vector<32x64xbf16>, vector<128x64xf32> -> vector<128x64xf32>
    %cst_72 = arith.constant dense<0.000000e+00> : vector<128x64xf32>
    %131 = tpu.matmul %129, %126, %cst_72 {dimension_numbers = #tpu.dot_dimension_numbers<[1], [0], [0], [1], [0, 0, 1, 1], [], []>} : vector<128x32xbf16>, vector<32x64xbf16>, vector<128x64xf32> -> vector<128x64xf32>
    %cst_73 = arith.constant dense<0.000000e+00> : vector<128x64xf32>
    %132 = tpu.matmul %129, %128, %cst_73 {dimension_numbers = #tpu.dot_dimension_numbers<[1], [0], [0], [1], [0, 0, 1, 1], [], []>} : vector<128x32xbf16>, vector<32x64xbf16>, vector<128x64xf32> -> vector<128x64xf32>
    %133 = arith.truncf %67 : vector<128x32xf32> to vector<128x32xbf16>
    %cst_74 = arith.constant dense<0.000000e+00> : vector<128x64xf32>
    %134 = tpu.matmul %133, %124, %cst_74 {dimension_numbers = #tpu.dot_dimension_numbers<[1], [0], [0], [1], [0, 0, 1, 1], [], []>} : vector<128x32xbf16>, vector<32x64xbf16>, vector<128x64xf32> -> vector<128x64xf32>
    %cst_75 = arith.constant dense<0.000000e+00> : vector<128x64xf32>
    %135 = tpu.matmul %133, %126, %cst_75 {dimension_numbers = #tpu.dot_dimension_numbers<[1], [0], [0], [1], [0, 0, 1, 1], [], []>} : vector<128x32xbf16>, vector<32x64xbf16>, vector<128x64xf32> -> vector<128x64xf32>
    %cst_76 = arith.constant dense<0.000000e+00> : vector<128x64xf32>
    %136 = tpu.matmul %133, %128, %cst_76 {dimension_numbers = #tpu.dot_dimension_numbers<[1], [0], [0], [1], [0, 0, 1, 1], [], []>} : vector<128x32xbf16>, vector<32x64xbf16>, vector<128x64xf32> -> vector<128x64xf32>
    %137 = arith.truncf %118 : vector<128x32xf32> to vector<128x32xbf16>
    %cst_77 = arith.constant dense<0.000000e+00> : vector<128x64xf32>
    %138 = tpu.matmul %137, %124, %cst_77 {dimension_numbers = #tpu.dot_dimension_numbers<[1], [0], [0], [1], [0, 0, 1, 1], [], []>} : vector<128x32xbf16>, vector<32x64xbf16>, vector<128x64xf32> -> vector<128x64xf32>
    %cst_78 = arith.constant dense<0.000000e+00> : vector<128x64xf32>
    %139 = tpu.matmul %137, %126, %cst_78 {dimension_numbers = #tpu.dot_dimension_numbers<[1], [0], [0], [1], [0, 0, 1, 1], [], []>} : vector<128x32xbf16>, vector<32x64xbf16>, vector<128x64xf32> -> vector<128x64xf32>
    %cst_79 = arith.constant dense<0.000000e+00> : vector<128x64xf32>
    %140 = tpu.matmul %137, %128, %cst_79 {dimension_numbers = #tpu.dot_dimension_numbers<[1], [0], [0], [1], [0, 0, 1, 1], [], []>} : vector<128x32xbf16>, vector<32x64xbf16>, vector<128x64xf32> -> vector<128x64xf32>
    %cst_80 = arith.constant 0.000000e+00 : f32
    %141 = vector.broadcast %cst_80 : f32 to vector<128x64xf32>
    %142 = arith.mulf %130, %131 : vector<128x64xf32>
    %143 = arith.truncf %142 : vector<128x64xf32> to vector<128x64xbf16>
    %cst_81 = arith.constant dense<0.000000e+00> : vector<128x2xf32>
    %144 = tpu.matmul %143, %120, %cst_81 {dimension_numbers = #tpu.dot_dimension_numbers<[1], [0], [0], [1], [0, 0, 1, 1], [], []>} : vector<128x64xbf16>, vector<64x2xbf16>, vector<128x2xf32> -> vector<128x2xf32>
    %cst_82 = arith.constant 0.176776692 : f32
    %145 = vector.broadcast %cst_82 : f32 to vector<128x2xf32>
    %146 = arith.mulf %144, %145 : vector<128x2xf32>
    %147 = arith.mulf %130, %135 : vector<128x64xf32>
    %148 = arith.truncf %147 : vector<128x64xf32> to vector<128x64xbf16>
    %cst_83 = arith.constant dense<0.000000e+00> : vector<128x2xf32>
    %149 = tpu.matmul %148, %120, %cst_83 {dimension_numbers = #tpu.dot_dimension_numbers<[1], [0], [0], [1], [0, 0, 1, 1], [], []>} : vector<128x64xbf16>, vector<64x2xbf16>, vector<128x2xf32> -> vector<128x2xf32>
    %cst_84 = arith.constant 0.176776692 : f32
    %150 = vector.broadcast %cst_84 : f32 to vector<128x2xf32>
    %151 = arith.mulf %149, %150 : vector<128x2xf32>
    %152 = arith.mulf %130, %139 : vector<128x64xf32>
    %153 = arith.truncf %152 : vector<128x64xf32> to vector<128x64xbf16>
    %cst_85 = arith.constant dense<0.000000e+00> : vector<128x2xf32>
    %154 = tpu.matmul %153, %120, %cst_85 {dimension_numbers = #tpu.dot_dimension_numbers<[1], [0], [0], [1], [0, 0, 1, 1], [], []>} : vector<128x64xbf16>, vector<64x2xbf16>, vector<128x2xf32> -> vector<128x2xf32>
    %cst_86 = arith.constant 0.176776692 : f32
    %155 = vector.broadcast %cst_86 : f32 to vector<128x2xf32>
    %156 = arith.mulf %154, %155 : vector<128x2xf32>
    %157 = arith.maximumf %146, %151 : vector<128x2xf32>
    %158 = arith.maximumf %157, %156 : vector<128x2xf32>
    %159 = arith.subf %146, %158 : vector<128x2xf32>
    %160 = math.exp %159 : vector<128x2xf32>
    %161 = arith.subf %151, %158 : vector<128x2xf32>
    %162 = math.exp %161 : vector<128x2xf32>
    %163 = arith.subf %156, %158 : vector<128x2xf32>
    %164 = math.exp %163 : vector<128x2xf32>
    %165 = arith.addf %160, %162 : vector<128x2xf32>
    %166 = arith.addf %165, %164 : vector<128x2xf32>
    %167 = tpu.reciprocal %166 {approx = true} : vector<128x2xf32> -> vector<128x2xf32>
    %cst_87 = arith.constant 0.000000e+00 : f32
    %168 = vector.broadcast %cst_87 : f32 to vector<128x64xf32>
    %169 = arith.mulf %160, %167 : vector<128x2xf32>
    %170 = arith.truncf %169 : vector<128x2xf32> to vector<128x2xbf16>
    %cst_88 = arith.constant dense<0.000000e+00> : vector<128x64xf32>
    %171 = tpu.matmul %170, %122, %cst_88 {dimension_numbers = #tpu.dot_dimension_numbers<[1], [0], [0], [1], [0, 0, 1, 1], [], []>} : vector<128x2xbf16>, vector<2x64xbf16>, vector<128x64xf32> -> vector<128x64xf32>
    %172 = arith.mulf %171, %132 : vector<128x64xf32>
    %173 = arith.addf %168, %172 : vector<128x64xf32>
    %174 = arith.mulf %162, %167 : vector<128x2xf32>
    %175 = arith.truncf %174 : vector<128x2xf32> to vector<128x2xbf16>
    %cst_89 = arith.constant dense<0.000000e+00> : vector<128x64xf32>
    %176 = tpu.matmul %175, %122, %cst_89 {dimension_numbers = #tpu.dot_dimension_numbers<[1], [0], [0], [1], [0, 0, 1, 1], [], []>} : vector<128x2xbf16>, vector<2x64xbf16>, vector<128x64xf32> -> vector<128x64xf32>
    %177 = arith.mulf %176, %136 : vector<128x64xf32>
    %178 = arith.addf %173, %177 : vector<128x64xf32>
    %179 = arith.mulf %164, %167 : vector<128x2xf32>
    %180 = arith.truncf %179 : vector<128x2xf32> to vector<128x2xbf16>
    %cst_90 = arith.constant dense<0.000000e+00> : vector<128x64xf32>
    %181 = tpu.matmul %180, %122, %cst_90 {dimension_numbers = #tpu.dot_dimension_numbers<[1], [0], [0], [1], [0, 0, 1, 1], [], []>} : vector<128x2xbf16>, vector<2x64xbf16>, vector<128x64xf32> -> vector<128x64xf32>
    %182 = arith.mulf %181, %140 : vector<128x64xf32>
    %183 = arith.addf %178, %182 : vector<128x64xf32>
    %184 = arith.addf %141, %183 : vector<128x64xf32>
    %185 = arith.mulf %134, %131 : vector<128x64xf32>
    %186 = arith.truncf %185 : vector<128x64xf32> to vector<128x64xbf16>
    %cst_91 = arith.constant dense<0.000000e+00> : vector<128x2xf32>
    %187 = tpu.matmul %186, %120, %cst_91 {dimension_numbers = #tpu.dot_dimension_numbers<[1], [0], [0], [1], [0, 0, 1, 1], [], []>} : vector<128x64xbf16>, vector<64x2xbf16>, vector<128x2xf32> -> vector<128x2xf32>
    %cst_92 = arith.constant 0.176776692 : f32
    %188 = vector.broadcast %cst_92 : f32 to vector<128x2xf32>
    %189 = arith.mulf %187, %188 : vector<128x2xf32>
    %190 = arith.mulf %134, %135 : vector<128x64xf32>
    %191 = arith.truncf %190 : vector<128x64xf32> to vector<128x64xbf16>
    %cst_93 = arith.constant dense<0.000000e+00> : vector<128x2xf32>
    %192 = tpu.matmul %191, %120, %cst_93 {dimension_numbers = #tpu.dot_dimension_numbers<[1], [0], [0], [1], [0, 0, 1, 1], [], []>} : vector<128x64xbf16>, vector<64x2xbf16>, vector<128x2xf32> -> vector<128x2xf32>
    %cst_94 = arith.constant 0.176776692 : f32
    %193 = vector.broadcast %cst_94 : f32 to vector<128x2xf32>
    %194 = arith.mulf %192, %193 : vector<128x2xf32>
    %195 = arith.mulf %134, %139 : vector<128x64xf32>
    %196 = arith.truncf %195 : vector<128x64xf32> to vector<128x64xbf16>
    %cst_95 = arith.constant dense<0.000000e+00> : vector<128x2xf32>
    %197 = tpu.matmul %196, %120, %cst_95 {dimension_numbers = #tpu.dot_dimension_numbers<[1], [0], [0], [1], [0, 0, 1, 1], [], []>} : vector<128x64xbf16>, vector<64x2xbf16>, vector<128x2xf32> -> vector<128x2xf32>
    %cst_96 = arith.constant 0.176776692 : f32
    %198 = vector.broadcast %cst_96 : f32 to vector<128x2xf32>
    %199 = arith.mulf %197, %198 : vector<128x2xf32>
    %200 = arith.maximumf %189, %194 : vector<128x2xf32>
    %201 = arith.maximumf %200, %199 : vector<128x2xf32>
    %202 = arith.subf %189, %201 : vector<128x2xf32>
    %203 = math.exp %202 : vector<128x2xf32>
    %204 = arith.subf %194, %201 : vector<128x2xf32>
    %205 = math.exp %204 : vector<128x2xf32>
    %206 = arith.subf %199, %201 : vector<128x2xf32>
    %207 = math.exp %206 : vector<128x2xf32>
    %208 = arith.addf %203, %205 : vector<128x2xf32>
    %209 = arith.addf %208, %207 : vector<128x2xf32>
    %210 = tpu.reciprocal %209 {approx = true} : vector<128x2xf32> -> vector<128x2xf32>
    %cst_97 = arith.constant 0.000000e+00 : f32
    %211 = vector.broadcast %cst_97 : f32 to vector<128x64xf32>
    %212 = arith.mulf %203, %210 : vector<128x2xf32>
    %213 = arith.truncf %212 : vector<128x2xf32> to vector<128x2xbf16>
    %cst_98 = arith.constant dense<0.000000e+00> : vector<128x64xf32>
    %214 = tpu.matmul %213, %122, %cst_98 {dimension_numbers = #tpu.dot_dimension_numbers<[1], [0], [0], [1], [0, 0, 1, 1], [], []>} : vector<128x2xbf16>, vector<2x64xbf16>, vector<128x64xf32> -> vector<128x64xf32>
    %215 = arith.mulf %214, %132 : vector<128x64xf32>
    %216 = arith.addf %211, %215 : vector<128x64xf32>
    %217 = arith.mulf %205, %210 : vector<128x2xf32>
    %218 = arith.truncf %217 : vector<128x2xf32> to vector<128x2xbf16>
    %cst_99 = arith.constant dense<0.000000e+00> : vector<128x64xf32>
    %219 = tpu.matmul %218, %122, %cst_99 {dimension_numbers = #tpu.dot_dimension_numbers<[1], [0], [0], [1], [0, 0, 1, 1], [], []>} : vector<128x2xbf16>, vector<2x64xbf16>, vector<128x64xf32> -> vector<128x64xf32>
    %220 = arith.mulf %219, %136 : vector<128x64xf32>
    %221 = arith.addf %216, %220 : vector<128x64xf32>
    %222 = arith.mulf %207, %210 : vector<128x2xf32>
    %223 = arith.truncf %222 : vector<128x2xf32> to vector<128x2xbf16>
    %cst_100 = arith.constant dense<0.000000e+00> : vector<128x64xf32>
    %224 = tpu.matmul %223, %122, %cst_100 {dimension_numbers = #tpu.dot_dimension_numbers<[1], [0], [0], [1], [0, 0, 1, 1], [], []>} : vector<128x2xbf16>, vector<2x64xbf16>, vector<128x64xf32> -> vector<128x64xf32>
    %225 = arith.mulf %224, %140 : vector<128x64xf32>
    %226 = arith.addf %221, %225 : vector<128x64xf32>
    %227 = arith.addf %184, %226 : vector<128x64xf32>
    %228 = arith.mulf %138, %131 : vector<128x64xf32>
    %229 = arith.truncf %228 : vector<128x64xf32> to vector<128x64xbf16>
    %cst_101 = arith.constant dense<0.000000e+00> : vector<128x2xf32>
    %230 = tpu.matmul %229, %120, %cst_101 {dimension_numbers = #tpu.dot_dimension_numbers<[1], [0], [0], [1], [0, 0, 1, 1], [], []>} : vector<128x64xbf16>, vector<64x2xbf16>, vector<128x2xf32> -> vector<128x2xf32>
    %cst_102 = arith.constant 0.176776692 : f32
    %231 = vector.broadcast %cst_102 : f32 to vector<128x2xf32>
    %232 = arith.mulf %230, %231 : vector<128x2xf32>
    %233 = arith.mulf %138, %135 : vector<128x64xf32>
    %234 = arith.truncf %233 : vector<128x64xf32> to vector<128x64xbf16>
    %cst_103 = arith.constant dense<0.000000e+00> : vector<128x2xf32>
    %235 = tpu.matmul %234, %120, %cst_103 {dimension_numbers = #tpu.dot_dimension_numbers<[1], [0], [0], [1], [0, 0, 1, 1], [], []>} : vector<128x64xbf16>, vector<64x2xbf16>, vector<128x2xf32> -> vector<128x2xf32>
    %cst_104 = arith.constant 0.176776692 : f32
    %236 = vector.broadcast %cst_104 : f32 to vector<128x2xf32>
    %237 = arith.mulf %235, %236 : vector<128x2xf32>
    %238 = arith.mulf %138, %139 : vector<128x64xf32>
    %239 = arith.truncf %238 : vector<128x64xf32> to vector<128x64xbf16>
    %cst_105 = arith.constant dense<0.000000e+00> : vector<128x2xf32>
    %240 = tpu.matmul %239, %120, %cst_105 {dimension_numbers = #tpu.dot_dimension_numbers<[1], [0], [0], [1], [0, 0, 1, 1], [], []>} : vector<128x64xbf16>, vector<64x2xbf16>, vector<128x2xf32> -> vector<128x2xf32>
    %cst_106 = arith.constant 0.176776692 : f32
    %241 = vector.broadcast %cst_106 : f32 to vector<128x2xf32>
    %242 = arith.mulf %240, %241 : vector<128x2xf32>
    %243 = arith.maximumf %232, %237 : vector<128x2xf32>
    %244 = arith.maximumf %243, %242 : vector<128x2xf32>
    %245 = arith.subf %232, %244 : vector<128x2xf32>
    %246 = math.exp %245 : vector<128x2xf32>
    %247 = arith.subf %237, %244 : vector<128x2xf32>
    %248 = math.exp %247 : vector<128x2xf32>
    %249 = arith.subf %242, %244 : vector<128x2xf32>
    %250 = math.exp %249 : vector<128x2xf32>
    %251 = arith.addf %246, %248 : vector<128x2xf32>
    %252 = arith.addf %251, %250 : vector<128x2xf32>
    %253 = tpu.reciprocal %252 {approx = true} : vector<128x2xf32> -> vector<128x2xf32>
    %cst_107 = arith.constant 0.000000e+00 : f32
    %254 = vector.broadcast %cst_107 : f32 to vector<128x64xf32>
    %255 = arith.mulf %246, %253 : vector<128x2xf32>
    %256 = arith.truncf %255 : vector<128x2xf32> to vector<128x2xbf16>
    %cst_108 = arith.constant dense<0.000000e+00> : vector<128x64xf32>
    %257 = tpu.matmul %256, %122, %cst_108 {dimension_numbers = #tpu.dot_dimension_numbers<[1], [0], [0], [1], [0, 0, 1, 1], [], []>} : vector<128x2xbf16>, vector<2x64xbf16>, vector<128x64xf32> -> vector<128x64xf32>
    %258 = arith.mulf %257, %132 : vector<128x64xf32>
    %259 = arith.addf %254, %258 : vector<128x64xf32>
    %260 = arith.mulf %248, %253 : vector<128x2xf32>
    %261 = arith.truncf %260 : vector<128x2xf32> to vector<128x2xbf16>
    %cst_109 = arith.constant dense<0.000000e+00> : vector<128x64xf32>
    %262 = tpu.matmul %261, %122, %cst_109 {dimension_numbers = #tpu.dot_dimension_numbers<[1], [0], [0], [1], [0, 0, 1, 1], [], []>} : vector<128x2xbf16>, vector<2x64xbf16>, vector<128x64xf32> -> vector<128x64xf32>
    %263 = arith.mulf %262, %136 : vector<128x64xf32>
    %264 = arith.addf %259, %263 : vector<128x64xf32>
    %265 = arith.mulf %250, %253 : vector<128x2xf32>
    %266 = arith.truncf %265 : vector<128x2xf32> to vector<128x2xbf16>
    %cst_110 = arith.constant dense<0.000000e+00> : vector<128x64xf32>
    %267 = tpu.matmul %266, %122, %cst_110 {dimension_numbers = #tpu.dot_dimension_numbers<[1], [0], [0], [1], [0, 0, 1, 1], [], []>} : vector<128x2xbf16>, vector<2x64xbf16>, vector<128x64xf32> -> vector<128x64xf32>
    %268 = arith.mulf %267, %140 : vector<128x64xf32>
    %269 = arith.addf %264, %268 : vector<128x64xf32>
    %270 = arith.addf %227, %269 : vector<128x64xf32>
    %cst_111 = arith.constant 0.333333343 : f32
    %271 = vector.broadcast %cst_111 : f32 to vector<128x64xf32>
    %272 = arith.mulf %270, %271 : vector<128x64xf32>
    %c0_112 = arith.constant 0 : index
    %c0_113 = arith.constant 0 : index
    %273 = vector.load %arg12[%c0_112, %c0_113] : memref<128x64xf32, #tpu.memory_space<vmem>>, vector<128x64xf32>
    tpu.vector_store %arg12[%c0_112, %c0_113], %272 {strides = array<i32>} : memref<128x64xf32, #tpu.memory_space<vmem>>, vector<128x64xf32>,
    return
  }
}

</mosaic_0001>

<bundles_post_ra>
// kernel: gaea_forward.1
= control target key start
LH: loop header
LB: loop body
LE: loop exit
PB: predicated region body
PF: predicated region fallthrough
CT: control target
= control target key end

     0   :  { %v8499_v0 = vmov 1065369472   ;;  %vm75_vm0 = vcmask 261120   ;;  %s12193_s1 = inlined_call_operand.vmem [shape: f32[32,16], index: 1, kind: input, shape index: {}]   ;;  %s12194_s3 = inlined_call_operand.vmem [shape: f32[128,32], index: 3, kind: input, shape index: {}]   ;;  %s12195_s4 = inlined_call_operand.vmem [shape: f32[2,2,32,32], index: 4, kind: input, shape index: {}]   ;;  %s12196_s0 = inlined_call_operand.vmem [shape: f32[128,32], index: 0, kind: input, shape index: {}]   ;;  %s12197_s5 = inlined_call_operand.vmem [shape: f32[2,2,1,32], index: 5, kind: input, shape index: {}]   ;;  %s12198_s6 = inlined_call_operand.vmem [shape: f32[2,2,1,32], index: 6, kind: input, shape index: {}]   ;;  %s12199_s2 = inlined_call_operand.vmem [shape: f32[128,128], index: 2, kind: input, shape index: {}]   ;;  %s12200_s7 = inlined_call_operand.vmem [shape: f32[32,64], index: 7, kind: input, shape index: {}]   ;;  %s12201_s8 = inlined_call_operand.vmem [shape: f32[32,64], index: 8, kind: input, shape index: {}]   ;;  %s12202_s9 = inlined_call_operand.vmem [shape: f32[32,64], index: 9, kind: input, shape index: {}]   ;;  %s12203_s10 = inlined_call_operand.vmem [shape: f32[64,2], index: 10, kind: input, shape index: {}]   ;;  %s12204_s13 = inlined_call_operand.vmem [shape: f32[128,16], index: 13, kind: output, shape index: {1}]   ;;  %s12205_s11 = inlined_call_operand.vmem [shape: f32[2,64], index: 11, kind: input, shape index: {}]   ;;  %s12206_s12 = inlined_call_operand.vmem [shape: f32[128,64], index: 12, kind: output, shape index: {0}]  }
   0x1   :  { %7753 = vmatpush.bf16.msra.mxu3 %v8499_v0  ;;  %v71_v1 = vld [vmem:[%s12193_s1 + $0x10] sm:$0xff]  ;;  %v72_v2 = vld [vmem:[%s12193_s1 + $0x18] sm:$0xff]  ;;  %v69_v3 = vld [vmem:[%s12193_s1] sm:$0xff]  ;;  %155 = vmatpush.bf16.msra.mxu1 %v8499_v0 }
   0x2   :  { %v74_v4 = vpack.c.bf16 %v72_v2, %v71_v1  ;;  %v70_v5 = vld [vmem:[%s12193_s1 + $0x8] sm:$0xff]  ;;  %v57_v6 = vld [vmem:[%s12194_s3 + $0x60] sm:$0xff]  ;;  %v621_v8 = vld [vmem:[%s12195_s4 + $0x30] sm:$0xff] }
   0x3   :  { %v58_v7 = vld [vmem:[%s12194_s3 + $0x68] sm:$0xff]  ;;  %v73_v9 = vpack.c.bf16 %v70_v5, %v69_v3  ;;  %v622_v11 = vld [vmem:[%s12195_s4 + $0x38] sm:$0xff]  ;;  %v629_v12 = vpack.c.bf16 %v621_v8, %v621_v8  ;;  %v617_v13 = vld [vmem:[%s12195_s4 + $0x10] sm:$0xff] }
   0x4   :  { %7751 = vmatpush.bf16.msra.mxu2 %v74_v4  ;;  %v67_v10 = vpack.c.bf16 %v58_v7, %v57_v6  ;;  %v618_v14 = vld [vmem:[%s12195_s4 + $0x18] sm:$0xff]  ;;  %106 = vmatpush.bf16.msra.mxu0 %v74_v4  ;;  %v630_v15 = vpack.c.bf16 %v622_v11, %v622_v11  ;;  %v625_v16 = vpack.c.bf16 %v617_v13, %v617_v13  ;;  %v619_v18 = vld [vmem:[%s12195_s4 + $0x20] sm:$0xff]  ;;  %v620_v19 = vld [vmem:[%s12195_s4 + $0x28] sm:$0xff] }
   0x5   :  { %7754 = vmatpush.bf16.msra.mxu3 %v8499_v0  ;;  %v626_v17 = vpack.c.bf16 %v618_v14, %v618_v14  ;;  %v615_v20 = vld [vmem:[%s12195_s4] sm:$0xff]  ;;  %156 = vmatpush.bf16.msra.mxu1 %v8499_v0  ;;  %v762_v21 = vunpack.c.l.b16 %v629_v12  ;;  %v627_v22 = vpack.c.bf16 %v619_v18, %v619_v18  ;;  %v628_v23 = vpack.c.bf16 %v620_v19, %v620_v19  ;;  %v616_v24 = vld [vmem:[%s12195_s4 + $0x8] sm:$0xff]  ;;  %v59_v38 = vld [vmem:[%s12194_s3 + $0x70] sm:$0xff] }
   0x6   :  { %v623_v25 = vpack.c.bf16 %v615_v20, %v615_v20  ;;  %v763_v26 = vunpack.c.l.b16 %v630_v15  ;;  %v677_v27 = vunpack.c.l.b16 %v625_v16  ;;  %v624_v29 = vpack.c.bf16 %v616_v24, %v616_v24  ;;  %v60_v39 = vld [vmem:[%s12194_s3 + $0x78] sm:$0xff]  ;;  %v583_v41 = vld [vmem:[%s12196_s0] sm:$0xff]  ;;  %v584_v42 = vld [vmem:[%s12196_s0 + $0x8] sm:$0xff] }
   0x7   :  { %v678_v28 = vunpack.c.l.b16 %v626_v17  ;;  %v760_v30 = vunpack.c.l.b16 %v627_v22  ;;  %v761_v31 = vunpack.c.l.b16 %v628_v23  ;;  %v68_v40 = vpack.c.bf16 %v60_v39, %v59_v38  ;;  %v585_v48 = vld [vmem:[%s12196_s0 + $0x10] sm:$0xff]  ;;  %v586_v49 = vld [vmem:[%s12196_s0 + $0x18] sm:$0xff]  ;;  %v45_v55 = vld [vmem:[%s12194_s3] sm:$0xff] }
   0x8   :  { %7752 = vmatpush.bf16.msra.mxu2 %v73_v9  ;;  %7453 = vmatmul.msk.bf16.vlgmr.msra.gmra.mxu3 %vm75_vm0, %v67_v10  ;;  %v675_v32 = vunpack.c.l.b16 %v623_v25  ;;  %v765_v33 = vpack.c.b16 %v763_v26, %v762_v21  ;;  %v676_v35 = vunpack.c.l.b16 %v624_v29  ;;  %v599_v43 = vpack.c.bf16 %v583_v41, %v583_v41  ;;  %v46_v56 = vld [vmem:[%s12194_s3 + $0x8] sm:$0xff]  ;;  %v587_v58 = vld [vmem:[%s12196_s0 + $0x20] sm:$0xff]  ;;  %v47_v1 = vld [vmem:[%s12194_s3 + $0x10] sm:$0xff] }
   0x9   :  { %v680_v34 = vpack.c.b16 %v678_v28, %v677_v27  ;;  %107 = vmatpush.bf16.msra.mxu0 %v73_v9  ;;  %v764_v36 = vpack.c.b16 %v761_v31, %v760_v30  ;;  %v600_v44 = vpack.c.bf16 %v584_v42, %v584_v42  ;;  %v601_v50 = vpack.c.bf16 %v585_v48, %v585_v48  ;;  %v588_v59 = vld [vmem:[%s12196_s0 + $0x28] sm:$0xff]  ;;  %v48_v2 = vld [vmem:[%s12194_s3 + $0x18] sm:$0xff]  ;;  %v589_v4 = vld [vmem:[%s12196_s0 + $0x30] sm:$0xff] }
   0xa   :  { %774 = vmatpush.bf16.msrb.mxu3 %v765_v33  ;;  %v679_v37 = vpack.c.b16 %v676_v35, %v675_v32  ;;  %v647_v45 = vunpack.c.l.b16 %v599_v43  ;;  %v602_v51 = vpack.c.bf16 %v586_v49, %v586_v49  ;;  %v61_v57 = vpack.c.bf16 %v46_v56, %v45_v55  ;;  %v590_v5 = vld [vmem:[%s12196_s0 + $0x38] sm:$0xff]  ;;  %v49_v11 = vld [vmem:[%s12194_s3 + $0x20] sm:$0xff]  ;;  %v50_v12 = vld [vmem:[%s12194_s3 + $0x28] sm:$0xff] }
   0xb   :  { %7445 = vmatmul.msk.bf16.vlgmr.msra.gmra.mxu2 %vm75_vm0, %v67_v10  ;;  %v648_v46 = vunpack.c.l.b16 %v600_v44  ;;  %v649_v52 = vunpack.c.l.b16 %v601_v50  ;;  %v603_v60 = vpack.c.bf16 %v587_v58, %v587_v58  ;;  %v604_v61 = vpack.c.bf16 %v588_v59, %v588_v59  ;;  %v591_v14 = vld [vmem:[%s12196_s0 + $0x40] sm:$0xff]  ;;  %v592_v15 = vld [vmem:[%s12196_s0 + $0x48] sm:$0xff]  ;;  %v51_v21 = vld [vmem:[%s12194_s3 + $0x30] sm:$0xff] }
   0xc   :  { %713 = vmatpush.bf16.msrb.mxu2 %v680_v34  ;;  %v650_v53 = vunpack.c.l.b16 %v602_v51  ;;  %7447 = vmatmul.msk.bf16.vlgmr.msra.gmra.mxu1 %vm75_vm0, %v61_v57  ;;  %v62_v3 = vpack.c.bf16 %v48_v2, %v47_v1  ;;  %v605_v6 = vpack.c.bf16 %v589_v4, %v589_v4  ;;  %v606_v7 = vpack.c.bf16 %v590_v5, %v590_v5  ;;  %v52_v22 = vld [vmem:[%s12194_s3 + $0x38] sm:$0xff]  ;;  %v593_v24 = vld [vmem:[%s12196_s0 + $0x50] sm:$0xff]  ;;  %v53_v31 = vld [vmem:[%s12194_s3 + $0x40] sm:$0xff] }
   0xd   :  { %v8630_v47 = vpack.c.b16 %v648_v46, %v647_v45  ;;  %7439 = vmatmul.msk.bf16.vlgmr.msra.gmra.mxu0 %vm75_vm0, %v61_v57  ;;  %v651_v62 = vunpack.c.l.b16 %v603_v60  ;;  %v652_v63 = vunpack.c.l.b16 %v604_v61  ;;  %v63_v13 = vpack.c.bf16 %v50_v12, %v49_v11  ;;  %v594_v25 = vld [vmem:[%s12196_s0 + $0x58] sm:$0xff]  ;;  %v54_v32 = vld [vmem:[%s12194_s3 + $0x48] sm:$0xff]  ;;  %v595_v34 = vld [vmem:[%s12196_s0 + $0x60] sm:$0xff] }
   0xe   :  { %775 = vmatpush.bf16.msrb.mxu3 %v764_v36  ;;  %v8642_v54 = vpack.c.b16 %v650_v53, %v649_v52  ;;  %v653_v8 = vunpack.c.l.b16 %v605_v6  ;;  %v654_v9 = vunpack.c.l.b16 %v606_v7  ;;  %v607_v16 = vpack.c.bf16 %v591_v14, %v591_v14  ;;  %v596_v35 = vld [vmem:[%s12196_s0 + $0x68] sm:$0xff]  ;;  %v55_v41 = vld [vmem:[%s12194_s3 + $0x50] sm:$0xff]  ;;  %v56_v42 = vld [vmem:[%s12194_s3 + $0x58] sm:$0xff] }
   0xf   :  { %v8662_v0 = vpack.c.b16 %v652_v63, %v651_v62  ;;  %v608_v17 = vpack.c.bf16 %v592_v15, %v592_v15  ;;  %v64_v23 = vpack.c.bf16 %v52_v22, %v51_v21  ;;  %v609_v26 = vpack.c.bf16 %v593_v24, %v593_v24  ;;  %v597_v44 = vld [vmem:[%s12196_s0 + $0x70] sm:$0xff]  ;;  %v598_v45 = vld [vmem:[%s12196_s0 + $0x78] sm:$0xff]  ;;  %v850_v51 = vld [vmem:[%s12197_s5 + $0x1] sm:$0x1] }
  0x10   :  { %714 = vmatpush.bf16.msrb.mxu2 %v679_v37  ;;  %v8682_v10 = vpack.c.b16 %v654_v9, %v653_v8  ;;  %v655_v18 = vunpack.c.l.b16 %v607_v16  ;;  %v610_v27 = vpack.c.bf16 %v594_v25, %v594_v25  ;;  %v65_v33 = vpack.c.bf16 %v54_v32, %v53_v31  ;;  %v849_v57 = vld [vmem:[%s12197_s5] sm:$0x1] }
  0x11   :  { %12409 = vst [vmem:[#allocation2_spill] sm:$0xff] %v8662_v0  ;;  %v656_v19 = vunpack.c.l.b16 %v608_v17  ;;  %v657_v28 = vunpack.c.l.b16 %v609_v26  ;;  %v611_v36 = vpack.c.bf16 %v595_v34, %v595_v34  ;;  %v612_v37 = vpack.c.bf16 %v596_v35, %v596_v35 }
  0x12   :  { %12410 = vst [vmem:[#allocation3_spill] sm:$0xff] %v8682_v10  ;;  %v658_v29 = vunpack.c.l.b16 %v610_v27  ;;  %v66_v43 = vpack.c.bf16 %v56_v42, %v55_v41  ;;  %v613_v48 = vpack.c.bf16 %v597_v44, %v597_v44  ;;  %v614_v49 = vpack.c.bf16 %v598_v45, %v598_v45 }
  0x13   :  { %v8702_v20 = vpack.c.b16 %v656_v19, %v655_v18  ;;  %v659_v38 = vunpack.c.l.b16 %v611_v36  ;;  %v660_v39 = vunpack.c.l.b16 %v612_v37  ;;  %v852_v55 = vpack.c.bf16 %v850_v51, %v850_v51 }
  0x14   :  { %v8722_v30 = vpack.c.b16 %v658_v29, %v657_v28  ;;  %v661_v52 = vunpack.c.l.b16 %v613_v48  ;;  %v662_v53 = vunpack.c.l.b16 %v614_v49  ;;  %v851_v59 = vpack.c.bf16 %v849_v57, %v849_v57 }
  0x15   :  { %12411 = vst [vmem:[#allocation4_spill] sm:$0xff] %v8702_v20  ;;  %v1038_v56 = vsel %vm75_vm0, %v852_v55, 0 }
  0x16   :  { %12412 = vst [vmem:[#allocation5_spill] sm:$0xff] %v8722_v30  ;;  %1047 = vmatpush.bf16.xpose.msrb.mxu1 %v1038_v56  ;;  %v8775_v60 = vpack.c.b16 %v662_v53, %v661_v52  ;;  %v922_v61 = vsel %vm75_vm0, %v851_v59, 0 }
  0x17   :  { %931 = vmatpush.bf16.xpose.msrb.mxu0 %v922_v61 }
  0x18   :  { %7454 = vmatmul.msk.bf16.gmra.mxu3 %vm75_vm0, %v68_v40  ;;  %12417 = vst [vmem:[#allocation10_spill] sm:$0xff] %v8775_v60 }
  0x1b   :  { %7446 = vmatmul.msk.bf16.gmra.mxu2 %vm75_vm0, %v68_v40  ;;  %v8742_v40 = vpack.c.b16 %v660_v39, %v659_v38 }
  0x1c   :  { %7448 = vmatmul.msk.bf16.gmra.mxu1 %vm75_vm0, %v62_v3 }
  0x1d   :  { %7440 = vmatmul.msk.bf16.gmra.mxu0 %vm75_vm0, %v62_v3  ;;  %12413 = vst [vmem:[#allocation6_spill] sm:$0xff] %v8742_v40 }
  0x28   :  { %7463 = vmatmul.msk.bf16.vlgmr.msrb.gmra.mxu3 %vm75_vm0, %v8630_v47 }
  0x2b   :  { %7455 = vmatmul.msk.bf16.vlgmr.msrb.gmra.mxu2 %vm75_vm0, %v8630_v47 }
  0x2c   :  { %7449 = vmatmul.msk.bf16.gmra.mxu1 %vm75_vm0, %v63_v13 }
  0x2d   :  { %7441 = vmatmul.msk.bf16.gmra.mxu0 %vm75_vm0, %v63_v13 }
  0x38   :  { %7464 = vmatmul.msk.bf16.gmra.mxu3 %vm75_vm0, %v8642_v54 }
  0x3b   :  { %7456 = vmatmul.msk.bf16.gmra.mxu2 %vm75_vm0, %v8642_v54 }
  0x3c   :  { %7450 = vmatmul.msk.bf16.gmra.mxu1 %vm75_vm0, %v64_v23 }
  0x3d   :  { %7442 = vmatmul.msk.bf16.gmra.mxu0 %vm75_vm0, %v64_v23 }
  0x48   :  { %7465 = vmatmul.msk.bf16.gmra.mxu3 %vm75_vm0, %v8662_v0 }
  0x4b   :  { %7457 = vmatmul.msk.bf16.gmra.mxu2 %vm75_vm0, %v8662_v0 }
  0x4c   :  { %7451 = vmatmul.msk.bf16.gmra.mxu1 %vm75_vm0, %v65_v33 }
  0x4d   :  { %7443 = vmatmul.msk.bf16.gmra.mxu0 %vm75_vm0, %v65_v33 }
  0x58   :  { %7466 = vmatmul.msk.bf16.gmra.mxu3 %vm75_vm0, %v8682_v10 }
  0x5b   :  { %7458 = vmatmul.msk.bf16.gmra.mxu2 %vm75_vm0, %v8682_v10 }
  0x5c   :  { %7452 = vmatmul.msk.bf16.gmra.mxu1 %vm75_vm0, %v66_v43 }
  0x5d   :  { %7444 = vmatmul.msk.bf16.gmra.mxu0 %vm75_vm0, %v66_v43 }
  0x68   :  { %7467 = vmatmul.msk.bf16.gmra.mxu3 %vm75_vm0, %v8702_v20 }
  0x6b   :  { %7459 = vmatmul.msk.bf16.gmra.mxu2 %vm75_vm0, %v8702_v20 }
  0x78   :  { %7468 = vmatmul.msk.bf16.gmra.mxu3 %vm75_vm0, %v8722_v30 }
  0x7b   :  { %7460 = vmatmul.msk.bf16.gmra.mxu2 %vm75_vm0, %v8722_v30 }
  0x88   :  { %7469 = vmatmul.msk.bf16.gmra.mxu3 %vm75_vm0, %v8742_v40 }
  0x89   :  { %v8800_v22 = vpop.f32.mrf.mxu1 }
  0x8a   :  { %12423 = vst [vmem:[#allocation16_spill] sm:$0xff] %v8800_v22  ;;  %v8802_v24 = vpop.f32.mrf.mxu0 }
  0x8b   :  { %v8760_v46 = vpop.f32.mrf.mxu3  ;;  %7461 = vmatmul.msk.bf16.gmra.mxu2 %vm75_vm0, %v8742_v40  ;;  %12424 = vst [vmem:[#allocation17_spill] sm:$0xff] %v8802_v24 }
  0x8c   :  { %12414 = vst [vmem:[#allocation7_spill] sm:$0xff] %v8760_v46 }
  0x8e   :  { %v8764_v50 = vpop.f32.mrf.mxu2 }
  0x8f   :  { %12415 = vst [vmem:[#allocation8_spill] sm:$0xff] %v8764_v50 }
  0x91   :  { %v8806_v36 = vpop.f32.mrf.mxu1 }
  0x92   :  { %12425 = vst [vmem:[#allocation18_spill] sm:$0xff] %v8806_v36  ;;  %v8812_v39 = vpop.f32.mrf.mxu0 }
  0x93   :  { %v8773_v58 = vpop.f32.mrf.mxu3  ;;  %12426 = vst [vmem:[#allocation19_spill] sm:$0xff] %v8812_v39 }
  0x94   :  { %12416 = vst [vmem:[#allocation9_spill] sm:$0xff] %v8773_v58 }
  0x96   :  { %v8778_v62 = vpop.f32.mrf.mxu2 }
  0x97   :  { %12418 = vst [vmem:[#allocation11_spill] sm:$0xff] %v8778_v62 }
  0x98   :  { %7470 = vmatmul.msk.bf16.gmra.mxu3 %vm75_vm0, %v8775_v60 }
  0x99   :  { %v8816_v45 = vpop.f32.mrf.mxu1 }
  0x9a   :  { %12427 = vst [vmem:[#allocation20_spill] sm:$0xff] %v8816_v45  ;;  %v8818_v53 = vpop.f32.mrf.mxu0 }
  0x9b   :  { %v8782_v63 = vpop.f32.mrf.mxu3  ;;  %7462 = vmatmul.msk.bf16.gmra.mxu2 %vm75_vm0, %v8775_v60  ;;  %12428 = vst [vmem:[#allocation21_spill] sm:$0xff] %v8818_v53 }
  0x9c   :  { %12419 = vst [vmem:[#allocation12_spill] sm:$0xff] %v8782_v63 }
  0x9e   :  { %v8786_v1 = vpop.f32.mrf.mxu2 }
  0x9f   :  { %12420 = vst [vmem:[#allocation13_spill] sm:$0xff] %v8786_v1 }
  0xa3   :  { %v8788_v2 = vpop.f32.mrf.mxu3 }
  0xa4   :  { %12421 = vst [vmem:[#allocation14_spill] sm:$0xff] %v8788_v2 }
  0xa6   :  { %v8790_v3 = vpop.f32.mrf.mxu2 }
  0xa7   :  { %12422 = vst [vmem:[#allocation15_spill] sm:$0xff] %v8790_v3 }
  0xab   :  { %v777_v4 = vpop.f32.mrf.mxu3 }
  0xac   :  { %v833_v6 = vpack.c.bf16 %v777_v4, %v777_v4 }
  0xae   :  { %v716_v5 = vpop.f32.mrf.mxu2  ;;  %v989_v11 = vunpack.c.l.b16 %v833_v6 }
  0xaf   :  { %v817_v7 = vpack.c.bf16 %v716_v5, %v716_v5  ;;  %v8828_v5 = vpop.f32.mrf.mxu1 }
  0xb0   :  { %12429 = vst [vmem:[#allocation22_spill] sm:$0xff] %v8828_v5 }
  0xb1   :  { %v873_v14 = vunpack.c.l.b16 %v817_v7  ;;  %v8830_v7 = vpop.f32.mrf.mxu0 }
  0xb2   :  { %12430 = vst [vmem:[#allocation23_spill] sm:$0xff] %v8830_v7 }
  0xb3   :  { %v779_v8 = vpop.f32.mrf.mxu3 }
  0xb4   :  { %v834_v9 = vpack.c.bf16 %v779_v8, %v779_v8 }
  0xb6   :  { %v990_v12 = vunpack.c.l.b16 %v834_v9  ;;  %v718_v13 = vpop.f32.mrf.mxu2 }
  0xb7   :  { %v818_v15 = vpack.c.bf16 %v718_v13, %v718_v13 }
  0xb8   :  { %v8792_v16 = vpack.c.b16 %v990_v12, %v989_v11 }
  0xb9   :  { %v874_v17 = vunpack.c.l.b16 %v818_v15 }
  0xba   :  { %7479 = vmatmul.msk.bf16.vlgmr.msrb.gmra.mxu1 %vm75_vm0, %v8792_v16 }
  0xbb   :  { %v8796_v18 = vpack.c.b16 %v874_v17, %v873_v14  ;;  %v782_v19 = vpop.f32.mrf.mxu3 }
  0xbc   :  { %v835_v23 = vpack.c.bf16 %v782_v19, %v782_v19 }
  0xbd   :  { %7471 = vmatmul.msk.bf16.vlgmr.msrb.gmra.mxu0 %vm75_vm0, %v8796_v18 }
  0xbe   :  { %v721_v21 = vpop.f32.mrf.mxu2  ;;  %v991_v28 = vunpack.c.l.b16 %v835_v23 }
  0xbf   :  { %v819_v25 = vpack.c.bf16 %v721_v21, %v721_v21  ;;  %v8832_v21 = vpop.f32.mrf.mxu1 }
  0xc0   :  { %12431 = vst [vmem:[#allocation24_spill] sm:$0xff] %v8832_v21 }
  0xc1   :  { %v875_v32 = vunpack.c.l.b16 %v819_v25 }
  0xc3   :  { %v784_v26 = vpop.f32.mrf.mxu3 }
  0xc4   :  { %v836_v27 = vpack.c.bf16 %v784_v26, %v784_v26  ;;  %v8838_v26 = vpop.f32.mrf.mxu0 }
  0xc5   :  { %12432 = vst [vmem:[#allocation25_spill] sm:$0xff] %v8838_v26  ;;  %v543_v26 = vld [vmem:[%s12199_s2 + $0x40] sm:$0xff] }
  0xc6   :  { %v992_v29 = vunpack.c.l.b16 %v836_v27  ;;  %v723_v31 = vpop.f32.mrf.mxu2  ;;  %vm559_vm14 = vcmp.gt.f32.partialorder %v543_v26, 0.0 }
  0xc7   :  { %v820_v33 = vpack.c.bf16 %v723_v31, %v723_v31  ;;  %v8844_v31 = vpop.f32.mrf.mxu1 }
  0xc8   :  { %v8804_v34 = vpack.c.b16 %v992_v29, %v991_v28  ;;  %12433 = vst [vmem:[#allocation26_spill] sm:$0xff] %v8844_v31 }
  0xc9   :  { %v876_v35 = vunpack.c.l.b16 %v820_v33 }
  0xca   :  { %7480 = vmatmul.msk.bf16.gmra.mxu1 %vm75_vm0, %v8804_v34 }
  0xcb   :  { %v787_v37 = vpop.f32.mrf.mxu3  ;;  %v8810_v38 = vpack.c.b16 %v876_v35, %v875_v32 }
  0xcc   :  { %v837_v42 = vpack.c.bf16 %v787_v37, %v787_v37 }
  0xcd   :  { %7472 = vmatmul.msk.bf16.gmra.mxu0 %vm75_vm0, %v8810_v38 }
  0xce   :  { %v726_v41 = vpop.f32.mrf.mxu2  ;;  %v993_v49 = vunpack.c.l.b16 %v837_v42 }
  0xcf   :  { %v821_v43 = vpack.c.bf16 %v726_v41, %v726_v41  ;;  %v8846_v41 = vpop.f32.mrf.mxu0 }
  0xd0   :  { %12434 = vst [vmem:[#allocation27_spill] sm:$0xff] %v8846_v41 }
  0xd1   :  { %v877_v55 = vunpack.c.l.b16 %v821_v43 }
  0xd3   :  { %v789_v44 = vpop.f32.mrf.mxu3 }
  0xd4   :  { %v838_v48 = vpack.c.bf16 %v789_v44, %v789_v44 }
  0xd6   :  { %v994_v51 = vunpack.c.l.b16 %v838_v48  ;;  %v728_v52 = vpop.f32.mrf.mxu2 }
  0xd7   :  { %v822_v56 = vpack.c.bf16 %v728_v52, %v728_v52 }
  0xd8   :  { %v8820_v57 = vpack.c.b16 %v994_v51, %v993_v49 }
  0xd9   :  { %v878_v59 = vunpack.c.l.b16 %v822_v56 }
  0xda   :  { %7481 = vmatmul.msk.bf16.gmra.mxu1 %vm75_vm0, %v8820_v57 }
  0xdb   :  { %v792_v61 = vpop.f32.mrf.mxu3  ;;  %v8824_v4 = vpack.c.b16 %v878_v59, %v877_v55  ;;  %v8854_v59 = vpop.f32.mrf.mxu1 }
  0xdc   :  { %v839_v8 = vpack.c.bf16 %v792_v61, %v792_v61  ;;  %12435 = vst [vmem:[#allocation28_spill] sm:$0xff] %v8854_v59 }
  0xdd   :  { %7473 = vmatmul.msk.bf16.gmra.mxu0 %vm75_vm0, %v8824_v4 }
  0xde   :  { %v731_v6 = vpop.f32.mrf.mxu2  ;;  %v995_v13 = vunpack.c.l.b16 %v839_v8 }
  0xdf   :  { %v823_v9 = vpack.c.bf16 %v731_v6, %v731_v6  ;;  %v8858_v6 = vpop.f32.mrf.mxu0 }
  0xe0   :  { %12436 = vst [vmem:[#allocation29_spill] sm:$0xff] %v8858_v6 }
  0xe1   :  { %v879_v17 = vunpack.c.l.b16 %v823_v9 }
  0xe3   :  { %v794_v11 = vpop.f32.mrf.mxu3 }
  0xe4   :  { %v840_v12 = vpack.c.bf16 %v794_v11, %v794_v11 }
  0xe6   :  { %v996_v14 = vunpack.c.l.b16 %v840_v12  ;;  %v733_v15 = vpop.f32.mrf.mxu2 }
  0xe7   :  { %v824_v19 = vpack.c.bf16 %v733_v15, %v733_v15 }
  0xe8   :  { %v8834_v23 = vpack.c.b16 %v996_v14, %v995_v13  ;;  %v8860_v13 = vpop.f32.mrf.mxu1 }
  0xe9   :  { %v880_v25 = vunpack.c.l.b16 %v824_v19  ;;  %12437 = vst [vmem:[#allocation30_spill] sm:$0xff] %v8860_v13  ;;  %v545_v13 = vld [vmem:[%s12199_s2 + $0x50] sm:$0xff] }
  0xea   :  { %7482 = vmatmul.msk.bf16.gmra.mxu1 %vm75_vm0, %v8834_v23 }
  0xeb   :  { %v797_v27 = vpop.f32.mrf.mxu3  ;;  %v8840_v28 = vpack.c.b16 %v880_v25, %v879_v17 }
  0xec   :  { %v841_v32 = vpack.c.bf16 %v797_v27, %v797_v27 }
  0xed   :  { %7474 = vmatmul.msk.bf16.gmra.mxu0 %vm75_vm0, %v8840_v28 }
  0xee   :  { %v736_v29 = vpop.f32.mrf.mxu2  ;;  %v997_v42 = vunpack.c.l.b16 %v841_v32 }
  0xef   :  { %v825_v33 = vpack.c.bf16 %v736_v29, %v736_v29  ;;  %v8864_v29 = vpop.f32.mrf.mxu0 }
  0xf0   :  { %12438 = vst [vmem:[#allocation31_spill] sm:$0xff] %v8864_v29 }
  0xf1   :  { %v881_v48 = vunpack.c.l.b16 %v825_v33 }
  0xf3   :  { %v799_v35 = vpop.f32.mrf.mxu3 }
  0xf4   :  { %v842_v37 = vpack.c.bf16 %v799_v35, %v799_v35 }
  0xf6   :  { %v998_v43 = vunpack.c.l.b16 %v842_v37  ;;  %v738_v44 = vpop.f32.mrf.mxu2 }
  0xf7   :  { %v826_v49 = vpack.c.bf16 %v738_v44, %v738_v44  ;;  %v8874_v44 = vpop.f32.mrf.mxu0 }
  0xf8   :  { %v8848_v51 = vpack.c.b16 %v998_v43, %v997_v42  ;;  %v8872_v42 = vpop.f32.mrf.mxu1  ;;  %12440 = vst [vmem:[#allocation33_spill] sm:$0xff] %v8874_v44 }
  0xf9   :  { %v882_v52 = vunpack.c.l.b16 %v826_v49  ;;  %12439 = vst [vmem:[#allocation32_spill] sm:$0xff] %v8872_v42 }
  0xfa   :  { %7483 = vmatmul.msk.bf16.gmra.mxu1 %vm75_vm0, %v8848_v51 }
  0xfb   :  { %v802_v55 = vpop.f32.mrf.mxu3  ;;  %v8852_v56 = vpack.c.b16 %v882_v52, %v881_v48 }
  0xfc   :  { %v843_v8 = vpack.c.bf16 %v802_v55, %v802_v55 }
  0xfd   :  { %7475 = vmatmul.msk.bf16.gmra.mxu0 %vm75_vm0, %v8852_v56 }
  0xfe   :  { %v741_v61 = vpop.f32.mrf.mxu2  ;;  %v999_v14 = vunpack.c.l.b16 %v843_v8 }
  0xff   :  { %v827_v9 = vpack.c.bf16 %v741_v61, %v741_v61 }
 0x101   :  { %v883_v19 = vunpack.c.l.b16 %v827_v9 }
 0x103   :  { %v804_v11 = vpop.f32.mrf.mxu3 }
 0x104   :  { %v844_v12 = vpack.c.bf16 %v804_v11, %v804_v11 }
 0x106   :  { %v1000_v15 = vunpack.c.l.b16 %v844_v12  ;;  %v743_v17 = vpop.f32.mrf.mxu2  ;;  %v8500_v12 = vmov 0  }
 0x107   :  { %v828_v25 = vpack.c.bf16 %v743_v17, %v743_v17  ;;  %7760 = vset.pattern.permute.xlu1 %v8500_v12  ;;  %7761 = vset.pattern.permute.xlu0 %v8500_v12  ;;  %v8878_v17 = vpop.f32.mrf.mxu1 }
 0x108   :  { %v8862_v27 = vpack.c.b16 %v1000_v15, %v999_v14  ;;  %7762 = vset.pattern.permute.xlu2 %v8500_v12  ;;  %12441 = vst [vmem:[#allocation34_spill] sm:$0xff] %v8878_v17 }
 0x109   :  { %v884_v32 = vunpack.c.l.b16 %v828_v25 }
 0x10a   :  { %7484 = vmatmul.msk.bf16.gmra.mxu1 %vm75_vm0, %v8862_v27 }
 0x10b   :  { %v807_v33 = vpop.f32.mrf.mxu3  ;;  %v8868_v35 = vpack.c.b16 %v884_v32, %v883_v19  ;;  %v8884_v32 = vpop.f32.mrf.mxu0 }
 0x10c   :  { %v845_v43 = vpack.c.bf16 %v807_v33, %v807_v33  ;;  %12442 = vst [vmem:[#allocation35_spill] sm:$0xff] %v8884_v32 }
 0x10d   :  { %7476 = vmatmul.msk.bf16.gmra.mxu0 %vm75_vm0, %v8868_v35 }
 0x10e   :  { %v746_v37 = vpop.f32.mrf.mxu2  ;;  %v1001_v55 = vunpack.c.l.b16 %v845_v43 }
 0x10f   :  { %v829_v48 = vpack.c.bf16 %v746_v37, %v746_v37 }
 0x111   :  { %v885_v9 = vunpack.c.l.b16 %v829_v48 }
 0x113   :  { %v809_v49 = vpop.f32.mrf.mxu3 }
 0x114   :  { %v846_v52 = vpack.c.bf16 %v809_v49, %v809_v49  ;;  %v8888_v49 = vpop.f32.mrf.mxu1 }
 0x115   :  { %12443 = vst [vmem:[#allocation36_spill] sm:$0xff] %v8888_v49 }
 0x116   :  { %v1002_v61 = vunpack.c.l.b16 %v846_v52  ;;  %v748_v8 = vpop.f32.mrf.mxu2 }
 0x117   :  { %v830_v11 = vpack.c.bf16 %v748_v8, %v748_v8 }
 0x118   :  { %v8876_v14 = vpack.c.b16 %v1002_v61, %v1001_v55 }
 0x119   :  { %v886_v15 = vunpack.c.l.b16 %v830_v11  ;;  %v8890_v11 = vpop.f32.mrf.mxu0 }
 0x11a   :  { %7485 = vmatmul.msk.bf16.gmra.mxu1 %vm75_vm0, %v8876_v14  ;;  %12444 = vst [vmem:[#allocation37_spill] sm:$0xff] %v8890_v11 }
 0x11b   :  { %v8882_v19 = vpack.c.b16 %v886_v15, %v885_v9  ;;  %v812_v25 = vpop.f32.mrf.mxu3 }
 0x11c   :  { %v847_v37 = vpack.c.bf16 %v812_v25, %v812_v25 }
 0x11d   :  { %7477 = vmatmul.msk.bf16.gmra.mxu0 %vm75_vm0, %v8882_v19 }
 0x11e   :  { %v751_v33 = vpop.f32.mrf.mxu2  ;;  %v1003_v55 = vunpack.c.l.b16 %v847_v37 }
 0x11f   :  { %v831_v43 = vpack.c.bf16 %v751_v33, %v751_v33  ;;  %v8900_v33 = vpop.f32.mrf.mxu1 }
 0x120   :  { %12445 = vst [vmem:[#allocation38_spill] sm:$0xff] %v8900_v33 }
 0x121   :  { %v887_v9 = vunpack.c.l.b16 %v831_v43  ;;  %v8902_v37 = vpop.f32.mrf.mxu0  ;;  %v1032_v43 = vsel %vm75_vm0, %v8876_v14, 0 }
 0x122   :  { %12446 = vst [vmem:[#allocation39_spill] sm:$0xff] %v8902_v37 }
 0x123   :  { %v814_v48 = vpop.f32.mrf.mxu3 }
 0x124   :  { %v848_v52 = vpack.c.bf16 %v814_v48, %v814_v48 }
 0x126   :  { %v1004_v61 = vunpack.c.l.b16 %v848_v52  ;;  %v753_v8 = vpop.f32.mrf.mxu2  ;;  %v1029_v52 = vsel %vm75_vm0, %v8862_v27, 0 }
 0x127   :  { %v832_v12 = vpack.c.bf16 %v753_v8, %v753_v8 }
 0x128   :  { %v1012_v15 = vpack.c.b16 %v1004_v61, %v1003_v55  ;;  %v913_v55 = vsel %vm75_vm0, %v8868_v35, 0 }
 0x129   :  { %v888_v3 = vunpack.c.l.b16 %v832_v12  ;;  %v910_v12 = vsel %vm75_vm0, %v8852_v56, 0 }
 0x12a   :  { %7486 = vmatmul.msk.bf16.gmra.mxu1 %vm75_vm0, %v1012_v15  ;;  %v1035_v50 = vsel %vm75_vm0, %v1012_v15, 0 }
 0x12b   :  { %v8894_v32 = vpack.c.b16 %v888_v3, %v887_v9  ;;  %1108 = vmatpush.bf16.xpose.msra.mxu3 %v1035_v50  ;;  %v916_v3 = vsel %vm75_vm0, %v8882_v19, 0  ;;  %v1026_v9 = vsel %vm75_vm0, %v8848_v51, 0 }
 0x12d   :  { %7478 = vmatmul.msk.bf16.gmra.mxu0 %vm75_vm0, %v8894_v32  ;;  %v919_v25 = vsel %vm75_vm0, %v8894_v32, 0 }
 0x12e   :  { %1092 = vmatpush.bf16.xpose.msra.mxu2 %v919_v25 }
 0x133   :  { %1109 = vmatpush.bf16.xpose.msra.mxu3 %v1032_v43 }
 0x136   :  { %1093 = vmatpush.bf16.xpose.msra.mxu2 %v916_v3  ;;  %v1023_v3 = vsel %vm75_vm0, %v8834_v23, 0 }
 0x137   :  { %v1049_v50 = vpop.f32.mrf.mxu1 }
 0x138   :  { %1203 = vperm.xlu1 %7760, %v1049_v50   ;;  %v907_v50 = vsel %vm75_vm0, %v8840_v28, 0 }
 0x13a   :  { %v933_v48 = vpop.f32.mrf.mxu0 }
 0x13b   :  { %1110 = vmatpush.bf16.xpose.msra.mxu3 %v1029_v52  ;;  %1123 = vperm.xlu0 %7761, %v933_v48  }
 0x13e   :  { %1094 = vmatpush.bf16.xpose.msra.mxu2 %v913_v55  ;;  %v1020_v55 = vsel %vm75_vm0, %v8820_v57, 0 }
 0x13f   :  { %v1051_v61 = vpop.f32.mrf.mxu1 }
 0x140   :  { %1208 = vperm.xlu1 %7760, %v1051_v61   ;;  %v904_v61 = vsel %vm75_vm0, %v8824_v4, 0 }
 0x142   :  { %v935_v8 = vpop.f32.mrf.mxu0 }
 0x143   :  { %1111 = vmatpush.bf16.xpose.msra.mxu3 %v1026_v9  ;;  %1128 = vperm.xlu0 %7761, %v935_v8  }
 0x146   :  { %1095 = vmatpush.bf16.xpose.msra.mxu2 %v910_v12  ;;  %v1017_v12 = vsel %vm75_vm0, %v8804_v34, 0 }
 0x147   :  { %v1054_v25 = vpop.f32.mrf.mxu1 }
 0x14a   :  { %v938_v43 = vpop.f32.mrf.mxu0 }
 0x14b   :  { %1112 = vmatpush.bf16.xpose.msra.mxu3 %v1023_v3  ;;  %1213 = vperm.xlu0 %7761, %v1054_v25   ;;  %v901_v25 = vsel %vm75_vm0, %v8810_v38, 0 }
 0x14c   :  { %1133 = vperm.xlu2 %7762, %v938_v43  }
 0x14e   :  { %1096 = vmatpush.bf16.xpose.msra.mxu2 %v907_v50  ;;  %v1014_v50 = vsel %vm75_vm0, %v8792_v16, 0 }
 0x14f   :  { %v1056_v48 = vpop.f32.mrf.mxu1 }
 0x150   :  { %1218 = vperm.xlu1 %7760, %v1056_v48   ;;  %v854_v48 = vld [vmem:[%s12198_s6 + $0x1] sm:$0x1] }
 0x152   :  { %v940_v52 = vpop.f32.mrf.mxu0 }
 0x153   :  { %1113 = vmatpush.bf16.xpose.msra.mxu3 %v1020_v55  ;;  %v856_v55 = vpack.c.bf16 %v854_v48, %v854_v48 }
 0x154   :  { %1138 = vperm.xlu2 %7762, %v940_v52   ;;  %v898_v52 = vsel %vm75_vm0, %v8796_v18, 0 }
 0x156   :  { %1097 = vmatpush.bf16.xpose.msra.mxu2 %v904_v61  ;;  %v853_v61 = vld [vmem:[%s12198_s6] sm:$0x1] }
 0x157   :  { %v1059_v8 = vpop.f32.mrf.mxu1 }
 0x158   :  { %1223 = vperm.xlu1 %7760, %v1059_v8  }
 0x15a   :  { %v943_v9 = vpop.f32.mrf.mxu0 }
 0x15b   :  { %1114 = vmatpush.bf16.xpose.msra.mxu3 %v1017_v12 }
 0x15c   :  { %1143 = vperm.xlu2 %7762, %v943_v9   ;;  %v855_v9 = vpack.c.bf16 %v853_v61, %v853_v61  ;;  %v538_v61 = vld [vmem:[%s12199_s2 + $0x18] sm:$0xff] }
 0x15d   :  { %vm554_vm1 = vcmp.gt.f32.partialorder %v538_v61, 0.0 }
 0x15e   :  { %1098 = vmatpush.bf16.xpose.msra.mxu2 %v901_v25 }
 0x15f   :  { %v1061_v43 = vpop.f32.mrf.mxu1 }
 0x162   :  { %v945_v3 = vpop.f32.mrf.mxu0 }
 0x163   :  { %1115 = vmatpush.bf16.xpose.msra.mxu3 %v1014_v50  ;;  %1148 = vperm.xlu0 %7761, %v945_v3  }
 0x164   :  { %1228 = vperm.xlu2 %7762, %v1061_v43  }
 0x166   :  { %1099 = vmatpush.bf16.xpose.msra.mxu2 %v898_v52 }
 0x167   :  { %v1064_v8 = vpop.f32.mrf.mxu1 }
 0x16a   :  { %v948_v12 = vpop.f32.mrf.mxu0  ;;  %7488 = vmatmul.msk.bf16.vlgmr.msra.gmra.mxu3 %vm75_vm0, %v856_v55 }
 0x16b   :  { %1924 = vmatpush.bf16.msrb.mxu3 %v1012_v15  ;;  %1153 = vperm.xlu0 %7761, %v948_v12   ;;  %v535_v12 = vld [vmem:[%s12199_s2] sm:$0xff] }
 0x16c   :  { %1233 = vperm.xlu2 %7762, %v1064_v8   ;;  %vm551_vm2 = vcmp.gt.f32.partialorder %v535_v12, 0.0 }
 0x16d   :  { %7487 = vmatmul.msk.bf16.vlgmr.msra.gmra.mxu2 %vm75_vm0, %v855_v9 }
 0x16e   :  { %1819 = vmatpush.bf16.msrb.mxu2 %v8894_v32 }
 0x16f   :  { %1925 = vmatpush.bf16.msrb.mxu3 %v8876_v14  ;;  %v1066_v15 = vpop.f32.mrf.mxu1 }
 0x172   :  { %1820 = vmatpush.bf16.msrb.mxu2 %v8882_v19  ;;  %v950_v32 = vpop.f32.mrf.mxu0 }
 0x173   :  { %1926 = vmatpush.bf16.msrb.mxu3 %v8862_v27  ;;  %1238 = vperm.xlu0 %7761, %v1066_v15  }
 0x174   :  { %1158 = vperm.xlu1 %7760, %v950_v32  }
 0x176   :  { %1821 = vmatpush.bf16.msrb.mxu2 %v8868_v35 }
 0x177   :  { %1927 = vmatpush.bf16.msrb.mxu3 %v8848_v51  ;;  %v1069_v14 = vpop.f32.mrf.mxu1 }
 0x17a   :  { %1822 = vmatpush.bf16.msrb.mxu2 %v8852_v56  ;;  %v953_v27 = vpop.f32.mrf.mxu0 }
 0x17b   :  { %1928 = vmatpush.bf16.msrb.mxu3 %v8834_v23  ;;  %1163 = vperm.xlu0 %7761, %v953_v27  }
 0x17c   :  { %1243 = vperm.xlu1 %7760, %v1069_v14  }
 0x17e   :  { %1823 = vmatpush.bf16.msrb.mxu2 %v8840_v28 }
 0x17f   :  { %1929 = vmatpush.bf16.msrb.mxu3 %v8820_v57  ;;  %v1071_v51 = vpop.f32.mrf.mxu1 }
 0x182   :  { %1824 = vmatpush.bf16.msrb.mxu2 %v8824_v4  ;;  %v955_v56 = vpop.f32.mrf.mxu0 }
 0x183   :  { %1930 = vmatpush.bf16.msrb.mxu3 %v8804_v34  ;;  %1248 = vperm.xlu0 %7761, %v1071_v51  }
 0x184   :  { %1168 = vperm.xlu2 %7762, %v955_v56  }
 0x186   :  { %1825 = vmatpush.bf16.msrb.mxu2 %v8810_v38 }
 0x187   :  { %1931 = vmatpush.bf16.msrb.mxu3 %v8792_v16  ;;  %v1074_v23 = vpop.f32.mrf.mxu1 }
 0x18a   :  { %1826 = vmatpush.bf16.msrb.mxu2 %v8796_v18  ;;  %v958_v28 = vpop.f32.mrf.mxu0 }
 0x18b   :  { %1173 = vperm.xlu0 %7761, %v958_v28   ;;  %v12207_v28 = vmov -9e+15  }
 0x18c   :  { %1253 = vperm.xlu2 %7762, %v1074_v23  }
 0x18f   :  { %v1076_v57 = vpop.f32.mrf.mxu1 }
 0x192   :  { %v960_v35 = vpop.f32.mrf.mxu0 }
 0x193   :  { %1258 = vperm.xlu0 %7761, %v1076_v57   ;;  %1178 = vperm.xlu1 %7760, %v960_v35   ;;  %v8978_v57 = vsel %vm554_vm1, 0.0, %v12207_v28 }
 0x197   :  { %v1079_v4 = vpop.f32.mrf.mxu1 }
 0x19a   :  { %v963_v34 = vpop.f32.mrf.mxu0 }
 0x19b   :  { %1263 = vperm.xlu1 %7760, %v1079_v4   ;;  %1183 = vperm.xlu0 %7761, %v963_v34   ;;  %v8982_v34 = vsel %vm551_vm2, 0.0, %v12207_v28 }
 0x19f   :  { %v1081_v38 = vpop.f32.mrf.mxu1 }
 0x1a2   :  { %v965_v19 = vpop.f32.mrf.mxu0 }
 0x1a3   :  { %1268 = vperm.xlu0 %7761, %v1081_v38   ;;  %1188 = vperm.xlu2 %7762, %v965_v19  }
 0x1a6   :  { %v8957_v48 = vpop.permute.xlu2 %1133 }
 0x1a7   :  { %v1084_v37 = vpop.f32.mrf.mxu1 }
 0x1aa   :  { %v968_v16 = vpop.f32.mrf.mxu0  ;;  %v1204_v18 = vpop.permute.xlu1 %1203 }
 0x1ab   :  { %1193 = vperm.xlu2 %7762, %v968_v16  }
 0x1ad   :  { %v1124_v25 = vpop.permute.xlu0 %1123 }
 0x1ae   :  { %v8964_v8 = vpop.permute.xlu2 %1138 }
 0x1b2   :  { %v1209_v3 = vpop.permute.xlu1 %1208 }
 0x1b5   :  { %v8955_v43 = vpop.permute.xlu0 %1128 }
 0x1b6   :  { %v8995_v28 = vpop.permute.xlu2 %1143 }
 0x1bd   :  { %v1214_v50 = vpop.permute.xlu0 %1213 }
 0x1c2   :  { %v1219_v52 = vpop.permute.xlu1 %1218 }
 0x1ca   :  { %v1224_v32 = vpop.permute.xlu1 %1223 }
 0x1d5   :  { %v8959_v55 = vpop.permute.xlu0 %1148 }
 0x1dd   :  { %v8971_v14 = vpop.permute.xlu0 %1153 }
 0x1ed   :  { %v1117_v9 = vpop.f32.mrf.mxu3 }
 0x1ee   :  { %v8969_v15 = vperm.slane %v1117_v9, 0 }
 0x1f0   :  { %v1101_v27 = vpop.f32.mrf.mxu2  ;;  %v1302_v51 = vadd.f32 %v8969_v15, %v1219_v52  ;;  %v1299_v56 = vadd.f32 %v8969_v15, %v1204_v18  ;;  %v1303_v4 = vadd.f32 %v8969_v15, %v1224_v32  ;;  %v1300_v16 = vadd.f32 %v8969_v15, %v1209_v3  ;;  %v539_v52 = vld [vmem:[%s12199_s2 + $0x20] sm:$0xff]  ;;  %v536_v32 = vld [vmem:[%s12199_s2 + $0x8] sm:$0xff] }
 0x1f1   :  { %v8975_v23 = vperm.slane %v1101_v27, 0  ;;  %vm555_vm6 = vcmp.gt.f32.partialorder %v539_v52, 0.0  ;;  %vm552_vm8 = vcmp.gt.f32.partialorder %v536_v32, 0.0  ;;  %v1301_v11 = vadd.f32 %v8969_v15, %v1214_v50  ;;  %v542_v32 = vld [vmem:[%s12199_s2 + $0x38] sm:$0xff] }
 0x1f2   :  { %vm1334_vm3 = vcmp.gt.f32.partialorder %v1302_v51, 0.0  ;;  %v1366_v35 = vmul.f32 0.2, %v1302_v51  ;;  %vm1331_vm4 = vcmp.gt.f32.partialorder %v1299_v56, 0.0  ;;  %v1363_v38 = vmul.f32 0.2, %v1299_v56 }
 0x1f3   :  { %v1283_v19 = vadd.f32 %v8975_v23, %v1124_v25  ;;  %v1367_v3 = vmul.f32 0.2, %v1303_v4  ;;  %vm1335_vm7 = vcmp.gt.f32.partialorder %v1303_v4, 0.0  ;;  %vm1332_vm9 = vcmp.gt.f32.partialorder %v1300_v16, 0.0 }
 0x1f4   :  { %v1398_v18 = vsel %vm1334_vm3, %v1302_v51, %v1366_v35  ;;  %v1395_v9 = vsel %vm1331_vm4, %v1299_v56, %v1363_v38  ;;  %v9000_v51 = vpop.permute.xlu1 %1158  ;;  %v1364_v56 = vmul.f32 0.2, %v1300_v16  ;;  %vm558_vm10 = vcmp.gt.f32.partialorder %v542_v32, 0.0 }
 0x1f5   :  { %v8990_v61 = vadd.f32 %v1398_v18, %v8978_v57  ;;  %vm1315_vm5 = vcmp.gt.f32.partialorder %v1283_v19, 0.0  ;;  %v1347_v12 = vmul.f32 0.2, %v1283_v19  ;;  %v1119_v27 = vpop.f32.mrf.mxu3  ;;  %v8998_v25 = vadd.f32 %v1395_v9, %v8982_v34 }
 0x1f6   :  { %v1239_v27 = vpop.permute.xlu0 %1238  ;;  %v12447_v9 = vmov -9e+15   ;;  %v1399_v6 = vsel %vm1335_vm7, %v1303_v4, %v1367_v3  ;;  %v1365_v50 = vmul.f32 0.2, %v1301_v11  ;;  %vm1333_vm13 = vcmp.gt.f32.partialorder %v1301_v11, 0.0 }
 0x1f7   :  { %1481 = vmax.xlane.f32.xlu1 %v8990_v61  ;;  %v1379_v35 = vsel %vm1315_vm5, %v1283_v19, %v1347_v12  ;;  %1475 = vmax.xlane.f32.xlu2 %v8998_v25  ;;  %v9009_v62 = vsel %vm555_vm6, 0.0, %v12447_v9  ;;  %v1306_v19 = vadd.f32 %v8969_v15, %v1239_v27  ;;  %v9013_v52 = vsel %vm552_vm8, 0.0, %v12447_v9 }
 0x1f8   :  { %v9005_v38 = vadd.f32 %v1379_v35, %v8982_v34  ;;  %v1103_v18 = vpop.f32.mrf.mxu2  ;;  %v1396_v12 = vsel %vm1332_vm9, %v1300_v16, %v1364_v56  ;;  %v9020_v35 = vadd.f32 %v1399_v6, %v9009_v62  ;;  %v1229_v16 = vpop.permute.xlu2 %1228  ;;  %v9032_v27 = vsel %vm558_vm10, 0.0, %v12447_v9 }
 0x1f9   :  { %v537_v18 = vld [vmem:[%s12199_s2 + $0x10] sm:$0xff]  ;;  %v9026_v4 = vadd.f32 %v1396_v12, %v9013_v52  ;;  %v1370_v3 = vmul.f32 0.2, %v1306_v19  ;;  %vm1338_vm11 = vcmp.gt.f32.partialorder %v1306_v19, 0.0  ;;  %v1397_v29 = vsel %vm1333_vm13, %v1301_v11, %v1365_v50 }
 0x1fa   :  { %1443 = vmax.xlane.f32.xlu0 %v9005_v38  ;;  %vm553_vm12 = vcmp.gt.f32.partialorder %v537_v18, 0.0  ;;  %v1304_v32 = vadd.f32 %v8969_v15, %v1229_v16  ;;  %v1284_v16 = vadd.f32 %v8975_v23, %v8955_v43 }
 0x1fb   :  { %v1402_v53 = vsel %vm1338_vm11, %v1306_v19, %v1370_v3  ;;  %v9035_v12 = vsel %vm553_vm12, 0.0, %v12447_v9 }
 0x1fc   :  { %v1244_v6 = vpop.permute.xlu1 %1243  ;;  %v9042_v18 = vadd.f32 %v1402_v53, %v9032_v27  ;;  %v9048_v19 = vadd.f32 %v1397_v29, %v9035_v12  ;;  %v1368_v11 = vmul.f32 0.2, %v1304_v32  ;;  %vm1336_vm2 = vcmp.gt.f32.partialorder %v1304_v32, 0.0 }
 0x1fd   :  { %v1307_v56 = vadd.f32 %v8969_v15, %v1244_v6  ;;  %v540_v6 = vld [vmem:[%s12199_s2 + $0x28] sm:$0xff]  ;;  %v9053_v53 = vsel %vm559_vm14, 0.0, %v12447_v9  ;;  %vm1316_vm3 = vcmp.gt.f32.partialorder %v1284_v16, 0.0 }
 0x1fe   :  { %vm556_vm1 = vcmp.gt.f32.partialorder %v540_v6, 0.0  ;;  %12448 = vst [vmem:[#allocation40_spill] sm:$0xff] %v9053_v53  ;;  %v1400_v39 = vsel %vm1336_vm2, %v1304_v32, %v1368_v11  ;;  %v541_v6 = vld [vmem:[%s12199_s2 + $0x30] sm:$0xff]  ;;  %v1285_v11 = vadd.f32 %v8975_v23, %v8957_v48  ;;  %v1286_v48 = vadd.f32 %v8975_v23, %v8964_v8  ;;  %v1164_v7 = vpop.permute.xlu0 %1163 }
 0x1ff   :  { %1483 = vmax.xlane.f32.xlu1 %v9020_v35  ;;  %1477 = vmax.xlane.f32.xlu2 %v9026_v4  ;;  %v1371_v1 = vmul.f32 0.2, %v1307_v56  ;;  %vm1339_vm15 = vcmp.gt.f32.partialorder %v1307_v56, 0.0  ;;  %v9058_v29 = vsel %vm556_vm1, 0.0, %v12447_v9  ;;  %vm557_vm4 = vcmp.gt.f32.partialorder %v541_v6, 0.0 }
 0x200   :  { %v1234_v3 = vpop.permute.xlu2 %1233  ;;  %12449 = vst [vmem:[#allocation41_spill] sm:$0xff] %v9058_v29  ;;  %v1349_v41 = vmul.f32 0.2, %v1285_v11  ;;  %vm1317_vm6 = vcmp.gt.f32.partialorder %v1285_v11, 0.0  ;;  %vm1318_vm7 = vcmp.gt.f32.partialorder %v1286_v48, 0.0  ;;  %v1290_v8 = vadd.f32 %v8975_v23, %v9000_v51 }
 0x201   :  { %v1403_v50 = vsel %vm1339_vm15, %v1307_v56, %v1371_v1  ;;  %v1305_v26 = vadd.f32 %v8969_v15, %v1234_v3  ;;  %v9068_v1 = vadd.f32 %v1400_v39, %v9058_v29  ;;  %v1348_v56 = vmul.f32 0.2, %v1284_v16 }
 0x202   :  { %v9062_v44 = vadd.f32 %v1403_v50, %v9053_v53  ;;  %v9075_v3 = vsel %vm557_vm4, 0.0, %v12447_v9  ;;  %vm1322_vm9 = vcmp.gt.f32.partialorder %v1290_v8, 0.0  ;;  %vm561_vm2 = vcmp.gt.f32.partialorder %v545_v13, 0.0 }
 0x203   :  { %v1369_v43 = vmul.f32 0.2, %v1305_v26  ;;  %vm1337_vm5 = vcmp.gt.f32.partialorder %v1305_v26, 0.0  ;;  %v1380_v32 = vsel %vm1316_vm3, %v1284_v16, %v1348_v56  ;;  %12450 = vst [vmem:[#allocation42_spill] sm:$0xff] %v9075_v3  ;;  %v1381_v16 = vsel %vm1317_vm6, %v1285_v11, %v1349_v41  ;;  %v970_v41 = vpop.f32.mrf.mxu0 }
 0x204   :  { %v9078_v39 = vadd.f32 %v1380_v32, %v9013_v52  ;;  %v9086_v6 = vadd.f32 %v1381_v16, %v9035_v12  ;;  %v1350_v56 = vmul.f32 0.2, %v1286_v48  ;;  %v1288_v32 = vadd.f32 %v8975_v23, %v8959_v55 }
 0x205   :  { %v9130_v49 = vpop.permute.xlu1 %1178 }
 0x206   :  { %v1352_v11 = vmul.f32 0.2, %v1288_v32  ;;  %vm1320_vm8 = vcmp.gt.f32.partialorder %v1288_v32, 0.0 }
 0x207   :  { %1489 = vmax.xlane.f32.xlu1 %v9042_v18  ;;  %1479 = vmax.xlane.f32.xlu2 %v9048_v19 }
 0x208   :  { %v1384_v16 = vsel %vm1320_vm8, %v1288_v32, %v1352_v11  ;;  %v1249_v32 = vpop.permute.xlu0 %1248 }
 0x209   :  { %v1308_v51 = vadd.f32 %v8969_v15, %v1249_v32 }
 0x20b   :  { %vm1340_vm11 = vcmp.gt.f32.partialorder %v1308_v51, 0.0 }
 0x20d   :  { %v9147_v45 = vpop.permute.xlu1 %1263 }
 0x20e   :  { %1273 = vperm.xlu0 %7761, %v1084_v37   ;;  %v1401_v37 = vsel %vm1337_vm5, %v1305_v26, %v1369_v43  ;;  %v1086_v26 = vpop.f32.mrf.mxu1  ;;  %v1382_v43 = vsel %vm1318_vm7, %v1286_v48, %v1350_v56  ;;  %v1354_v48 = vmul.f32 0.2, %v1290_v8  ;;  %v1291_v56 = vadd.f32 %v8975_v23, %v1164_v7  ;;  %v544_v7 = vld [vmem:[%s12199_s2 + $0x48] sm:$0xff] }
 0x20f   :  { %1491 = vmax.xlane.f32.xlu1 %v9062_v44  ;;  %1485 = vmax.xlane.f32.xlu2 %v9068_v1  ;;  %v9081_v50 = vadd.f32 %v1401_v37, %v9075_v3  ;;  %v9094_v37 = vadd.f32 %v1382_v43, %v8978_v57  ;;  %vm560_vm13 = vcmp.gt.f32.partialorder %v544_v7, 0.0 }
 0x210   :  { %v1386_v55 = vsel %vm1322_vm9, %v1290_v8, %v1354_v48  ;;  %v1355_v24 = vmul.f32 0.2, %v1291_v56  ;;  %vm1323_vm10 = vcmp.gt.f32.partialorder %v1291_v56, 0.0  ;;  %v1372_v8 = vmul.f32 0.2, %v1308_v51  ;;  %v1174_v58 = vpop.permute.xlu0 %1173 }
 0x211   :  { %v9105_v43 = vadd.f32 %v1386_v55, %v9032_v27 }
 0x212   :  { %v1387_v11 = vsel %vm1323_vm10, %v1291_v56, %v1355_v24  ;;  %v1404_v32 = vsel %vm1340_vm11, %v1308_v51, %v1372_v8  ;;  %v1293_v8 = vadd.f32 %v8975_v23, %v1174_v58 }
 0x213   :  { %v9112_v2 = vadd.f32 %v1387_v11, %v9053_v53  ;;  %v1289_v11 = vadd.f32 %v8975_v23, %v8971_v14 }
 0x214   :  { %vm1325_vm1 = vcmp.gt.f32.partialorder %v1293_v8, 0.0 }
 0x215   :  { %vm1321_vm15 = vcmp.gt.f32.partialorder %v1289_v11, 0.0 }
 0x217   :  { %1445 = vmax.xlane.f32.xlu1 %v9078_v39  ;;  %1487 = vmax.xlane.f32.xlu2 %v9081_v50 }
 0x218   :  { %v1259_v59 = vpop.permute.xlu0 %1258 }
 0x21f   :  { %1447 = vmax.xlane.f32.xlu1 %v9086_v6 }
 0x22f   :  { %1278 = vperm.xlu2 %7762, %v1086_v26   ;;  %v9100_v26 = vadd.f32 %v1384_v16, %v9058_v29  ;;  %v1287_v16 = vadd.f32 %v8975_v23, %v8995_v28  ;;  %v9120_v28 = vsel %vm560_vm13, 0.0, %v12447_v9  ;;  %v550_v29 = vld [vmem:[%s12199_s2 + $0x78] sm:$0xff] }
 0x230   :  { %12451 = vst [vmem:[#allocation43_spill] sm:$0xff] %v9120_v28  ;;  %v9125_v46 = vadd.f32 %v1404_v32, %v9120_v28 }
 0x231   :  { %v1351_v48 = vmul.f32 0.2, %v1287_v16  ;;  %vm1319_vm12 = vcmp.gt.f32.partialorder %v1287_v16, 0.0 }
 0x233   :  { %v1383_v24 = vsel %vm1319_vm12, %v1287_v16, %v1351_v48 }
 0x234   :  { %v9128_v17 = vadd.f32 %v1383_v24, %v9009_v62  ;;  %v1357_v24 = vmul.f32 0.2, %v1293_v8 }
 0x238   :  { %1198 = vperm.xlu1 %7760, %v970_v41   ;;  %1449 = vmax.xlane.f32.xlu0 %v9094_v37  ;;  %v1169_v41 = vpop.permute.xlu2 %1168 }
 0x239   :  { %v1292_v56 = vadd.f32 %v8975_v23, %v1169_v41  ;;  %v1353_v41 = vmul.f32 0.2, %v1289_v11 }
 0x23b   :  { %v1356_v51 = vmul.f32 0.2, %v1292_v56  ;;  %vm1324_vm14 = vcmp.gt.f32.partialorder %v1292_v56, 0.0  ;;  %v1385_v7 = vsel %vm1321_vm15, %v1289_v11, %v1353_v41  ;;  %v9153_v11 = vsel %vm561_vm2, 0.0, %v12447_v9 }
 0x23c   :  { %v9141_v32 = vadd.f32 %v1385_v7, %v9075_v3  ;;  %12452 = vst [vmem:[#allocation44_spill] sm:$0xff] %v9153_v11 }
 0x23d   :  { %v1388_v14 = vsel %vm1324_vm14, %v1292_v56, %v1356_v51  ;;  %v1389_v56 = vsel %vm1325_vm1, %v1293_v8, %v1357_v24  ;;  %v1310_v8 = vadd.f32 %v8969_v15, %v1259_v59  ;;  %vm566_vm14 = vcmp.gt.f32.partialorder %v550_v29, 0.0 }
 0x23e   :  { %v9138_v48 = vadd.f32 %v1388_v14, %v9120_v28  ;;  %v9156_v51 = vadd.f32 %v1389_v56, %v9153_v11  ;;  %v9159_v14 = vpop.permute.xlu0 %1183 }
 0x23f   :  { %vm1342_vm5 = vcmp.gt.f32.partialorder %v1310_v8, 0.0 }
 0x240   :  { %1453 = vmax.xlane.f32.xlu0 %v9100_v26  ;;  %v1254_v55 = vpop.permute.xlu2 %1253 }
 0x241   :  { %v1309_v13 = vadd.f32 %v8969_v15, %v1254_v55 }
 0x243   :  { %vm1341_vm3 = vcmp.gt.f32.partialorder %v1309_v13, 0.0 }
 0x248   :  { %1457 = vmax.xlane.f32.xlu0 %v9105_v43  ;;  %v9133_v16 = vpop.permute.xlu2 %1188 }
 0x250   :  { %1459 = vmax.xlane.f32.xlu0 %v9112_v2  ;;  %v9150_v58 = vpop.permute.xlu2 %1193 }
 0x251   :  { %v1297_v29 = vadd.f32 %v8975_v23, %v9150_v58 }
 0x253   :  { %vm1329_vm1 = vcmp.gt.f32.partialorder %v1297_v29, 0.0 }
 0x258   :  { %1493 = vmax.xlane.f32.xlu0 %v9125_v46  ;;  %1451 = vmax.xlane.f32.xlu2 %v9128_v17 }
 0x260   :  { %1461 = vmax.xlane.f32.xlu2 %v9138_v48 }
 0x262   :  { %1455 = vmax.xlane.f32.xlu1 %v9141_v32 }
 0x26a   :  { %v1482_v41 = vpop.xlane.xlu1 %1481  ;;  %1463 = vmax.xlane.f32.xlu1 %v9156_v51  ;;  %v1476_v21 = vpop.xlane.xlu2 %1475 }
 0x26b   :  { %v1526_v7 = vsub.f32 %v8990_v61, %v1482_v41  ;;  %v1523_v36 = vsub.f32 %v8998_v25, %v1476_v21  ;;  %v546_v61 = vld [vmem:[%s12199_s2 + $0x58] sm:$0xff]  ;;  %v9173_v21 = vpop.permute.xlu0 %1268 }
 0x26c   :  { %vm562_vm4 = vcmp.gt.f32.partialorder %v546_v61, 0.0 }
 0x26d   :  { %v1577_v63 = vmul.f32 1.442695, %v1526_v7  ;;  %v1571_v33 = vmul.f32 1.442695, %v1523_v36  ;;  %v1373_v36 = vmul.f32 0.2, %v1309_v13 }
 0x26e   :  { %v9182_v55 = vsel %vm562_vm4, 0.0, %v12447_v9 }
 0x26f   :  { %7763 = vpow2.f32 %v1577_v63  ;;  %v1405_v59 = vsel %vm1341_vm3, %v1309_v13, %v1373_v36  ;;  %12453 = vst [vmem:[#allocation45_spill] sm:$0xff] %v9182_v55 }
 0x270   :  { %7765 = vpow2.f32 %v1571_v33  ;;  %v1374_v33 = vmul.f32 0.2, %v1310_v8 }
 0x272   :  { %v9165_v24 = vpop.xlane.xlu1 %1483  ;;  %v1478_v56 = vpop.xlane.xlu2 %1477  ;;  %v1406_v7 = vsel %vm1342_vm5, %v1310_v8, %v1374_v33 }
 0x273   :  { %v1524_v42 = vsub.f32 %v9026_v4, %v1478_v56  ;;  %v1444_v5 = vpop.xlane.xlu0 %1443  ;;  %v9189_v22 = vadd.f32 %v1406_v7, %v9182_v55 }
 0x274   :  { %v1507_v13 = vsub.f32 %v9005_v38, %v1444_v5 }
 0x275   :  { %v9171_v41 = vpop.eup %7763  ;;  %v1573_v25 = vmul.f32 1.442695, %v1524_v42  ;;  %v9186_v42 = vadd.f32 %v1405_v59, %v9153_v11 }
 0x276   :  { %v9175_v63 = vpop.eup %7765  ;;  %1641 = vadd.xlane.f32.xlu0 %v9171_v41  ;;  %v1539_v8 = vmul.f32 1.442695, %v1507_v13 }
 0x277   :  { %1635 = vadd.xlane.f32.xlu1 %v9175_v63  ;;  %7767 = vpow2.f32 %v1573_v25 }
 0x27a   :  { %v9179_v4 = vpop.xlane.xlu1 %1489  ;;  %v1480_v56 = vpop.xlane.xlu2 %1479 }
 0x27b   :  { %v1525_v31 = vsub.f32 %v9048_v19, %v1480_v56 }
 0x27d   :  { %v9191_v61 = vpop.eup %7767  ;;  %v1575_v25 = vmul.f32 1.442695, %v1525_v31  ;;  %v1294_v31 = vadd.f32 %v8975_v23, %v9130_v49 }
 0x27e   :  { %1495 = vmax.xlane.f32.xlu0 %v9186_v42  ;;  %1637 = vadd.xlane.f32.xlu2 %v9191_v61 }
 0x27f   :  { %1497 = vmax.xlane.f32.xlu1 %v9189_v22  ;;  %7769 = vpow2.f32 %v1575_v25  ;;  %v1358_v5 = vmul.f32 0.2, %v1294_v31  ;;  %vm1326_vm6 = vcmp.gt.f32.partialorder %v1294_v31, 0.0 }
 0x280   :  { %7771 = vpow2.f32 %v1539_v8 }
 0x281   :  { %v1390_v13 = vsel %vm1326_vm6, %v1294_v31, %v1358_v5  ;;  %v1311_v31 = vadd.f32 %v8969_v15, %v9147_v45  ;;  %v1312_v45 = vadd.f32 %v8969_v15, %v9173_v21  ;;  %v9235_v5 = vpop.permute.xlu0 %1273 }
 0x282   :  { %v9197_v19 = vpop.xlane.xlu1 %1491  ;;  %v1486_v7 = vpop.xlane.xlu2 %1485 }
 0x283   :  { %v1528_v38 = vsub.f32 %v9068_v1, %v1486_v7  ;;  %v1295_v1 = vadd.f32 %v8975_v23, %v9159_v14  ;;  %vm1343_vm9 = vcmp.gt.f32.partialorder %v1311_v31, 0.0  ;;  %vm1344_vm10 = vcmp.gt.f32.partialorder %v1312_v45, 0.0 }
 0x285   :  { %v9199_v36 = vpop.eup %7769  ;;  %v1581_v53 = vmul.f32 1.442695, %v1528_v38  ;;  %vm1327_vm8 = vcmp.gt.f32.partialorder %v1295_v1, 0.0 }
 0x286   :  { %1639 = vadd.xlane.f32.xlu2 %v9199_v36  ;;  %v9205_v11 = vpop.eup %7771 }
 0x28a   :  { %v1446_v33 = vpop.xlane.xlu1 %1445 }
 0x28b   :  { %v1508_v59 = vsub.f32 %v9078_v39, %v1446_v33  ;;  %v9213_v39 = vadd.f32 %v1390_v13, %v9182_v55 }
 0x28d   :  { %v1541_v56 = vmul.f32 1.442695, %v1508_v59  ;;  %v1359_v59 = vmul.f32 0.2, %v1295_v1 }
 0x28e   :  { %1603 = vadd.xlane.f32.xlu2 %v9205_v11 }
 0x28f   :  { %7773 = vpow2.f32 %v1541_v56  ;;  %v1375_v56 = vmul.f32 0.2, %v1311_v31 }
 0x291   :  { %v1407_v14 = vsel %vm1343_vm9, %v1311_v31, %v1375_v56 }
 0x292   :  { %v1448_v25 = vpop.xlane.xlu1 %1447 }
 0x293   :  { %v1509_v8 = vsub.f32 %v9086_v6, %v1448_v25  ;;  %v547_v6 = vld [vmem:[%s12199_s2 + $0x60] sm:$0xff]  ;;  %v1376_v25 = vmul.f32 0.2, %v1312_v45 }
 0x294   :  { %vm563_vm7 = vcmp.gt.f32.partialorder %v547_v6, 0.0 }
 0x295   :  { %v9210_v49 = vpop.eup %7773  ;;  %v1543_v28 = vmul.f32 1.442695, %v1509_v8  ;;  %v548_v8 = vld [vmem:[%s12199_s2 + $0x68] sm:$0xff]  ;;  %v1408_v21 = vsel %vm1344_vm10, %v1312_v45, %v1376_v25  ;;  %v1488_v25 = vpop.xlane.xlu2 %1487 }
 0x296   :  { %1605 = vadd.xlane.f32.xlu0 %v9210_v49  ;;  %1465 = vmax.xlane.f32.xlu2 %v9213_v39  ;;  %vm564_vm11 = vcmp.gt.f32.partialorder %v548_v8, 0.0 }
 0x297   :  { %7775 = vpow2.f32 %v1543_v28  ;;  %v1391_v28 = vsel %vm1327_vm8, %v1295_v1, %v1359_v59  ;;  %v9249_v31 = vsel %vm564_vm11, 0.0, %v12447_v9 }
 0x298   :  { %7777 = vpow2.f32 %v1581_v53  ;;  %v9233_v53 = vsel %vm563_vm7, 0.0, %v12447_v9  ;;  %12455 = vst [vmem:[#allocation47_spill] sm:$0xff] %v9249_v31  ;;  %v9253_v59 = vadd.f32 %v1408_v21, %v9249_v31  ;;  %v1296_v21 = vadd.f32 %v8975_v23, %v9133_v16 }
 0x299   :  { %12454 = vst [vmem:[#allocation46_spill] sm:$0xff] %v9233_v53  ;;  %v9238_v38 = vadd.f32 %v1391_v28, %v9233_v53  ;;  %v9241_v13 = vadd.f32 %v1407_v14, %v9233_v53  ;;  %v1527_v28 = vsub.f32 %v9020_v35, %v9165_v24 }
 0x29a   :  { %vm1328_vm12 = vcmp.gt.f32.partialorder %v1296_v21, 0.0 }
 0x29b   :  { %v1579_v14 = vmul.f32 1.442695, %v1527_v28 }
 0x29d   :  { %v9224_v33 = vpop.eup %7775 }
 0x29e   :  { %v9226_v7 = vpop.eup %7777  ;;  %1607 = vadd.xlane.f32.xlu0 %v9224_v33 }
 0x29f   :  { %1645 = vadd.xlane.f32.xlu2 %v9226_v7 }
 0x2a6   :  { %1467 = vmax.xlane.f32.xlu0 %v9238_v38 }
 0x2a7   :  { %1499 = vmax.xlane.f32.xlu2 %v9241_v13 }
 0x2ab   :  { %v1450_v1 = vpop.xlane.xlu0 %1449 }
 0x2ac   :  { %v1510_v6 = vsub.f32 %v9094_v37, %v1450_v1  ;;  %v1529_v37 = vsub.f32 %v9081_v50, %v1488_v25  ;;  %v1530_v50 = vsub.f32 %v9042_v18, %v9179_v4 }
 0x2ae   :  { %v1545_v56 = vmul.f32 1.442695, %v1510_v6  ;;  %1501 = vmax.xlane.f32.xlu0 %v9253_v59  ;;  %v1583_v35 = vmul.f32 1.442695, %v1529_v37  ;;  %v1585_v28 = vmul.f32 1.442695, %v1530_v50 }
 0x2b0   :  { %7779 = vpow2.f32 %v1545_v56 }
 0x2b1   :  { %7781 = vpow2.f32 %v1579_v14  ;;  %v1279_v14 = vpop.permute.xlu2 %1278 }
 0x2b3   :  { %v1454_v53 = vpop.xlane.xlu0 %1453 }
 0x2b4   :  { %v1512_v45 = vsub.f32 %v9100_v26, %v1454_v53  ;;  %v1360_v26 = vmul.f32 0.2, %v1296_v21  ;;  %v1199_v53 = vpop.permute.xlu1 %1198 }
 0x2b6   :  { %v9259_v8 = vpop.eup %7779  ;;  %v1549_v55 = vmul.f32 1.442695, %v1512_v45  ;;  %v1392_v16 = vsel %vm1328_vm12, %v1296_v21, %v1360_v26  ;;  %v9286_v26 = vsel %vm566_vm14, 0.0, %v12447_v9 }
 0x2b7   :  { %1609 = vadd.xlane.f32.xlu1 %v9259_v8  ;;  %v9265_v24 = vpop.eup %7781  ;;  %v9275_v45 = vadd.f32 %v1392_v16, %v9249_v31 }
 0x2b8   :  { %7783 = vpow2.f32 %v1549_v55  ;;  %v1298_v55 = vadd.f32 %v8975_v23, %v1199_v53 }
 0x2b9   :  { %7785 = vpow2.f32 %v1583_v35 }
 0x2ba   :  { %v1362_v37 = vmul.f32 0.2, %v1298_v55  ;;  %vm1330_vm13 = vcmp.gt.f32.partialorder %v1298_v55, 0.0  ;;  %7787 = vpow2.f32 %v1585_v28 }
 0x2bb   :  { %v1458_v1 = vpop.xlane.xlu0 %1457 }
 0x2bc   :  { %v1394_v4 = vsel %vm1330_vm13, %v1298_v55, %v1362_v37  ;;  %v1514_v23 = vsub.f32 %v9105_v43, %v1458_v1  ;;  %v1314_v1 = vadd.f32 %v8969_v15, %v1279_v14 }
 0x2bd   :  { %v9290_v16 = vadd.f32 %v1394_v4, %v9286_v26  ;;  %v1361_v4 = vmul.f32 0.2, %v1297_v29 }
 0x2be   :  { %v9267_v6 = vpop.eup %7783  ;;  %vm1346_vm3 = vcmp.gt.f32.partialorder %v1314_v1, 0.0 }
 0x2bf   :  { %1643 = vadd.xlane.f32.xlu1 %v9265_v24  ;;  %1613 = vadd.xlane.f32.xlu0 %v9267_v6  ;;  %v9277_v25 = vpop.eup %7785  ;;  %v1393_v58 = vsel %vm1329_vm1, %v1297_v29, %v1361_v4  ;;  %v1531_v4 = vsub.f32 %v9062_v44, %v9197_v19 }
 0x2c0   :  { %v9292_v31 = vpop.eup %7787 }
 0x2c3   :  { %v1460_v56 = vpop.xlane.xlu0 %1459 }
 0x2c4   :  { %v1515_v18 = vsub.f32 %v9112_v2, %v1460_v56  ;;  %v549_v56 = vld [vmem:[%s12199_s2 + $0x70] sm:$0xff] }
 0x2c5   :  { %vm565_vm15 = vcmp.gt.f32.partialorder %v549_v56, 0.0  ;;  %v1378_v56 = vmul.f32 0.2, %v1314_v1 }
 0x2c6   :  { %v1555_v21 = vmul.f32 1.442695, %v1515_v18 }
 0x2c7   :  { %1469 = vmax.xlane.f32.xlu1 %v9275_v45  ;;  %1647 = vadd.xlane.f32.xlu0 %v9277_v25 }
 0x2c8   :  { %7789 = vpow2.f32 %v1555_v21  ;;  %v1553_v21 = vmul.f32 1.442695, %v1514_v23  ;;  %v1587_v23 = vmul.f32 1.442695, %v1531_v4 }
 0x2cb   :  { %v1452_v35 = vpop.xlane.xlu2 %1451  ;;  %v1494_v50 = vpop.xlane.xlu0 %1493 }
 0x2cc   :  { %v1511_v53 = vsub.f32 %v9128_v17, %v1452_v35  ;;  %v1532_v2 = vsub.f32 %v9125_v46, %v1494_v50 }
 0x2ce   :  { %v1547_v3 = vmul.f32 1.442695, %v1511_v53  ;;  %v1589_v55 = vmul.f32 1.442695, %v1532_v2  ;;  %v9302_v28 = vpop.eup %7789 }
 0x2cf   :  { %1649 = vadd.xlane.f32.xlu1 %v9292_v31  ;;  %1473 = vmax.xlane.f32.xlu0 %v9290_v16 }
 0x2d0   :  { %7791 = vpow2.f32 %v1547_v3  ;;  %v9311_v3 = vsel %vm565_vm15, 0.0, %v12447_v9 }
 0x2d1   :  { %7793 = vpow2.f32 %v1589_v55  ;;  %v9318_v53 = vadd.f32 %v1393_v58, %v9311_v3 }
 0x2d3   :  { %v1462_v50 = vpop.xlane.xlu2 %1461 }
 0x2d4   :  { %v1516_v9 = vsub.f32 %v9138_v48, %v1462_v50 }
 0x2d5   :  { %v1456_v17 = vpop.xlane.xlu1 %1455 }
 0x2d6   :  { %v1513_v37 = vsub.f32 %v9141_v32, %v1456_v17  ;;  %v9305_v18 = vpop.eup %7791  ;;  %v1313_v32 = vadd.f32 %v8969_v15, %v9235_v5  ;;  %v1557_v55 = vmul.f32 1.442695, %v1516_v9 }
 0x2d7   :  { %1619 = vadd.xlane.f32.xlu0 %v9302_v28  ;;  %1611 = vadd.xlane.f32.xlu2 %v9305_v18  ;;  %v9315_v35 = vpop.eup %7793 }
 0x2d8   :  { %v1551_v46 = vmul.f32 1.442695, %v1513_v37  ;;  %v1377_v43 = vmul.f32 0.2, %v1313_v32  ;;  %vm1345_vm2 = vcmp.gt.f32.partialorder %v1313_v32, 0.0 }
 0x2da   :  { %7795 = vpow2.f32 %v1551_v46  ;;  %v1409_v29 = vsel %vm1345_vm2, %v1313_v32, %v1377_v43  ;;  %v1410_v46 = vsel %vm1346_vm3, %v1314_v1, %v1378_v56 }
 0x2db   :  { %7797 = vpow2.f32 %v1553_v21  ;;  %v9330_v37 = vadd.f32 %v1409_v29, %v9311_v3  ;;  %v9338_v32 = vadd.f32 %v1410_v46, %v9286_v26 }
 0x2dc   :  { %7799 = vpow2.f32 %v1557_v55 }
 0x2dd   :  { %v1464_v5 = vpop.xlane.xlu1 %1463 }
 0x2de   :  { %v1517_v15 = vsub.f32 %v9156_v51, %v1464_v5 }
 0x2df   :  { %1653 = vadd.xlane.f32.xlu0 %v9315_v35  ;;  %1471 = vmax.xlane.f32.xlu2 %v9318_v53 }
 0x2e0   :  { %v9321_v2 = vpop.eup %7795  ;;  %v1559_v58 = vmul.f32 1.442695, %v1517_v15 }
 0x2e1   :  { %1615 = vadd.xlane.f32.xlu1 %v9321_v2  ;;  %v9327_v17 = vpop.eup %7797 }
 0x2e2   :  { %v9340_v21 = vpop.eup %7799 }
 0x2e7   :  { %1617 = vadd.xlane.f32.xlu2 %v9327_v17 }
 0x2e9   :  { %1503 = vmax.xlane.f32.xlu1 %v9330_v37  ;;  %v1642_v48 = vpop.xlane.xlu0 %1641 }
 0x2ea   :  { %v1636_v14 = vpop.xlane.xlu1 %1635 }
 0x2eb   :  { %7801 = vrcp.f32 %v1636_v14 }
 0x2ec   :  { %7803 = vpow2.f32 %v1587_v23 }
 0x2ed   :  { %7805 = vpow2.f32 %v1559_v58 }
 0x2ef   :  { %1505 = vmax.xlane.f32.xlu2 %v9338_v32 }
 0x2f1   :  { %1621 = vadd.xlane.f32.xlu1 %v9340_v21  ;;  %v1496_v44 = vpop.xlane.xlu0 %1495  ;;  %v1638_v19 = vpop.xlane.xlu2 %1637 }
 0x2f2   :  { %v1498_v50 = vpop.xlane.xlu1 %1497  ;;  %v1533_v51 = vsub.f32 %v9186_v42, %v1496_v44  ;;  %v7802_v43 = vpop.eup %7801  ;;  %7807 = vrcp.f32 %v1638_v19 }
 0x2f3   :  { %v1534_v9 = vsub.f32 %v9189_v22, %v1498_v50  ;;  %v1715_v1 = vmul.f32 %v7802_v43, %v9175_v63  ;;  %v9347_v55 = vpop.eup %7803 }
 0x2f4   :  { %v1591_v5 = vmul.f32 1.442695, %v1533_v51  ;;  %v9349_v56 = vpop.eup %7805 }
 0x2f5   :  { %v1593_v29 = vmul.f32 1.442695, %v1534_v9  ;;  %v1747_v15 = vpack.c.bf16 %v1715_v1, %v1715_v1 }
 0x2f6   :  { %7809 = vpow2.f32 %v1591_v5 }
 0x2f7   :  { %1651 = vadd.xlane.f32.xlu2 %v9347_v55  ;;  %7811 = vpow2.f32 %v1593_v29  ;;  %v1884_v46 = vunpack.c.l.b16 %v1747_v15 }
 0x2f8   :  { %v7808_v4 = vpop.eup %7807 }
 0x2f9   :  { %1623 = vadd.xlane.f32.xlu1 %v9349_v56  ;;  %v1716_v42 = vmul.f32 %v7808_v4, %v9191_v61  ;;  %v1640_v14 = vpop.xlane.xlu2 %1639 }
 0x2fa   :  { %7813 = vrcp.f32 %v1640_v14 }
 0x2fb   :  { %v1748_v63 = vpack.c.bf16 %v1716_v42, %v1716_v42  ;;  %7815 = vrcp.f32 %v1642_v48 }
 0x2fc   :  { %v9354_v22 = vpop.eup %7809 }
 0x2fd   :  { %1655 = vadd.xlane.f32.xlu0 %v9354_v22  ;;  %v1885_v23 = vunpack.c.l.b16 %v1748_v63  ;;  %v9357_v58 = vpop.eup %7811 }
 0x2ff   :  { %v1900_v44 = vpack.c.b16 %v1885_v23, %v1884_v46 }
 0x300   :  { %v7814_v19 = vpop.eup %7813 }
 0x301   :  { %1657 = vadd.xlane.f32.xlu1 %v9357_v58  ;;  %1932 = vmatmul.bf16.vlgmr.msrb.gmra.mxu3 %v1900_v44  ;;  %v1604_v50 = vpop.xlane.xlu2 %1603  ;;  %v7816_v61 = vpop.eup %7815  ;;  %v1717_v51 = vmul.f32 %v7814_v19, %v9199_v36 }
 0x302   :  { %7817 = vrcp.f32 %v1604_v50  ;;  %v1718_v43 = vmul.f32 %v7816_v61, %v9171_v41 }
 0x303   :  { %v1749_v9 = vpack.c.bf16 %v1717_v51, %v1717_v51 }
 0x304   :  { %v1750_v29 = vpack.c.bf16 %v1718_v43, %v1718_v43 }
 0x305   :  { %v1886_v15 = vunpack.c.l.b16 %v1749_v9 }
 0x306   :  { %v1887_v63 = vunpack.c.l.b16 %v1750_v29 }
 0x308   :  { %v7818_v5 = vpop.eup %7817  ;;  %v1901_v23 = vpack.c.b16 %v1887_v63, %v1886_v15 }
 0x309   :  { %v1606_v48 = vpop.xlane.xlu0 %1605  ;;  %v1466_v1 = vpop.xlane.xlu2 %1465  ;;  %v1699_v42 = vmul.f32 %v7818_v5, %v9205_v11 }
 0x30a   :  { %7819 = vrcp.f32 %v1606_v48  ;;  %v1518_v4 = vsub.f32 %v9213_v39, %v1466_v1 }
 0x30b   :  { %v1731_v44 = vpack.c.bf16 %v1699_v42, %v1699_v42 }
 0x30c   :  { %v1561_v14 = vmul.f32 1.442695, %v1518_v4 }
 0x30d   :  { %v1779_v51 = vunpack.c.l.b16 %v1731_v44 }
 0x30e   :  { %7821 = vpow2.f32 %v1561_v14 }
 0x310   :  { %v7820_v46 = vpop.eup %7819 }
 0x311   :  { %v1700_v36 = vmul.f32 %v7820_v46, %v9210_v49  ;;  %v1608_v41 = vpop.xlane.xlu0 %1607  ;;  %1937 = vmatmul.bf16.gmra.mxu3 %v1901_v23 }
 0x312   :  { %v1646_v19 = vpop.xlane.xlu2 %1645 }
 0x313   :  { %v1732_v50 = vpack.c.bf16 %v1700_v36, %v1700_v36 }
 0x314   :  { %v9365_v61 = vpop.eup %7821 }
 0x315   :  { %v1780_v43 = vunpack.c.l.b16 %v1732_v50  ;;  %1625 = vadd.xlane.f32.xlu2 %v9365_v61 }
 0x317   :  { %v1795_v39 = vpack.c.b16 %v1780_v43, %v1779_v51 }
 0x319   :  { %1827 = vmatmul.bf16.vlgmr.msrb.gmra.mxu2 %v1795_v39  ;;  %v1468_v11 = vpop.xlane.xlu0 %1467 }
 0x31a   :  { %v1500_v9 = vpop.xlane.xlu2 %1499  ;;  %v1519_v48 = vsub.f32 %v9238_v38, %v1468_v11 }
 0x31b   :  { %v1535_v5 = vsub.f32 %v9241_v13, %v1500_v9 }
 0x31c   :  { %v1563_v1 = vmul.f32 1.442695, %v1519_v48 }
 0x31d   :  { %v1595_v49 = vmul.f32 1.442695, %v1535_v5 }
 0x31e   :  { %7823 = vpow2.f32 %v1563_v1 }
 0x31f   :  { %7825 = vpow2.f32 %v1595_v49 }
 0x320   :  { %7827 = vrcp.f32 %v1608_v41 }
 0x321   :  { %v1502_v29 = vpop.xlane.xlu0 %1501 }
 0x322   :  { %v1536_v4 = vsub.f32 %v9253_v59, %v1502_v29 }
 0x324   :  { %v9371_v15 = vpop.eup %7823  ;;  %v1597_v42 = vmul.f32 1.442695, %v1536_v4 }
 0x325   :  { %v9373_v14 = vpop.eup %7825  ;;  %1627 = vadd.xlane.f32.xlu2 %v9371_v15 }
 0x326   :  { %7829 = vpow2.f32 %v1597_v42  ;;  %1659 = vadd.xlane.f32.xlu1 %v9373_v14  ;;  %v7828_v13 = vpop.eup %7827 }
 0x327   :  { %v1701_v59 = vmul.f32 %v7828_v13, %v9224_v33 }
 0x329   :  { %v1733_v41 = vpack.c.bf16 %v1701_v59, %v1701_v59 }
 0x32a   :  { %v1610_v38 = vpop.xlane.xlu1 %1609 }
 0x32b   :  { %7831 = vrcp.f32 %v1610_v38  ;;  %v1781_v43 = vunpack.c.l.b16 %v1733_v41 }
 0x32c   :  { %v9377_v63 = vpop.eup %7829  ;;  %7833 = vrcp.f32 %v1646_v19 }
 0x32d   :  { %1661 = vadd.xlane.f32.xlu2 %v9377_v63 }
 0x331   :  { %v7832_v46 = vpop.eup %7831 }
 0x332   :  { %v1644_v23 = vpop.xlane.xlu1 %1643  ;;  %v1614_v44 = vpop.xlane.xlu0 %1613  ;;  %v1702_v36 = vmul.f32 %v7832_v46, %v9259_v8 }
 0x333   :  { %v7834_v50 = vpop.eup %7833  ;;  %7835 = vrcp.f32 %v1644_v23 }
 0x334   :  { %v1734_v51 = vpack.c.bf16 %v1702_v36, %v1702_v36  ;;  %v1720_v11 = vmul.f32 %v7834_v50, %v9226_v7 }
 0x336   :  { %v1782_v39 = vunpack.c.l.b16 %v1734_v51  ;;  %v1752_v1 = vpack.c.bf16 %v1720_v11, %v1720_v11 }
 0x338   :  { %v1796_v9 = vpack.c.b16 %v1782_v39, %v1781_v43  ;;  %v1889_v42 = vunpack.c.l.b16 %v1752_v1 }
 0x339   :  { %v7836_v48 = vpop.eup %7835 }
 0x33a   :  { %v1470_v19 = vpop.xlane.xlu1 %1469  ;;  %1832 = vmatmul.bf16.gmra.mxu2 %v1796_v9  ;;  %v1648_v5 = vpop.xlane.xlu0 %1647  ;;  %v1719_v33 = vmul.f32 %v7836_v48, %v9265_v24 }
 0x33b   :  { %v1520_v49 = vsub.f32 %v9275_v45, %v1470_v19  ;;  %7837 = vrcp.f32 %v1648_v5 }
 0x33c   :  { %v1751_v29 = vpack.c.bf16 %v1719_v33, %v1719_v33 }
 0x33d   :  { %v1565_v8 = vmul.f32 1.442695, %v1520_v49 }
 0x33e   :  { %v1888_v4 = vunpack.c.l.b16 %v1751_v29 }
 0x33f   :  { %7839 = vpow2.f32 %v1565_v8 }
 0x340   :  { %v1902_v38 = vpack.c.b16 %v1889_v42, %v1888_v4 }
 0x341   :  { %v7838_v59 = vpop.eup %7837 }
 0x342   :  { %v1650_v13 = vpop.xlane.xlu1 %1649  ;;  %1942 = vmatmul.bf16.gmra.mxu3 %v1902_v38  ;;  %v1474_v7 = vpop.xlane.xlu0 %1473  ;;  %v1721_v45 = vmul.f32 %v7838_v59, %v9277_v25 }
 0x343   :  { %7841 = vrcp.f32 %v1650_v13  ;;  %v1522_v46 = vsub.f32 %v9290_v16, %v1474_v7 }
 0x344   :  { %7843 = vrcp.f32 %v1614_v44  ;;  %v1753_v50 = vpack.c.bf16 %v1721_v45, %v1721_v45 }
 0x345   :  { %v9386_v23 = vpop.eup %7839  ;;  %v1569_v24 = vmul.f32 1.442695, %v1522_v46 }
 0x346   :  { %1629 = vadd.xlane.f32.xlu0 %v9386_v23  ;;  %v1890_v16 = vunpack.c.l.b16 %v1753_v50 }
 0x347   :  { %7845 = vpow2.f32 %v1569_v24 }
 0x349   :  { %v7842_v36 = vpop.eup %7841 }
 0x34a   :  { %v1722_v41 = vmul.f32 %v7842_v36, %v9292_v31  ;;  %v1612_v51 = vpop.xlane.xlu2 %1611  ;;  %v7844_v43 = vpop.eup %7843 }
 0x34b   :  { %7847 = vrcp.f32 %v1612_v51  ;;  %v1704_v44 = vmul.f32 %v7844_v43, %v9267_v6  ;;  %v1620_v42 = vpop.xlane.xlu0 %1619 }
 0x34c   :  { %v1754_v39 = vpack.c.bf16 %v1722_v41, %v1722_v41 }
 0x34d   :  { %v9391_v11 = vpop.eup %7845  ;;  %v1736_v31 = vpack.c.bf16 %v1704_v44, %v1704_v44 }
 0x34e   :  { %1633 = vadd.xlane.f32.xlu1 %v9391_v11  ;;  %v1891_v9 = vunpack.c.l.b16 %v1754_v39 }
 0x34f   :  { %v1784_v4 = vunpack.c.l.b16 %v1736_v31 }
 0x350   :  { %v1903_v48 = vpack.c.b16 %v1891_v9, %v1890_v16 }
 0x351   :  { %v7848_v19 = vpop.eup %7847 }
 0x352   :  { %1947 = vmatmul.bf16.gmra.mxu3 %v1903_v48  ;;  %v1472_v25 = vpop.xlane.xlu2 %1471  ;;  %v1703_v5 = vmul.f32 %v7848_v19, %v9305_v18 }
 0x353   :  { %v1521_v33 = vsub.f32 %v9318_v53, %v1472_v25  ;;  %v1654_v45 = vpop.xlane.xlu0 %1653 }
 0x354   :  { %v1616_v1 = vpop.xlane.xlu1 %1615  ;;  %v1735_v49 = vpack.c.bf16 %v1703_v5, %v1703_v5 }
 0x355   :  { %v1567_v29 = vmul.f32 1.442695, %v1521_v33  ;;  %7849 = vrcp.f32 %v1616_v1 }
 0x356   :  { %v1783_v8 = vunpack.c.l.b16 %v1735_v49 }
 0x357   :  { %7851 = vpow2.f32 %v1567_v29 }
 0x358   :  { %v1797_v38 = vpack.c.b16 %v1784_v4, %v1783_v8 }
 0x35a   :  { %v1618_v13 = vpop.xlane.xlu2 %1617  ;;  %1837 = vmatmul.bf16.gmra.mxu2 %v1797_v38 }
 0x35b   :  { %v7850_v6 = vpop.eup %7849  ;;  %7853 = vrcp.f32 %v1618_v13 }
 0x35c   :  { %v1504_v7 = vpop.xlane.xlu1 %1503  ;;  %v1705_v53 = vmul.f32 %v7850_v6, %v9321_v2 }
 0x35d   :  { %v1537_v59 = vsub.f32 %v9330_v37, %v1504_v7  ;;  %v9398_v18 = vpop.eup %7851 }
 0x35e   :  { %1631 = vadd.xlane.f32.xlu0 %v9398_v18  ;;  %v1737_v50 = vpack.c.bf16 %v1705_v53, %v1705_v53 }
 0x35f   :  { %v1599_v46 = vmul.f32 1.442695, %v1537_v59 }
 0x360   :  { %v1785_v9 = vunpack.c.l.b16 %v1737_v50 }
 0x361   :  { %7855 = vpow2.f32 %v1599_v46  ;;  %v7854_v24 = vpop.eup %7853 }
 0x362   :  { %v1506_v36 = vpop.xlane.xlu2 %1505  ;;  %v1706_v41 = vmul.f32 %v7854_v24, %v9327_v17  ;;  %7857 = vrcp.f32 %v1620_v42 }
 0x363   :  { %v1538_v51 = vsub.f32 %v9338_v32, %v1506_v36 }
 0x364   :  { %v1622_v43 = vpop.xlane.xlu1 %1621  ;;  %v1738_v37 = vpack.c.bf16 %v1706_v41, %v1706_v41 }
 0x365   :  { %7859 = vrcp.f32 %v1622_v43  ;;  %v1601_v39 = vmul.f32 1.442695, %v1538_v51 }
 0x366   :  { %7861 = vrcp.f32 %v1654_v45  ;;  %v1786_v44 = vunpack.c.l.b16 %v1738_v37 }
 0x367   :  { %v9404_v16 = vpop.eup %7855  ;;  %7863 = vpow2.f32 %v1601_v39 }
 0x368   :  { %1663 = vadd.xlane.f32.xlu2 %v9404_v16  ;;  %v1798_v2 = vpack.c.b16 %v1786_v44, %v1785_v9  ;;  %v7858_v48 = vpop.eup %7857 }
 0x369   :  { %v1707_v33 = vmul.f32 %v7858_v48, %v9302_v28 }
 0x36a   :  { %v1652_v17 = vpop.xlane.xlu2 %1651  ;;  %1842 = vmatmul.bf16.gmra.mxu2 %v1798_v2 }
 0x36b   :  { %v7860_v19 = vpop.eup %7859  ;;  %7865 = vrcp.f32 %v1652_v17  ;;  %v1739_v4 = vpack.c.bf16 %v1707_v33, %v1707_v33 }
 0x36c   :  { %v7862_v25 = vpop.eup %7861  ;;  %v1624_v32 = vpop.xlane.xlu1 %1623  ;;  %v1708_v5 = vmul.f32 %v7860_v19, %v9340_v21 }
 0x36d   :  { %v9408_v31 = vpop.eup %7863  ;;  %v1724_v1 = vmul.f32 %v7862_v25, %v9315_v35  ;;  %v1787_v21 = vunpack.c.l.b16 %v1739_v4 }
 0x36e   :  { %1665 = vadd.xlane.f32.xlu0 %v9408_v31  ;;  %v1740_v49 = vpack.c.bf16 %v1708_v5, %v1708_v5 }
 0x36f   :  { %v1756_v38 = vpack.c.bf16 %v1724_v1, %v1724_v1 }
 0x370   :  { %v1656_v8 = vpop.xlane.xlu0 %1655  ;;  %v1788_v6 = vunpack.c.l.b16 %v1740_v49 }
 0x371   :  { %v7866_v29 = vpop.eup %7865  ;;  %v1893_v46 = vunpack.c.l.b16 %v1756_v38 }
 0x372   :  { %v1723_v42 = vmul.f32 %v7866_v29, %v9347_v55  ;;  %v1799_v53 = vpack.c.b16 %v1788_v6, %v1787_v21 }
 0x374   :  { %v1658_v13 = vpop.xlane.xlu1 %1657  ;;  %v1755_v7 = vpack.c.bf16 %v1723_v42, %v1723_v42 }
 0x375   :  { %7867 = vrcp.f32 %v1658_v13 }
 0x376   :  { %7869 = vrcp.f32 %v1656_v8  ;;  %v1892_v59 = vunpack.c.l.b16 %v1755_v7 }
 0x377   :  { %7871 = vrcp.f32 %v1624_v32 }
 0x378   :  { %v1904_v24 = vpack.c.b16 %v1893_v46, %v1892_v59 }
 0x37a   :  { %1847 = vmatmul.bf16.gmra.mxu2 %v1799_v53  ;;  %1952 = vmatmul.bf16.gmra.mxu3 %v1904_v24 }
 0x37b   :  { %v7868_v28 = vpop.eup %7867 }
 0x37c   :  { %v7870_v35 = vpop.eup %7869  ;;  %v1726_v45 = vmul.f32 %v7868_v28, %v9357_v58 }
 0x37d   :  { %v1725_v36 = vmul.f32 %v7870_v35, %v9354_v22  ;;  %v7872_v39 = vpop.eup %7871 }
 0x37e   :  { %v1758_v55 = vpack.c.bf16 %v1726_v45, %v1726_v45  ;;  %v1709_v9 = vmul.f32 %v7872_v39, %v9349_v56 }
 0x37f   :  { %v1757_v41 = vpack.c.bf16 %v1725_v36, %v1725_v36 }
 0x380   :  { %v1895_v50 = vunpack.c.l.b16 %v1758_v55  ;;  %v1741_v48 = vpack.c.bf16 %v1709_v9, %v1709_v9 }
 0x381   :  { %v1894_v51 = vunpack.c.l.b16 %v1757_v41 }
 0x382   :  { %v1789_v58 = vunpack.c.l.b16 %v1741_v48 }
 0x383   :  { %v1905_v37 = vpack.c.b16 %v1895_v50, %v1894_v51 }
 0x384   :  { %v1933_v32 = vpop.f32.mrf.mxu3 }
 0x385   :  { %v1974_v1 = vsel %vm75_vm0, %v1933_v32, 0.0 }
 0x388   :  { %v1626_v43 = vpop.xlane.xlu2 %1625 }
 0x389   :  { %7873 = vrcp.f32 %v1626_v43 }
 0x38a   :  { %1957 = vmatmul.bf16.gmra.mxu3 %v1905_v37 }
 0x38c   :  { %v9424_v59 = vpop.f32.mrf.mxu3 }
 0x38f   :  { %v7874_v44 = vpop.eup %7873 }
 0x390   :  { %v1710_v2 = vmul.f32 %v7874_v44, %v9365_v61 }
 0x392   :  { %v1742_v19 = vpack.c.bf16 %v1710_v2, %v1710_v2 }
 0x394   :  { %v1790_v17 = vunpack.c.l.b16 %v1742_v19  ;;  %v1938_v28 = vpop.f32.mrf.mxu3 }
 0x396   :  { %v1800_v22 = vpack.c.b16 %v1790_v17, %v1789_v58 }
 0x398   :  { %v1628_v25 = vpop.xlane.xlu2 %1627  ;;  %1852 = vmatmul.bf16.gmra.mxu2 %v1800_v22 }
 0x399   :  { %v1660_v5 = vpop.xlane.xlu1 %1659 }
 0x39a   :  { %7875 = vrcp.f32 %v1660_v5 }
 0x39c   :  { %v1828_v33 = vpop.f32.mrf.mxu2  ;;  %v9434_v44 = vpop.f32.mrf.mxu3 }
 0x39d   :  { %v1973_v49 = vsel %vm75_vm0, %v1828_v33, 0.0 }
 0x39e   :  { %v9420_v29 = vadd.f32 %v1974_v1, %v1973_v49 }
 0x3a0   :  { %v1662_v56 = vpop.xlane.xlu2 %1661  ;;  %v7876_v8 = vpop.eup %7875 }
 0x3a1   :  { %7877 = vrcp.f32 %v1662_v56  ;;  %v1727_v61 = vmul.f32 %v7876_v8, %v9373_v14 }
 0x3a2   :  { %7879 = vrcp.f32 %v1628_v25 }
 0x3a3   :  { %v1759_v38 = vpack.c.bf16 %v1727_v61, %v1727_v61 }
 0x3a4   :  { %v9426_v46 = vpop.f32.mrf.mxu2 }
 0x3a5   :  { %v1896_v6 = vunpack.c.l.b16 %v1759_v38 }
 0x3a7   :  { %v7878_v4 = vpop.eup %7877 }
 0x3a8   :  { %v1728_v42 = vmul.f32 %v7878_v4, %v9377_v63  ;;  %v7880_v24 = vpop.eup %7879  ;;  %v1980_v63 = vsel %vm75_vm0, %v1938_v28, 0.0 }
 0x3a9   :  { %v1711_v14 = vmul.f32 %v7880_v24, %v9371_v15 }
 0x3aa   :  { %v1760_v13 = vpack.c.bf16 %v1728_v42, %v1728_v42 }
 0x3ab   :  { %v1743_v50 = vpack.c.bf16 %v1711_v14, %v1711_v14 }
 0x3ac   :  { %v1897_v7 = vunpack.c.l.b16 %v1760_v13 }
 0x3ad   :  { %v1791_v43 = vunpack.c.l.b16 %v1743_v50 }
 0x3ae   :  { %v1906_v21 = vpack.c.b16 %v1897_v7, %v1896_v6 }
 0x3b0   :  { %1962 = vmatmul.bf16.gmra.mxu3 %v1906_v21 }
 0x3b9   :  { %v1630_v53 = vpop.xlane.xlu0 %1629 }
 0x3ba   :  { %7881 = vrcp.f32 %v1630_v53 }
 0x3bd   :  { %v1833_v35 = vpop.f32.mrf.mxu2 }
 0x3be   :  { %v1979_v45 = vsel %vm75_vm0, %v1833_v35, 0.0 }
 0x3bf   :  { %v9431_v36 = vadd.f32 %v1980_v63, %v1979_v45 }
 0x3c0   :  { %v7882_v55 = vpop.eup %7881 }
 0x3c1   :  { %v1712_v41 = vmul.f32 %v7882_v55, %v9386_v23  ;;  %v1634_v9 = vpop.xlane.xlu1 %1633 }
 0x3c2   :  { %7883 = vrcp.f32 %v1634_v9 }
 0x3c3   :  { %v1744_v51 = vpack.c.bf16 %v1712_v41, %v1712_v41 }
 0x3c5   :  { %v1792_v37 = vunpack.c.l.b16 %v1744_v51  ;;  %v9436_v48 = vpop.f32.mrf.mxu2  ;;  %v1943_v58 = vpop.f32.mrf.mxu3 }
 0x3c6   :  { %v1986_v49 = vsel %vm75_vm0, %v1943_v58, 0.0 }
 0x3c7   :  { %v1801_v39 = vpack.c.b16 %v1792_v37, %v1791_v43 }
 0x3c8   :  { %v7884_v2 = vpop.eup %7883 }
 0x3c9   :  { %1857 = vmatmul.bf16.gmra.mxu2 %v1801_v39  ;;  %v1714_v19 = vmul.f32 %v7884_v2, %v9391_v11 }
 0x3cb   :  { %v1746_v22 = vpack.c.bf16 %v1714_v19, %v1714_v19 }
 0x3cd   :  { %v1794_v1 = vunpack.c.l.b16 %v1746_v22  ;;  %v9444_v4 = vpop.f32.mrf.mxu3 }
 0x3d1   :  { %v1632_v15 = vpop.xlane.xlu0 %1631 }
 0x3d2   :  { %7885 = vrcp.f32 %v1632_v15 }
 0x3d5   :  { %v1948_v21 = vpop.f32.mrf.mxu3 }
 0x3d6   :  { %v1992_v14 = vsel %vm75_vm0, %v1948_v21, 0.0 }
 0x3d8   :  { %v7886_v17 = vpop.eup %7885 }
 0x3d9   :  { %v1713_v23 = vmul.f32 %v7886_v17, %v9398_v18 }
 0x3db   :  { %v1664_v25 = vpop.xlane.xlu2 %1663  ;;  %v1745_v5 = vpack.c.bf16 %v1713_v23, %v1713_v23 }
 0x3dc   :  { %7887 = vrcp.f32 %v1664_v25 }
 0x3dd   :  { %v1838_v32 = vpop.f32.mrf.mxu2  ;;  %v1793_v33 = vunpack.c.l.b16 %v1745_v5  ;;  %v9454_v41 = vpop.f32.mrf.mxu3 }
 0x3de   :  { %v1985_v56 = vsel %vm75_vm0, %v1838_v32, 0.0 }
 0x3df   :  { %v9442_v8 = vadd.f32 %v1986_v49, %v1985_v56  ;;  %v1802_v61 = vpack.c.b16 %v1794_v1, %v1793_v33 }
 0x3e1   :  { %1862 = vmatmul.bf16.gmra.mxu2 %v1802_v61  ;;  %v1666_v11 = vpop.xlane.xlu0 %1665 }
 0x3e2   :  { %v7888_v42 = vpop.eup %7887  ;;  %7889 = vrcp.f32 %v1666_v11 }
 0x3e3   :  { %v1729_v38 = vmul.f32 %v7888_v42, %v9404_v16 }
 0x3e5   :  { %v9446_v18 = vpop.f32.mrf.mxu2  ;;  %v1761_v7 = vpack.c.bf16 %v1729_v38, %v1729_v38 }
 0x3e7   :  { %v1898_v28 = vunpack.c.l.b16 %v1761_v7 }
 0x3e8   :  { %v7890_v13 = vpop.eup %7889 }
 0x3e9   :  { %v1730_v6 = vmul.f32 %v7890_v13, %v9408_v31 }
 0x3eb   :  { %v1762_v53 = vpack.c.bf16 %v1730_v6, %v1730_v6 }
 0x3ed   :  { %v1843_v24 = vpop.f32.mrf.mxu2  ;;  %v1899_v35 = vunpack.c.l.b16 %v1762_v53 }
 0x3ee   :  { %v1991_v63 = vsel %vm75_vm0, %v1843_v24, 0.0 }
 0x3ef   :  { %v9452_v45 = vadd.f32 %v1992_v14, %v1991_v63  ;;  %v1907_v55 = vpack.c.b16 %v1899_v35, %v1898_v28 }
 0x3f1   :  { %1967 = vmatmul.bf16.gmra.mxu3 %v1907_v55 }
 0x3f5   :  { %v9456_v16 = vpop.f32.mrf.mxu2 }
 0x3fd   :  { %v1848_v50 = vpop.f32.mrf.mxu2  ;;  %v1953_v31 = vpop.f32.mrf.mxu3 }
 0x3fe   :  { %v1997_v51 = vsel %vm75_vm0, %v1848_v50, 0.0  ;;  %v1998_v43 = vsel %vm75_vm0, %v1953_v31, 0.0 }
 0x3ff   :  { %v1999_v37 = vadd.f32 %v1998_v43, %v1997_v51 }
 0x401   :  { %v9460_v39 = vmul.f32 0.5, %v1999_v37 }
 0x403   :  { %v2045_v9 = vmul.f32 %v9460_v39, %v9460_v39 }
 0x405   :  { %v1850_v15 = vpop.f32.mrf.mxu2  ;;  %v1955_v2 = vpop.f32.mrf.mxu3  ;;  %v2077_v19 = vsel %vm75_vm0, %v2045_v9, 0.0 }
 0x406   :  { %v2000_v58 = vsel %vm75_vm0, %v1850_v15, 0.0  ;;  %v2001_v17 = vsel %vm75_vm0, %v1955_v2, 0.0  ;;  %2078 = vadd.xlane.f32.xlu1 %v2077_v19 }
 0x407   :  { %v2002_v23 = vadd.f32 %v2001_v17, %v2000_v58 }
 0x409   :  { %v9467_v22 = vmul.f32 0.5, %v2002_v23  ;;  %v9500_v23 = vmul.f32 0.5, %v9420_v29 }
 0x40b   :  { %v2046_v25 = vmul.f32 %v9467_v22, %v9467_v22 }
 0x40d   :  { %v2080_v5 = vsel %vm75_vm0, %v2046_v25, 0.0  ;;  %v1958_v32 = vpop.f32.mrf.mxu3 }
 0x40e   :  { %2081 = vadd.xlane.f32.xlu2 %v2080_v5  ;;  %v2004_v1 = vsel %vm75_vm0, %v1958_v32, 0.0  ;;  %v1982_v5 = vsel %vm75_vm0, %v9436_v48, 0.0  ;;  %v1983_v32 = vsel %vm75_vm0, %v9434_v44, 0.0 }
 0x415   :  { %v1960_v11 = vpop.f32.mrf.mxu3 }
 0x416   :  { %v2007_v6 = vsel %vm75_vm0, %v1960_v11, 0.0  ;;  %v9515_v11 = vmul.f32 0.5, %v9452_v45  ;;  %v1977_v45 = vsel %vm75_vm0, %v9424_v59, 0.0  ;;  %v7491_v59 = vld [vmem:[%s12195_s4 + $0x50] sm:$0xff] }
 0x418   :  { %v2043_v44 = vmul.f32 %v9515_v11, %v9515_v11 }
 0x41b   :  { %v1853_v33 = vpop.f32.mrf.mxu2 }
 0x41c   :  { %v2003_v49 = vsel %vm75_vm0, %v1853_v33, 0.0  ;;  %v1984_v33 = vadd.f32 %v1983_v32, %v1982_v5 }
 0x41d   :  { %v2005_v56 = vadd.f32 %v2004_v1, %v2003_v49  ;;  %v2037_v1 = vmul.f32 %v9500_v23, %v9500_v23 }
 0x41e   :  { %v9509_v49 = vmul.f32 0.5, %v1984_v33 }
 0x41f   :  { %v9474_v61 = vmul.f32 0.5, %v2005_v56  ;;  %v2053_v56 = vsel %vm75_vm0, %v2037_v1, 0.0 }
 0x420   :  { %v2040_v29 = vmul.f32 %v9509_v49, %v9509_v49 }
 0x421   :  { %v2047_v42 = vmul.f32 %v9474_v61, %v9474_v61 }
 0x422   :  { %v2062_v48 = vsel %vm75_vm0, %v2040_v29, 0.0 }
 0x423   :  { %v1855_v38 = vpop.f32.mrf.mxu2  ;;  %v2083_v13 = vsel %vm75_vm0, %v2047_v42, 0.0 }
 0x424   :  { %v2006_v7 = vsel %vm75_vm0, %v1855_v38, 0.0  ;;  %2084 = vadd.xlane.f32.xlu0 %v2083_v13  ;;  %v2071_v38 = vsel %vm75_vm0, %v2043_v44, 0.0  ;;  %v1976_v13 = vsel %vm75_vm0, %v9426_v46, 0.0 }
 0x425   :  { %v2008_v21 = vadd.f32 %v2007_v6, %v2006_v7 }
 0x427   :  { %v9481_v53 = vmul.f32 0.5, %v2008_v21 }
 0x429   :  { %v2048_v24 = vmul.f32 %v9481_v53, %v9481_v53 }
 0x42b   :  { %v2086_v28 = vsel %vm75_vm0, %v2048_v24, 0.0 }
 0x42c   :  { %2087 = vadd.xlane.f32.xlu1 %v2086_v28  ;;  %v1978_v28 = vadd.f32 %v1977_v45, %v1976_v13  ;;  %v9550_v13 = vmul.f32 0.5, %v9431_v36  ;;  %v1994_v45 = vsel %vm75_vm0, %v9456_v16, 0.0  ;;  %v1995_v36 = vsel %vm75_vm0, %v9454_v41, 0.0 }
 0x42e   :  { %v9531_v46 = vmul.f32 0.5, %v1978_v28  ;;  %v1989_v28 = vsel %vm75_vm0, %v9444_v4, 0.0 }
 0x433   :  { %v1963_v35 = vpop.f32.mrf.mxu3 }
 0x434   :  { %v2010_v63 = vsel %vm75_vm0, %v1963_v35, 0.0 }
 0x43b   :  { %v1965_v51 = vpop.f32.mrf.mxu3 }
 0x43c   :  { %v2013_v15 = vsel %vm75_vm0, %v1965_v51, 0.0 }
 0x44c   :  { %v1858_v14 = vpop.f32.mrf.mxu2 }
 0x44d   :  { %v2009_v55 = vsel %vm75_vm0, %v1858_v14, 0.0 }
 0x44e   :  { %v2011_v50 = vadd.f32 %v2010_v63, %v2009_v55 }
 0x450   :  { %v9488_v31 = vmul.f32 0.5, %v2011_v50 }
 0x452   :  { %v2049_v43 = vmul.f32 %v9488_v31, %v9488_v31 }
 0x454   :  { %v1860_v37 = vpop.f32.mrf.mxu2  ;;  %v2089_v9 = vsel %vm75_vm0, %v2049_v43, 0.0 }
 0x455   :  { %v2012_v2 = vsel %vm75_vm0, %v1860_v37, 0.0  ;;  %2090 = vadd.xlane.f32.xlu2 %v2089_v9  ;;  %v7492_v37 = vld [vmem:[%s12195_s4 + $0x58] sm:$0xff] }
 0x456   :  { %v2014_v19 = vadd.f32 %v2013_v15, %v2012_v2  ;;  %v2320_v2 = vpack.c.bf16 %v7491_v59, %v7491_v59 }
 0x458   :  { %v9495_v58 = vmul.f32 0.5, %v2014_v19  ;;  %v2321_v19 = vpack.c.bf16 %v7492_v37, %v7492_v37  ;;  %v2372_v5 = vunpack.c.l.b16 %v2320_v2  ;;  %v7489_v2 = vld [vmem:[%s12195_s4 + $0x40] sm:$0xff] }
 0x45a   :  { %v2050_v17 = vmul.f32 %v9495_v58, %v9495_v58  ;;  %v2373_v32 = vunpack.c.l.b16 %v2321_v19  ;;  %v7490_v19 = vld [vmem:[%s12195_s4 + $0x48] sm:$0xff] }
 0x45c   :  { %v2092_v25 = vsel %vm75_vm0, %v2050_v17, 0.0 }
 0x45d   :  { %2093 = vadd.xlane.f32.xlu0 %v2092_v25  ;;  %v2038_v25 = vmul.f32 %v9531_v46, %v9531_v46 }
 0x464   :  { %v1863_v42 = vpop.f32.mrf.mxu2 }
 0x465   :  { %2054 = vadd.xlane.f32.xlu0 %v2053_v56  ;;  %v2015_v7 = vsel %vm75_vm0, %v1863_v42, 0.0  ;;  %v2375_v56 = vpack.c.b16 %v2373_v32, %v2372_v5  ;;  %v2318_v5 = vpack.c.bf16 %v7489_v2, %v7489_v2  ;;  %v2319_v32 = vpack.c.bf16 %v7490_v19, %v7490_v19 }
 0x467   :  { %7755 = vmatpush.bf16.msra.mxu1 %v2375_v56  ;;  %2408 = vmatpush.bf16.msra.mxu0 %v2375_v56 }
 0x46c   :  { %v1865_v63 = vpop.f32.mrf.mxu2 }
 0x46d   :  { %2063 = vadd.xlane.f32.xlu0 %v2062_v48  ;;  %v2018_v9 = vsel %vm75_vm0, %v1865_v63, 0.0  ;;  %v1996_v63 = vadd.f32 %v1995_v36, %v1994_v45 }
 0x46f   :  { %v9570_v4 = vmul.f32 0.5, %v1996_v63 }
 0x474   :  { %v1968_v6 = vpop.f32.mrf.mxu3 }
 0x475   :  { %2072 = vadd.xlane.f32.xlu0 %v2071_v38  ;;  %v2016_v21 = vsel %vm75_vm0, %v1968_v6, 0.0  ;;  %v2056_v38 = vsel %vm75_vm0, %v2038_v25, 0.0  ;;  %v9553_v6 = vmul.f32 0.5, %v9442_v8 }
 0x476   :  { %v2017_v24 = vadd.f32 %v2016_v21, %v2015_v7  ;;  %v1988_v21 = vsel %vm75_vm0, %v9446_v18, 0.0  ;;  %v2039_v18 = vmul.f32 %v9550_v13, %v9550_v13 }
 0x478   :  { %v9527_v35 = vmul.f32 0.5, %v2017_v24 }
 0x479   :  { %v2079_v14 = vpop.xlane.xlu1 %2078 }
 0x47a   :  { %v2109_v55 = vmax.f32 %v2079_v14, 1e-24  ;;  %v2051_v50 = vmul.f32 %v9527_v35, %v9527_v35  ;;  %v1990_v14 = vadd.f32 %v1989_v28, %v1988_v21 }
 0x47c   :  { %7891 = vrsqrt.f32 %v2109_v55  ;;  %v1970_v51 = vpop.f32.mrf.mxu3  ;;  %v2095_v43 = vsel %vm75_vm0, %v2051_v50, 0.0  ;;  %v2041_v50 = vmul.f32 %v9553_v6, %v9553_v6  ;;  %v9568_v37 = vmul.f32 0.5, %v1990_v14 }
 0x47d   :  { %v2019_v15 = vsel %vm75_vm0, %v1970_v51, 0.0  ;;  %2096 = vadd.xlane.f32.xlu1 %v2095_v43  ;;  %vm2203_vm5 = vweird.f32 %v2109_v55 }
 0x47e   :  { %v2020_v17 = vadd.f32 %v2019_v15, %v2018_v9  ;;  %v2065_v41 = vsel %vm75_vm0, %v2041_v50, 0.0  ;;  %v2059_v9 = vsel %vm75_vm0, %v2039_v18, 0.0 }
 0x480   :  { %v9544_v33 = vmul.f32 0.5, %v2020_v17 }
 0x481   :  { %v2082_v1 = vpop.xlane.xlu2 %2081 }
 0x482   :  { %v7892_v29 = vpop.eup %7891  ;;  %v2110_v48 = vmax.f32 %v2082_v1, 1e-24  ;;  %v2052_v44 = vmul.f32 %v9544_v33, %v9544_v33  ;;  %v2044_v1 = vmul.f32 %v9570_v4, %v9570_v4 }
 0x483   :  { %v2198_v42 = vmul.f32 %v7892_v29, %v2109_v55  ;;  %vm2204_vm4 = vweird.f32 %v7892_v29  ;;  %v2042_v55 = vmul.f32 %v9568_v37, %v9568_v37 }
 0x484   :  { %7893 = vrsqrt.f32 %v2110_v48  ;;  %v2098_v7 = vsel %vm75_vm0, %v2052_v44, 0.0  ;;  %vm2205_vm6 = vmor %vm2203_vm5, %vm2204_vm4  ;;  %v2370_v44 = vunpack.c.l.b16 %v2318_v5  ;;  %vm2213_vm8 = vweird.f32 %v2110_v48 }
 0x485   :  { %v2199_v24 = vmul.f32 %v7892_v29, %v2198_v42  ;;  %2057 = vadd.xlane.f32.xlu1 %v2056_v38  ;;  %2099 = vadd.xlane.f32.xlu2 %v2098_v7  ;;  %v2371_v42 = vunpack.c.l.b16 %v2319_v32  ;;  %v2068_v45 = vsel %vm75_vm0, %v2042_v55, 0.0 }
 0x487   :  { %v2200_v8 = vmul.f32 0.5, %v2199_v24  ;;  %v2374_v21 = vpack.c.b16 %v2371_v42, %v2370_v44 }
 0x489   :  { %v2201_v51 = vsub.f32 1.5, %v2200_v8  ;;  %7756 = vmatpush.bf16.msra.mxu1 %v2374_v21  ;;  %2409 = vmatpush.bf16.msra.mxu0 %v2374_v21 }
 0x48a   :  { %v7894_v16 = vpop.eup %7893 }
 0x48b   :  { %v2202_v43 = vmul.f32 %v7892_v29, %v2201_v51  ;;  %v2208_v59 = vmul.f32 %v7894_v16, %v2110_v48  ;;  %vm2214_vm7 = vweird.f32 %v7894_v16 }
 0x48c   :  { %vm2215_vm9 = vmor %vm2213_vm8, %vm2214_vm7 }
 0x48d   :  { %v2209_v15 = vmul.f32 %v7894_v16, %v2208_v59  ;;  %2066 = vadd.xlane.f32.xlu1 %v2065_v41  ;;  %2060 = vadd.xlane.f32.xlu2 %v2059_v9  ;;  %v2206_v17 = vsel %vm2205_vm6, %v7892_v29, %v2202_v43  ;;  %v2074_v29 = vsel %vm75_vm0, %v2044_v1, 0.0 }
 0x48e   :  { %v2285_v38 = vmul.f32 %v2206_v17, %v9460_v39 }
 0x48f   :  { %v2210_v25 = vmul.f32 0.5, %v2209_v15 }
 0x490   :  { %v2301_v28 = vpack.c.bf16 %v2285_v38, %v2285_v38 }
 0x491   :  { %v2211_v56 = vsub.f32 1.5, %v2210_v25 }
 0x492   :  { %v2350_v39 = vunpack.c.l.b16 %v2301_v28 }
 0x493   :  { %v2212_v7 = vmul.f32 %v7894_v16, %v2211_v56 }
 0x495   :  { %v2216_v24 = vsel %vm2215_vm9, %v7894_v16, %v2212_v7  ;;  %2075 = vadd.xlane.f32.xlu1 %v2074_v29  ;;  %2069 = vadd.xlane.f32.xlu2 %v2068_v45 }
 0x496   :  { %v2286_v36 = vmul.f32 %v2216_v24, %v9467_v22 }
 0x497   :  { %v2085_v8 = vpop.xlane.xlu0 %2084 }
 0x498   :  { %v2302_v14 = vpack.c.bf16 %v2286_v36, %v2286_v36  ;;  %v2111_v63 = vmax.f32 %v2085_v8, 1e-24 }
 0x49a   :  { %v2351_v50 = vunpack.c.l.b16 %v2302_v14  ;;  %7895 = vrsqrt.f32 %v2111_v63  ;;  %vm2223_vm11 = vweird.f32 %v2111_v63 }
 0x49c   :  { %v9588_v48 = vpack.c.b16 %v2351_v50, %v2350_v39 }
 0x49e   :  { %7501 = vmatmul.msk.bf16.vlgmr.msra.gmra.mxu1 %vm75_vm0, %v9588_v48 }
 0x49f   :  { %v2088_v18 = vpop.xlane.xlu1 %2087 }
 0x4a0   :  { %v7896_v51 = vpop.eup %7895  ;;  %v2112_v16 = vmax.f32 %v2088_v18, 1e-24 }
 0x4a1   :  { %v2218_v43 = vmul.f32 %v7896_v51, %v2111_v63  ;;  %vm2224_vm10 = vweird.f32 %v7896_v51 }
 0x4a2   :  { %7897 = vrsqrt.f32 %v2112_v16  ;;  %vm2225_vm12 = vmor %vm2223_vm11, %vm2224_vm10  ;;  %vm2233_vm14 = vweird.f32 %v2112_v16 }
 0x4a3   :  { %v2219_v59 = vmul.f32 %v7896_v51, %v2218_v43 }
 0x4a5   :  { %v2220_v22 = vmul.f32 0.5, %v2219_v59 }
 0x4a7   :  { %v2221_v41 = vsub.f32 1.5, %v2220_v22 }
 0x4a8   :  { %v7898_v9 = vpop.eup %7897 }
 0x4a9   :  { %v2222_v15 = vmul.f32 %v7896_v51, %v2221_v41  ;;  %v2228_v2 = vmul.f32 %v7898_v9, %v2112_v16  ;;  %vm2234_vm13 = vweird.f32 %v7898_v9 }
 0x4aa   :  { %vm2235_vm15 = vmor %vm2233_vm14, %vm2234_vm13 }
 0x4ab   :  { %v2229_v19 = vmul.f32 %v7898_v9, %v2228_v2  ;;  %v2226_v17 = vsel %vm2225_vm12, %v7896_v51, %v2222_v15 }
 0x4ac   :  { %v2287_v32 = vmul.f32 %v2226_v17, %v9474_v61 }
 0x4ad   :  { %v2230_v25 = vmul.f32 0.5, %v2229_v19 }
 0x4ae   :  { %v2303_v56 = vpack.c.bf16 %v2287_v32, %v2287_v32 }
 0x4af   :  { %v2231_v5 = vsub.f32 1.5, %v2230_v25 }
 0x4b0   :  { %v2352_v38 = vunpack.c.l.b16 %v2303_v56 }
 0x4b1   :  { %v2232_v1 = vmul.f32 %v7898_v9, %v2231_v5 }
 0x4b3   :  { %v2236_v55 = vsel %vm2235_vm15, %v7898_v9, %v2232_v1 }
 0x4b4   :  { %v2288_v44 = vmul.f32 %v2236_v55, %v9481_v53 }
 0x4b6   :  { %v2304_v42 = vpack.c.bf16 %v2288_v44, %v2288_v44 }
 0x4b8   :  { %v2353_v7 = vunpack.c.l.b16 %v2304_v42 }
 0x4ba   :  { %v9594_v21 = vpack.c.b16 %v2353_v7, %v2352_v38 }
 0x4bc   :  { %12456 = vst [vmem:[#allocation48_spill] sm:$0xff] %v9594_v21  ;;  %7502 = vmatmul.msk.bf16.gmra.mxu1 %vm75_vm0, %v9594_v21 }
 0x4c8   :  { %v2091_v29 = vpop.xlane.xlu2 %2090 }
 0x4c9   :  { %v2113_v45 = vmax.f32 %v2091_v29, 1e-24 }
 0x4cb   :  { %7899 = vrsqrt.f32 %v2113_v45  ;;  %vm2243_vm2 = vweird.f32 %v2113_v45 }
 0x4d0   :  { %v2094_v24 = vpop.xlane.xlu0 %2093 }
 0x4d1   :  { %v7900_v61 = vpop.eup %7899  ;;  %v2114_v28 = vmax.f32 %v2094_v24, 1e-24 }
 0x4d2   :  { %v2238_v36 = vmul.f32 %v7900_v61, %v2113_v45  ;;  %vm2244_vm1 = vweird.f32 %v7900_v61 }
 0x4d3   :  { %7901 = vrsqrt.f32 %v2114_v28  ;;  %vm2245_vm3 = vmor %vm2243_vm2, %vm2244_vm1  ;;  %vm2253_vm5 = vweird.f32 %v2114_v28 }
 0x4d4   :  { %v2239_v8 = vmul.f32 %v7900_v61, %v2238_v36 }
 0x4d6   :  { %v2240_v14 = vmul.f32 0.5, %v2239_v8 }
 0x4d8   :  { %v2241_v63 = vsub.f32 1.5, %v2240_v14  ;;  %v2055_v43 = vpop.xlane.xlu0 %2054 }
 0x4d9   :  { %v7902_v53 = vpop.eup %7901  ;;  %v2101_v41 = vmax.f32 %v2055_v43, 1e-24 }
 0x4da   :  { %v2242_v39 = vmul.f32 %v7900_v61, %v2241_v63  ;;  %v2248_v50 = vmul.f32 %v7902_v53, %v2114_v28  ;;  %vm2254_vm4 = vweird.f32 %v7902_v53 }
 0x4db   :  { %vm2255_vm6 = vmor %vm2253_vm5, %vm2254_vm4  ;;  %7903 = vrsqrt.f32 %v2101_v41  ;;  %vm2123_vm8 = vweird.f32 %v2101_v41 }
 0x4dc   :  { %v2249_v18 = vmul.f32 %v7902_v53, %v2248_v50  ;;  %v2246_v51 = vsel %vm2245_vm3, %v7900_v61, %v2242_v39 }
 0x4dd   :  { %v2289_v22 = vmul.f32 %v2246_v51, %v9488_v31 }
 0x4de   :  { %v2250_v16 = vmul.f32 0.5, %v2249_v18 }
 0x4df   :  { %v2305_v2 = vpack.c.bf16 %v2289_v22, %v2289_v22 }
 0x4e0   :  { %v2251_v59 = vsub.f32 1.5, %v2250_v16  ;;  %v2064_v31 = vpop.xlane.xlu0 %2063 }
 0x4e1   :  { %v2354_v25 = vunpack.c.l.b16 %v2305_v2  ;;  %v7904_v32 = vpop.eup %7903  ;;  %v9604_v38 = vmax.f32 %v2064_v31, 1e-24  ;;  %v7495_v2 = vld [vmem:[%s12195_s4 + $0x70] sm:$0xff] }
 0x4e2   :  { %v2252_v9 = vmul.f32 %v7902_v53, %v2251_v59  ;;  %v2118_v55 = vmul.f32 %v7904_v32, %v2101_v41  ;;  %vm2124_vm7 = vweird.f32 %v7904_v32 }
 0x4e3   :  { %vm9614_vm9 = vmor %vm2123_vm8, %vm2124_vm7  ;;  %vm2153_vm7 = vweird.f32 %v9604_v38 }
 0x4e4   :  { %v2256_v15 = vsel %vm2255_vm6, %v7902_v53, %v2252_v9  ;;  %v2119_v44 = vmul.f32 %v7904_v32, %v2118_v55 }
 0x4e5   :  { %v2290_v19 = vmul.f32 %v2256_v15, %v9495_v58 }
 0x4e6   :  { %v2120_v7 = vmul.f32 0.5, %v2119_v44 }
 0x4e7   :  { %v2306_v17 = vpack.c.bf16 %v2290_v19, %v2290_v19  ;;  %v7496_v19 = vld [vmem:[%s12195_s4 + $0x78] sm:$0xff] }
 0x4e8   :  { %v2121_v24 = vsub.f32 1.5, %v2120_v7 }
 0x4e9   :  { %v2355_v5 = vunpack.c.l.b16 %v2306_v17 }
 0x4ea   :  { %v2122_v63 = vmul.f32 %v7904_v32, %v2121_v24 }
 0x4eb   :  { %v9600_v1 = vpack.c.b16 %v2355_v5, %v2354_v25  ;;  %v7493_v5 = vld [vmem:[%s12195_s4 + $0x60] sm:$0xff] }
 0x4ec   :  { %v2126_v43 = vsel %vm9614_vm9, %v7904_v32, %v2122_v63  ;;  %v7494_v32 = vld [vmem:[%s12195_s4 + $0x68] sm:$0xff] }
 0x4ed   :  { %12457 = vst [vmem:[#allocation49_spill] sm:$0xff] %v9600_v1  ;;  %7503 = vmatmul.msk.bf16.gmra.mxu1 %vm75_vm0, %v9600_v1  ;;  %v2277_v55 = vmul.f32 %v2126_v43, %v9500_v23  ;;  %v2323_v63 = vpack.c.bf16 %v7494_v32, %v7494_v32 }
 0x4f0   :  { %v2097_v56 = vpop.xlane.xlu1 %2096 }
 0x4f1   :  { %v2115_v42 = vmax.f32 %v2097_v56, 1e-24 }
 0x4f3   :  { %7905 = vrsqrt.f32 %v2115_v42  ;;  %vm2263_vm11 = vweird.f32 %v2115_v42 }
 0x4f4   :  { %7907 = vrsqrt.f32 %v9604_v38 }
 0x4f8   :  { %v2058_v58 = vpop.xlane.xlu1 %2057  ;;  %v2100_v29 = vpop.xlane.xlu2 %2099 }
 0x4f9   :  { %v7906_v45 = vpop.eup %7905  ;;  %v2102_v61 = vmax.f32 %v2058_v58, 1e-24  ;;  %v9607_v28 = vmax.f32 %v2100_v29, 1e-24  ;;  %v2324_v58 = vpack.c.bf16 %v7495_v2, %v7495_v2  ;;  %v2325_v29 = vpack.c.bf16 %v7496_v19, %v7496_v19 }
 0x4fa   :  { %v2258_v36 = vmul.f32 %v7906_v45, %v2115_v42  ;;  %v9609_v8 = vpop.eup %7907  ;;  %vm2264_vm10 = vweird.f32 %v7906_v45  ;;  %v2456_v19 = vunpack.c.l.b16 %v2323_v63 }
 0x4fb   :  { %7909 = vrsqrt.f32 %v2102_v61  ;;  %v2148_v39 = vmul.f32 %v9609_v8, %v9604_v38  ;;  %vm9638_vm12 = vmor %vm2263_vm11, %vm2264_vm10  ;;  %vm2133_vm13 = vweird.f32 %v2102_v61  ;;  %vm2273_vm2 = vweird.f32 %v9607_v28 }
 0x4fc   :  { %v2259_v14 = vmul.f32 %v7906_v45, %v2258_v36  ;;  %7911 = vrsqrt.f32 %v9607_v28  ;;  %vm2154_vm4 = vweird.f32 %v9609_v8 }
 0x4fd   :  { %v2149_v17 = vmul.f32 %v9609_v8, %v2148_v39  ;;  %v2458_v39 = vunpack.c.l.b16 %v2325_v29  ;;  %vm2155_vm9 = vmor %vm2153_vm7, %vm2154_vm4 }
 0x4fe   :  { %v2260_v53 = vmul.f32 0.5, %v2259_v14  ;;  %v2322_v14 = vpack.c.bf16 %v7493_v5, %v7493_v5 }
 0x4ff   :  { %v2150_v23 = vmul.f32 0.5, %v2149_v17 }
 0x500   :  { %v2261_v18 = vsub.f32 1.5, %v2260_v53  ;;  %v2061_v51 = vpop.xlane.xlu2 %2060  ;;  %v2067_v41 = vpop.xlane.xlu1 %2066  ;;  %v2457_v53 = vunpack.c.l.b16 %v2324_v58  ;;  %v2455_v2 = vunpack.c.l.b16 %v2322_v14 }
 0x501   :  { %v7910_v16 = vpop.eup %7909  ;;  %v9620_v59 = vmax.f32 %v2061_v51, 1e-24  ;;  %v9642_v7 = vmax.f32 %v2067_v41, 1e-24 }
 0x502   :  { %v7912_v22 = vpop.eup %7911  ;;  %v2262_v9 = vmul.f32 %v7906_v45, %v2261_v18  ;;  %v2128_v15 = vmul.f32 %v7910_v16, %v2102_v61  ;;  %vm2134_vm14 = vweird.f32 %v7910_v16  ;;  %v2460_v41 = vpack.c.b16 %v2458_v39, %v2457_v53 }
 0x503   :  { %v2268_v25 = vmul.f32 %v7912_v22, %v9607_v28  ;;  %7913 = vrsqrt.f32 %v9620_v59  ;;  %vm2274_vm15 = vweird.f32 %v7912_v22  ;;  %vm2135_vm1 = vmor %vm2133_vm13, %vm2134_vm14  ;;  %v2459_v29 = vpack.c.b16 %v2456_v19, %v2455_v2 }
 0x504   :  { %v2129_v31 = vmul.f32 %v7910_v16, %v2128_v15  ;;  %v2266_v24 = vsel %vm9638_vm12, %v7906_v45, %v2262_v9  ;;  %7915 = vrsqrt.f32 %v9642_v7  ;;  %vm2275_vm3 = vmor %vm2273_vm2, %vm2274_vm15  ;;  %2469 = vmatpush.bf16.msrb.mxu1 %v2460_v41  ;;  %vm2143_vm6 = vweird.f32 %v9620_v59 }
 0x505   :  { %v2269_v44 = vmul.f32 %v7912_v22, %v2268_v25  ;;  %v2291_v51 = vmul.f32 %v2266_v24, %v9527_v35  ;;  %v2293_v25 = vpack.c.bf16 %v2277_v55, %v2277_v55  ;;  %v2151_v35 = vsub.f32 1.5, %v2150_v23 }
 0x506   :  { %v2130_v36 = vmul.f32 0.5, %v2129_v31  ;;  %vm2163_vm14 = vweird.f32 %v9642_v7 }
 0x507   :  { %v2270_v42 = vmul.f32 0.5, %v2269_v44  ;;  %v2307_v44 = vpack.c.bf16 %v2291_v51, %v2291_v51  ;;  %v2342_v55 = vunpack.c.l.b16 %v2293_v25  ;;  %v2152_v63 = vmul.f32 %v9609_v8, %v2151_v35 }
 0x508   :  { %v2131_v50 = vsub.f32 1.5, %v2130_v36  ;;  %v2070_v18 = vpop.xlane.xlu2 %2069  ;;  %v2076_v14 = vpop.xlane.xlu1 %2075  ;;  %2470 = vmatpush.bf16.msrb.mxu1 %v2459_v29 }
 0x509   :  { %v2271_v43 = vsub.f32 1.5, %v2270_v42  ;;  %v9648_v15 = vmax.f32 %v2070_v18, 1e-24  ;;  %v7914_v45 = vpop.eup %7913  ;;  %v2073_v42 = vpop.xlane.xlu0 %2072  ;;  %v2356_v53 = vunpack.c.l.b16 %v2307_v44  ;;  %v2108_v51 = vmax.f32 %v2076_v14, 1e-24 }
 0x50a   :  { %v2132_v9 = vmul.f32 %v7910_v16, %v2131_v50  ;;  %v2138_v61 = vmul.f32 %v7914_v45, %v9620_v59  ;;  %v9656_v24 = vpop.eup %7915  ;;  %vm2144_vm5 = vweird.f32 %v7914_v45  ;;  %v2107_v41 = vmax.f32 %v2073_v42, 1e-24 }
 0x50b   :  { %v2272_v17 = vmul.f32 %v7912_v22, %v2271_v43  ;;  %7917 = vrsqrt.f32 %v9648_v15  ;;  %v2158_v39 = vmul.f32 %v9656_v24, %v9642_v7  ;;  %vm2145_vm8 = vmor %vm2143_vm6, %vm2144_vm5  ;;  %v2156_v59 = vsel %vm2155_vm9, %v9609_v8, %v2152_v63 }
 0x50c   :  { %v2136_v5 = vsel %vm2135_vm1, %v7910_v16, %v2132_v9  ;;  %v2139_v56 = vmul.f32 %v7914_v45, %v2138_v61  ;;  %7919 = vrsqrt.f32 %v2108_v51  ;;  %v2280_v25 = vmul.f32 %v2156_v59, %v9509_v49 }
 0x50d   :  { %v2278_v32 = vmul.f32 %v2136_v5, %v9531_v46  ;;  %v2276_v31 = vsel %vm2275_vm3, %v7912_v22, %v2272_v17  ;;  %v2159_v17 = vmul.f32 %v9656_v24, %v2158_v39  ;;  %7921 = vrsqrt.f32 %v2107_v41 }
 0x50e   :  { %v2292_v58 = vmul.f32 %v2276_v31, %v9544_v33  ;;  %v2140_v36 = vmul.f32 0.5, %v2139_v56  ;;  %v2296_v31 = vpack.c.bf16 %v2280_v25, %v2280_v25  ;;  %vm2164_vm11 = vweird.f32 %v9656_v24 }
 0x50f   :  { %v2294_v28 = vpack.c.bf16 %v2278_v32, %v2278_v32  ;;  %v2160_v5 = vmul.f32 0.5, %v2159_v17  ;;  %vm2173_vm12 = vweird.f32 %v9648_v15  ;;  %vm2165_vm15 = vmor %vm2163_vm14, %vm2164_vm11  ;;  %vm2193_vm3 = vweird.f32 %v2108_v51 }
 0x510   :  { %v2308_v16 = vpack.c.bf16 %v2292_v58, %v2292_v58  ;;  %v2141_v46 = vsub.f32 1.5, %v2140_v36  ;;  %vm2183_vm5 = vweird.f32 %v2107_v41 }
 0x511   :  { %v2343_v23 = vunpack.c.l.b16 %v2294_v28  ;;  %v7918_v22 = vpop.eup %7917  ;;  %v2161_v56 = vsub.f32 1.5, %v2160_v5  ;;  %v2345_v28 = vunpack.c.l.b16 %v2296_v31 }
 0x512   :  { %v2357_v33 = vunpack.c.l.b16 %v2308_v16  ;;  %v2142_v18 = vmul.f32 %v7914_v45, %v2141_v46  ;;  %v2168_v43 = vmul.f32 %v7918_v22, %v9648_v15  ;;  %v7920_v32 = vpop.eup %7919  ;;  %vm2174_vm10 = vweird.f32 %v7918_v22 }
 0x513   :  { %v9663_v50 = vpack.c.b16 %v2343_v23, %v2342_v55  ;;  %v7922_v44 = vpop.eup %7921  ;;  %v2188_v58 = vmul.f32 %v7920_v32, %v2108_v51  ;;  %vm2175_vm13 = vmor %vm2173_vm12, %vm2174_vm10  ;;  %vm2194_vm1 = vweird.f32 %v7920_v32 }
 0x514   :  { %v9667_v9 = vpack.c.b16 %v2357_v33, %v2356_v53  ;;  %v2146_v2 = vsel %vm2145_vm8, %v7914_v45, %v2142_v18  ;;  %v2169_v19 = vmul.f32 %v7918_v22, %v2168_v43  ;;  %v2178_v36 = vmul.f32 %v7922_v44, %v2107_v41  ;;  %vm2195_vm4 = vmor %vm2193_vm3, %vm2194_vm1 }
 0x515   :  { %7497 = vmatmul.msk.bf16.vlgmr.msra.gmra.mxu0 %vm75_vm0, %v9663_v50  ;;  %v2279_v38 = vmul.f32 %v2146_v2, %v9550_v13  ;;  %v2162_v13 = vmul.f32 %v9656_v24, %v2161_v56  ;;  %v2189_v55 = vmul.f32 %v7920_v32, %v2188_v58  ;;  %vm2184_vm2 = vweird.f32 %v7922_v44 }
 0x516   :  { %12462 = vst [vmem:[#allocation50_spill] sm:$0xff] %v9667_v9  ;;  %7504 = vmatmul.msk.bf16.gmra.mxu1 %vm75_vm0, %v9667_v9  ;;  %v2170_v61 = vmul.f32 0.5, %v2169_v19  ;;  %v2179_v14 = vmul.f32 %v7922_v44, %v2178_v36  ;;  %vm2185_vm6 = vmor %vm2183_vm5, %vm2184_vm2  ;;  %v7513_v19 = vld [vmem:[%s12197_s5 + $0x2] sm:$0x1] }
 0x517   :  { %v2295_v45 = vpack.c.bf16 %v2279_v38, %v2279_v38  ;;  %v2166_v63 = vsel %vm2165_vm15, %v9656_v24, %v2162_v13  ;;  %v2190_v15 = vmul.f32 0.5, %v2189_v55  ;;  %v2547_v51 = vpack.c.bf16 %v7513_v19, %v7513_v19 }
 0x518   :  { %v2171_v35 = vsub.f32 1.5, %v2170_v61  ;;  %v2281_v46 = vmul.f32 %v2166_v63, %v9553_v6  ;;  %v2180_v42 = vmul.f32 0.5, %v2179_v14 }
 0x519   :  { %v2344_v8 = vunpack.c.l.b16 %v2295_v45  ;;  %v2191_v7 = vsub.f32 1.5, %v2190_v15  ;;  %v2619_v41 = vsel %vm75_vm0, %v2547_v51, 0 }
 0x51a   :  { %v2172_v29 = vmul.f32 %v7918_v22, %v2171_v35  ;;  %v2297_v33 = vpack.c.bf16 %v2281_v46, %v2281_v46  ;;  %2628 = vmatpush.bf16.xpose.msra.mxu2 %v2619_v41 }
 0x51b   :  { %v9682_v49 = vpack.c.b16 %v2345_v28, %v2344_v8  ;;  %v2192_v18 = vmul.f32 %v7920_v32, %v2191_v7 }
 0x51c   :  { %v2176_v16 = vsel %vm2175_vm13, %v7918_v22, %v2172_v29  ;;  %v2181_v22 = vsub.f32 1.5, %v2180_v42  ;;  %v2346_v43 = vunpack.c.l.b16 %v2297_v33 }
 0x51d   :  { %v2282_v23 = vmul.f32 %v2176_v16, %v9568_v37  ;;  %v2196_v37 = vsel %vm2195_vm4, %v7920_v32, %v2192_v18 }
 0x51e   :  { %v2182_v2 = vmul.f32 %v7922_v44, %v2181_v22  ;;  %v2284_v59 = vmul.f32 %v2196_v37, %v9570_v4  ;;  %v9712_v4 = vpop.f32.mrf.mxu1 }
 0x51f   :  { %v2298_v53 = vpack.c.bf16 %v2282_v23, %v2282_v23 }
 0x520   :  { %v2186_v6 = vsel %vm2185_vm6, %v7922_v44, %v2182_v2  ;;  %v2300_v38 = vpack.c.bf16 %v2284_v59, %v2284_v59  ;;  %v7514_v44 = vld [vmem:[%s12197_s5 + $0x3] sm:$0x1] }
 0x521   :  { %v2347_v39 = vunpack.c.l.b16 %v2298_v53  ;;  %v2283_v17 = vmul.f32 %v2186_v6, %v9515_v11  ;;  %v2548_v8 = vpack.c.bf16 %v7514_v44, %v7514_v44 }
 0x522   :  { %v2349_v25 = vunpack.c.l.b16 %v2300_v38 }
 0x523   :  { %v9692_v24 = vpack.c.b16 %v2347_v39, %v2346_v43  ;;  %v2299_v61 = vpack.c.bf16 %v2283_v17, %v2283_v17  ;;  %v2735_v28 = vsel %vm75_vm0, %v2548_v8, 0 }
 0x524   :  { %2744 = vmatpush.bf16.xpose.msra.mxu3 %v2735_v28 }
 0x525   :  { %7498 = vmatmul.msk.bf16.gmra.mxu0 %vm75_vm0, %v9682_v49  ;;  %v2348_v5 = vunpack.c.l.b16 %v2299_v61 }
 0x526   :  { %7505 = vmatmul.msk.bf16.vlgmr.msrb.gmra.mxu1 %vm75_vm0, %v9663_v50  ;;  %v2433_v11 = vpop.f32.mrf.mxu1 }
 0x527   :  { %v9704_v45 = vpack.c.b16 %v2349_v25, %v2348_v5 }
 0x535   :  { %7499 = vmatmul.msk.bf16.gmra.mxu0 %vm75_vm0, %v9692_v24 }
 0x536   :  { %7506 = vmatmul.msk.bf16.gmra.mxu1 %vm75_vm0, %v9682_v49 }
 0x539   :  { %v2436_v35 = vpop.f32.mrf.mxu1 }
 0x53a   :  { %v2522_v59 = vpack.c.bf16 %v2436_v35, %v2436_v35 }
 0x541   :  { %v2438_v32 = vpop.f32.mrf.mxu1 }
 0x542   :  { %v2523_v6 = vpack.c.bf16 %v2438_v32, %v2438_v32 }
 0x544   :  { %v2581_v17 = vunpack.c.l.b16 %v2523_v6 }
 0x545   :  { %7500 = vmatmul.msk.bf16.gmra.mxu0 %vm75_vm0, %v9704_v45 }
 0x546   :  { %7507 = vmatmul.msk.bf16.gmra.mxu1 %vm75_vm0, %v9692_v24 }
 0x556   :  { %7508 = vmatmul.msk.bf16.gmra.mxu1 %vm75_vm0, %v9704_v45 }
 0x566   :  { %7509 = vmatmul.msk.bf16.gmra.mxu1 %vm75_vm0, %v9588_v48 }
 0x56a   :  { %v2441_v31 = vpop.f32.mrf.mxu1 }
 0x56b   :  { %v2524_v33 = vpack.c.bf16 %v2441_v31, %v2441_v31  ;;  %v2580_v31 = vunpack.c.l.b16 %v2522_v59 }
 0x56d   :  { %v2582_v37 = vunpack.c.l.b16 %v2524_v33 }
 0x572   :  { %v2443_v56 = vpop.f32.mrf.mxu1 }
 0x573   :  { %v2525_v46 = vpack.c.bf16 %v2443_v56, %v2443_v56 }
 0x575   :  { %v2583_v39 = vunpack.c.l.b16 %v2525_v46 }
 0x576   :  { %7510 = vmatmul.msk.bf16.gmra.mxu1 %vm75_vm0, %v9594_v21 }
 0x577   :  { %v9734_v19 = vpack.c.b16 %v2583_v39, %v2582_v37 }
 0x579   :  { %v2613_v61 = vsel %vm75_vm0, %v9734_v19, 0 }
 0x586   :  { %7511 = vmatmul.msk.bf16.gmra.mxu1 %vm75_vm0, %v9600_v1 }
 0x592   :  { %v2411_v58 = vpop.f32.mrf.mxu0 }
 0x593   :  { %v2446_v29 = vpop.f32.mrf.mxu1  ;;  %v2512_v36 = vpack.c.bf16 %v2411_v58, %v2411_v58  ;;  %v2521_v58 = vpack.c.bf16 %v2433_v11, %v2433_v11 }
 0x594   :  { %v2526_v13 = vpack.c.bf16 %v2446_v29, %v2446_v29  ;;  %v9738_v29 = vpack.c.b16 %v2581_v17, %v2580_v31 }
 0x595   :  { %v2570_v23 = vunpack.c.l.b16 %v2512_v36  ;;  %v2520_v36 = vpack.c.bf16 %v9712_v4, %v9712_v4 }
 0x596   :  { %7512 = vmatmul.msk.bf16.gmra.mxu1 %vm75_vm0, %v9667_v9  ;;  %v2584_v42 = vunpack.c.l.b16 %v2526_v13  ;;  %v2610_v11 = vsel %vm75_vm0, %v9738_v29, 0 }
 0x59a   :  { %v2413_v55 = vpop.f32.mrf.mxu0 }
 0x59b   :  { %v2513_v16 = vpack.c.bf16 %v2413_v55, %v2413_v55  ;;  %v2448_v14 = vpop.f32.mrf.mxu1  ;;  %v2579_v55 = vunpack.c.l.b16 %v2521_v58 }
 0x59c   :  { %v2527_v63 = vpack.c.bf16 %v2448_v14, %v2448_v14 }
 0x59d   :  { %v2571_v15 = vunpack.c.l.b16 %v2513_v16 }
 0x59e   :  { %v2585_v53 = vunpack.c.l.b16 %v2527_v63  ;;  %v2578_v63 = vunpack.c.l.b16 %v2520_v36 }
 0x59f   :  { %v9726_v7 = vpack.c.b16 %v2571_v15, %v2570_v23 }
 0x5a0   :  { %v9728_v22 = vpack.c.b16 %v2585_v53, %v2584_v42  ;;  %v9752_v23 = vpack.c.b16 %v2579_v55, %v2578_v63 }
 0x5a1   :  { %7517 = vmatmul.msk.bf16.vlgmr.msra.gmra.mxu2 %vm75_vm0, %v9726_v7 }
 0x5a2   :  { %v2416_v18 = vpop.f32.mrf.mxu0  ;;  %v2616_v43 = vsel %vm75_vm0, %v9728_v22, 0  ;;  %v2607_v42 = vsel %vm75_vm0, %v9752_v23, 0 }
 0x5a3   :  { %v2472_v2 = vpop.f32.mrf.mxu1  ;;  %2789 = vmatpush.bf16.xpose.msrb.mxu0 %v2616_v43  ;;  %v2514_v51 = vpack.c.bf16 %v2416_v18, %v2416_v18 }
 0x5a4   :  { %v2528_v41 = vpack.c.bf16 %v2472_v2, %v2472_v2 }
 0x5a5   :  { %v2572_v44 = vunpack.c.l.b16 %v2514_v51 }
 0x5a6   :  { %v2686_v32 = vunpack.c.l.b16 %v2528_v41 }
 0x5aa   :  { %v2418_v38 = vpop.f32.mrf.mxu0 }
 0x5ab   :  { %v2515_v25 = vpack.c.bf16 %v2418_v38, %v2418_v38  ;;  %v2474_v5 = vpop.f32.mrf.mxu1  ;;  %2790 = vmatpush.bf16.xpose.msrb.mxu0 %v2613_v61 }
 0x5ac   :  { %v2529_v56 = vpack.c.bf16 %v2474_v5, %v2474_v5 }
 0x5ad   :  { %v2573_v8 = vunpack.c.l.b16 %v2515_v25 }
 0x5ae   :  { %v2687_v28 = vunpack.c.l.b16 %v2529_v56 }
 0x5af   :  { %v9740_v35 = vpack.c.b16 %v2573_v8, %v2572_v44 }
 0x5b0   :  { %v9744_v13 = vpack.c.b16 %v2687_v28, %v2686_v32 }
 0x5b1   :  { %7518 = vmatmul.msk.bf16.gmra.mxu2 %vm75_vm0, %v9740_v35 }
 0x5b2   :  { %7525 = vmatmul.msk.bf16.vlgmr.msra.gmra.mxu3 %vm75_vm0, %v9744_v13  ;;  %v2421_v16 = vpop.f32.mrf.mxu0 }
 0x5b3   :  { %v2477_v14 = vpop.f32.mrf.mxu1  ;;  %2791 = vmatpush.bf16.xpose.msrb.mxu0 %v2610_v11  ;;  %v2516_v15 = vpack.c.bf16 %v2421_v16, %v2421_v16 }
 0x5b4   :  { %v2530_v4 = vpack.c.bf16 %v2477_v14, %v2477_v14 }
 0x5b5   :  { %v2574_v18 = vunpack.c.l.b16 %v2516_v15 }
 0x5b6   :  { %v2688_v2 = vunpack.c.l.b16 %v2530_v4 }
 0x5ba   :  { %v2423_v46 = vpop.f32.mrf.mxu0 }
 0x5bb   :  { %v2517_v53 = vpack.c.bf16 %v2423_v46, %v2423_v46  ;;  %v2479_v33 = vpop.f32.mrf.mxu1  ;;  %2792 = vmatpush.bf16.xpose.msrb.mxu0 %v2607_v42  ;;  %v2598_v42 = vsel %vm75_vm0, %v9740_v35, 0 }
 0x5bc   :  { %v2531_v39 = vpack.c.bf16 %v2479_v33, %v2479_v33  ;;  %v2595_v33 = vsel %vm75_vm0, %v9726_v7, 0 }
 0x5bd   :  { %v2575_v43 = vunpack.c.l.b16 %v2517_v53 }
 0x5be   :  { %v2689_v37 = vunpack.c.l.b16 %v2531_v39 }
 0x5bf   :  { %v2588_v6 = vpack.c.b16 %v2575_v43, %v2574_v18 }
 0x5c0   :  { %v9756_v59 = vpack.c.b16 %v2689_v37, %v2688_v2 }
 0x5c1   :  { %7519 = vmatmul.msk.bf16.gmra.mxu2 %vm75_vm0, %v2588_v6  ;;  %v2601_v16 = vsel %vm75_vm0, %v2588_v6, 0 }
 0x5c2   :  { %7526 = vmatmul.msk.bf16.gmra.mxu3 %vm75_vm0, %v9756_v59  ;;  %v2426_v51 = vpop.f32.mrf.mxu0 }
 0x5c3   :  { %v2482_v17 = vpop.f32.mrf.mxu1  ;;  %v2518_v41 = vpack.c.bf16 %v2426_v51, %v2426_v51 }
 0x5c4   :  { %v2532_v38 = vpack.c.bf16 %v2482_v17, %v2482_v17 }
 0x5c5   :  { %v2576_v56 = vunpack.c.l.b16 %v2518_v41  ;;  %v7515_v41 = vld [vmem:[%s12198_s6 + $0x2] sm:$0x1] }
 0x5c6   :  { %v2690_v8 = vunpack.c.l.b16 %v2532_v38  ;;  %v2552_v38 = vpack.c.bf16 %v7515_v41, %v7515_v41 }
 0x5ca   :  { %v2428_v61 = vpop.f32.mrf.mxu0 }
 0x5cb   :  { %v2519_v25 = vpack.c.bf16 %v2428_v61, %v2428_v61  ;;  %v2484_v5 = vpop.f32.mrf.mxu1 }
 0x5cc   :  { %v2533_v31 = vpack.c.bf16 %v2484_v5, %v2484_v5 }
 0x5cd   :  { %v2577_v44 = vunpack.c.l.b16 %v2519_v25 }
 0x5ce   :  { %v2691_v58 = vunpack.c.l.b16 %v2533_v31 }
 0x5cf   :  { %v2589_v32 = vpack.c.b16 %v2577_v44, %v2576_v56 }
 0x5d0   :  { %v9761_v28 = vpack.c.b16 %v2691_v58, %v2690_v8  ;;  %v4004_v8 = vld [vmem:[%s12200_s7] sm:$0xff] }
 0x5d1   :  { %7520 = vmatmul.msk.bf16.gmra.mxu2 %vm75_vm0, %v2589_v32  ;;  %v2604_v36 = vsel %vm75_vm0, %v2589_v32, 0 }
 0x5d2   :  { %7527 = vmatmul.msk.bf16.gmra.mxu3 %vm75_vm0, %v9761_v28  ;;  %2793 = vmatpush.bf16.xpose.msrb.mxu0 %v2604_v36 }
 0x5d3   :  { %v2487_v55 = vpop.f32.mrf.mxu1 }
 0x5d4   :  { %v2534_v11 = vpack.c.bf16 %v2487_v55, %v2487_v55 }
 0x5d6   :  { %v2692_v15 = vunpack.c.l.b16 %v2534_v11  ;;  %v4013_v11 = vld [vmem:[%s12201_s8 + $0x18] sm:$0xff] }
 0x5da   :  { %2794 = vmatpush.bf16.xpose.msrb.mxu0 %v2601_v16  ;;  %v4012_v16 = vld [vmem:[%s12201_s8 + $0x10] sm:$0xff] }
 0x5db   :  { %v2489_v14 = vpop.f32.mrf.mxu1 }
 0x5dc   :  { %v2535_v63 = vpack.c.bf16 %v2489_v14, %v2489_v14 }
 0x5de   :  { %v2693_v4 = vunpack.c.l.b16 %v2535_v63  ;;  %v4010_v63 = vld [vmem:[%s12201_s8] sm:$0xff] }
 0x5e0   :  { %v9768_v46 = vpack.c.b16 %v2693_v4, %v2692_v15 }
 0x5e1   :  { %7521 = vmatmul.msk.bf16.gmra.mxu2 %vm75_vm0, %v9752_v23 }
 0x5e2   :  { %7528 = vmatmul.msk.bf16.gmra.mxu3 %vm75_vm0, %v9768_v46  ;;  %2795 = vmatpush.bf16.xpose.msrb.mxu0 %v2598_v42 }
 0x5e3   :  { %v2492_v53 = vpop.f32.mrf.mxu1 }
 0x5e4   :  { %v2536_v39 = vpack.c.bf16 %v2492_v53, %v2492_v53 }
 0x5e6   :  { %v2694_v2 = vunpack.c.l.b16 %v2536_v39 }
 0x5ea   :  { %2796 = vmatpush.bf16.xpose.msrb.mxu0 %v2595_v33 }
 0x5eb   :  { %v2494_v18 = vpop.f32.mrf.mxu1 }
 0x5ec   :  { %v2537_v43 = vpack.c.bf16 %v2494_v18, %v2494_v18 }
 0x5ee   :  { %v2695_v37 = vunpack.c.l.b16 %v2537_v43 }
 0x5f0   :  { %v9780_v51 = vpack.c.b16 %v2695_v37, %v2694_v2 }
 0x5f1   :  { %7522 = vmatmul.msk.bf16.gmra.mxu2 %vm75_vm0, %v9738_v29  ;;  %7533 = vmatmul.msk.bf16.vlgmr.msrb.gmra.mxu0 %vm75_vm0, %v2552_v38 }
 0x5f2   :  { %3516 = vmatpush.bf16.msra.mxu0 %v9728_v22  ;;  %7529 = vmatmul.msk.bf16.gmra.mxu3 %vm75_vm0, %v9780_v51 }
 0x5f3   :  { %v2497_v17 = vpop.f32.mrf.mxu1 }
 0x5f4   :  { %v2538_v61 = vpack.c.bf16 %v2497_v17, %v2497_v17 }
 0x5f6   :  { %3517 = vmatpush.bf16.msra.mxu0 %v9734_v19  ;;  %v2696_v31 = vunpack.c.l.b16 %v2538_v61 }
 0x5fa   :  { %3518 = vmatpush.bf16.msra.mxu0 %v9738_v29  ;;  %v4006_v29 = vld [vmem:[%s12200_s7 + $0x10] sm:$0xff] }
 0x5fb   :  { %v2499_v25 = vpop.f32.mrf.mxu1 }
 0x5fc   :  { %v2539_v5 = vpack.c.bf16 %v2499_v25, %v2499_v25 }
 0x5fe   :  { %3519 = vmatpush.bf16.msra.mxu0 %v9752_v23  ;;  %v2697_v56 = vunpack.c.l.b16 %v2539_v5  ;;  %v4007_v23 = vld [vmem:[%s12200_s7 + $0x18] sm:$0xff] }
 0x5ff   :  { %v9805_v58 = vpack.c.bf16 %v4007_v23, %v4006_v29  ;;  %v2720_v23 = vsel %vm75_vm0, %v9768_v46, 0 }
 0x600   :  { %v9792_v44 = vpack.c.b16 %v2697_v56, %v2696_v31  ;;  %v2723_v31 = vsel %vm75_vm0, %v9780_v51, 0 }
 0x601   :  { %7523 = vmatmul.msk.bf16.gmra.mxu2 %vm75_vm0, %v9734_v19 }
 0x602   :  { %3520 = vmatpush.bf16.msra.mxu0 %v2589_v32  ;;  %7530 = vmatmul.msk.bf16.gmra.mxu3 %vm75_vm0, %v9792_v44  ;;  %v2726_v25 = vsel %vm75_vm0, %v9792_v44, 0 }
 0x603   :  { %v2502_v32 = vpop.f32.mrf.mxu1  ;;  %4028 = vmatpush.bf16.msrb.mxu2 %v9805_v58 }
 0x604   :  { %v2540_v19 = vpack.c.bf16 %v2502_v32, %v2502_v32  ;;  %v2717_v32 = vsel %vm75_vm0, %v9761_v28, 0 }
 0x606   :  { %3521 = vmatpush.bf16.msra.mxu0 %v2588_v6  ;;  %v4005_v6 = vld [vmem:[%s12200_s7 + $0x8] sm:$0xff]  ;;  %v2698_v15 = vunpack.c.l.b16 %v2540_v19 }
 0x607   :  { %v9814_v36 = vpack.c.bf16 %v4005_v6, %v4004_v8 }
 0x609   :  { %4029 = vmatpush.bf16.msrb.mxu2 %v9814_v36 }
 0x60a   :  { %3522 = vmatpush.bf16.msra.mxu0 %v9740_v35  ;;  %v9824_v35 = vpack.c.bf16 %v4013_v11, %v4012_v16  ;;  %v2714_v16 = vsel %vm75_vm0, %v9756_v59, 0 }
 0x60b   :  { %v2504_v55 = vpop.f32.mrf.mxu1 }
 0x60c   :  { %v2541_v14 = vpack.c.bf16 %v2504_v55, %v2504_v55  ;;  %4077 = vmatpush.bf16.msrb.mxu3 %v9824_v35 }
 0x60d   :  { %4224 = vmatpush.bf16.msra.mxu2 %v9824_v35 }
 0x60e   :  { %3523 = vmatpush.bf16.msra.mxu0 %v9726_v7  ;;  %v4011_v7 = vld [vmem:[%s12201_s8 + $0x8] sm:$0xff]  ;;  %v2699_v4 = vunpack.c.l.b16 %v2541_v14 }
 0x60f   :  { %v9834_v42 = vpack.c.bf16 %v4011_v7, %v4010_v63  ;;  %v2711_v63 = vsel %vm75_vm0, %v9744_v13, 0  ;;  %v7516_v7 = vld [vmem:[%s12198_s6 + $0x3] sm:$0x1] }
 0x610   :  { %v2708_v53 = vpack.c.b16 %v2699_v4, %v2698_v15  ;;  %v2553_v4 = vpack.c.bf16 %v7516_v7, %v7516_v7 }
 0x611   :  { %7524 = vmatmul.msk.bf16.gmra.mxu2 %vm75_vm0, %v9728_v22  ;;  %4078 = vmatpush.bf16.msrb.mxu3 %v9834_v42 }
 0x612   :  { %7531 = vmatmul.msk.bf16.gmra.mxu3 %vm75_vm0, %v2708_v53  ;;  %4225 = vmatpush.bf16.msra.mxu2 %v9834_v42  ;;  %v2729_v38 = vsel %vm75_vm0, %v2708_v53, 0 }
 0x613   :  { %v2507_v33 = vpop.f32.mrf.mxu1 }
 0x614   :  { %v2542_v39 = vpack.c.bf16 %v2507_v33, %v2507_v33 }
 0x616   :  { %v2700_v2 = vunpack.c.l.b16 %v2542_v39 }
 0x61b   :  { %v2509_v18 = vpop.f32.mrf.mxu1 }
 0x61c   :  { %v2543_v43 = vpack.c.bf16 %v2509_v18, %v2509_v18 }
 0x61e   :  { %v2701_v37 = vunpack.c.l.b16 %v2543_v43 }
 0x620   :  { %v2709_v17 = vpack.c.b16 %v2701_v37, %v2700_v2  ;;  %v4019_v37 = vld [vmem:[%s12202_s9 + $0x18] sm:$0xff] }
 0x621   :  { %7535 = vmatmul.msk.bf16.vlgmr.msrb.gmra.mxu2 %vm75_vm0, %v8630_v47 }
 0x622   :  { %7532 = vmatmul.msk.bf16.gmra.mxu3 %vm75_vm0, %v2709_v17  ;;  %v2732_v22 = vsel %vm75_vm0, %v2709_v17, 0 }
 0x623   :  { %2805 = vmatpush.bf16.xpose.msra.mxu1 %v2732_v22 }
 0x624   :  { %v2630_v41 = vpop.f32.mrf.mxu2 }
 0x625   :  { %2820 = vperm.xlu1 %7760, %v2630_v41  }
 0x62b   :  { %2806 = vmatpush.bf16.xpose.msra.mxu1 %v2729_v38  ;;  %v4016_v38 = vld [vmem:[%s12202_s9] sm:$0xff] }
 0x62c   :  { %v2632_v61 = vpop.f32.mrf.mxu2 }
 0x62d   :  { %2825 = vperm.xlu0 %7761, %v2632_v61   ;;  %v4017_v61 = vld [vmem:[%s12202_s9 + $0x8] sm:$0xff] }
 0x631   :  { %7536 = vmatmul.msk.bf16.gmra.mxu2 %vm75_vm0, %v8642_v54 }
 0x632   :  { %7543 = vmatmul.msk.bf16.vlgmr.msrb.gmra.mxu3 %vm75_vm0, %v8630_v47 }
 0x633   :  { %2807 = vmatpush.bf16.xpose.msra.mxu1 %v2726_v25  ;;  %v4020_v25 = vpack.c.bf16 %v4017_v61, %v4016_v38 }
 0x634   :  { %v2635_v5 = vpop.f32.mrf.mxu2 }
 0x635   :  { %2830 = vperm.xlu0 %7761, %v2635_v5   ;;  %v2746_v56 = vpop.f32.mrf.mxu3 }
 0x63b   :  { %2808 = vmatpush.bf16.xpose.msra.mxu1 %v2723_v31 }
 0x63c   :  { %v2637_v29 = vpop.f32.mrf.mxu2 }
 0x63d   :  { %2835 = vperm.xlu2 %7762, %v2637_v29   ;;  %v2748_v6 = vpop.f32.mrf.mxu3 }
 0x641   :  { %7537 = vmatmul.msk.bf16.gmra.mxu2 %vm75_vm0, %v8662_v0 }
 0x642   :  { %7544 = vmatmul.msk.bf16.gmra.mxu3 %vm75_vm0, %v8642_v54 }
 0x643   :  { %2809 = vmatpush.bf16.xpose.msra.mxu1 %v2720_v23 }
 0x644   :  { %v2640_v8 = vpop.f32.mrf.mxu2 }
 0x645   :  { %2840 = vperm.xlu2 %7762, %v2640_v8   ;;  %v2751_v55 = vpop.f32.mrf.mxu3 }
 0x64b   :  { %2810 = vmatpush.bf16.xpose.msra.mxu1 %v2717_v32 }
 0x64c   :  { %v2642_v19 = vpop.f32.mrf.mxu2 }
 0x64d   :  { %2845 = vperm.xlu1 %7760, %v2642_v19   ;;  %v2753_v14 = vpop.f32.mrf.mxu3 }
 0x651   :  { %7538 = vmatmul.msk.bf16.gmra.mxu2 %vm75_vm0, %v8682_v10 }
 0x652   :  { %7545 = vmatmul.msk.bf16.gmra.mxu3 %vm75_vm0, %v8662_v0 }
 0x653   :  { %2811 = vmatpush.bf16.xpose.msra.mxu1 %v2714_v16 }
 0x654   :  { %v2645_v11 = vpop.f32.mrf.mxu2 }
 0x655   :  { %2850 = vperm.xlu2 %7762, %v2645_v11   ;;  %v2756_v33 = vpop.f32.mrf.mxu3 }
 0x65b   :  { %2812 = vmatpush.bf16.xpose.msra.mxu1 %v2711_v63 }
 0x65c   :  { %v2647_v15 = vpop.f32.mrf.mxu2 }
 0x65d   :  { %2855 = vperm.xlu0 %7761, %v2647_v15  }
 0x661   :  { %7539 = vmatmul.msk.bf16.gmra.mxu2 %vm75_vm0, %v8702_v20 }
 0x662   :  { %7534 = vmatmul.msk.bf16.vlgmr.msra.gmra.mxu1 %vm75_vm0, %v2553_v4  ;;  %7546 = vmatmul.msk.bf16.gmra.mxu3 %vm75_vm0, %v8682_v10 }
 0x663   :  { %3621 = vmatpush.bf16.msrb.mxu1 %v2709_v17 }
 0x664   :  { %v2650_v39 = vpop.f32.mrf.mxu2 }
 0x665   :  { %2860 = vperm.xlu2 %7762, %v2650_v39  }
 0x667   :  { %3622 = vmatpush.bf16.msrb.mxu1 %v2708_v53  ;;  %v2758_v53 = vpop.f32.mrf.mxu3 }
 0x66b   :  { %3623 = vmatpush.bf16.msrb.mxu1 %v9792_v44 }
 0x66c   :  { %v2652_v18 = vpop.f32.mrf.mxu2 }
 0x66d   :  { %2865 = vperm.xlu0 %7761, %v2652_v18  }
 0x66e   :  { %v2798_v43 = vpop.f32.mrf.mxu0 }
 0x66f   :  { %3624 = vmatpush.bf16.msrb.mxu1 %v9780_v51  ;;  %v2761_v2 = vpop.f32.mrf.mxu3  ;;  %v9924_v23 = vperm.slane %v2798_v43, 0 }
 0x671   :  { %7540 = vmatmul.msk.bf16.gmra.mxu2 %vm75_vm0, %v8722_v30 }
 0x672   :  { %7547 = vmatmul.msk.bf16.gmra.mxu3 %vm75_vm0, %v8702_v20 }
 0x673   :  { %3625 = vmatpush.bf16.msrb.mxu1 %v9768_v46 }
 0x674   :  { %v2655_v44 = vpop.f32.mrf.mxu2 }
 0x675   :  { %2870 = vperm.xlu2 %7762, %v2655_v44  }
 0x677   :  { %3626 = vmatpush.bf16.msrb.mxu1 %v9761_v28  ;;  %v2800_v28 = vpop.f32.mrf.mxu0  ;;  %v9892_v51 = vpop.f32.mrf.mxu3 }
 0x67b   :  { %3627 = vmatpush.bf16.msrb.mxu1 %v9756_v59 }
 0x67c   :  { %v2657_v46 = vpop.f32.mrf.mxu2 }
 0x67d   :  { %2900 = vperm.xlu2 %7762, %v2746_v56   ;;  %2875 = vperm.xlu0 %7761, %v2657_v46  }
 0x67f   :  { %3628 = vmatpush.bf16.msrb.mxu1 %v9744_v13  ;;  %v4018_v13 = vld [vmem:[%s12202_s9 + $0x10] sm:$0xff]  ;;  %v9902_v22 = vpop.f32.mrf.mxu3 }
 0x680   :  { %v4021_v17 = vpack.c.bf16 %v4019_v37, %v4018_v13 }
 0x681   :  { %7541 = vmatmul.msk.bf16.gmra.mxu2 %vm75_vm0, %v8742_v40 }
 0x682   :  { %7548 = vmatmul.msk.bf16.gmra.mxu3 %vm75_vm0, %v8722_v30  ;;  %4126 = vmatpush.bf16.msrb.mxu0 %v4021_v17 }
 0x683   :  { %4175 = vmatpush.bf16.msra.mxu1 %v9805_v58  ;;  %4273 = vmatpush.bf16.msra.mxu3 %v4021_v17 }
 0x684   :  { %v2660_v59 = vpop.f32.mrf.mxu2  ;;  %4452 = vmatpush.bf16.msrb.mxu2 %v4021_v17 }
 0x685   :  { %2910 = vperm.xlu2 %7762, %v2751_v55   ;;  %2880 = vperm.xlu0 %7761, %v2660_v59  }
 0x686   :  { %4127 = vmatpush.bf16.msrb.mxu0 %v4020_v25 }
 0x687   :  { %4176 = vmatpush.bf16.msra.mxu1 %v9814_v36  ;;  %4274 = vmatpush.bf16.msra.mxu3 %v4020_v25  ;;  %v9914_v5 = vpop.f32.mrf.mxu3 }
 0x688   :  { %4453 = vmatpush.bf16.msrb.mxu2 %v4020_v25 }
 0x68c   :  { %v2662_v41 = vpop.f32.mrf.mxu2 }
 0x68d   :  { %2905 = vperm.xlu0 %7761, %v2748_v6   ;;  %2885 = vperm.xlu1 %7760, %v2662_v41  }
 0x68f   :  { %v9916_v31 = vpop.f32.mrf.mxu3 }
 0x691   :  { %7542 = vmatmul.msk.bf16.gmra.mxu2 %vm75_vm0, %v8775_v60 }
 0x692   :  { %7549 = vmatmul.msk.bf16.gmra.mxu3 %vm75_vm0, %v8742_v40 }
 0x694   :  { %v9933_v55 = vpop.f32.mrf.mxu2 }
 0x695   :  { %2925 = vperm.xlu0 %7761, %v2758_v53   ;;  %2915 = vperm.xlu1 %7760, %v2753_v14  }
 0x697   :  { %v9922_v56 = vpop.f32.mrf.mxu3  ;;  %v2836_v32 = vpop.permute.xlu2 %2835 }
 0x698   :  { %v2821_v4 = vpop.permute.xlu1 %2820  ;;  %v2983_v13 = vadd.f32 %v9924_v23, %v2836_v32 }
 0x699   :  { %v2980_v18 = vadd.f32 %v9924_v23, %v2821_v4 }
 0x69a   :  { %vm3015_vm11 = vcmp.gt.f32.partialorder %v2983_v13, 0.0 }
 0x69b   :  { %vm3012_vm10 = vcmp.gt.f32.partialorder %v2980_v18, 0.0 }
 0x69c   :  { %v9942_v39 = vpop.f32.mrf.mxu2 }
 0x69d   :  { %2920 = vperm.xlu1 %7760, %v2756_v33  }
 0x69f   :  { %v2826_v29 = vpop.permute.xlu0 %2825  ;;  %v9931_v6 = vpop.f32.mrf.mxu3 }
 0x6a0   :  { %v2981_v8 = vadd.f32 %v9924_v23, %v2826_v29  ;;  %v2841_v33 = vpop.permute.xlu2 %2840  ;;  %v3047_v29 = vmul.f32 0.2, %v2983_v13 }
 0x6a1   :  { %7567 = vmatmul.msk.bf16.vlgmr.msra.gmra.mxu2 %vm75_vm0, %v9663_v50  ;;  %v2984_v53 = vadd.f32 %v9924_v23, %v2841_v33 }
 0x6a2   :  { %7550 = vmatmul.msk.bf16.gmra.mxu3 %vm75_vm0, %v8775_v60  ;;  %v3045_v19 = vmul.f32 0.2, %v2981_v8  ;;  %vm3013_vm7 = vcmp.gt.f32.partialorder %v2981_v8, 0.0  ;;  %v3079_v4 = vsel %vm3015_vm11, %v2983_v13, %v3047_v29 }
 0x6a3   :  { %v3048_v46 = vmul.f32 0.2, %v2984_v53  ;;  %vm3016_vm9 = vcmp.gt.f32.partialorder %v2984_v53, 0.0 }
 0x6a4   :  { %v3077_v14 = vsel %vm3013_vm7, %v2981_v8, %v3045_v19  ;;  %v9955_v41 = vpop.f32.mrf.mxu2 }
 0x6a5   :  { %2930 = vperm.xlu1 %7760, %v2761_v2   ;;  %v9937_v63 = vadd.f32 %v3077_v14, %v9013_v52  ;;  %v3044_v2 = vmul.f32 0.2, %v2980_v18  ;;  %v3080_v17 = vsel %vm3016_vm9, %v2984_v53, %v3048_v46  ;;  %12463 = vst [vmem:[#allocation51_spill] sm:$0xff] %v9955_v41  ;;  %v12481_v41 = vld [vmem:[#allocation43_spill] sm:$0xff] }
 0x6a6   :  { %v9962_v25 = vadd.f32 %v3080_v17, %v9009_v62 }
 0x6a7   :  { %v2831_v16 = vpop.permute.xlu0 %2830  ;;  %v9939_v7 = vpop.f32.mrf.mxu3  ;;  %v3076_v37 = vsel %vm3012_vm10, %v2980_v18, %v3044_v2  ;;  %v9980_v2 = vadd.f32 %v3079_v4, %v8978_v57 }
 0x6a8   :  { %v2982_v11 = vadd.f32 %v9924_v23, %v2831_v16  ;;  %v9959_v61 = vadd.f32 %v3076_v37, %v8982_v34 }
 0x6aa   :  { %v3046_v15 = vmul.f32 0.2, %v2982_v11  ;;  %vm3014_vm8 = vcmp.gt.f32.partialorder %v2982_v11, 0.0 }
 0x6ac   :  { %v3078_v44 = vsel %vm3014_vm8, %v2982_v11, %v3046_v15  ;;  %v9974_v53 = vpop.f32.mrf.mxu2 }
 0x6ad   :  { %v9951_v43 = vadd.f32 %v3078_v44, %v9035_v12  ;;  %12464 = vst [vmem:[#allocation52_spill] sm:$0xff] %v9974_v53 }
 0x6af   :  { %v2781_v28 = vpop.f32.mrf.mxu3  ;;  %v2851_v59 = vpop.permute.xlu2 %2850 }
 0x6b0   :  { %v2986_v38 = vadd.f32 %v9924_v23, %v2851_v59  ;;  %v12465_v59 = vld [vmem:[#allocation42_spill] sm:$0xff] }
 0x6b1   :  { %7568 = vmatmul.msk.bf16.gmra.mxu2 %vm75_vm0, %v9682_v49 }
 0x6b2   :  { %7575 = vmatmul.msk.bf16.vlgmr.msra.gmra.mxu3 %vm75_vm0, %v9663_v50  ;;  %v3050_v8 = vmul.f32 0.2, %v2986_v38  ;;  %vm3018_vm12 = vcmp.gt.f32.partialorder %v2986_v38, 0.0 }
 0x6b4   :  { %v3082_v33 = vsel %vm3018_vm12, %v2986_v38, %v3050_v8  ;;  %v12467_v38 = vld [vmem:[#allocation41_spill] sm:$0xff]  ;;  %v9993_v8 = vpop.f32.mrf.mxu2 }
 0x6b5   :  { %v9983_v37 = vadd.f32 %v3082_v33, %v12465_v59  ;;  %12468 = vst [vmem:[#allocation41_spill] sm:$0xff] %v9993_v8 }
 0x6b7   :  { %v9969_v11 = vpop.f32.mrf.mxu3 }
 0x6bf   :  { %3142 = vmax.xlane.f32.xlu0 %v9937_v63  ;;  %v2846_v19 = vpop.permute.xlu1 %2845  ;;  %v9988_v17 = vpop.f32.mrf.mxu3 }
 0x6c0   :  { %v2985_v14 = vadd.f32 %v9924_v23, %v2846_v19  ;;  %12466 = vst [vmem:[#allocation42_spill] sm:$0xff] %v9988_v17 }
 0x6c1   :  { %7569 = vmatmul.msk.bf16.gmra.mxu2 %vm75_vm0, %v9692_v24 }
 0x6c2   :  { %7576 = vmatmul.msk.bf16.gmra.mxu3 %vm75_vm0, %v9682_v49  ;;  %v3049_v46 = vmul.f32 0.2, %v2985_v14  ;;  %vm3017_vm14 = vcmp.gt.f32.partialorder %v2985_v14, 0.0 }
 0x6c4   :  { %v3081_v13 = vsel %vm3017_vm14, %v2985_v14, %v3049_v46  ;;  %v10002_v14 = vpop.f32.mrf.mxu2 }
 0x6c5   :  { %v9991_v29 = vadd.f32 %v3081_v13, %v12467_v38  ;;  %12470 = vst [vmem:[#allocation54_spill] sm:$0xff] %v10002_v14 }
 0x6c7   :  { %3144 = vmax.xlane.f32.xlu0 %v9951_v43 }
 0x6cc   :  { %v10012_v4 = vpop.f32.mrf.mxu2 }
 0x6cd   :  { %12472 = vst [vmem:[#allocation56_spill] sm:$0xff] %v10012_v4 }
 0x6cf   :  { %v2856_v16 = vpop.permute.xlu0 %2855  ;;  %3140 = vmax.xlane.f32.xlu1 %v9959_v61  ;;  %3148 = vmax.xlane.f32.xlu0 %v9962_v25 }
 0x6d0   :  { %v2987_v32 = vadd.f32 %v9924_v23, %v2856_v16  ;;  %v10000_v16 = vpop.f32.mrf.mxu3 }
 0x6d1   :  { %7570 = vmatmul.msk.bf16.gmra.mxu2 %vm75_vm0, %v9704_v45  ;;  %12469 = vst [vmem:[#allocation53_spill] sm:$0xff] %v10000_v16 }
 0x6d2   :  { %v3051_v15 = vmul.f32 0.2, %v2987_v32  ;;  %7577 = vmatmul.msk.bf16.gmra.mxu3 %vm75_vm0, %v9692_v24  ;;  %vm3019_vm13 = vcmp.gt.f32.partialorder %v2987_v32, 0.0 }
 0x6d4   :  { %v3083_v18 = vsel %vm3019_vm13, %v2987_v32, %v3051_v15 }
 0x6d5   :  { %v9977_v44 = vadd.f32 %v3083_v18, %v9032_v27 }
 0x6d7   :  { %3154 = vmax.xlane.f32.xlu2 %v9977_v44  ;;  %3146 = vmax.xlane.f32.xlu1 %v9980_v2 }
 0x6d8   :  { %3152 = vmax.xlane.f32.xlu0 %v9983_v37  ;;  %v10006_v15 = vpop.f32.mrf.mxu3 }
 0x6d9   :  { %12471 = vst [vmem:[#allocation55_spill] sm:$0xff] %v10006_v15 }
 0x6df   :  { %v2814_v19 = vpop.f32.mrf.mxu1  ;;  %3150 = vmax.xlane.f32.xlu1 %v9991_v29  ;;  %v2866_v18 = vpop.permute.xlu0 %2865 }
 0x6e0   :  { %v10016_v33 = vpop.f32.mrf.mxu3  ;;  %v2989_v4 = vadd.f32 %v9924_v23, %v2866_v18  ;;  %v10058_v14 = vperm.slane %v2814_v19, 0 }
 0x6e1   :  { %7571 = vmatmul.msk.bf16.gmra.mxu2 %vm75_vm0, %v9588_v48  ;;  %12473 = vst [vmem:[#allocation57_spill] sm:$0xff] %v10016_v33 }
 0x6e2   :  { %7578 = vmatmul.msk.bf16.gmra.mxu3 %vm75_vm0, %v9704_v45  ;;  %vm3021_vm15 = vcmp.gt.f32.partialorder %v2989_v4, 0.0 }
 0x6e7   :  { %v2816_v32 = vpop.f32.mrf.mxu1 }
 0x6ec   :  { %2940 = vperm.xlu0 %7761, %v9902_v22   ;;  %v10018_v22 = vpop.f32.mrf.mxu2 }
 0x6ed   :  { %12474 = vst [vmem:[#allocation58_spill] sm:$0xff] %v10018_v22 }
 0x6ef   :  { %2965 = vperm.xlu2 %7762, %v9939_v7   ;;  %v10025_v7 = vpop.f32.mrf.mxu3 }
 0x6f0   :  { %12475 = vst [vmem:[#allocation59_spill] sm:$0xff] %v10025_v7 }
 0x6f1   :  { %7572 = vmatmul.msk.bf16.gmra.mxu2 %vm75_vm0, %v9594_v21 }
 0x6f2   :  { %7579 = vmatmul.msk.bf16.gmra.mxu3 %vm75_vm0, %v9588_v48 }
 0x6f4   :  { %2950 = vperm.xlu0 %7761, %v9916_v31   ;;  %v10027_v46 = vpop.f32.mrf.mxu2 }
 0x6f5   :  { %12476 = vst [vmem:[#allocation60_spill] sm:$0xff] %v10027_v46 }
 0x6f7   :  { %2970 = vperm.xlu2 %7762, %v2781_v28   ;;  %v10032_v31 = vpop.f32.mrf.mxu3  ;;  %v10041_v28 = vpop.permute.xlu2 %2860 }
 0x6f8   :  { %2935 = vperm.xlu1 %7760, %v9892_v51   ;;  %v10030_v51 = vpop.permute.xlu0 %2875  ;;  %12477 = vst [vmem:[#allocation61_spill] sm:$0xff] %v10032_v31 }
 0x6ff   :  { %v10045_v32 = vpop.f32.mrf.mxu3  ;;  %v10049_v46 = vpop.permute.xlu2 %2870 }
 0x700   :  { %2945 = vperm.xlu1 %7760, %v9914_v5   ;;  %v10035_v5 = vpop.f32.mrf.mxu2  ;;  %v10043_v13 = vpop.permute.xlu0 %2880  ;;  %12479 = vst [vmem:[#allocation63_spill] sm:$0xff] %v10045_v32  ;;  %v3053_v32 = vmul.f32 0.2, %v2989_v4 }
 0x701   :  { %7573 = vmatmul.msk.bf16.gmra.mxu2 %vm75_vm0, %v9600_v1  ;;  %12478 = vst [vmem:[#allocation62_spill] sm:$0xff] %v10035_v5 }
 0x702   :  { %7580 = vmatmul.msk.bf16.gmra.mxu3 %vm75_vm0, %v9594_v21  ;;  %v3085_v17 = vsel %vm3021_vm15, %v2989_v4, %v3053_v32 }
 0x703   :  { %v10063_v60 = vadd.f32 %v3085_v17, %v12481_v41 }
 0x707   :  { %v2901_v22 = vpop.permute.xlu2 %2900 }
 0x708   :  { %2955 = vperm.xlu1 %7760, %v9922_v56   ;;  %v10047_v56 = vpop.permute.xlu1 %2885  ;;  %v2906_v31 = vpop.permute.xlu0 %2905 }
 0x709   :  { %v2997_v18 = vadd.f32 %v10058_v14, %v2906_v31 }
 0x70b   :  { %vm3029_vm2 = vcmp.gt.f32.partialorder %v2997_v18, 0.0 }
 0x70f   :  { %v2911_v15 = vpop.permute.xlu2 %2910 }
 0x710   :  { %2960 = vperm.xlu1 %7760, %v9931_v6   ;;  %v10051_v6 = vpop.f32.mrf.mxu3  ;;  %v2916_v5 = vpop.permute.xlu1 %2915 }
 0x711   :  { %7574 = vmatmul.msk.bf16.gmra.mxu2 %vm75_vm0, %v9667_v9  ;;  %12480 = vst [vmem:[#allocation64_spill] sm:$0xff] %v10051_v6  ;;  %v10055_v7 = vpop.permute.xlu0 %2925  ;;  %v2998_v6 = vadd.f32 %v10058_v14, %v2911_v15 }
 0x712   :  { %7581 = vmatmul.msk.bf16.gmra.mxu3 %vm75_vm0, %v9600_v1 }
 0x713   :  { %v3062_v40 = vmul.f32 0.2, %v2998_v6  ;;  %vm3030_vm1 = vcmp.gt.f32.partialorder %v2998_v6, 0.0 }
 0x715   :  { %v3094_v20 = vsel %vm3030_vm1, %v2998_v6, %v3062_v40 }
 0x718   :  { %v2921_v33 = vpop.permute.xlu1 %2920 }
 0x720   :  { %v2931_v19 = vpop.permute.xlu1 %2930 }
 0x722   :  { %7582 = vmatmul.msk.bf16.gmra.mxu3 %vm75_vm0, %v9667_v9  ;;  %v3061_v9 = vmul.f32 0.2, %v2997_v18 }
 0x724   :  { %v3093_v17 = vsel %vm3029_vm2, %v2997_v18, %v3061_v9 }
 0x725   :  { %v10077_v15 = vadd.f32 %v3093_v17, %v9013_v52  ;;  %v3002_v52 = vadd.f32 %v10058_v14, %v2931_v19 }
 0x727   :  { %vm3034_vm6 = vcmp.gt.f32.partialorder %v3002_v52, 0.0 }
 0x732   :  { %v3143_v8 = vpop.xlane.xlu0 %3142 }
 0x733   :  { %v3205_v16 = vsub.f32 %v9937_v63, %v3143_v8  ;;  %v10071_v63 = vadd.f32 %v3094_v20, %v9035_v12  ;;  %v3000_v20 = vadd.f32 %v10058_v14, %v2921_v33  ;;  %v2996_v12 = vadd.f32 %v10058_v14, %v2901_v22 }
 0x734   :  { %v3066_v22 = vmul.f32 0.2, %v3002_v52 }
 0x735   :  { %v3238_v53 = vmul.f32 1.442695, %v3205_v16  ;;  %v3060_v32 = vmul.f32 0.2, %v2996_v12  ;;  %vm3032_vm4 = vcmp.gt.f32.partialorder %v3000_v20, 0.0  ;;  %vm3028_vm5 = vcmp.gt.f32.partialorder %v2996_v12, 0.0 }
 0x736   :  { %v3098_v17 = vsel %vm3034_vm6, %v3002_v52, %v3066_v22 }
 0x737   :  { %7923 = vpow2.f32 %v3238_v53  ;;  %v2999_v53 = vadd.f32 %v10058_v14, %v2916_v5  ;;  %v3092_v33 = vsel %vm3028_vm5, %v2996_v12, %v3060_v32  ;;  %v10102_v19 = vadd.f32 %v3098_v17, %v12465_v59  ;;  %v12482_v17 = vld [vmem:[#allocation40_spill] sm:$0xff] }
 0x739   :  { %v3063_v4 = vmul.f32 0.2, %v2999_v53  ;;  %vm3031_vm3 = vcmp.gt.f32.partialorder %v2999_v53, 0.0 }
 0x73a   :  { %3158 = vmax.xlane.f32.xlu1 %v10063_v60 }
 0x73b   :  { %v3095_v40 = vsel %vm3031_vm3, %v2999_v53, %v3063_v4 }
 0x73c   :  { %v10083_v9 = vadd.f32 %v3095_v40, %v8978_v57  ;;  %v10094_v57 = vadd.f32 %v3092_v33, %v8982_v34  ;;  %v3001_v40 = vadd.f32 %v10058_v14, %v10055_v7  ;;  %v2988_v7 = vadd.f32 %v9924_v23, %v10041_v28 }
 0x73d   :  { %v10067_v30 = vpop.eup %7923 }
 0x73e   :  { %3302 = vadd.xlane.f32.xlu2 %v10067_v30  ;;  %vm3033_vm8 = vcmp.gt.f32.partialorder %v3001_v40, 0.0  ;;  %v3052_v22 = vmul.f32 0.2, %v2988_v7  ;;  %vm3020_vm10 = vcmp.gt.f32.partialorder %v2988_v7, 0.0 }
 0x742   :  { %v3141_v8 = vpop.xlane.xlu1 %3140  ;;  %3176 = vmax.xlane.f32.xlu1 %v10071_v63 }
 0x743   :  { %v3204_v16 = vsub.f32 %v9959_v61, %v3141_v8  ;;  %v3064_v61 = vmul.f32 0.2, %v3000_v20 }
 0x745   :  { %v3236_v31 = vmul.f32 1.442695, %v3204_v16  ;;  %v3096_v6 = vsel %vm3032_vm4, %v3000_v20, %v3064_v61  ;;  %v3065_v61 = vmul.f32 0.2, %v3001_v40 }
 0x746   :  { %3174 = vmax.xlane.f32.xlu2 %v10077_v15  ;;  %v10091_v18 = vadd.f32 %v3096_v6, %v9009_v62  ;;  %v10105_v62 = vpop.xlane.xlu0 %3144 }
 0x747   :  { %7925 = vpow2.f32 %v3236_v31  ;;  %v3097_v52 = vsel %vm3033_vm8, %v3001_v40, %v3065_v61 }
 0x748   :  { %v10123_v6 = vadd.f32 %v3097_v52, %v12467_v38 }
 0x74a   :  { %v10098_v53 = vpop.xlane.xlu1 %3146  ;;  %v10137_v40 = vpop.xlane.xlu2 %3154 }
 0x74d   :  { %v10085_v5 = vpop.eup %7925 }
 0x74e   :  { %3178 = vmax.xlane.f32.xlu2 %v10083_v9  ;;  %3300 = vadd.xlane.f32.xlu0 %v10085_v5  ;;  %v10110_v16 = vpop.xlane.xlu0 %3148 }
 0x752   :  { %v10107_v34 = vpop.xlane.xlu1 %3150 }
 0x756   :  { %3180 = vmax.xlane.f32.xlu2 %v10091_v18  ;;  %3172 = vmax.xlane.f32.xlu0 %v10094_v57  ;;  %v10113_v20 = vpop.xlane.xlu0 %3152 }
 0x75b   :  { %2890 = vperm.xlu1 %7760, %v9933_v55  }
 0x75e   :  { %3184 = vmax.xlane.f32.xlu2 %v10102_v19 }
 0x76a   :  { %v2936_v8 = vpop.permute.xlu1 %2935  ;;  %2975 = vperm.xlu0 %7761, %v9969_v11   ;;  %v2941_v11 = vpop.permute.xlu0 %2940 }
 0x76b   :  { %v3004_v32 = vadd.f32 %v10058_v14, %v2941_v11 }
 0x76d   :  { %v3068_v33 = vmul.f32 0.2, %v3004_v32  ;;  %vm3036_vm9 = vcmp.gt.f32.partialorder %v3004_v32, 0.0 }
 0x772   :  { %v2946_v4 = vpop.permute.xlu1 %2945 }
 0x773   :  { %v3005_v31 = vadd.f32 %v10058_v14, %v2946_v4 }
 0x775   :  { %vm3037_vm7 = vcmp.gt.f32.partialorder %v3005_v31, 0.0  ;;  %v3069_v55 = vmul.f32 0.2, %v3005_v31 }
 0x777   :  { %v3101_v59 = vsel %vm3037_vm7, %v3005_v31, %v3069_v55  ;;  %v3003_v31 = vadd.f32 %v10058_v14, %v2936_v8  ;;  %v3084_v55 = vsel %vm3020_vm10, %v2988_v7, %v3052_v22 }
 0x778   :  { %v10118_v12 = vadd.f32 %v3101_v59, %v12481_v41  ;;  %v3100_v41 = vsel %vm3036_vm9, %v3004_v32, %v3068_v33  ;;  %v10134_v38 = vadd.f32 %v3084_v55, %v12482_v17  ;;  %v10143_v32 = vpop.permute.xlu2 %2965 }
 0x779   :  { %v10129_v4 = vadd.f32 %v3100_v41, %v12482_v17  ;;  %v3067_v59 = vmul.f32 0.2, %v3003_v31  ;;  %vm3035_vm11 = vcmp.gt.f32.partialorder %v3003_v31, 0.0 }
 0x77a   :  { %3190 = vmax.xlane.f32.xlu2 %v10118_v12  ;;  %v2956_v11 = vpop.permute.xlu1 %2955 }
 0x77b   :  { %v3099_v28 = vsel %vm3035_vm11, %v3003_v31, %v3067_v59  ;;  %v2951_v31 = vpop.permute.xlu0 %2950 }
 0x77c   :  { %v10140_v61 = vadd.f32 %v3099_v28, %v9032_v27  ;;  %v3207_v28 = vsub.f32 %v9980_v2, %v10098_v53 }
 0x77e   :  { %v3242_v0 = vmul.f32 1.442695, %v3207_v28 }
 0x780   :  { %v10147_v52 = vpop.permute.xlu2 %2970 }
 0x782   :  { %v10145_v8 = vpop.permute.xlu1 %2960 }
 0x785   :  { %3182 = vmax.xlane.f32.xlu1 %v10123_v6 }
 0x78d   :  { %3188 = vmax.xlane.f32.xlu1 %v10129_v4 }
 0x794   :  { %3156 = vmax.xlane.f32.xlu0 %v10134_v38 }
 0x79c   :  { %3186 = vmax.xlane.f32.xlu0 %v10140_v61 }
 0x7ad   :  { %v10149_v33 = vpop.xlane.xlu1 %3158 }
 0x7b1   :  { %v3303_v7 = vpop.xlane.xlu2 %3302 }
 0x7b5   :  { %v3177_v41 = vpop.xlane.xlu1 %3176 }
 0x7b6   :  { %v3222_v22 = vsub.f32 %v10071_v63, %v3177_v41 }
 0x7b8   :  { %v3272_v17 = vmul.f32 1.442695, %v3222_v22 }
 0x7b9   :  { %v3175_v55 = vpop.xlane.xlu2 %3174 }
 0x7ba   :  { %7927 = vpow2.f32 %v3272_v17  ;;  %v3221_v27 = vsub.f32 %v10077_v15, %v3175_v55 }
 0x7bb   :  { %7929 = vrcp.f32 %v3303_v7  ;;  %v3006_v7 = vadd.f32 %v10058_v14, %v2951_v31 }
 0x7bc   :  { %v3270_v59 = vmul.f32 1.442695, %v3221_v27 }
 0x7bd   :  { %vm3038_vm12 = vcmp.gt.f32.partialorder %v3006_v7, 0.0 }
 0x7be   :  { %7931 = vpow2.f32 %v3270_v59 }
 0x7c0   :  { %v10155_v1 = vpop.eup %7927 }
 0x7c1   :  { %v3301_v10 = vpop.xlane.xlu0 %3300  ;;  %3336 = vadd.xlane.f32.xlu2 %v10155_v1  ;;  %v7930_v21 = vpop.eup %7929 }
 0x7c2   :  { %7933 = vrcp.f32 %v3301_v10  ;;  %v3397_v41 = vmul.f32 %v7930_v21, %v10067_v30  ;;  %v3070_v10 = vmul.f32 0.2, %v3006_v7 }
 0x7c3   :  { %7935 = vpow2.f32 %v3242_v0  ;;  %v3206_v0 = vsub.f32 %v9951_v43, %v10105_v62 }
 0x7c4   :  { %v10158_v63 = vpop.eup %7931  ;;  %v3429_v2 = vpack.c.bf16 %v3397_v41, %v3397_v41  ;;  %v3102_v31 = vsel %vm3038_vm12, %v3006_v7, %v3070_v10  ;;  %v3179_v41 = vpop.xlane.xlu2 %3178  ;;  %v12484_v7 = vld [vmem:[#allocation45_spill] sm:$0xff] }
 0x7c5   :  { %3334 = vadd.xlane.f32.xlu0 %v10158_v63  ;;  %v3223_v43 = vsub.f32 %v10083_v9, %v3179_v41 }
 0x7c6   :  { %v3477_v28 = vunpack.c.l.b16 %v3429_v2 }
 0x7c8   :  { %v7934_v15 = vpop.eup %7933 }
 0x7c9   :  { %v3396_v53 = vmul.f32 %v7934_v15, %v10085_v5  ;;  %v3173_v22 = vpop.xlane.xlu0 %3172  ;;  %v10165_v27 = vpop.eup %7935  ;;  %v3007_v5 = vadd.f32 %v10058_v14, %v2956_v11  ;;  %v12483_v15 = vld [vmem:[#allocation44_spill] sm:$0xff]  ;;  %v3274_v11 = vmul.f32 1.442695, %v3223_v43 }
 0x7ca   :  { %v3220_v17 = vsub.f32 %v10094_v57, %v3173_v22  ;;  %v3240_v57 = vmul.f32 1.442695, %v3206_v0 }
 0x7cb   :  { %v3428_v55 = vpack.c.bf16 %v3396_v53, %v3396_v53  ;;  %v10173_v53 = vadd.f32 %v3102_v31, %v12483_v15  ;;  %v3071_v22 = vmul.f32 0.2, %v3007_v5  ;;  %vm3039_vm13 = vcmp.gt.f32.partialorder %v3007_v5, 0.0 }
 0x7cc   :  { %v3268_v59 = vmul.f32 1.442695, %v3220_v17 }
 0x7cd   :  { %v3476_v30 = vunpack.c.l.b16 %v3428_v55  ;;  %3306 = vadd.xlane.f32.xlu0 %v10165_v27  ;;  %v3103_v62 = vsel %vm3039_vm13, %v3007_v5, %v3071_v22 }
 0x7ce   :  { %7937 = vpow2.f32 %v3268_v59  ;;  %v10185_v17 = vadd.f32 %v3103_v62, %v12484_v7 }
 0x7cf   :  { %v3492_v21 = vpack.c.b16 %v3477_v28, %v3476_v30  ;;  %7939 = vpow2.f32 %v3240_v57  ;;  %v10215_v57 = vpop.permute.xlu1 %2890 }
 0x7d0   :  { %7941 = vpow2.f32 %v3274_v11 }
 0x7d1   :  { %3524 = vmatmul.bf16.vlgmr.msra.gmra.mxu0 %v3492_v21 }
 0x7d2   :  { %4354 = vmatpush.bf16.msra.mxu0 %v9805_v58  ;;  %v2990_v58 = vadd.f32 %v9924_v23, %v10049_v46  ;;  %v2991_v46 = vadd.f32 %v9924_v23, %v10030_v51  ;;  %v3008_v51 = vadd.f32 %v10058_v14, %v10145_v8 }
 0x7d4   :  { %v10175_v2 = vpop.eup %7937  ;;  %v3054_v10 = vmul.f32 0.2, %v2990_v58  ;;  %vm3022_vm14 = vcmp.gt.f32.partialorder %v2990_v58, 0.0  ;;  %v3055_v30 = vmul.f32 0.2, %v2991_v46  ;;  %vm3023_vm15 = vcmp.gt.f32.partialorder %v2991_v46, 0.0 }
 0x7d5   :  { %3332 = vadd.xlane.f32.xlu1 %v10175_v2  ;;  %3192 = vmax.xlane.f32.xlu0 %v10173_v53  ;;  %v10187_v55 = vpop.eup %7939  ;;  %v3072_v31 = vmul.f32 0.2, %v3008_v51  ;;  %vm3040_vm1 = vcmp.gt.f32.partialorder %v3008_v51, 0.0 }
 0x7d6   :  { %4355 = vmatpush.bf16.msra.mxu0 %v9814_v36  ;;  %v3208_v36 = vsub.f32 %v9962_v25, %v10110_v16  ;;  %v10198_v28 = vpop.eup %7941  ;;  %v3209_v25 = vsub.f32 %v9991_v29, %v10107_v34  ;;  %v3087_v16 = vsel %vm3023_vm15, %v2991_v46, %v3055_v30  ;;  %v3009_v29 = vadd.f32 %v10058_v14, %v10143_v32  ;;  %v3181_v34 = vpop.xlane.xlu2 %3180  ;;  %v12486_v46 = vld [vmem:[#allocation47_spill] sm:$0xff] }
 0x7d7   :  { %v10207_v21 = vadd.f32 %v3087_v16, %v12484_v7  ;;  %v3104_v8 = vsel %vm3040_vm1, %v3008_v51, %v3072_v31  ;;  %v3224_v41 = vsub.f32 %v10091_v18, %v3181_v34  ;;  %v2992_v32 = vadd.f32 %v9924_v23, %v10043_v13 }
 0x7d8   :  { %v3244_v9 = vmul.f32 1.442695, %v3208_v36  ;;  %v3246_v0 = vmul.f32 1.442695, %v3209_v25  ;;  %vm3041_vm2 = vcmp.gt.f32.partialorder %v3009_v29, 0.0  ;;  %v3210_v18 = vsub.f32 %v9983_v37, %v10113_v20 }
 0x7d9   :  { %2895 = vperm.xlu2 %7762, %v9942_v39   ;;  %v3086_v39 = vsel %vm3022_vm14, %v2990_v58, %v3054_v10  ;;  %v3073_v58 = vmul.f32 0.2, %v3009_v29  ;;  %v3276_v62 = vmul.f32 1.442695, %v3224_v41  ;;  %vm3024_vm3 = vcmp.gt.f32.partialorder %v2992_v32, 0.0 }
 0x7da   :  { %v10196_v59 = vadd.f32 %v3086_v39, %v12483_v15  ;;  %7943 = vpow2.f32 %v3244_v9  ;;  %v12485_v15 = vld [vmem:[#allocation46_spill] sm:$0xff]  ;;  %v3056_v9 = vmul.f32 0.2, %v2992_v32  ;;  %v3211_v13 = vsub.f32 %v9977_v44, %v10137_v40 }
 0x7db   :  { %7945 = vpow2.f32 %v3246_v0  ;;  %v10219_v22 = vadd.f32 %v3104_v8, %v12485_v15  ;;  %v3105_v7 = vsel %vm3041_vm2, %v3009_v29, %v3073_v58  ;;  %v2993_v30 = vadd.f32 %v9924_v23, %v10047_v56 }
 0x7dc   :  { %7947 = vpow2.f32 %v3276_v62  ;;  %v10231_v39 = vadd.f32 %v3105_v7, %v12486_v46  ;;  %v2976_v25 = vpop.permute.xlu0 %2975  ;;  %v3088_v51 = vsel %vm3024_vm3, %v2992_v32, %v3056_v9  ;;  %v3250_v20 = vmul.f32 1.442695, %v3211_v13 }
 0x7dd   :  { %3304 = vadd.xlane.f32.xlu1 %v10187_v55  ;;  %3194 = vmax.xlane.f32.xlu0 %v10185_v17  ;;  %v3057_v31 = vmul.f32 0.2, %v2993_v30  ;;  %v10244_v34 = vadd.f32 %v3088_v51, %v12485_v15  ;;  %vm3025_vm4 = vcmp.gt.f32.partialorder %v2993_v30, 0.0 }
 0x7de   :  { %v3185_v16 = vpop.xlane.xlu2 %3184 }
 0x7df   :  { %v3226_v44 = vsub.f32 %v10102_v19, %v3185_v16  ;;  %v3089_v8 = vsel %vm3025_vm4, %v2993_v30, %v3057_v31  ;;  %v3010_v19 = vadd.f32 %v10058_v14, %v10147_v52  ;;  %v3011_v52 = vadd.f32 %v10058_v14, %v2976_v25 }
 0x7e0   :  { %v10209_v5 = vpop.eup %7943  ;;  %v10254_v15 = vadd.f32 %v3089_v8, %v12486_v46 }
 0x7e1   :  { %v10221_v43 = vpop.eup %7945  ;;  %v3280_v58 = vmul.f32 1.442695, %v3226_v44  ;;  %vm3042_vm5 = vcmp.gt.f32.partialorder %v3010_v19, 0.0  ;;  %vm3043_vm6 = vcmp.gt.f32.partialorder %v3011_v52, 0.0  ;;  %v3213_v44 = vsub.f32 %v10063_v60, %v10149_v33 }
 0x7e2   :  { %v10238_v37 = vpop.eup %7947 }
 0x7e5   :  { %3160 = vmax.xlane.f32.xlu0 %v10196_v59  ;;  %3338 = vadd.xlane.f32.xlu1 %v10198_v28 }
 0x7ed   :  { %3308 = vadd.xlane.f32.xlu0 %v10209_v5  ;;  %3162 = vmax.xlane.f32.xlu1 %v10207_v21  ;;  %v3191_v7 = vpop.xlane.xlu2 %3190 }
 0x7ee   :  { %v3229_v9 = vsub.f32 %v10118_v12, %v3191_v7 }
 0x7f0   :  { %v3286_v30 = vmul.f32 1.442695, %v3229_v9 }
 0x7f5   :  { %3196 = vmax.xlane.f32.xlu0 %v10219_v22  ;;  %3310 = vadd.xlane.f32.xlu1 %v10221_v43 }
 0x7f8   :  { %v3183_v11 = vpop.xlane.xlu1 %3182 }
 0x7f9   :  { %v3225_v10 = vsub.f32 %v10123_v6, %v3183_v11  ;;  %v3248_v6 = vmul.f32 1.442695, %v3210_v18 }
 0x7fb   :  { %v3278_v36 = vmul.f32 1.442695, %v3225_v10 }
 0x7fd   :  { %7949 = vpow2.f32 %v3278_v36  ;;  %3198 = vmax.xlane.f32.xlu1 %v10231_v39  ;;  %v3074_v36 = vmul.f32 0.2, %v3010_v19 }
 0x7fe   :  { %7951 = vpow2.f32 %v3248_v6  ;;  %v3075_v6 = vmul.f32 0.2, %v3011_v52 }
 0x7ff   :  { %7953 = vpow2.f32 %v3250_v20  ;;  %v3106_v13 = vsel %vm3042_vm5, %v3010_v19, %v3074_v36  ;;  %v2994_v20 = vadd.f32 %v9924_v23, %v10215_v57 }
 0x800   :  { %v3189_v29 = vpop.xlane.xlu1 %3188  ;;  %7955 = vpow2.f32 %v3280_v58  ;;  %v10274_v51 = vadd.f32 %v3106_v13, %v9311_v3  ;;  %v3107_v14 = vsel %vm3043_vm6, %v3011_v52, %v3075_v6 }
 0x801   :  { %v3228_v56 = vsub.f32 %v10129_v4, %v3189_v29  ;;  %v10282_v16 = vadd.f32 %v3107_v14, %v9286_v26  ;;  %v3058_v31 = vmul.f32 0.2, %v2994_v20  ;;  %vm3026_vm7 = vcmp.gt.f32.partialorder %v2994_v20, 0.0 }
 0x802   :  { %3340 = vadd.xlane.f32.xlu2 %v10238_v37 }
 0x803   :  { %v10241_v0 = vpop.eup %7949  ;;  %v3284_v62 = vmul.f32 1.442695, %v3228_v56  ;;  %v3254_v56 = vmul.f32 1.442695, %v3213_v44 }
 0x804   :  { %3342 = vadd.xlane.f32.xlu0 %v10241_v0  ;;  %v10250_v41 = vpop.eup %7951 }
 0x805   :  { %3164 = vmax.xlane.f32.xlu1 %v10244_v34  ;;  %v10256_v32 = vpop.eup %7953  ;;  %7957 = vpow2.f32 %v3284_v62 }
 0x806   :  { %v10263_v18 = vpop.eup %7955 }
 0x807   :  { %v3157_v40 = vpop.xlane.xlu0 %3156 }
 0x808   :  { %v3212_v12 = vsub.f32 %v10134_v38, %v3157_v40  ;;  %v3090_v38 = vsel %vm3026_vm7, %v2994_v20, %v3058_v31 }
 0x809   :  { %v10291_v57 = vadd.f32 %v3090_v38, %v9311_v3 }
 0x80a   :  { %3312 = vadd.xlane.f32.xlu2 %v10250_v41  ;;  %v3252_v25 = vmul.f32 1.442695, %v3212_v12 }
 0x80b   :  { %v10265_v46 = vpop.eup %7957 }
 0x80c   :  { %3166 = vmax.xlane.f32.xlu0 %v10254_v15 }
 0x80d   :  { %3314 = vadd.xlane.f32.xlu1 %v10256_v32 }
 0x80f   :  { %v3187_v4 = vpop.xlane.xlu0 %3186 }
 0x810   :  { %v3227_v11 = vsub.f32 %v10140_v61, %v3187_v4 }
 0x812   :  { %v3282_v10 = vmul.f32 1.442695, %v3227_v11 }
 0x814   :  { %7959 = vpow2.f32 %v3282_v10  ;;  %3344 = vadd.xlane.f32.xlu0 %v10263_v18 }
 0x815   :  { %3348 = vadd.xlane.f32.xlu1 %v10265_v46  ;;  %7961 = vpow2.f32 %v3286_v30 }
 0x816   :  { %7963 = vpow2.f32 %v3252_v25 }
 0x817   :  { %7965 = vpow2.f32 %v3254_v56 }
 0x81a   :  { %v10271_v61 = vpop.eup %7959 }
 0x81b   :  { %3346 = vadd.xlane.f32.xlu2 %v10271_v61  ;;  %v10284_v29 = vpop.eup %7961 }
 0x81c   :  { %3200 = vmax.xlane.f32.xlu0 %v10274_v51  ;;  %v10293_v40 = vpop.eup %7963 }
 0x81d   :  { %v10297_v8 = vpop.eup %7965 }
 0x823   :  { %3202 = vmax.xlane.f32.xlu2 %v10282_v16 }
 0x824   :  { %3350 = vadd.xlane.f32.xlu0 %v10284_v29 }
 0x82b   :  { %3168 = vmax.xlane.f32.xlu2 %v10291_v57 }
 0x82c   :  { %3316 = vadd.xlane.f32.xlu0 %v10293_v40 }
 0x833   :  { %3318 = vadd.xlane.f32.xlu2 %v10297_v8 }
 0x834   :  { %v3337_v60 = vpop.xlane.xlu2 %3336 }
 0x838   :  { %v3335_v33 = vpop.xlane.xlu0 %3334 }
 0x839   :  { %7967 = vrcp.f32 %v3335_v33 }
 0x83c   :  { %v2896_v58 = vpop.permute.xlu2 %2895 }
 0x83d   :  { %v2995_v62 = vadd.f32 %v9924_v23, %v2896_v58 }
 0x83f   :  { %vm3027_vm8 = vcmp.gt.f32.partialorder %v2995_v62, 0.0  ;;  %v3059_v19 = vmul.f32 0.2, %v2995_v62  ;;  %v7968_v36 = vpop.eup %7967 }
 0x840   :  { %v3307_v3 = vpop.xlane.xlu0 %3306  ;;  %v3413_v23 = vmul.f32 %v7968_v36, %v10158_v63 }
 0x841   :  { %v3091_v4 = vsel %vm3027_vm8, %v2995_v62, %v3059_v19 }
 0x842   :  { %v10302_v11 = vadd.f32 %v3091_v4, %v9286_v26  ;;  %v3445_v30 = vpack.c.bf16 %v3413_v23, %v3413_v23 }
 0x844   :  { %3170 = vmax.xlane.f32.xlu1 %v10302_v11  ;;  %v3582_v44 = vunpack.c.l.b16 %v3445_v30 }
 0x848   :  { %v3333_v7 = vpop.xlane.xlu1 %3332  ;;  %v3193_v10 = vpop.xlane.xlu0 %3192 }
 0x849   :  { %7969 = vrcp.f32 %v3333_v7  ;;  %v3230_v9 = vsub.f32 %v10173_v53, %v3193_v10 }
 0x84a   :  { %7971 = vrcp.f32 %v3307_v3 }
 0x84b   :  { %v3288_v52 = vmul.f32 1.442695, %v3230_v9 }
 0x84d   :  { %7973 = vpow2.f32 %v3288_v52 }
 0x84f   :  { %v7970_v13 = vpop.eup %7969 }
 0x850   :  { %v3412_v6 = vmul.f32 %v7970_v13, %v10175_v2  ;;  %v3305_v26 = vpop.xlane.xlu1 %3304  ;;  %v3195_v12 = vpop.xlane.xlu0 %3194 }
 0x851   :  { %v7972_v20 = vpop.eup %7971  ;;  %7975 = vrcp.f32 %v3305_v26  ;;  %v3231_v14 = vsub.f32 %v10185_v17, %v3195_v12 }
 0x852   :  { %v3444_v25 = vpack.c.bf16 %v3412_v6, %v3412_v6  ;;  %7977 = vrcp.f32 %v3337_v60  ;;  %v3399_v63 = vmul.f32 %v7972_v20, %v10165_v27 }
 0x853   :  { %v10309_v31 = vpop.eup %7973  ;;  %v3290_v53 = vmul.f32 1.442695, %v3231_v14 }
 0x854   :  { %v3581_v38 = vunpack.c.l.b16 %v3444_v25  ;;  %3352 = vadd.xlane.f32.xlu1 %v10309_v31  ;;  %v3431_v17 = vpack.c.bf16 %v3399_v63, %v3399_v63 }
 0x855   :  { %7979 = vpow2.f32 %v3290_v53 }
 0x856   :  { %v3597_v56 = vpack.c.b16 %v3582_v44, %v3581_v38  ;;  %v3479_v10 = vunpack.c.l.b16 %v3431_v17 }
 0x857   :  { %v7976_v2 = vpop.eup %7975 }
 0x858   :  { %3629 = vmatmul.bf16.vlgmr.msrb.gmra.mxu1 %v3597_v56  ;;  %v3161_v33 = vpop.xlane.xlu0 %3160  ;;  %v3339_v58 = vpop.xlane.xlu1 %3338  ;;  %v3398_v62 = vmul.f32 %v7976_v2, %v10187_v55 }
 0x859   :  { %v7978_v19 = vpop.eup %7977  ;;  %v3214_v3 = vsub.f32 %v10196_v59, %v3161_v33  ;;  %7981 = vrcp.f32 %v3339_v58  ;;  %4403 = vmatpush.bf16.msrb.mxu1 %v9824_v35 }
 0x85a   :  { %v3430_v60 = vpack.c.bf16 %v3398_v62, %v3398_v62  ;;  %v3414_v36 = vmul.f32 %v7978_v19, %v10155_v1 }
 0x85b   :  { %v10316_v4 = vpop.eup %7979  ;;  %v3256_v7 = vmul.f32 1.442695, %v3214_v3 }
 0x85c   :  { %3354 = vadd.xlane.f32.xlu0 %v10316_v4  ;;  %v3478_v27 = vunpack.c.l.b16 %v3430_v60  ;;  %v3446_v23 = vpack.c.bf16 %v3414_v36, %v3414_v36 }
 0x85d   :  { %7983 = vpow2.f32 %v3256_v7  ;;  %4404 = vmatpush.bf16.msrb.mxu1 %v9834_v42 }
 0x85e   :  { %v3493_v55 = vpack.c.b16 %v3479_v10, %v3478_v27  ;;  %v3583_v1 = vunpack.c.l.b16 %v3446_v23 }
 0x85f   :  { %v7982_v9 = vpop.eup %7981 }
 0x860   :  { %3529 = vmatmul.bf16.gmra.mxu0 %v3493_v55  ;;  %v3309_v59 = vpop.xlane.xlu0 %3308  ;;  %v3163_v52 = vpop.xlane.xlu1 %3162  ;;  %v3415_v35 = vmul.f32 %v7982_v9, %v10198_v28 }
 0x861   :  { %v3215_v13 = vsub.f32 %v10207_v21, %v3163_v52  ;;  %7985 = vrcp.f32 %v3309_v59 }
 0x862   :  { %v3447_v30 = vpack.c.bf16 %v3415_v35, %v3415_v35 }
 0x863   :  { %v10323_v6 = vpop.eup %7983  ;;  %v3258_v26 = vmul.f32 1.442695, %v3215_v13 }
 0x864   :  { %3320 = vadd.xlane.f32.xlu2 %v10323_v6  ;;  %v3584_v12 = vunpack.c.l.b16 %v3447_v30 }
 0x865   :  { %7987 = vpow2.f32 %v3258_v26 }
 0x866   :  { %v3598_v42 = vpack.c.b16 %v3584_v12, %v3583_v1 }
 0x867   :  { %v7986_v25 = vpop.eup %7985 }
 0x868   :  { %v3197_v20 = vpop.xlane.xlu0 %3196  ;;  %v3311_v14 = vpop.xlane.xlu1 %3310  ;;  %3634 = vmatmul.bf16.gmra.mxu1 %v3598_v42  ;;  %v3400_v44 = vmul.f32 %v7986_v25, %v10209_v5 }
 0x869   :  { %v3232_v28 = vsub.f32 %v10219_v22, %v3197_v20  ;;  %7989 = vrcp.f32 %v3311_v14 }
 0x86a   :  { %v3432_v2 = vpack.c.bf16 %v3400_v44, %v3400_v44 }
 0x86b   :  { %v10327_v53 = vpop.eup %7987  ;;  %v3292_v21 = vmul.f32 1.442695, %v3232_v28 }
 0x86c   :  { %3322 = vadd.xlane.f32.xlu1 %v10327_v53  ;;  %v3480_v17 = vunpack.c.l.b16 %v3432_v2 }
 0x86d   :  { %7991 = vpow2.f32 %v3292_v21 }
 0x86f   :  { %v7990_v38 = vpop.eup %7989 }
 0x870   :  { %v3199_v63 = vpop.xlane.xlu1 %3198  ;;  %v3401_v56 = vmul.f32 %v7990_v38, %v10221_v43 }
 0x871   :  { %v3233_v33 = vsub.f32 %v10231_v39, %v3199_v63 }
 0x872   :  { %v3433_v58 = vpack.c.bf16 %v3401_v56, %v3401_v56 }
 0x873   :  { %v10333_v62 = vpop.eup %7991  ;;  %v3294_v22 = vmul.f32 1.442695, %v3233_v33 }
 0x874   :  { %3356 = vadd.xlane.f32.xlu0 %v10333_v62  ;;  %v3481_v19 = vunpack.c.l.b16 %v3433_v58 }
 0x875   :  { %7993 = vpow2.f32 %v3294_v22  ;;  %v3341_v3 = vpop.xlane.xlu2 %3340 }
 0x876   :  { %7995 = vrcp.f32 %v3341_v3  ;;  %v3494_v5 = vpack.c.b16 %v3481_v19, %v3480_v17 }
 0x877   :  { %v3343_v60 = vpop.xlane.xlu0 %3342 }
 0x878   :  { %7997 = vrcp.f32 %v3343_v60  ;;  %3534 = vmatmul.bf16.gmra.mxu0 %v3494_v5  ;;  %v3165_v7 = vpop.xlane.xlu1 %3164 }
 0x879   :  { %v3216_v43 = vsub.f32 %v10244_v34, %v3165_v7 }
 0x87b   :  { %v10337_v27 = vpop.eup %7993  ;;  %v3260_v39 = vmul.f32 1.442695, %v3216_v43 }
 0x87c   :  { %v7996_v10 = vpop.eup %7995  ;;  %3358 = vadd.xlane.f32.xlu2 %v10337_v27 }
 0x87d   :  { %7999 = vpow2.f32 %v3260_v39  ;;  %v3313_v36 = vpop.xlane.xlu2 %3312  ;;  %v3416_v55 = vmul.f32 %v7996_v10, %v10238_v37 }
 0x87e   :  { %v7998_v9 = vpop.eup %7997  ;;  %8001 = vrcp.f32 %v3313_v36 }
 0x87f   :  { %v3167_v59 = vpop.xlane.xlu0 %3166  ;;  %v3417_v52 = vmul.f32 %v7998_v9, %v10241_v0  ;;  %v3448_v35 = vpack.c.bf16 %v3416_v55, %v3416_v55 }
 0x880   :  { %v3217_v23 = vsub.f32 %v10254_v15, %v3167_v59  ;;  %v3315_v13 = vpop.xlane.xlu1 %3314 }
 0x881   :  { %8003 = vrcp.f32 %v3315_v13  ;;  %v3449_v34 = vpack.c.bf16 %v3417_v52, %v3417_v52  ;;  %v3585_v1 = vunpack.c.l.b16 %v3448_v35 }
 0x882   :  { %v3262_v30 = vmul.f32 1.442695, %v3217_v23 }
 0x883   :  { %v10343_v26 = vpop.eup %7999  ;;  %v3586_v12 = vunpack.c.l.b16 %v3449_v34 }
 0x884   :  { %v8002_v42 = vpop.eup %8001  ;;  %8005 = vpow2.f32 %v3262_v30  ;;  %3324 = vadd.xlane.f32.xlu1 %v10343_v26 }
 0x885   :  { %v3599_v37 = vpack.c.b16 %v3586_v12, %v3585_v1  ;;  %v3402_v20 = vmul.f32 %v8002_v42, %v10250_v41 }
 0x887   :  { %v8004_v14 = vpop.eup %8003  ;;  %v3345_v0 = vpop.xlane.xlu0 %3344  ;;  %3639 = vmatmul.bf16.gmra.mxu1 %v3599_v37  ;;  %v3434_v25 = vpack.c.bf16 %v3402_v20, %v3402_v20 }
 0x888   :  { %v3403_v15 = vmul.f32 %v8004_v14, %v10256_v32  ;;  %8007 = vrcp.f32 %v3345_v0  ;;  %v3349_v17 = vpop.xlane.xlu1 %3348 }
 0x889   :  { %v3482_v44 = vunpack.c.l.b16 %v3434_v25 }
 0x88a   :  { %v10348_v28 = vpop.eup %8005  ;;  %v3435_v21 = vpack.c.bf16 %v3403_v15, %v3403_v15 }
 0x88b   :  { %3326 = vadd.xlane.f32.xlu0 %v10348_v28 }
 0x88c   :  { %v3483_v38 = vunpack.c.l.b16 %v3435_v21 }
 0x88e   :  { %v3347_v63 = vpop.xlane.xlu2 %3346  ;;  %v3495_v56 = vpack.c.b16 %v3483_v38, %v3482_v44  ;;  %v8008_v2 = vpop.eup %8007 }
 0x88f   :  { %8009 = vrcp.f32 %v3347_v63  ;;  %v3201_v33 = vpop.xlane.xlu0 %3200  ;;  %v3418_v32 = vmul.f32 %v8008_v2, %v10263_v18 }
 0x890   :  { %v3234_v41 = vsub.f32 %v10274_v51, %v3201_v33  ;;  %3539 = vmatmul.bf16.gmra.mxu0 %v3495_v56  ;;  %v3525_v33 = vpop.f32.mrf.mxu0 }
 0x891   :  { %v3450_v5 = vpack.c.bf16 %v3418_v32, %v3418_v32 }
 0x892   :  { %v3296_v58 = vmul.f32 1.442695, %v3234_v41 }
 0x893   :  { %v3587_v51 = vunpack.c.l.b16 %v3450_v5 }
 0x894   :  { %8011 = vpow2.f32 %v3296_v58 }
 0x895   :  { %v8010_v22 = vpop.eup %8009 }
 0x896   :  { %v3203_v19 = vpop.xlane.xlu2 %3202  ;;  %v3419_v3 = vmul.f32 %v8010_v22, %v10271_v61 }
 0x897   :  { %v3235_v60 = vsub.f32 %v10282_v16, %v3203_v19  ;;  %v3351_v7 = vpop.xlane.xlu0 %3350 }
 0x898   :  { %8013 = vrcp.f32 %v3351_v7  ;;  %v3451_v43 = vpack.c.bf16 %v3419_v3, %v3419_v3  ;;  %v3527_v7 = vpop.f32.mrf.mxu0 }
 0x899   :  { %8015 = vrcp.f32 %v3349_v17  ;;  %v3298_v39 = vmul.f32 1.442695, %v3235_v60  ;;  %v3670_v17 = vsel %vm75_vm0, %v3525_v33, 0.0 }
 0x89a   :  { %v10355_v10 = vpop.eup %8011  ;;  %v3588_v36 = vunpack.c.l.b16 %v3451_v43 }
 0x89b   :  { %8017 = vpow2.f32 %v3298_v39  ;;  %3360 = vadd.xlane.f32.xlu2 %v10355_v10 }
 0x89c   :  { %v3600_v18 = vpack.c.b16 %v3588_v36, %v3587_v51 }
 0x89e   :  { %v8014_v55 = vpop.eup %8013  ;;  %3644 = vmatmul.bf16.gmra.mxu1 %v3600_v18  ;;  %v3169_v9 = vpop.xlane.xlu2 %3168 }
 0x89f   :  { %v8016_v61 = vpop.eup %8015  ;;  %v3218_v59 = vsub.f32 %v10291_v57, %v3169_v9  ;;  %v3317_v16 = vpop.xlane.xlu0 %3316  ;;  %v3421_v52 = vmul.f32 %v8014_v55, %v10284_v29 }
 0x8a0   :  { %8019 = vrcp.f32 %v3317_v16  ;;  %v3420_v13 = vmul.f32 %v8016_v61, %v10265_v46  ;;  %v3673_v61 = vsel %vm75_vm0, %v3527_v7, 0.0 }
 0x8a1   :  { %v10360_v35 = vpop.eup %8017  ;;  %v3264_v23 = vmul.f32 1.442695, %v3218_v59  ;;  %v3453_v34 = vpack.c.bf16 %v3421_v52, %v3421_v52 }
 0x8a2   :  { %3362 = vadd.xlane.f32.xlu1 %v10360_v35  ;;  %v3452_v1 = vpack.c.bf16 %v3420_v13, %v3420_v13 }
 0x8a3   :  { %8021 = vpow2.f32 %v3264_v23  ;;  %v3590_v42 = vunpack.c.l.b16 %v3453_v34 }
 0x8a4   :  { %v3589_v29 = vunpack.c.l.b16 %v3452_v1 }
 0x8a6   :  { %v3319_v30 = vpop.xlane.xlu2 %3318  ;;  %v8020_v12 = vpop.eup %8019  ;;  %v3601_v20 = vpack.c.b16 %v3590_v42, %v3589_v29 }
 0x8a7   :  { %8023 = vrcp.f32 %v3319_v30  ;;  %v3404_v57 = vmul.f32 %v8020_v12, %v10293_v40 }
 0x8a9   :  { %v10364_v37 = vpop.eup %8021  ;;  %v3436_v46 = vpack.c.bf16 %v3404_v57, %v3404_v57 }
 0x8aa   :  { %3328 = vadd.xlane.f32.xlu0 %v10364_v37 }
 0x8ab   :  { %v3484_v25 = vunpack.c.l.b16 %v3436_v46 }
 0x8ad   :  { %v8024_v14 = vpop.eup %8023 }
 0x8ae   :  { %3649 = vmatmul.bf16.gmra.mxu1 %v3601_v20  ;;  %v3405_v0 = vmul.f32 %v8024_v14, %v10297_v8 }
 0x8b0   :  { %v3437_v15 = vpack.c.bf16 %v3405_v0, %v3405_v0 }
 0x8b2   :  { %v3485_v21 = vunpack.c.l.b16 %v3437_v15 }
 0x8b4   :  { %v3496_v44 = vpack.c.b16 %v3485_v21, %v3484_v25 }
 0x8b6   :  { %3544 = vmatmul.bf16.gmra.mxu0 %v3496_v44 }
 0x8b7   :  { %v3171_v38 = vpop.xlane.xlu1 %3170 }
 0x8b8   :  { %v3219_v63 = vsub.f32 %v10302_v11, %v3171_v38 }
 0x8ba   :  { %v3266_v56 = vmul.f32 1.442695, %v3219_v63 }
 0x8bc   :  { %8025 = vpow2.f32 %v3266_v56 }
 0x8c2   :  { %v10370_v2 = vpop.eup %8025 }
 0x8c3   :  { %3330 = vadd.xlane.f32.xlu2 %v10370_v2 }
 0x8c7   :  { %v3353_v40 = vpop.xlane.xlu1 %3352 }
 0x8c8   :  { %8027 = vrcp.f32 %v3353_v40 }
 0x8ce   :  { %v8028_v8 = vpop.eup %8027 }
 0x8cf   :  { %v3355_v41 = vpop.xlane.xlu0 %3354  ;;  %v3422_v58 = vmul.f32 %v8028_v8, %v10309_v31 }
 0x8d0   :  { %8029 = vrcp.f32 %v3355_v41 }
 0x8d1   :  { %v3454_v60 = vpack.c.bf16 %v3422_v58, %v3422_v58 }
 0x8d3   :  { %v3591_v31 = vunpack.c.l.b16 %v3454_v60 }
 0x8d5   :  { %v3630_v32 = vpop.f32.mrf.mxu1 }
 0x8d6   :  { %v8030_v22 = vpop.eup %8029  ;;  %v3671_v11 = vsel %vm75_vm0, %v3630_v32, 0.0 }
 0x8d7   :  { %v3672_v19 = vadd.f32 %v3671_v11, %v3670_v17  ;;  %v3321_v3 = vpop.xlane.xlu2 %3320  ;;  %v3423_v5 = vmul.f32 %v8030_v22, %v10316_v4 }
 0x8d8   :  { %8031 = vrcp.f32 %v3321_v3 }
 0x8d9   :  { %v10377_v43 = vmul.f32 0.5, %v3672_v19  ;;  %v3455_v39 = vpack.c.bf16 %v3423_v5, %v3423_v5 }
 0x8db   :  { %v3734_v51 = vmul.f32 %v10377_v43, %v10377_v43  ;;  %v3592_v36 = vunpack.c.l.b16 %v3455_v39 }
 0x8dd   :  { %v3632_v18 = vpop.f32.mrf.mxu1  ;;  %v3750_v55 = vsel %vm75_vm0, %v3734_v51, 0.0  ;;  %v3602_v9 = vpack.c.b16 %v3592_v36, %v3591_v31  ;;  %v3530_v23 = vpop.f32.mrf.mxu0 }
 0x8de   :  { %v3674_v59 = vsel %vm75_vm0, %v3632_v18, 0.0  ;;  %3751 = vadd.xlane.f32.xlu1 %v3750_v55  ;;  %v8032_v52 = vpop.eup %8031  ;;  %v3676_v29 = vsel %vm75_vm0, %v3530_v23, 0.0 }
 0x8df   :  { %v3675_v4 = vadd.f32 %v3674_v59, %v3673_v61  ;;  %v3323_v16 = vpop.xlane.xlu1 %3322  ;;  %3654 = vmatmul.bf16.gmra.mxu1 %v3602_v9  ;;  %v3406_v30 = vmul.f32 %v8032_v52, %v10323_v6 }
 0x8e0   :  { %8033 = vrcp.f32 %v3323_v16 }
 0x8e1   :  { %v10384_v13 = vmul.f32 0.5, %v3675_v4  ;;  %v3438_v46 = vpack.c.bf16 %v3406_v30, %v3406_v30 }
 0x8e3   :  { %v3735_v34 = vmul.f32 %v10384_v13, %v10384_v13  ;;  %v3486_v44 = vunpack.c.l.b16 %v3438_v46 }
 0x8e5   :  { %v3635_v1 = vpop.f32.mrf.mxu1  ;;  %v3753_v12 = vsel %vm75_vm0, %v3735_v34, 0.0  ;;  %v3532_v21 = vpop.f32.mrf.mxu0 }
 0x8e6   :  { %v8034_v42 = vpop.eup %8033  ;;  %v3677_v57 = vsel %vm75_vm0, %v3635_v1, 0.0  ;;  %3754 = vadd.xlane.f32.xlu0 %v3753_v12  ;;  %v3679_v33 = vsel %vm75_vm0, %v3532_v21, 0.0 }
 0x8e7   :  { %v3678_v20 = vadd.f32 %v3677_v57, %v3676_v29  ;;  %v3357_v14 = vpop.xlane.xlu0 %3356  ;;  %v3407_v0 = vmul.f32 %v8034_v42, %v10327_v53 }
 0x8e8   :  { %8035 = vrcp.f32 %v3357_v14 }
 0x8e9   :  { %v10393_v15 = vmul.f32 0.5, %v3678_v20  ;;  %v3439_v25 = vpack.c.bf16 %v3407_v0, %v3407_v0 }
 0x8eb   :  { %v3736_v6 = vmul.f32 %v10393_v15, %v10393_v15  ;;  %v3487_v38 = vunpack.c.l.b16 %v3439_v25 }
 0x8ed   :  { %v3637_v63 = vpop.f32.mrf.mxu1  ;;  %v3756_v56 = vsel %vm75_vm0, %v3736_v6, 0.0  ;;  %v3497_v40 = vpack.c.b16 %v3487_v38, %v3486_v44 }
 0x8ee   :  { %v3680_v41 = vsel %vm75_vm0, %v3637_v63, 0.0  ;;  %3757 = vadd.xlane.f32.xlu2 %v3756_v56  ;;  %v8036_v58 = vpop.eup %8035 }
 0x8ef   :  { %v3681_v53 = vadd.f32 %v3680_v41, %v3679_v33  ;;  %3549 = vmatmul.bf16.gmra.mxu0 %v3497_v40  ;;  %v3359_v8 = vpop.xlane.xlu2 %3358  ;;  %v3424_v17 = vmul.f32 %v8036_v58, %v10333_v62 }
 0x8f0   :  { %8037 = vrcp.f32 %v3359_v8 }
 0x8f1   :  { %v10400_v32 = vmul.f32 0.5, %v3681_v53  ;;  %v3456_v60 = vpack.c.bf16 %v3424_v17, %v3424_v17 }
 0x8f3   :  { %v3737_v22 = vmul.f32 %v10400_v32, %v10400_v32  ;;  %v3593_v39 = vunpack.c.l.b16 %v3456_v60 }
 0x8f5   :  { %v3759_v11 = vsel %vm75_vm0, %v3737_v22, 0.0  ;;  %v3535_v55 = vpop.f32.mrf.mxu0 }
 0x8f6   :  { %v8038_v19 = vpop.eup %8037  ;;  %3760 = vadd.xlane.f32.xlu1 %v3759_v11  ;;  %v3682_v59 = vsel %vm75_vm0, %v3535_v55, 0.0 }
 0x8f7   :  { %v3325_v3 = vpop.xlane.xlu1 %3324  ;;  %v3425_v5 = vmul.f32 %v8038_v19, %v10337_v27 }
 0x8f8   :  { %8039 = vrcp.f32 %v3325_v3 }
 0x8f9   :  { %v3457_v7 = vpack.c.bf16 %v3425_v5, %v3425_v5 }
 0x8fb   :  { %v3594_v51 = vunpack.c.l.b16 %v3457_v7 }
 0x8fd   :  { %v3603_v31 = vpack.c.b16 %v3594_v51, %v3593_v39  ;;  %v3537_v30 = vpop.f32.mrf.mxu0 }
 0x8fe   :  { %v3327_v36 = vpop.xlane.xlu0 %3326  ;;  %v8040_v18 = vpop.eup %8039  ;;  %v3685_v20 = vsel %vm75_vm0, %v3537_v30, 0.0 }
 0x8ff   :  { %8041 = vrcp.f32 %v3327_v36  ;;  %3659 = vmatmul.bf16.gmra.mxu1 %v3603_v31  ;;  %v3408_v62 = vmul.f32 %v8040_v18, %v10343_v26 }
 0x901   :  { %v3440_v52 = vpack.c.bf16 %v3408_v62, %v3408_v62 }
 0x903   :  { %v3488_v12 = vunpack.c.l.b16 %v3440_v52 }
 0x904   :  { %v3640_v9 = vpop.f32.mrf.mxu1 }
 0x905   :  { %v8042_v61 = vpop.eup %8041  ;;  %v3683_v4 = vsel %vm75_vm0, %v3640_v9, 0.0 }
 0x906   :  { %v3684_v27 = vadd.f32 %v3683_v4, %v3682_v59  ;;  %v3409_v16 = vmul.f32 %v8042_v61, %v10348_v28 }
 0x908   :  { %v10411_v23 = vmul.f32 0.5, %v3684_v27  ;;  %v3441_v34 = vpack.c.bf16 %v3409_v16, %v3409_v16 }
 0x90a   :  { %v3738_v1 = vmul.f32 %v10411_v23, %v10411_v23  ;;  %v3489_v42 = vunpack.c.l.b16 %v3441_v34 }
 0x90c   :  { %v3642_v26 = vpop.f32.mrf.mxu1  ;;  %v3762_v29 = vsel %vm75_vm0, %v3738_v1, 0.0  ;;  %v3498_v57 = vpack.c.b16 %v3489_v42, %v3488_v12 }
 0x90d   :  { %v3686_v14 = vsel %vm75_vm0, %v3642_v26, 0.0  ;;  %3763 = vadd.xlane.f32.xlu0 %v3762_v29  ;;  %v3540_v38 = vpop.f32.mrf.mxu0 }
 0x90e   :  { %v3687_v28 = vadd.f32 %v3686_v14, %v3685_v20  ;;  %3554 = vmatmul.bf16.gmra.mxu0 %v3498_v57  ;;  %v3361_v0 = vpop.xlane.xlu2 %3360  ;;  %v3688_v33 = vsel %vm75_vm0, %v3540_v38, 0.0 }
 0x90f   :  { %8043 = vrcp.f32 %v3361_v0 }
 0x910   :  { %v10418_v46 = vmul.f32 0.5, %v3687_v28 }
 0x912   :  { %v3739_v25 = vmul.f32 %v10418_v46, %v10418_v46 }
 0x914   :  { %v3765_v21 = vsel %vm75_vm0, %v3739_v25, 0.0 }
 0x915   :  { %3766 = vadd.xlane.f32.xlu2 %v3765_v21  ;;  %v3363_v6 = vpop.xlane.xlu1 %3362  ;;  %v8044_v44 = vpop.eup %8043 }
 0x916   :  { %8045 = vrcp.f32 %v3363_v6  ;;  %v3426_v63 = vmul.f32 %v8044_v44, %v10355_v10  ;;  %v3542_v11 = vpop.f32.mrf.mxu0 }
 0x917   :  { %v3691_v39 = vsel %vm75_vm0, %v3542_v11, 0.0 }
 0x918   :  { %v3458_v58 = vpack.c.bf16 %v3426_v63, %v3426_v63 }
 0x91a   :  { %v3595_v3 = vunpack.c.l.b16 %v3458_v58 }
 0x91b   :  { %v3645_v56 = vpop.f32.mrf.mxu1 }
 0x91c   :  { %v8046_v40 = vpop.eup %8045  ;;  %v3689_v41 = vsel %vm75_vm0, %v3645_v56, 0.0 }
 0x91d   :  { %v3690_v53 = vadd.f32 %v3689_v41, %v3688_v33  ;;  %v3427_v8 = vmul.f32 %v8046_v40, %v10360_v35  ;;  %v3329_v55 = vpop.xlane.xlu0 %3328 }
 0x91e   :  { %8047 = vrcp.f32 %v3329_v55 }
 0x91f   :  { %v10427_v22 = vmul.f32 0.5, %v3690_v53  ;;  %v3459_v17 = vpack.c.bf16 %v3427_v8, %v3427_v8 }
 0x921   :  { %v3740_v19 = vmul.f32 %v10427_v22, %v10427_v22  ;;  %v3596_v5 = vunpack.c.l.b16 %v3459_v17 }
 0x923   :  { %v3647_v10 = vpop.f32.mrf.mxu1  ;;  %v3768_v60 = vsel %vm75_vm0, %v3740_v19, 0.0  ;;  %v3604_v7 = vpack.c.b16 %v3596_v5, %v3595_v3  ;;  %v10463_v19 = vpop.f32.mrf.mxu2 }
 0x924   :  { %v3692_v51 = vsel %vm75_vm0, %v3647_v10, 0.0  ;;  %3769 = vadd.xlane.f32.xlu1 %v3768_v60  ;;  %v8048_v16 = vpop.eup %8047 }
 0x925   :  { %v3693_v35 = vadd.f32 %v3692_v51, %v3691_v39  ;;  %3664 = vmatmul.bf16.gmra.mxu1 %v3604_v7  ;;  %v3410_v1 = vmul.f32 %v8048_v16, %v10364_v37 }
 0x927   :  { %v10434_v31 = vmul.f32 0.5, %v3693_v35  ;;  %v3442_v14 = vpack.c.bf16 %v3410_v1, %v3410_v1 }
 0x929   :  { %v3741_v36 = vmul.f32 %v10434_v31, %v10434_v31  ;;  %v3490_v37 = vunpack.c.l.b16 %v3442_v14  ;;  %v12487_v14 = vld [vmem:[#allocation2_spill] sm:$0xff] }
 0x92b   :  { %v3771_v18 = vsel %vm75_vm0, %v3741_v36, 0.0  ;;  %v3650_v62 = vpop.f32.mrf.mxu1 }
 0x92c   :  { %3772 = vadd.xlane.f32.xlu0 %v3771_v18  ;;  %v3695_v61 = vsel %vm75_vm0, %v3650_v62, 0.0 }
 0x933   :  { %v3545_v9 = vpop.f32.mrf.mxu0  ;;  %v3652_v34 = vpop.f32.mrf.mxu1 }
 0x934   :  { %v3694_v59 = vsel %vm75_vm0, %v3545_v9, 0.0  ;;  %v3698_v26 = vsel %vm75_vm0, %v3652_v34, 0.0  ;;  %v10471_v9 = vpop.f32.mrf.mxu2 }
 0x935   :  { %v3696_v4 = vadd.f32 %v3695_v61, %v3694_v59  ;;  %7559 = vmatmul.msk.bf16.vlgmr.msra.gmra.mxu1 %vm75_vm0, %v9663_v50 }
 0x936   :  { %v3331_v27 = vpop.xlane.xlu2 %3330 }
 0x937   :  { %v10443_v52 = vmul.f32 0.5, %v3696_v4  ;;  %8049 = vrcp.f32 %v3331_v27 }
 0x939   :  { %v3742_v30 = vmul.f32 %v10443_v52, %v10443_v52 }
 0x93b   :  { %v3547_v12 = vpop.f32.mrf.mxu0  ;;  %v3774_v42 = vsel %vm75_vm0, %v3742_v30, 0.0 }
 0x93c   :  { %v3697_v29 = vsel %vm75_vm0, %v3547_v12, 0.0  ;;  %3775 = vadd.xlane.f32.xlu2 %v3774_v42 }
 0x93d   :  { %v8050_v50 = vpop.eup %8049  ;;  %v3699_v57 = vadd.f32 %v3698_v26, %v3697_v29 }
 0x93e   :  { %v3411_v20 = vmul.f32 %v8050_v50, %v10370_v2 }
 0x93f   :  { %v10452_v28 = vmul.f32 0.5, %v3699_v57 }
 0x940   :  { %v3443_v0 = vpack.c.bf16 %v3411_v20, %v3411_v20 }
 0x941   :  { %v3743_v25 = vmul.f32 %v10452_v28, %v10452_v28 }
 0x942   :  { %v3491_v21 = vunpack.c.l.b16 %v3443_v0 }
 0x943   :  { %v3777_v6 = vsel %vm75_vm0, %v3743_v25, 0.0 }
 0x944   :  { %3778 = vadd.xlane.f32.xlu1 %v3777_v6  ;;  %v3499_v44 = vpack.c.b16 %v3491_v21, %v3490_v37  ;;  %v10490_v37 = vpop.f32.mrf.mxu2 }
 0x945   :  { %7560 = vmatmul.msk.bf16.gmra.mxu1 %vm75_vm0, %v9682_v49 }
 0x946   :  { %3559 = vmatmul.bf16.gmra.mxu0 %v3499_v44 }
 0x951   :  { %v3752_v38 = vpop.xlane.xlu1 %3751 }
 0x952   :  { %v3798_v63 = vmax.f32 %v3752_v38, 1e-24 }
 0x954   :  { %8051 = vrsqrt.f32 %v3798_v63  ;;  %vm3820_vm10 = vweird.f32 %v3798_v63 }
 0x955   :  { %7561 = vmatmul.msk.bf16.gmra.mxu1 %vm75_vm0, %v9692_v24 }
 0x956   :  { %7551 = vmatmul.msk.bf16.vlgmr.msrb.gmra.mxu0 %vm75_vm0, %v8630_v47 }
 0x959   :  { %v3755_v2 = vpop.xlane.xlu0 %3754 }
 0x95a   :  { %v8052_v56 = vpop.eup %8051  ;;  %v3799_v40 = vmax.f32 %v3755_v2, 1e-24 }
 0x95b   :  { %v3815_v33 = vmul.f32 %v8052_v56, %v3798_v63  ;;  %vm3821_vm9 = vweird.f32 %v8052_v56 }
 0x95c   :  { %8053 = vrsqrt.f32 %v3799_v40  ;;  %v3655_v5 = vpop.f32.mrf.mxu1  ;;  %vm3822_vm12 = vmor %vm3820_vm10, %vm3821_vm9  ;;  %vm3830_vm13 = vweird.f32 %v3799_v40 }
 0x95d   :  { %v3816_v41 = vmul.f32 %v8052_v56, %v3815_v33 }
 0x95f   :  { %v3817_v53 = vmul.f32 0.5, %v3816_v41 }
 0x961   :  { %v3758_v8 = vpop.xlane.xlu2 %3757  ;;  %v3818_v17 = vsub.f32 1.5, %v3817_v53 }
 0x962   :  { %v8054_v58 = vpop.eup %8053  ;;  %v3800_v49 = vmax.f32 %v3758_v8, 1e-24  ;;  %v10501_v8 = vpop.f32.mrf.mxu2 }
 0x963   :  { %v3825_v11 = vmul.f32 %v8054_v58, %v3799_v40  ;;  %v3819_v47 = vmul.f32 %v8052_v56, %v3818_v17  ;;  %vm3831_vm11 = vweird.f32 %v8054_v58 }
 0x964   :  { %8055 = vrsqrt.f32 %v3800_v49  ;;  %vm3832_vm14 = vmor %vm3830_vm13, %vm3831_vm11  ;;  %v3657_v1 = vpop.f32.mrf.mxu1  ;;  %vm3840_vm1 = vweird.f32 %v3800_v49 }
 0x965   :  { %v3826_v3 = vmul.f32 %v8054_v58, %v3825_v11  ;;  %7562 = vmatmul.msk.bf16.gmra.mxu1 %vm75_vm0, %v9704_v45  ;;  %v3823_v51 = vsel %vm3822_vm12, %v8052_v56, %v3819_v47 }
 0x966   :  { %7552 = vmatmul.msk.bf16.gmra.mxu0 %vm75_vm0, %v8642_v54  ;;  %v3701_v54 = vsel %vm75_vm0, %v3655_v5, 0.0  ;;  %v3974_v61 = vmul.f32 %v3823_v51, %v10377_v43 }
 0x967   :  { %v3827_v24 = vmul.f32 0.5, %v3826_v3 }
 0x969   :  { %v3828_v10 = vsub.f32 1.5, %v3827_v24  ;;  %v3761_v60 = vpop.xlane.xlu1 %3760 }
 0x96a   :  { %v8056_v7 = vpop.eup %8055  ;;  %v3801_v39 = vmax.f32 %v3761_v60, 1e-24 }
 0x96b   :  { %v3829_v35 = vmul.f32 %v8054_v58, %v3828_v10  ;;  %v3835_v36 = vmul.f32 %v8056_v7, %v3800_v49  ;;  %vm3841_vm15 = vweird.f32 %v8056_v7  ;;  %v12489_v49 = vld [vmem:[#allocation3_spill] sm:$0xff] }
 0x96c   :  { %8057 = vrsqrt.f32 %v3801_v39  ;;  %v3550_v45 = vpop.f32.mrf.mxu0  ;;  %vm3842_vm3 = vmor %vm3840_vm1, %vm3841_vm15  ;;  %vm3850_vm4 = vweird.f32 %v3801_v39 }
 0x96d   :  { %v3833_v18 = vsel %vm3832_vm14, %v8054_v58, %v3829_v35  ;;  %v3836_v55 = vmul.f32 %v8056_v7, %v3835_v36  ;;  %v3700_v62 = vsel %vm75_vm0, %v3550_v45, 0.0  ;;  %v12488_v58 = vld [vmem:[#allocation48_spill] sm:$0xff] }
 0x96e   :  { %v3975_v59 = vmul.f32 %v3833_v18, %v10384_v13  ;;  %v3702_v4 = vadd.f32 %v3701_v54, %v3700_v62  ;;  %v3704_v13 = vsel %vm75_vm0, %v3657_v1, 0.0 }
 0x96f   :  { %v3837_v27 = vmul.f32 0.5, %v3836_v55 }
 0x970   :  { %v10475_v16 = vpack.c.bf16 %v3975_v59, %v3974_v61  ;;  %v10477_v34 = vmul.f32 0.5, %v3702_v4 }
 0x971   :  { %v3838_v42 = vsub.f32 1.5, %v3837_v27  ;;  %v12490_v27 = vld [vmem:[#allocation49_spill] sm:$0xff] }
 0x972   :  { %v8058_v30 = vpop.eup %8057  ;;  %7599 = vmatmul.msk.bf16.vlgmr.msrb.gmra.mxu2 %vm75_vm0, %v10475_v16  ;;  %v3744_v12 = vmul.f32 %v10477_v34, %v10477_v34 }
 0x973   :  { %v3845_v26 = vmul.f32 %v8058_v30, %v3801_v39  ;;  %v3839_v0 = vmul.f32 %v8056_v7, %v3838_v42  ;;  %vm3851_vm2 = vweird.f32 %v8058_v30  ;;  %v10522_v42 = vpop.f32.mrf.mxu2 }
 0x974   :  { %v3552_v29 = vpop.f32.mrf.mxu0  ;;  %v3780_v43 = vsel %vm75_vm0, %v3744_v12, 0.0  ;;  %vm3852_vm5 = vmor %vm3850_vm4, %vm3851_vm2  ;;  %v12491_v12 = vld [vmem:[#allocation4_spill] sm:$0xff] }
 0x975   :  { %v3846_v50 = vmul.f32 %v8058_v30, %v3845_v26  ;;  %v3703_v57 = vsel %vm75_vm0, %v3552_v29, 0.0  ;;  %3781 = vadd.xlane.f32.xlu0 %v3780_v43  ;;  %7563 = vmatmul.msk.bf16.gmra.mxu1 %vm75_vm0, %v9588_v48  ;;  %v3843_v38 = vsel %vm3842_vm3, %v8056_v7, %v3839_v0 }
 0x976   :  { %v3705_v20 = vadd.f32 %v3704_v13, %v3703_v57  ;;  %7553 = vmatmul.msk.bf16.gmra.mxu0 %vm75_vm0, %v12487_v14  ;;  %v3976_v56 = vmul.f32 %v3843_v38, %v10393_v15 }
 0x977   :  { %v3847_v25 = vmul.f32 0.5, %v3846_v50 }
 0x978   :  { %v10492_v21 = vmul.f32 0.5, %v3705_v20 }
 0x979   :  { %v3848_v6 = vsub.f32 1.5, %v3847_v25 }
 0x97a   :  { %v3745_v44 = vmul.f32 %v10492_v21, %v10492_v21 }
 0x97b   :  { %v3849_v48 = vmul.f32 %v8058_v30, %v3848_v6 }
 0x97c   :  { %v3783_v63 = vsel %vm75_vm0, %v3745_v44, 0.0  ;;  %v3660_v17 = vpop.f32.mrf.mxu1 }
 0x97d   :  { %v3853_v2 = vsel %vm3852_vm5, %v8058_v30, %v3849_v48  ;;  %3784 = vadd.xlane.f32.xlu2 %v3783_v63  ;;  %v3707_v24 = vsel %vm75_vm0, %v3660_v17, 0.0 }
 0x97e   :  { %v3977_v40 = vmul.f32 %v3853_v2, %v10400_v32  ;;  %v10533_v2 = vpop.f32.mrf.mxu2 }
 0x980   :  { %v3764_v33 = vpop.xlane.xlu0 %3763  ;;  %v10499_v41 = vpack.c.bf16 %v3977_v40, %v3976_v56 }
 0x981   :  { %v3802_v53 = vmax.f32 %v3764_v33, 1e-24 }
 0x982   :  { %7600 = vmatmul.msk.bf16.gmra.mxu2 %vm75_vm0, %v10499_v41 }
 0x983   :  { %8059 = vrsqrt.f32 %v3802_v53  ;;  %vm3860_vm7 = vweird.f32 %v3802_v53 }
 0x984   :  { %v3662_v35 = vpop.f32.mrf.mxu1 }
 0x985   :  { %7564 = vmatmul.msk.bf16.gmra.mxu1 %vm75_vm0, %v12488_v58  ;;  %v3710_v62 = vsel %vm75_vm0, %v3662_v35, 0.0  ;;  %v12492_v58 = vld [vmem:[#allocation50_spill] sm:$0xff] }
 0x986   :  { %7554 = vmatmul.msk.bf16.gmra.mxu0 %vm75_vm0, %v12489_v49 }
 0x988   :  { %v3767_v15 = vpop.xlane.xlu2 %3766 }
 0x989   :  { %v8060_v11 = vpop.eup %8059  ;;  %v3803_v32 = vmax.f32 %v3767_v15, 1e-24 }
 0x98a   :  { %v3855_v3 = vmul.f32 %v8060_v11, %v3802_v53  ;;  %vm3861_vm6 = vweird.f32 %v8060_v11 }
 0x98b   :  { %8061 = vrsqrt.f32 %v3803_v32  ;;  %v3555_v47 = vpop.f32.mrf.mxu0  ;;  %vm3862_vm9 = vmor %vm3860_vm7, %vm3861_vm6  ;;  %vm3870_vm10 = vweird.f32 %v3803_v32 }
 0x98c   :  { %v3856_v5 = vmul.f32 %v8060_v11, %v3855_v3  ;;  %v3706_v10 = vsel %vm75_vm0, %v3555_v47, 0.0  ;;  %v10543_v47 = vpop.f32.mrf.mxu2 }
 0x98d   :  { %v3708_v60 = vadd.f32 %v3707_v24, %v3706_v10 }
 0x98e   :  { %v3857_v7 = vmul.f32 0.5, %v3856_v5 }
 0x98f   :  { %v10511_v39 = vmul.f32 0.5, %v3708_v60  ;;  %v12494_v60 = vld [vmem:[#allocation16_spill] sm:$0xff] }
 0x990   :  { %v3858_v45 = vsub.f32 1.5, %v3857_v7 }
 0x991   :  { %v8062_v51 = vpop.eup %8061  ;;  %v3746_v36 = vmul.f32 %v10511_v39, %v10511_v39 }
 0x992   :  { %v3865_v18 = vmul.f32 %v8062_v51, %v3803_v32  ;;  %v3859_v30 = vmul.f32 %v8060_v11, %v3858_v45  ;;  %vm3871_vm8 = vweird.f32 %v8062_v51 }
 0x993   :  { %v3557_v54 = vpop.f32.mrf.mxu0  ;;  %v3786_v55 = vsel %vm75_vm0, %v3746_v36, 0.0  ;;  %vm3872_vm11 = vmor %vm3870_vm10, %vm3871_vm8 }
 0x994   :  { %v3866_v61 = vmul.f32 %v8062_v51, %v3865_v18  ;;  %v3709_v59 = vsel %vm75_vm0, %v3557_v54, 0.0  ;;  %3787 = vadd.xlane.f32.xlu1 %v3786_v55  ;;  %v3863_v57 = vsel %vm3862_vm9, %v8060_v11, %v3859_v30  ;;  %v12496_v54 = vld [vmem:[#allocation6_spill] sm:$0xff]  ;;  %vm4519_vm9 = vcmask 523264  }
 0x995   :  { %v3711_v4 = vadd.f32 %v3710_v62, %v3709_v59  ;;  %7565 = vmatmul.msk.bf16.gmra.mxu1 %vm75_vm0, %v12490_v27  ;;  %v3978_v25 = vmul.f32 %v3863_v57, %v10411_v23  ;;  %v12493_v23 = vld [vmem:[#allocation5_spill] sm:$0xff]  ;;  %v10556_v59 = vpop.f32.mrf.mxu2  ;;  %v12497_v27 = vld [vmem:[#allocation22_spill] sm:$0xff] }
 0x996   :  { %v3867_v1 = vmul.f32 0.5, %v3866_v61  ;;  %7555 = vmatmul.msk.bf16.gmra.mxu0 %vm75_vm0, %v12491_v12 }
 0x997   :  { %v10524_v26 = vmul.f32 0.5, %v3711_v4  ;;  %v3770_v29 = vpop.xlane.xlu1 %3769 }
 0x998   :  { %v3868_v43 = vsub.f32 1.5, %v3867_v1  ;;  %v3804_v13 = vmax.f32 %v3770_v29, 1e-24  ;;  %v10563_v29 = vpop.f32.mrf.mxu3 }
 0x999   :  { %v3747_v50 = vmul.f32 %v10524_v26, %v10524_v26  ;;  %12498 = vst [vmem:[#allocation40_spill] sm:$0xff] %v10563_v29 }
 0x99a   :  { %v3869_v20 = vmul.f32 %v8062_v51, %v3868_v43  ;;  %8063 = vrsqrt.f32 %v3804_v13  ;;  %vm3880_vm13 = vweird.f32 %v3804_v13  ;;  %v12499_v43 = vld [vmem:[#allocation26_spill] sm:$0xff] }
 0x99b   :  { %v3789_v14 = vsel %vm75_vm0, %v3747_v50, 0.0 }
 0x99c   :  { %v3873_v0 = vsel %vm3872_vm11, %v8062_v51, %v3869_v20  ;;  %3790 = vadd.xlane.f32.xlu0 %v3789_v14 }
 0x99d   :  { %v3979_v6 = vmul.f32 %v3873_v0, %v10418_v46 }
 0x99f   :  { %v3773_v44 = vpop.xlane.xlu0 %3772  ;;  %v10531_v38 = vpack.c.bf16 %v3979_v6, %v3978_v25 }
 0x9a0   :  { %v8064_v48 = vpop.eup %8063  ;;  %v3805_v63 = vmax.f32 %v3773_v44, 1e-24 }
 0x9a1   :  { %v3875_v56 = vmul.f32 %v8064_v48, %v3804_v13  ;;  %7601 = vmatmul.msk.bf16.gmra.mxu2 %vm75_vm0, %v10531_v38  ;;  %vm3881_vm12 = vweird.f32 %v8064_v48 }
 0x9a2   :  { %8065 = vrsqrt.f32 %v3805_v63  ;;  %v3665_v40 = vpop.f32.mrf.mxu1  ;;  %vm3882_vm15 = vmor %vm3880_vm13, %vm3881_vm12  ;;  %vm3890_vm1 = vweird.f32 %v3805_v63 }
 0x9a3   :  { %v3876_v33 = vmul.f32 %v8064_v48, %v3875_v56  ;;  %v3713_v0 = vsel %vm75_vm0, %v3665_v40, 0.0  ;;  %v12501_v56 = vld [vmem:[#allocation10_spill] sm:$0xff]  ;;  %v12502_v40 = vld [vmem:[#allocation32_spill] sm:$0xff] }
 0x9a5   :  { %v3877_v53 = vmul.f32 0.5, %v3876_v33  ;;  %7566 = vmatmul.msk.bf16.gmra.mxu1 %vm75_vm0, %v12492_v58 }
 0x9a6   :  { %7556 = vmatmul.msk.bf16.gmra.mxu0 %vm75_vm0, %v12493_v23 }
 0x9a7   :  { %v3878_v49 = vsub.f32 1.5, %v3877_v53 }
 0x9a8   :  { %v8066_v46 = vpop.eup %8065 }
 0x9a9   :  { %v3885_v17 = vmul.f32 %v8066_v46, %v3805_v63  ;;  %v3879_v32 = vmul.f32 %v8064_v48, %v3878_v49  ;;  %vm3891_vm14 = vweird.f32 %v8066_v46  ;;  %v10572_v63 = vpop.f32.mrf.mxu2  ;;  %v10581_v49 = vpop.f32.mrf.mxu3 }
 0x9aa   :  { %v10541_v15 = vpop.f32.mrf.mxu1  ;;  %vm3892_vm2 = vmor %vm3890_vm1, %vm3891_vm14  ;;  %12503 = vst [vmem:[#allocation45_spill] sm:$0xff] %v10581_v49 }
 0x9ab   :  { %v3886_v11 = vmul.f32 %v8066_v46, %v3885_v17  ;;  %v3883_v7 = vsel %vm3882_vm15, %v8064_v48, %v3879_v32 }
 0x9ac   :  { %v3980_v45 = vmul.f32 %v3883_v7, %v10427_v22 }
 0x9ad   :  { %v3887_v3 = vmul.f32 0.5, %v3886_v11 }
 0x9af   :  { %v3888_v24 = vsub.f32 1.5, %v3887_v3  ;;  %v3776_v5 = vpop.xlane.xlu2 %3775 }
 0x9b0   :  { %v3806_v10 = vmax.f32 %v3776_v5, 1e-24  ;;  %200 = vperm.xlu0 %7761, %v12494_v60  }
 0x9b1   :  { %v3889_v51 = vmul.f32 %v8066_v46, %v3888_v24  ;;  %v3716_v24 = vsel %vm75_vm0, %v10541_v15, 0.0 }
 0x9b2   :  { %8067 = vrsqrt.f32 %v3806_v10  ;;  %v10546_v35 = vpop.f32.mrf.mxu1  ;;  %vm3900_vm4 = vweird.f32 %v3806_v10 }
 0x9b3   :  { %12495 = vst [vmem:[#allocation43_spill] sm:$0xff] %v10546_v35  ;;  %v3893_v36 = vsel %vm3892_vm2, %v8066_v46, %v3889_v51 }
 0x9b4   :  { %v3981_v18 = vmul.f32 %v3893_v36, %v10434_v31 }
 0x9b5   :  { %7591 = vmatmul.msk.bf16.vlgmr.msrb.gmra.mxu1 %vm75_vm0, %v10475_v16 }
 0x9b6   :  { %7557 = vmatmul.msk.bf16.gmra.mxu0 %vm75_vm0, %v12496_v54  ;;  %v10554_v55 = vpack.c.bf16 %v3981_v18, %v3980_v45  ;;  %v10595_v45 = vpop.f32.mrf.mxu2  ;;  %v12505_v18 = vld [vmem:[#allocation38_spill] sm:$0xff] }
 0x9b7   :  { %v3779_v62 = vpop.xlane.xlu1 %3778 }
 0x9b8   :  { %v8068_v61 = vpop.eup %8067  ;;  %v3807_v4 = vmax.f32 %v3779_v62, 1e-24  ;;  %215 = vperm.xlu0 %7761, %v12497_v27   ;;  %7602 = vmatmul.msk.bf16.gmra.mxu2 %vm75_vm0, %v10554_v55  ;;  %v10617_v27 = vpop.f32.mrf.mxu3 }
 0x9b9   :  { %v3895_v22 = vmul.f32 %v8068_v61, %v3806_v10  ;;  %vm3901_vm3 = vweird.f32 %v8068_v61  ;;  %12508 = vst [vmem:[#allocation48_spill] sm:$0xff] %v10617_v27 }
 0x9ba   :  { %8069 = vrsqrt.f32 %v3807_v4  ;;  %v10561_v31 = vpop.f32.mrf.mxu1  ;;  %vm3902_vm6 = vmor %vm3900_vm4, %vm3901_vm3  ;;  %vm3910_vm7 = vweird.f32 %v3807_v4 }
 0x9bb   :  { %v3896_v30 = vmul.f32 %v8068_v61, %v3895_v22  ;;  %v3994_v22 = vld [vmem:[%s12203_s10 + $0x20] sm:$0xff] }
 0x9bd   :  { %v3897_v1 = vmul.f32 0.5, %v3896_v30  ;;  %v3995_v30 = vld [vmem:[%s12203_s10 + $0x28] sm:$0xff] }
 0x9bf   :  { %v3898_v13 = vsub.f32 1.5, %v3897_v1  ;;  %v10628_v1 = vpack.c.bf16 %v3995_v30, %v3994_v22  ;;  %v12528_v22 = vld [vmem:[#allocation20_spill] sm:$0xff] }
 0x9c0   :  { %v8070_v12 = vpop.eup %8069  ;;  %225 = vperm.xlu0 %7761, %v12499_v43   ;;  %v3992_v43 = vld [vmem:[%s12203_s10 + $0x10] sm:$0xff] }
 0x9c1   :  { %v3905_v50 = vmul.f32 %v8070_v12, %v3807_v4  ;;  %v3899_v6 = vmul.f32 %v8068_v61, %v3898_v13  ;;  %vm3911_vm5 = vweird.f32 %v8070_v12  ;;  %v3993_v13 = vld [vmem:[%s12203_s10 + $0x18] sm:$0xff] }
 0x9c2   :  { %v10566_v57 = vpop.f32.mrf.mxu1  ;;  %vm3912_vm8 = vmor %vm3910_vm7, %vm3911_vm5 }
 0x9c3   :  { %12500 = vst [vmem:[#allocation44_spill] sm:$0xff] %v10566_v57  ;;  %v3906_v20 = vmul.f32 %v8070_v12, %v3905_v50  ;;  %v3560_v14 = vpop.f32.mrf.mxu0  ;;  %v3903_v58 = vsel %vm3902_vm6, %v8068_v61, %v3899_v6  ;;  %v10642_v50 = vpack.c.bf16 %v3993_v13, %v3992_v43 }
 0x9c4   :  { %v3712_v25 = vsel %vm75_vm0, %v3560_v14, 0.0  ;;  %v3982_v5 = vmul.f32 %v3903_v58, %v10443_v52  ;;  %v3996_v52 = vld [vmem:[%s12203_s10 + $0x30] sm:$0xff] }
 0x9c5   :  { %v3907_v44 = vmul.f32 0.5, %v3906_v20  ;;  %v3714_v48 = vadd.f32 %v3713_v0, %v3712_v25  ;;  %7592 = vmatmul.msk.bf16.gmra.mxu1 %vm75_vm0, %v10499_v41  ;;  %v12510_v20 = vld [vmem:[#allocation51_spill] sm:$0xff]  ;;  %v12512_v0 = vld [vmem:[#allocation52_spill] sm:$0xff]  ;;  %v12513_v25 = vld [vmem:[#allocation53_spill] sm:$0xff] }
 0x9c6   :  { %7558 = vmatmul.msk.bf16.gmra.mxu0 %vm75_vm0, %v12501_v56  ;;  %v4496_v6 = vmul.f32 %v12513_v25, %v12512_v0  ;;  %v3990_v56 = vld [vmem:[%s12203_s10] sm:$0xff] }
 0x9c7   :  { %v3908_v33 = vsub.f32 1.5, %v3907_v44  ;;  %v10576_v53 = vmul.f32 0.5, %v3714_v48 }
 0x9c8   :  { %240 = vperm.xlu0 %7761, %v12502_v40  }
 0x9c9   :  { %v3909_v23 = vmul.f32 %v8070_v12, %v3908_v33  ;;  %v3748_v46 = vmul.f32 %v10576_v53, %v10576_v53  ;;  %v3991_v33 = vld [vmem:[%s12203_s10 + $0x8] sm:$0xff] }
 0x9ca   :  { %v10583_v17 = vpop.f32.mrf.mxu1  ;;  %v10661_v40 = vpack.c.bf16 %v3991_v33, %v3990_v56 }
 0x9cb   :  { %12504 = vst [vmem:[#allocation46_spill] sm:$0xff] %v10583_v17  ;;  %v3913_v11 = vsel %vm3912_vm8, %v8070_v12, %v3909_v23  ;;  %v3562_v32 = vpop.f32.mrf.mxu0  ;;  %v3792_v3 = vsel %vm75_vm0, %v3748_v46, 0.0  ;;  %v12509_v12 = vld [vmem:[#allocation12_spill] sm:$0xff]  ;;  %v10663_v23 = vpop.f32.mrf.mxu3 }
 0x9cc   :  { %v3983_v10 = vmul.f32 %v3913_v11, %v10452_v28  ;;  %v3715_v60 = vsel %vm75_vm0, %v3562_v32, 0.0  ;;  %3793 = vadd.xlane.f32.xlu2 %v3792_v3  ;;  %v3997_v28 = vld [vmem:[%s12203_s10 + $0x38] sm:$0xff]  ;;  %12516 = vst [vmem:[#allocation4_spill] sm:$0xff] %v10663_v23  ;;  %v12519_v32 = vld [vmem:[#allocation18_spill] sm:$0xff] }
 0x9cd   :  { %v3717_v7 = vadd.f32 %v3716_v24, %v3715_v60  ;;  %v10608_v54 = vpack.c.bf16 %v3997_v28, %v3996_v52  ;;  %v12525_v28 = vld [vmem:[#allocation54_spill] sm:$0xff] }
 0x9ce   :  { %v10591_v51 = vpack.c.bf16 %v3983_v10, %v3982_v5 }
 0x9cf   :  { %v10593_v36 = vmul.f32 0.5, %v3717_v7  ;;  %4548 = vmatpush.bf16.msrb.mxu3 %v10608_v54  ;;  %4661 = vmatpush.bf16.msrb.mxu0 %v10608_v54  ;;  %v12523_v7 = vld [vmem:[#allocation41_spill] sm:$0xff] }
 0x9d0   :  { %255 = vperm.xlu0 %7761, %v12505_v18   ;;  %7603 = vmatmul.msk.bf16.gmra.mxu2 %vm75_vm0, %v10591_v51  ;;  %v12524_v18 = vld [vmem:[#allocation55_spill] sm:$0xff] }
 0x9d1   :  { %v3749_v15 = vmul.f32 %v10593_v36, %v10593_v36  ;;  %4774 = vmatpush.bf16.msra.mxu1 %v10608_v54  ;;  %v4497_v52 = vmul.f32 %v12524_v18, %v12523_v7 }
 0x9d2   :  { %v10610_v62 = vpop.f32.mrf.mxu1 }
 0x9d3   :  { %12506 = vst [vmem:[#allocation47_spill] sm:$0xff] %v10610_v62  ;;  %v10612_v61 = vpop.f32.mrf.mxu0  ;;  %v3795_v4 = vsel %vm75_vm0, %v3749_v15, 0.0  ;;  %4549 = vmatpush.bf16.msrb.mxu3 %v10628_v1  ;;  %4662 = vmatpush.bf16.msrb.mxu0 %v10628_v1  ;;  %v10680_v3 = vpop.f32.mrf.mxu3  ;;  %v12526_v15 = vld [vmem:[#allocation57_spill] sm:$0xff] }
 0x9d4   :  { %12507 = vst [vmem:[#allocation2_spill] sm:$0xff] %v10612_v61  ;;  %3796 = vadd.xlane.f32.xlu1 %v3795_v4  ;;  %v4498_v4 = vmul.f32 %v12526_v15, %v12525_v28 }
 0x9d5   :  { %7593 = vmatmul.msk.bf16.gmra.mxu1 %vm75_vm0, %v10531_v38  ;;  %12520 = vst [vmem:[#allocation16_spill] sm:$0xff] %v10680_v3 }
 0x9d6   :  { %7583 = vmatmul.msk.bf16.vlgmr.msra.gmra.mxu0 %vm75_vm0, %v10475_v16  ;;  %4775 = vmatpush.bf16.msra.mxu1 %v10628_v1  ;;  %v12511_v16 = vld [vmem:[#allocation42_spill] sm:$0xff] }
 0x9d7   :  { %v4495_v14 = vmul.f32 %v12511_v16, %v12510_v20  ;;  %4550 = vmatpush.bf16.msrb.mxu3 %v10642_v50  ;;  %4663 = vmatpush.bf16.msrb.mxu0 %v10642_v50 }
 0x9d8   :  { %270 = vperm.xlu0 %7761, %v12509_v12   ;;  %v4512_v12 = vpack.c.bf16 %v4498_v4, %v4497_v52 }
 0x9d9   :  { %v4511_v58 = vpack.c.bf16 %v4496_v6, %v4495_v14 }
 0x9da   :  { %v10648_v44 = vpop.f32.mrf.mxu1  ;;  %4776 = vmatpush.bf16.msra.mxu1 %v10642_v50 }
 0x9db   :  { %12514 = vst [vmem:[#allocation3_spill] sm:$0xff] %v10648_v44  ;;  %v10650_v48 = vpop.f32.mrf.mxu0  ;;  %4551 = vmatpush.bf16.msrb.mxu3 %v10661_v40  ;;  %4664 = vmatpush.bf16.msrb.mxu0 %v10661_v40  ;;  %v10694_v14 = vpop.f32.mrf.mxu3 }
 0x9dc   :  { %12515 = vst [vmem:[#allocation49_spill] sm:$0xff] %v10650_v48 }
 0x9dd   :  { %12529 = vst [vmem:[#allocation26_spill] sm:$0xff] %v10694_v14 }
 0x9de   :  { %4777 = vmatpush.bf16.msra.mxu1 %v10661_v40  ;;  %7607 = vmatmul.msk.bf16.vlgmr.msrb.gmra.mxu3 %vm4519_vm9, %v4511_v58 }
 0x9e2   :  { %5519 = vmatpush.bf16.msrb.mxu1 %v10608_v54  ;;  %v10669_v46 = vpop.f32.mrf.mxu1 }
 0x9e3   :  { %12517 = vst [vmem:[#allocation50_spill] sm:$0xff] %v10669_v46  ;;  %v10672_v11 = vpop.f32.mrf.mxu0  ;;  %v10715_v48 = vpop.f32.mrf.mxu3 }
 0x9e4   :  { %12518 = vst [vmem:[#allocation5_spill] sm:$0xff] %v10672_v11  ;;  %205 = vperm.xlu2 %7762, %v12519_v32   ;;  %v12532_v32 = vld [vmem:[#allocation30_spill] sm:$0xff]  ;;  %v12539_v11 = vld [vmem:[#allocation61_spill] sm:$0xff] }
 0x9e5   :  { %7594 = vmatmul.msk.bf16.gmra.mxu1 %vm75_vm0, %v10554_v55  ;;  %12540 = vst [vmem:[#allocation51_spill] sm:$0xff] %v10715_v48 }
 0x9e6   :  { %7584 = vmatmul.msk.bf16.gmra.mxu0 %vm75_vm0, %v10499_v41  ;;  %5520 = vmatpush.bf16.msrb.mxu1 %v10628_v1  ;;  %v12527_v41 = vld [vmem:[#allocation24_spill] sm:$0xff] }
 0x9e8   :  { %v3782_v24 = vpop.xlane.xlu0 %3781 }
 0x9e9   :  { %v3808_v5 = vmax.f32 %v3782_v24, 1e-24  ;;  %v12533_v24 = vld [vmem:[#allocation28_spill] sm:$0xff] }
 0x9ea   :  { %v10682_v10 = vpop.f32.mrf.mxu1  ;;  %5521 = vmatpush.bf16.msrb.mxu1 %v10642_v50 }
 0x9eb   :  { %12521 = vst [vmem:[#allocation6_spill] sm:$0xff] %v10682_v10  ;;  %8071 = vrsqrt.f32 %v3808_v5  ;;  %v10685_v60 = vpop.f32.mrf.mxu0  ;;  %v10719_v10 = vpop.f32.mrf.mxu2  ;;  %vm3920_vm11 = vweird.f32 %v3808_v5 }
 0x9ec   :  { %12522 = vst [vmem:[#allocation22_spill] sm:$0xff] %v10685_v60  ;;  %220 = vperm.xlu2 %7762, %v12527_v41  }
 0x9ed   :  { %210 = vperm.xlu1 %7760, %v12528_v22  }
 0x9ee   :  { %5522 = vmatpush.bf16.msrb.mxu1 %v10661_v40  ;;  %7608 = vmatmul.msk.bf16.gmra.mxu3 %vm4519_vm9, %v4512_v12 }
 0x9f0   :  { %v3785_v30 = vpop.xlane.xlu2 %3784 }
 0x9f1   :  { %v8072_v43 = vpop.eup %8071  ;;  %v3809_v13 = vmax.f32 %v3785_v30, 1e-24 }
 0x9f2   :  { %v3915_v6 = vmul.f32 %v8072_v43, %v3808_v5  ;;  %v10696_v56 = vpop.f32.mrf.mxu1  ;;  %vm3921_vm10 = vweird.f32 %v8072_v43 }
 0x9f3   :  { %12530 = vst [vmem:[#allocation10_spill] sm:$0xff] %v10696_v56  ;;  %8073 = vrsqrt.f32 %v3809_v13  ;;  %v10699_v33 = vpop.f32.mrf.mxu0  ;;  %v12542_v56 = vld [vmem:[#allocation34_spill] sm:$0xff]  ;;  %vm3922_vm13 = vmor %vm3920_vm11, %vm3921_vm10  ;;  %vm3930_vm14 = vweird.f32 %v3809_v13 }
 0x9f4   :  { %12531 = vst [vmem:[#allocation32_spill] sm:$0xff] %v10699_v33  ;;  %v3916_v58 = vmul.f32 %v8072_v43, %v3915_v6  ;;  %235 = vperm.xlu2 %7762, %v12532_v32   ;;  %v12536_v33 = vld [vmem:[#allocation56_spill] sm:$0xff]  ;;  %v12537_v6 = vld [vmem:[#allocation59_spill] sm:$0xff]  ;;  %v12538_v32 = vld [vmem:[#allocation58_spill] sm:$0xff] }
 0x9f5   :  { %230 = vperm.xlu1 %7760, %v12533_v24   ;;  %7595 = vmatmul.msk.bf16.gmra.mxu1 %vm75_vm0, %v10591_v51  ;;  %v4499_v60 = vmul.f32 %v12537_v6, %v12536_v33  ;;  %v4500_v24 = vmul.f32 %v12539_v11, %v12538_v32 }
 0x9f6   :  { %v3917_v52 = vmul.f32 0.5, %v3916_v58  ;;  %7585 = vmatmul.msk.bf16.gmra.mxu0 %vm75_vm0, %v10531_v38  ;;  %v12541_v58 = vld [vmem:[#allocation36_spill] sm:$0xff] }
 0x9f8   :  { %v3918_v41 = vsub.f32 1.5, %v3917_v52 }
 0x9f9   :  { %v8074_v4 = vpop.eup %8073 }
 0x9fa   :  { %v3925_v22 = vmul.f32 %v8074_v4, %v3809_v13  ;;  %v10707_v30 = vpop.f32.mrf.mxu1  ;;  %v3919_v38 = vmul.f32 %v8072_v43, %v3918_v41  ;;  %vm3931_vm12 = vweird.f32 %v8074_v4  ;;  %v12545_v41 = vld [vmem:[#allocation9_spill] sm:$0xff] }
 0x9fb   :  { %12534 = vst [vmem:[#allocation38_spill] sm:$0xff] %v10707_v30  ;;  %v10709_v12 = vpop.f32.mrf.mxu0  ;;  %v4513_v30 = vpack.c.bf16 %v4500_v24, %v4499_v60  ;;  %vm3932_vm15 = vmor %vm3930_vm14, %vm3931_vm12  ;;  %v10730_v60 = vpop.f32.mrf.mxu3  ;;  %v12552_v24 = vld [vmem:[#allocation64_spill] sm:$0xff]  ;;  %vm518_vm12 = vcmask 130048  }
 0x9fc   :  { %12535 = vst [vmem:[#allocation12_spill] sm:$0xff] %v10709_v12  ;;  %v3926_v61 = vmul.f32 %v8074_v4, %v3925_v22  ;;  %250 = vperm.xlu2 %7762, %v12541_v58   ;;  %v3923_v46 = vsel %vm3922_vm13, %v8072_v43, %v3919_v38 }
 0x9fd   :  { %245 = vperm.xlu1 %7760, %v12542_v56   ;;  %12547 = vst [vmem:[#allocation41_spill] sm:$0xff] %v10730_v60 }
 0x9fe   :  { %v3927_v52 = vmul.f32 0.5, %v3926_v61  ;;  %7609 = vmatmul.msk.bf16.gmra.mxu3 %vm4519_vm9, %v4513_v30  ;;  %v3984_v61 = vmul.f32 %v3923_v46, %v10477_v34 }
 0xa00   :  { %v3928_v12 = vsub.f32 1.5, %v3927_v52  ;;  %v12546_v52 = vld [vmem:[#allocation7_spill] sm:$0xff] }
 0xa02   :  { %v3929_v44 = vmul.f32 %v8074_v4, %v3928_v12  ;;  %v10722_v22 = vpop.f32.mrf.mxu1  ;;  %v10734_v12 = vpop.f32.mrf.mxu2 }
 0xa03   :  { %12543 = vst [vmem:[#allocation52_spill] sm:$0xff] %v10722_v22  ;;  %v10724_v58 = vpop.f32.mrf.mxu0 }
 0xa04   :  { %12544 = vst [vmem:[#allocation18_spill] sm:$0xff] %v10724_v58  ;;  %v3933_v56 = vsel %vm3932_vm15, %v8074_v4, %v3929_v44  ;;  %265 = vperm.xlu2 %7762, %v12545_v41   ;;  %v12550_v44 = vld [vmem:[#allocation63_spill] sm:$0xff]  ;;  %v12551_v4 = vld [vmem:[#allocation62_spill] sm:$0xff] }
 0xa05   :  { %v3985_v5 = vmul.f32 %v3933_v56, %v10492_v21  ;;  %260 = vperm.xlu1 %7760, %v12546_v52   ;;  %v12549_v21 = vld [vmem:[#allocation60_spill] sm:$0xff]  ;;  %v4502_v38 = vmul.f32 %v12552_v24, %v12551_v4 }
 0xa06   :  { %7586 = vmatmul.msk.bf16.gmra.mxu0 %vm75_vm0, %v10554_v55  ;;  %v4501_v46 = vmul.f32 %v12550_v44, %v12549_v21  ;;  %v12554_v55 = vld [vmem:[#allocation14_spill] sm:$0xff] }
 0xa07   :  { %v3788_v43 = vpop.xlane.xlu1 %3787  ;;  %v4321_v13 = vpack.c.bf16 %v3985_v5, %v3984_v61  ;;  %v10747_v5 = vpop.f32.mrf.mxu3 }
 0xa08   :  { %v3810_v30 = vmax.f32 %v3788_v43, 1e-24  ;;  %12555 = vst [vmem:[#allocation20_spill] sm:$0xff] %v10747_v5  ;;  %v4514_v43 = vpack.c.bf16 %v4502_v38, %v4501_v46  ;;  %v4503_v38 = vmul.f32 %v10563_v29, %v10463_v19 }
 0xa09   :  { %7596 = vmatmul.msk.bf16.gmra.mxu1 %vm75_vm0, %v4321_v13  ;;  %7604 = vmatmul.msk.bf16.gmra.mxu2 %vm75_vm0, %v4321_v13 }
 0xa0a   :  { %8075 = vrsqrt.f32 %v3810_v30  ;;  %v10744_v56 = vpop.f32.mrf.mxu1  ;;  %vm3940_vm2 = vweird.f32 %v3810_v30 }
 0xa0b   :  { %v10738_v34 = vpop.f32.mrf.mxu0  ;;  %12553 = vst [vmem:[#allocation24_spill] sm:$0xff] %v10744_v56 }
 0xa0c   :  { %12548 = vst [vmem:[#allocation54_spill] sm:$0xff] %v10738_v34 }
 0xa0d   :  { %275 = vperm.xlu1 %7760, %v12554_v55  }
 0xa0e   :  { %7610 = vmatmul.msk.bf16.gmra.mxu3 %vm4519_vm9, %v4514_v43 }
 0xa0f   :  { %v3791_v41 = vpop.xlane.xlu0 %3790  ;;  %v10756_v62 = vpop.f32.mrf.mxu3 }
 0xa10   :  { %v8076_v61 = vpop.eup %8075  ;;  %v3811_v52 = vmax.f32 %v3791_v41, 1e-24  ;;  %12558 = vst [vmem:[#allocation56_spill] sm:$0xff] %v10756_v62 }
 0xa11   :  { %v3935_v58 = vmul.f32 %v8076_v61, %v3810_v30  ;;  %vm3941_vm1 = vweird.f32 %v8076_v61 }
 0xa12   :  { %8077 = vrsqrt.f32 %v3811_v52  ;;  %v10754_v56 = vpop.f32.mrf.mxu1  ;;  %vm3942_vm4 = vmor %vm3940_vm2, %vm3941_vm1  ;;  %vm3950_vm5 = vweird.f32 %v3811_v52 }
 0xa13   :  { %v3936_v34 = vmul.f32 %v8076_v61, %v3935_v58  ;;  %v10750_v22 = vpop.f32.mrf.mxu0  ;;  %12557 = vst [vmem:[#allocation28_spill] sm:$0xff] %v10754_v56  ;;  %v4504_v58 = vmul.f32 %v10581_v49, %v10471_v9 }
 0xa14   :  { %12556 = vst [vmem:[#allocation30_spill] sm:$0xff] %v10750_v22 }
 0xa15   :  { %v3937_v44 = vmul.f32 0.5, %v3936_v34 }
 0xa16   :  { %7587 = vmatmul.msk.bf16.gmra.mxu0 %vm75_vm0, %v10591_v51  ;;  %v10764_v51 = vpop.f32.mrf.mxu2 }
 0xa17   :  { %v3938_v24 = vsub.f32 1.5, %v3937_v44  ;;  %12560 = vst [vmem:[#allocation36_spill] sm:$0xff] %v10764_v51  ;;  %v4515_v44 = vpack.c.bf16 %v4504_v58, %v4503_v38 }
 0xa18   :  { %v8078_v55 = vpop.eup %8077 }
 0xa19   :  { %v3945_v11 = vmul.f32 %v8078_v55, %v3811_v52  ;;  %v3939_v34 = vmul.f32 %v8076_v61, %v3938_v24  ;;  %vm3951_vm3 = vweird.f32 %v8078_v55 }
 0xa1a   :  { %vm3952_vm6 = vmor %vm3950_vm5, %vm3951_vm3 }
 0xa1b   :  { %v3946_v41 = vmul.f32 %v8078_v55, %v3945_v11  ;;  %v10758_v46 = vpop.f32.mrf.mxu0  ;;  %v3943_v62 = vsel %vm3942_vm4, %v8076_v61, %v3939_v34 }
 0xa1c   :  { %12559 = vst [vmem:[#allocation58_spill] sm:$0xff] %v10758_v46  ;;  %v10766_v46 = vpop.f32.mrf.mxu1  ;;  %v3986_v30 = vmul.f32 %v3943_v62, %v10511_v39  ;;  %v4505_v39 = vmul.f32 %v10617_v27, %v10490_v37 }
 0xa1d   :  { %v3947_v43 = vmul.f32 0.5, %v3946_v41  ;;  %12561 = vst [vmem:[#allocation34_spill] sm:$0xff] %v10766_v46  ;;  %v10771_v41 = vpop.f32.mrf.mxu3 }
 0xa1e   :  { %7611 = vmatmul.msk.bf16.gmra.mxu3 %vm4519_vm9, %v4515_v44  ;;  %12563 = vst [vmem:[#allocation7_spill] sm:$0xff] %v10771_v41  ;;  %v10776_v61 = vpop.f32.mrf.mxu2 }
 0xa1f   :  { %v3948_v22 = vsub.f32 1.5, %v3947_v43  ;;  %12564 = vst [vmem:[#allocation60_spill] sm:$0xff] %v10776_v61 }
 0xa21   :  { %v3949_v11 = vmul.f32 %v8078_v55, %v3948_v22 }
 0xa22   :  { %v201_v5 = vpop.permute.xlu0 %200 }
 0xa23   :  { %v3953_v56 = vsel %vm3952_vm6, %v8078_v55, %v3949_v11  ;;  %8079 = vrcp.f32 %v201_v5  ;;  %v10769_v24 = vpop.f32.mrf.mxu0  ;;  %v287_v11 = vand.u32 2147483647, %v201_v5  ;;  %vm283_vm8 = vweird.f32 %v201_v5 }
 0xa24   :  { %12562 = vst [vmem:[#allocation9_spill] sm:$0xff] %v10769_v24  ;;  %v3987_v43 = vmul.f32 %v3953_v56, %v10524_v26  ;;  %v10780_v58 = vpop.f32.mrf.mxu1  ;;  %v4506_v26 = vmul.f32 %v10663_v23, %v10501_v8 }
 0xa25   :  { %12565 = vst [vmem:[#allocation62_spill] sm:$0xff] %v10780_v58  ;;  %v10788_v56 = vpop.f32.mrf.mxu3  ;;  %vm288_vm11 = vcmp.eq.f32.partialorder %v287_v11, 8.507059e+37 }
 0xa26   :  { %7588 = vmatmul.msk.bf16.gmra.mxu0 %vm75_vm0, %v4321_v13  ;;  %v4322_v22 = vpack.c.bf16 %v3987_v43, %v3986_v30  ;;  %v289_v13 = vand.u32 2147483648, %v201_v5  ;;  %12567 = vst [vmem:[#allocation65_spill] sm:$0xff] %v10788_v56  ;;  %v4516_v43 = vpack.c.bf16 %v4506_v26, %v4505_v39 }
 0xa28   :  { %7597 = vmatmul.msk.bf16.gmra.mxu1 %vm75_vm0, %v4322_v22  ;;  %7605 = vmatmul.msk.bf16.gmra.mxu2 %vm75_vm0, %v4322_v22  ;;  %v290_v41 = vor.u32 1.1754944e-38, %v289_v13 }
 0xa29   :  { %v8080_v52 = vpop.eup %8079 }
 0xa2a   :  { %v279_v55 = vmul.f32 %v8080_v52, %v201_v5  ;;  %v216_v38 = vpop.permute.xlu0 %215  ;;  %vm284_vm7 = vweird.f32 %v8080_v52 }
 0xa2b   :  { %8081 = vrcp.f32 %v216_v38  ;;  %v10782_v34 = vpop.f32.mrf.mxu0  ;;  %vm285_vm10 = vmor %vm283_vm8, %vm284_vm7  ;;  %v332_v39 = vand.u32 2147483647, %v216_v38  ;;  %vm328_vm14 = vweird.f32 %v216_v38 }
 0xa2c   :  { %12566 = vst [vmem:[#allocation14_spill] sm:$0xff] %v10782_v34  ;;  %v280_v62 = vsub.f32 1.0, %v279_v55  ;;  %v10794_v5 = vpop.f32.mrf.mxu1 }
 0xa2d   :  { %vm333_vm1 = vcmp.eq.f32.partialorder %v332_v39, 8.507059e+37 }
 0xa2e   :  { %v281_v44 = vmul.f32 %v8080_v52, %v280_v62  ;;  %7612 = vmatmul.msk.bf16.gmra.mxu3 %vm4519_vm9, %v4516_v43  ;;  %v12569_v62 = vld [vmem:[#allocation17_spill] sm:$0xff] }
 0xa2f   :  { %12570 = vst [vmem:[#allocation17_spill] sm:$0xff] %v10794_v5  ;;  %v12578_v5 = vld [vmem:[#allocation33_spill] sm:$0xff] }
 0xa30   :  { %v282_v30 = vadd.f32 %v8080_v52, %v281_v44  ;;  %v334_v44 = vand.u32 2147483648, %v216_v38 }
 0xa31   :  { %v8082_v24 = vpop.eup %8081 }
 0xa32   :  { %v286_v34 = vsel %vm285_vm10, %v8080_v52, %v282_v30  ;;  %v324_v58 = vmul.f32 %v8082_v24, %v216_v38  ;;  %v226_v46 = vpop.permute.xlu0 %225  ;;  %vm329_vm13 = vweird.f32 %v8082_v24 }
 0xa33   :  { %v291_v55 = vsel %vm288_vm11, %v290_v41, %v286_v34  ;;  %8083 = vrcp.f32 %v226_v46  ;;  %v10791_v27 = vpop.f32.mrf.mxu0  ;;  %v10801_v41 = vpop.f32.mrf.mxu3  ;;  %vm330_vm15 = vmor %vm328_vm14, %vm329_vm13  ;;  %vm358_vm3 = vweird.f32 %v226_v46 }
 0xa34   :  { %12568 = vst [vmem:[#allocation66_spill] sm:$0xff] %v10791_v27  ;;  %v292_v56 = vmul.f32 %v291_v55, %v12569_v62  ;;  %v325_v23 = vsub.f32 1.0, %v324_v58  ;;  %v335_v58 = vor.u32 1.1754944e-38, %v334_v44  ;;  %v362_v44 = vand.u32 2147483647, %v226_v46  ;;  %v10814_v39 = vpop.f32.mrf.mxu1 }
 0xa35   :  { %12571 = vst [vmem:[#allocation67_spill] sm:$0xff] %v10801_v41 }
 0xa36   :  { %519 = vst.msk [vmem:[%s12204_s13] sm:$0xff] %vm518_vm12, %v292_v56  ;;  %v326_v52 = vmul.f32 %v8082_v24, %v325_v23  ;;  %7589 = vmatmul.msk.bf16.gmra.mxu0 %vm75_vm0, %v4322_v22  ;;  %v4507_v23 = vmul.f32 %v10680_v3, %v10522_v42  ;;  %v4508_v22 = vmul.f32 %v10694_v14, %v10533_v2  ;;  %v12573_v56 = vld [vmem:[#allocation23_spill] sm:$0xff]  ;;  %vm363_vm5 = vcmp.eq.f32.partialorder %v362_v44, 8.507059e+37 }
 0xa38   :  { %v327_v34 = vadd.f32 %v8082_v24, %v326_v52  ;;  %v364_v52 = vand.u32 2147483648, %v226_v46 }
 0xa39   :  { %v8084_v26 = vpop.eup %8083 }
 0xa3a   :  { %v331_v13 = vsel %vm330_vm15, %v8082_v24, %v327_v34  ;;  %v354_v11 = vmul.f32 %v8084_v26, %v226_v46  ;;  %v241_v30 = vpop.permute.xlu0 %240  ;;  %vm359_vm2 = vweird.f32 %v8084_v26  ;;  %v12576_v46 = vld [vmem:[#allocation27_spill] sm:$0xff] }
 0xa3b   :  { %v336_v43 = vsel %vm333_vm1, %v335_v58, %v331_v13  ;;  %8085 = vrcp.f32 %v241_v30  ;;  %v10803_v55 = vpop.f32.mrf.mxu0  ;;  %vm360_vm4 = vmor %vm358_vm3, %vm359_vm2  ;;  %vm403_vm7 = vweird.f32 %v241_v30 }
 0xa3c   :  { %12572 = vst [vmem:[#allocation68_spill] sm:$0xff] %v10803_v55  ;;  %v337_v62 = vmul.f32 %v336_v43, %v12573_v56  ;;  %v355_v38 = vsub.f32 1.0, %v354_v11  ;;  %v4517_v55 = vpack.c.bf16 %v4508_v22, %v4507_v23  ;;  %v365_v11 = vor.u32 1.1754944e-38, %v364_v52  ;;  %v10818_v43 = vpop.f32.mrf.mxu3 }
 0xa3d   :  { %12574 = vst [vmem:[#allocation23_spill] sm:$0xff] %v10818_v43  ;;  %v409_v22 = vand.u32 2147483648, %v241_v30  ;;  %v407_v52 = vand.u32 2147483647, %v241_v30 }
 0xa3e   :  { %522 = vst.msk [vmem:[%s12204_s13 + $0x18] sm:$0xff] %vm518_vm12, %v337_v62  ;;  %v356_v24 = vmul.f32 %v8084_v26, %v355_v38  ;;  %7613 = vmatmul.msk.bf16.gmra.mxu3 %vm4519_vm9, %v4517_v55 }
 0xa3f   :  { %v3794_v34 = vpop.xlane.xlu2 %3793  ;;  %vm408_vm10 = vcmp.eq.f32.partialorder %v407_v52, 8.507059e+37 }
 0xa40   :  { %v357_v58 = vadd.f32 %v8084_v26, %v356_v24  ;;  %v10816_v13 = vmax.f32 %v3794_v34, 1e-24 }
 0xa41   :  { %v8086_v27 = vpop.eup %8085 }
 0xa42   :  { %v361_v56 = vsel %vm360_vm4, %v8084_v26, %v357_v58  ;;  %v399_v41 = vmul.f32 %v8086_v27, %v241_v30  ;;  %8087 = vrsqrt.f32 %v10816_v13  ;;  %v256_v62 = vpop.permute.xlu0 %255  ;;  %vm404_vm6 = vweird.f32 %v8086_v27 }
 0xa43   :  { %v366_v38 = vsel %vm363_vm5, %v365_v11, %v361_v56  ;;  %8089 = vrcp.f32 %v256_v62  ;;  %v10822_v24 = vpop.f32.mrf.mxu0  ;;  %vm405_vm8 = vmor %vm403_vm7, %vm404_vm6  ;;  %v454_v14 = vand.u32 2147483648, %v256_v62  ;;  %vm3960_vm13 = vweird.f32 %v10816_v13 }
 0xa44   :  { %12575 = vst [vmem:[#allocation69_spill] sm:$0xff] %v10822_v24  ;;  %v367_v34 = vmul.f32 %v366_v38, %v12576_v46  ;;  %v400_v23 = vsub.f32 1.0, %v399_v41  ;;  %v410_v38 = vor.u32 1.1754944e-38, %v409_v22  ;;  %v10836_v46 = vpop.f32.mrf.mxu1  ;;  %vm448_vm14 = vweird.f32 %v256_v62 }
 0xa46   :  { %524 = vst.msk [vmem:[%s12204_s13 + $0x28] sm:$0xff] %vm518_vm12, %v367_v34  ;;  %v401_v26 = vmul.f32 %v8086_v27, %v400_v23 }
 0xa47   :  { %v3797_v44 = vpop.xlane.xlu1 %3796  ;;  %v10829_v58 = vpop.permute.xlu2 %205 }
 0xa48   :  { %v10831_v55 = vpop.eup %8087  ;;  %v402_v11 = vadd.f32 %v8086_v27, %v401_v26  ;;  %v10833_v56 = vmax.f32 %v3797_v44, 1e-24  ;;  %8091 = vrcp.f32 %v10829_v58  ;;  %vm298_vm5 = vweird.f32 %v10829_v58 }
 0xa49   :  { %v8090_v41 = vpop.eup %8089  ;;  %v3955_v34 = vmul.f32 %v10831_v55, %v10816_v13  ;;  %vm3961_vm1 = vweird.f32 %v10831_v55 }
 0xa4a   :  { %v406_v23 = vsel %vm405_vm8, %v8086_v27, %v402_v11  ;;  %v444_v24 = vmul.f32 %v8090_v41, %v256_v62  ;;  %8093 = vrsqrt.f32 %v10833_v56  ;;  %v10841_v43 = vpop.permute.xlu0 %270  ;;  %v10850_v27 = vmul.f32 %v10715_v48, %v10543_v47  ;;  %vm10884_vm6 = vmor %vm3960_vm13, %vm3961_vm1 }
 0xa4b   :  { %v411_v30 = vsel %vm408_vm10, %v410_v38, %v406_v23  ;;  %v3956_v26 = vmul.f32 %v10831_v55, %v3955_v34  ;;  %v10844_v44 = vpop.f32.mrf.mxu0  ;;  %8095 = vrcp.f32 %v10841_v43  ;;  %vm449_vm11 = vweird.f32 %v8090_v41 }
 0xa4c   :  { %12577 = vst [vmem:[#allocation27_spill] sm:$0xff] %v10844_v44  ;;  %v412_v3 = vmul.f32 %v411_v30, %v12578_v5  ;;  %v445_v22 = vsub.f32 1.0, %v444_v24  ;;  %v452_v11 = vand.u32 2147483647, %v256_v62  ;;  %v10858_v5 = vmul.f32 %v10730_v60, %v10556_v59  ;;  %vm450_vm15 = vmor %vm448_vm14, %vm449_vm11 }
 0xa4d   :  { %v3957_v29 = vmul.f32 0.5, %v3956_v26  ;;  %v455_v26 = vor.u32 1.1754944e-38, %v454_v14  ;;  %v304_v44 = vand.u32 2147483648, %v10829_v58  ;;  %vm3970_vm4 = vweird.f32 %v10833_v56 }
 0xa4e   :  { %v8092_v49 = vpop.eup %8091  ;;  %527 = vst.msk [vmem:[%s12204_s13 + $0x40] sm:$0xff] %vm518_vm12, %v412_v3  ;;  %v446_v52 = vmul.f32 %v8090_v41, %v445_v22  ;;  %vm453_vm2 = vcmp.eq.f32.partialorder %v452_v11, 8.507059e+37  ;;  %vm493_vm14 = vweird.f32 %v10841_v43 }
 0xa4f   :  { %v3958_v24 = vsub.f32 1.5, %v3957_v29  ;;  %v294_v38 = vmul.f32 %v8092_v49, %v10829_v58  ;;  %v10862_v34 = vpop.permute.xlu2 %220  ;;  %v302_v29 = vand.u32 2147483647, %v10829_v58  ;;  %vm299_vm3 = vweird.f32 %v8092_v49 }
 0xa50   :  { %v10864_v23 = vpop.eup %8093  ;;  %v447_v30 = vadd.f32 %v8090_v41, %v446_v52  ;;  %8097 = vrcp.f32 %v10862_v34  ;;  %v10873_v52 = vpop.f32.mrf.mxu1  ;;  %vm300_vm10 = vmor %vm298_vm5, %vm299_vm3  ;;  %v497_v58 = vand.u32 2147483647, %v10841_v43  ;;  %vm343_vm3 = vweird.f32 %v10862_v34 }
 0xa51   :  { %v3965_v3 = vmul.f32 %v10864_v23, %v10833_v56  ;;  %v295_v22 = vsub.f32 1.0, %v294_v38  ;;  %v8096_v48 = vpop.eup %8095  ;;  %v3959_v62 = vmul.f32 %v10831_v55, %v3958_v24  ;;  %v12580_v38 = vld [vmem:[#allocation39_spill] sm:$0xff]  ;;  %vm10888_vm7 = vcmp.eq.f32.partialorder %v302_v29, 8.507059e+37 }
 0xa52   :  { %v451_v60 = vsel %vm450_vm15, %v8090_v41, %v447_v30  ;;  %v489_v41 = vmul.f32 %v8096_v48, %v10841_v43  ;;  %vm3971_vm8 = vweird.f32 %v10864_v23  ;;  %vm494_vm11 = vweird.f32 %v8096_v48 }
 0xa53   :  { %v456_v14 = vsel %vm453_vm2, %v455_v26, %v451_v60  ;;  %v3966_v6 = vmul.f32 %v10864_v23, %v3965_v3  ;;  %v296_v57 = vmul.f32 %v8092_v49, %v295_v22  ;;  %v10876_v18 = vpop.f32.mrf.mxu0  ;;  %v305_v26 = vor.u32 1.1754944e-38, %v304_v44  ;;  %vm3972_vm13 = vmor %vm3970_vm4, %vm3971_vm8 }
 0xa54   :  { %12579 = vst [vmem:[#allocation33_spill] sm:$0xff] %v10876_v18  ;;  %v457_v17 = vmul.f32 %v456_v14, %v12580_v38  ;;  %v490_v13 = vsub.f32 1.0, %v489_v41  ;;  %v3963_v44 = vsel %vm10884_vm6, %v10831_v55, %v3959_v62  ;;  %v10908_v38 = vpop.f32.mrf.mxu3  ;;  %v10914_v35 = vmul.f32 %v10814_v39, %v10876_v18  ;;  %v12588_v55 = vld [vmem:[#allocation19_spill] sm:$0xff]  ;;  %vm495_vm15 = vmor %vm493_vm14, %vm494_vm11 }
 0xa55   :  { %v3967_v60 = vmul.f32 0.5, %v3966_v6  ;;  %v297_v24 = vadd.f32 %v8092_v49, %v296_v57  ;;  %v499_v57 = vand.u32 2147483648, %v10841_v43  ;;  %v10900_v6 = vpop.f32.mrf.mxu2  ;;  %12586 = vst [vmem:[#allocation70_spill] sm:$0xff] %v10908_v38  ;;  %v349_v30 = vand.u32 2147483648, %v10862_v34 }
 0xa56   :  { %v8098_v3 = vpop.eup %8097  ;;  %530 = vst.msk [vmem:[%s12204_s13 + $0x58] sm:$0xff] %vm518_vm12, %v457_v17  ;;  %v491_v15 = vmul.f32 %v8096_v48, %v490_v13  ;;  %vm498_vm2 = vcmp.eq.f32.partialorder %v497_v58, 8.507059e+37 }
 0xa57   :  { %12585 = vst [vmem:[#allocation39_spill] sm:$0xff] %v10900_v6  ;;  %v3968_v22 = vsub.f32 1.5, %v3967_v60  ;;  %v301_v29 = vsel %vm300_vm10, %v8092_v49, %v297_v24  ;;  %v339_v14 = vmul.f32 %v8098_v3, %v10862_v34  ;;  %v10906_v17 = vpop.permute.xlu2 %235  ;;  %v500_v24 = vor.u32 1.1754944e-38, %v499_v57 }
 0xa58   :  { %v306_v41 = vsel %vm10888_vm7, %v305_v26, %v301_v29  ;;  %12587 = vst [vmem:[#allocation71_spill] sm:$0xff] %v10914_v35  ;;  %8099 = vrcp.f32 %v10906_v17  ;;  %v492_v60 = vadd.f32 %v8096_v48, %v491_v15  ;;  %vm344_vm1 = vweird.f32 %v8098_v3 }
 0xa59   :  { %v3969_v11 = vmul.f32 %v10864_v23, %v3968_v22  ;;  %v307_v62 = vmul.f32 %v306_v41, %v12588_v55  ;;  %v340_v49 = vsub.f32 1.0, %v339_v14  ;;  %v347_v22 = vand.u32 2147483647, %v10862_v34  ;;  %v12590_v41 = vld [vmem:[#allocation13_spill] sm:$0xff]  ;;  %vm345_vm4 = vmor %vm343_vm3, %vm344_vm1 }
 0xa5a   :  { %v3988_v15 = vmul.f32 %v3963_v44, %v10576_v53  ;;  %v496_v57 = vsel %vm495_vm15, %v8096_v48, %v492_v60  ;;  %v350_v55 = vor.u32 1.1754944e-38, %v349_v30  ;;  %v392_v30 = vand.u32 2147483647, %v10906_v17 }
 0xa5b   :  { %v3973_v26 = vsel %vm3972_vm13, %v10864_v23, %v3969_v11  ;;  %520 = vst.msk [vmem:[%s12204_s13 + $0x8] sm:$0xff] %vm518_vm12, %v307_v62  ;;  %v341_v13 = vmul.f32 %v8098_v3, %v340_v49  ;;  %v10931_v56 = vpop.f32.mrf.mxu0  ;;  %v501_v29 = vsel %vm498_vm2, %v500_v24, %v496_v57  ;;  %v10935_v23 = vpop.f32.mrf.mxu1  ;;  %vm348_vm5 = vcmp.eq.f32.partialorder %v347_v22, 8.507059e+37 }
 0xa5c   :  { %12589 = vst [vmem:[#allocation19_spill] sm:$0xff] %v10931_v56  ;;  %v3989_v43 = vmul.f32 %v3973_v26, %v10593_v36  ;;  %v502_v11 = vmul.f32 %v501_v29, %v12590_v41  ;;  %v4518_v36 = vpack.c.bf16 %v10858_v5, %v10850_v27  ;;  %v10957_v27 = vpop.f32.mrf.mxu3  ;;  %vm393_vm8 = vcmp.eq.f32.partialorder %v392_v30, 8.507059e+37 }
 0xa5d   :  { %v342_v14 = vadd.f32 %v8098_v3, %v341_v13  ;;  %v10951_v58 = vpop.f32.mrf.mxu2 }
 0xa5e   :  { %v4323_v62 = vpack.c.bf16 %v3989_v43, %v3988_v15  ;;  %v8100_v49 = vpop.eup %8099  ;;  %533 = vst.msk [vmem:[%s12204_s13 + $0x70] sm:$0xff] %vm518_vm12, %v502_v11  ;;  %7614 = vmatmul.msk.bf16.gmra.mxu3 %vm4519_vm9, %v4518_v36  ;;  %v4610_v36 = vmul.f32 %v10595_v45, %v12512_v0 }
 0xa5f   :  { %v346_v35 = vsel %vm345_vm4, %v8098_v3, %v342_v14  ;;  %v10939_v18 = vpop.permute.xlu1 %210  ;;  %v10941_v53 = vpop.permute.xlu2 %250  ;;  %v384_v34 = vmul.f32 %v8100_v49, %v10906_v17  ;;  %12591 = vst [vmem:[#allocation13_spill] sm:$0xff] %v10951_v58  ;;  %v12592_v3 = vld [vmem:[#allocation25_spill] sm:$0xff]  ;;  %vm389_vm6 = vweird.f32 %v8100_v49 }
 0xa60   :  { %v351_v48 = vsel %vm348_vm5, %v350_v55, %v346_v35  ;;  %7590 = vmatmul.msk.bf16.gmra.mxu0 %vm75_vm0, %v4323_v62  ;;  %8101 = vrcp.f32 %v10939_v18  ;;  %7598 = vmatmul.msk.bf16.gmra.mxu1 %vm75_vm0, %v4323_v62  ;;  %12593 = vst [vmem:[#allocation25_spill] sm:$0xff] %v10957_v27  ;;  %v394_v35 = vand.u32 2147483648, %v10906_v17  ;;  %v4609_v55 = vmul.f32 %v10572_v63, %v12510_v20 }
 0xa61   :  { %v352_v44 = vmul.f32 %v351_v48, %v12592_v3  ;;  %7606 = vmatmul.msk.bf16.gmra.mxu2 %vm75_vm0, %v4323_v62  ;;  %v385_v5 = vsub.f32 1.0, %v384_v34  ;;  %8103 = vrcp.f32 %v10941_v53  ;;  %vm388_vm0 = vweird.f32 %v10906_v17 }
 0xa62   :  { %vm390_vm7 = vmor %vm388_vm0, %vm389_vm6  ;;  %v395_v43 = vor.u32 1.1754944e-38, %v394_v35  ;;  %v4723_v48 = vmul.f32 %v10836_v46, %v12512_v0  ;;  %v317_v0 = vand.u32 2147483647, %v10939_v18  ;;  %vm313_vm13 = vweird.f32 %v10939_v18 }
 0xa63   :  { %523 = vst.msk [vmem:[%s12204_s13 + $0x20] sm:$0xff] %vm518_vm12, %v352_v44  ;;  %v10966_v60 = vpop.f32.mrf.mxu0  ;;  %v386_v24 = vmul.f32 %v8100_v49, %v385_v5  ;;  %v10974_v15 = vpop.f32.mrf.mxu1  ;;  %v4722_v44 = vmul.f32 %v10814_v39, %v12510_v20  ;;  %v319_v5 = vand.u32 2147483648, %v10939_v18  ;;  %v437_v20 = vand.u32 2147483647, %v10941_v53 }
 0xa64   :  { %12594 = vst [vmem:[#allocation72_spill] sm:$0xff] %v10966_v60  ;;  %v10971_v26 = vmul.f32 %v10873_v52, %v10966_v60  ;;  %vm433_vm15 = vweird.f32 %v10941_v53  ;;  %vm318_vm1 = vcmp.eq.f32.partialorder %v317_v0, 8.507059e+37 }
 0xa65   :  { %v387_v13 = vadd.f32 %v8100_v49, %v386_v24  ;;  %vm438_vm3 = vcmp.eq.f32.partialorder %v437_v20, 8.507059e+37 }
 0xa66   :  { %12595 = vst [vmem:[#allocation73_spill] sm:$0xff] %v10971_v26  ;;  %v8102_v22 = vpop.eup %8101 }
 0xa67   :  { %v10976_v57 = vpop.permute.xlu1 %230  ;;  %v8104_v29 = vpop.eup %8103  ;;  %v391_v14 = vsel %vm390_vm7, %v8100_v49, %v387_v13  ;;  %v309_v41 = vmul.f32 %v8102_v22, %v10939_v18  ;;  %v12596_v49 = vld [vmem:[#allocation31_spill] sm:$0xff]  ;;  %vm314_vm10 = vweird.f32 %v8102_v22  ;;  %v439_v13 = vand.u32 2147483648, %v10941_v53 }
 0xa68   :  { %8105 = vrcp.f32 %v10976_v57  ;;  %v10980_v11 = vpop.permute.xlu2 %265  ;;  %v396_v17 = vsel %vm393_vm8, %v395_v43, %v391_v14  ;;  %v429_v62 = vmul.f32 %v8104_v29, %v10941_v53  ;;  %vm434_vm11 = vweird.f32 %v8104_v29  ;;  %vm315_vm14 = vmor %vm313_vm13, %vm314_vm10 }
 0xa69   :  { %v397_v34 = vmul.f32 %v396_v17, %v12596_v49  ;;  %v310_v3 = vsub.f32 1.0, %v309_v41  ;;  %8107 = vrcp.f32 %v10980_v11  ;;  %v4625_v41 = vpack.c.bf16 %v4610_v36, %v4609_v55  ;;  %vm435_vm2 = vmor %vm433_vm15, %vm434_vm11 }
 0xa6a   :  { %v430_v35 = vsub.f32 1.0, %v429_v62  ;;  %v4738_v17 = vpack.c.bf16 %v4723_v48, %v4722_v44  ;;  %v320_v49 = vor.u32 1.1754944e-38, %v319_v5  ;;  %v12599_v44 = vld [vmem:[#allocation21_spill] sm:$0xff]  ;;  %vm373_vm5 = vweird.f32 %v10976_v57 }
 0xa6b   :  { %v10994_v24 = vpop.f32.mrf.mxu0  ;;  %526 = vst.msk [vmem:[%s12204_s13 + $0x38] sm:$0xff] %vm518_vm12, %v397_v34  ;;  %v311_v30 = vmul.f32 %v8102_v22, %v310_v3  ;;  %v11011_v18 = vpop.f32.mrf.mxu1  ;;  %vm478_vm8 = vweird.f32 %v10980_v11 }
 0xa6c   :  { %12597 = vst [vmem:[#allocation31_spill] sm:$0xff] %v10994_v24  ;;  %v431_v43 = vmul.f32 %v8104_v29, %v430_v35  ;;  %v440_v35 = vor.u32 1.1754944e-38, %v439_v13  ;;  %v12600_v13 = vld [vmem:[#allocation37_spill] sm:$0xff] }
 0xa6d   :  { %v312_v62 = vadd.f32 %v8102_v22, %v311_v30  ;;  %12598 = vst [vmem:[#allocation74_spill] sm:$0xff] %v11011_v18  ;;  %v379_v30 = vand.u32 2147483648, %v10976_v57 }
 0xa6e   :  { %v8106_v14 = vpop.eup %8105  ;;  %v432_v26 = vadd.f32 %v8104_v29, %v431_v43 }
 0xa6f   :  { %v369_v34 = vmul.f32 %v8106_v14, %v10976_v57  ;;  %v11006_v3 = vpop.permute.xlu1 %245  ;;  %v316_v60 = vsel %vm315_vm14, %v8102_v22, %v312_v62  ;;  %v8108_v55 = vpop.eup %8107  ;;  %vm374_vm4 = vweird.f32 %v8106_v14 }
 0xa70   :  { %8109 = vrcp.f32 %v11006_v3  ;;  %7615 = vmatmul.msk.bf16.vlgmr.msrb.gmra.mxu0 %vm4519_vm9, %v4625_v41  ;;  %v321_v36 = vsel %vm318_vm1, %v320_v49, %v316_v60  ;;  %v436_v48 = vsel %vm435_vm2, %v8104_v29, %v432_v26  ;;  %7623 = vmatmul.msk.bf16.vlgmr.msra.gmra.mxu1 %vm4519_vm9, %v4738_v17  ;;  %v474_v0 = vmul.f32 %v8108_v55, %v10980_v11  ;;  %vm375_vm6 = vmor %vm373_vm5, %vm374_vm4 }
 0xa71   :  { %v370_v53 = vsub.f32 1.0, %v369_v34  ;;  %v322_v5 = vmul.f32 %v321_v36, %v12599_v44  ;;  %v441_v22 = vsel %vm438_vm3, %v440_v35, %v436_v48  ;;  %v377_v41 = vand.u32 2147483647, %v10976_v57 }
 0xa72   :  { %v442_v43 = vmul.f32 %v441_v22, %v12600_v13  ;;  %v475_v60 = vsub.f32 1.0, %v474_v0  ;;  %v484_v29 = vand.u32 2147483648, %v10980_v11  ;;  %v380_v49 = vor.u32 1.1754944e-38, %v379_v30  ;;  %v12603_v22 = vld [vmem:[#allocation29_spill] sm:$0xff] }
 0xa73   :  { %v371_v62 = vmul.f32 %v8106_v14, %v370_v53  ;;  %v11019_v24 = vpop.f32.mrf.mxu0  ;;  %521 = vst.msk [vmem:[%s12204_s13 + $0x10] sm:$0xff] %vm518_vm12, %v322_v5  ;;  %vm479_vm0 = vweird.f32 %v8108_v55  ;;  %v482_v35 = vand.u32 2147483647, %v10980_v11  ;;  %vm378_vm7 = vcmp.eq.f32.partialorder %v377_v41, 8.507059e+37  ;;  %v11044_v41 = vpop.f32.mrf.mxu1 }
 0xa74   :  { %12601 = vst [vmem:[#allocation21_spill] sm:$0xff] %v11019_v24  ;;  %v11033_v20 = vmul.f32 %v10974_v15, %v11019_v24  ;;  %v476_v34 = vmul.f32 %v8108_v55, %v475_v60  ;;  %v4612_v5 = vmul.f32 %v10734_v12, %v12525_v28  ;;  %vm480_vm10 = vmor %vm478_vm8, %vm479_vm0  ;;  %v485_v30 = vor.u32 1.1754944e-38, %v484_v29 }
 0xa75   :  { %529 = vst.msk [vmem:[%s12204_s13 + $0x50] sm:$0xff] %vm518_vm12, %v442_v43  ;;  %v372_v26 = vadd.f32 %v8106_v14, %v371_v62  ;;  %vm483_vm11 = vcmp.eq.f32.partialorder %v482_v35, 8.507059e+37  ;;  %v424_v62 = vand.u32 2147483648, %v11006_v3  ;;  %vm418_vm14 = vweird.f32 %v11006_v3 }
 0xa76   :  { %12602 = vst [vmem:[#allocation37_spill] sm:$0xff] %v11033_v20  ;;  %v8110_v17 = vpop.eup %8109  ;;  %v477_v57 = vadd.f32 %v8108_v55, %v476_v34  ;;  %v4724_v34 = vmul.f32 %v10873_v52, %v12523_v7 }
 0xa77   :  { %v376_v36 = vsel %vm375_vm6, %v8106_v14, %v372_v26  ;;  %v414_v48 = vmul.f32 %v8110_v17, %v11006_v3  ;;  %v261_v53 = vpop.permute.xlu1 %260  ;;  %v4725_v14 = vmul.f32 %v10935_v23, %v12525_v28  ;;  %12604 = vst [vmem:[#allocation29_spill] sm:$0xff] %v11044_v41  ;;  %vm419_vm13 = vweird.f32 %v8110_v17 }
 0xa78   :  { %v381_v44 = vsel %vm378_vm7, %v380_v49, %v376_v36  ;;  %8111 = vrcp.f32 %v261_v53  ;;  %v481_v43 = vsel %vm480_vm10, %v8108_v55, %v477_v57  ;;  %v422_v26 = vand.u32 2147483647, %v11006_v3  ;;  %v12606_v55 = vld [vmem:[#allocation11_spill] sm:$0xff]  ;;  %vm420_vm15 = vmor %vm418_vm14, %vm419_vm13 }
 0xa79   :  { %v382_v0 = vmul.f32 %v381_v44, %v12603_v22  ;;  %v415_v13 = vsub.f32 1.0, %v414_v48  ;;  %v486_v11 = vsel %vm483_vm11, %v485_v30, %v481_v43  ;;  %v4611_v28 = vmul.f32 %v10719_v10, %v12523_v7  ;;  %v12608_v3 = vld [vmem:[#allocation35_spill] sm:$0xff] }
 0xa7a   :  { %v487_v49 = vmul.f32 %v486_v11, %v12606_v55  ;;  %v425_v48 = vor.u32 1.1754944e-38, %v424_v62  ;;  %vm423_vm1 = vcmp.eq.f32.partialorder %v422_v26, 8.507059e+37  ;;  %v4739_v30 = vpack.c.bf16 %v4725_v14, %v4724_v34 }
 0xa7b   :  { %525 = vst.msk [vmem:[%s12204_s13 + $0x30] sm:$0xff] %vm518_vm12, %v382_v0  ;;  %v416_v60 = vmul.f32 %v8110_v17, %v415_v13  ;;  %v11051_v29 = vpop.f32.mrf.mxu0  ;;  %v4626_v44 = vpack.c.bf16 %v4612_v5, %v4611_v28  ;;  %v11063_v13 = vpop.f32.mrf.mxu3  ;;  %v467_v5 = vand.u32 2147483647, %v261_v53  ;;  %vm463_vm3 = vweird.f32 %v261_v53 }
 0xa7c   :  { %12605 = vst [vmem:[#allocation75_spill] sm:$0xff] %v11051_v29  ;;  %v11078_v26 = vpop.f32.mrf.mxu1  ;;  %v5468_v29 = vmul.f32 %v10561_v31, %v12513_v25  ;;  %vm5083_vm10 = vcmask 15360  }
 0xa7d   :  { %v417_v35 = vadd.f32 %v8110_v17, %v416_v60  ;;  %532 = vst.msk [vmem:[%s12204_s13 + $0x68] sm:$0xff] %vm518_vm12, %v487_v49  ;;  %v469_v60 = vand.u32 2147483648, %v261_v53  ;;  %vm468_vm5 = vcmp.eq.f32.partialorder %v467_v5, 8.507059e+37 }
 0xa7e   :  { %v8112_v36 = vpop.eup %8111  ;;  %12607 = vst [vmem:[#allocation11_spill] sm:$0xff] %v11063_v13 }
 0xa7f   :  { %v421_v57 = vsel %vm420_vm15, %v8110_v17, %v417_v35  ;;  %v459_v22 = vmul.f32 %v8112_v36, %v261_v53  ;;  %v276_v0 = vpop.permute.xlu1 %275  ;;  %vm464_vm2 = vweird.f32 %v8112_v36  ;;  %12611 = vst [vmem:[#allocation77_spill] sm:$0xff] %v11078_v26  ;;  %v470_v49 = vor.u32 1.1754944e-38, %v469_v60 }
 0xa80   :  { %v426_v7 = vsel %vm423_vm1, %v425_v48, %v421_v57  ;;  %8113 = vrcp.f32 %v276_v0  ;;  %7616 = vmatmul.msk.bf16.gmra.mxu0 %vm4519_vm9, %v4626_v44  ;;  %7624 = vmatmul.msk.bf16.gmra.mxu1 %vm4519_vm9, %v4739_v30  ;;  %vm465_vm4 = vmor %vm463_vm3, %vm464_vm2  ;;  %v12612_v44 = vld [vmem:[#allocation8_spill] sm:$0xff]  ;;  %v4614_v30 = vmul.f32 %v10776_v61, %v12538_v32  ;;  %v4613_v60 = vmul.f32 %v10764_v51, %v12536_v33 }
 0xa81   :  { %v427_v43 = vmul.f32 %v426_v7, %v12608_v3  ;;  %v460_v11 = vsub.f32 1.0, %v459_v22  ;;  %v514_v3 = vand.u32 2147483648, %v276_v0  ;;  %vm508_vm0 = vweird.f32 %v276_v0 }
 0xa83   :  { %528 = vst.msk [vmem:[%s12204_s13 + $0x48] sm:$0xff] %vm518_vm12, %v427_v43  ;;  %v461_v17 = vmul.f32 %v8112_v36, %v460_v11  ;;  %v11072_v14 = vpop.f32.mrf.mxu0  ;;  %v11083_v7 = vpop.f32.mrf.mxu3  ;;  %v4727_v43 = vmul.f32 %v11011_v18, %v12538_v32  ;;  %v515_v32 = vor.u32 1.1754944e-38, %v514_v3  ;;  %v4616_v3 = vmul.f32 %v10951_v58, %v12551_v4 }
 0xa84   :  { %12609 = vst [vmem:[#allocation35_spill] sm:$0xff] %v11072_v14  ;;  %v11076_v62 = vmul.f32 %v11044_v41, %v11072_v14 }
 0xa85   :  { %v462_v28 = vadd.f32 %v8112_v36, %v461_v17  ;;  %12613 = vst [vmem:[#allocation8_spill] sm:$0xff] %v11083_v7  ;;  %v4726_v17 = vmul.f32 %v10974_v15, %v12536_v33 }
 0xa86   :  { %12610 = vst [vmem:[#allocation76_spill] sm:$0xff] %v11076_v62  ;;  %v8114_v55 = vpop.eup %8113 }
 0xa87   :  { %v466_v34 = vsel %vm465_vm4, %v8112_v36, %v462_v28  ;;  %v504_v35 = vmul.f32 %v8114_v55, %v276_v0  ;;  %vm509_vm6 = vweird.f32 %v8114_v55  ;;  %v512_v36 = vand.u32 2147483647, %v276_v0 }
 0xa88   :  { %v471_v48 = vsel %vm468_vm5, %v470_v49, %v466_v34  ;;  %vm510_vm7 = vmor %vm508_vm0, %vm509_vm6  ;;  %v4627_v28 = vpack.c.bf16 %v4614_v30, %v4613_v60  ;;  %v11097_v49 = vpop.f32.mrf.mxu1  ;;  %v4615_v60 = vmul.f32 %v10900_v6, %v12549_v21 }
 0xa89   :  { %v472_v57 = vmul.f32 %v471_v48, %v12612_v44  ;;  %v505_v22 = vsub.f32 1.0, %v504_v35  ;;  %12615 = vst [vmem:[#allocation79_spill] sm:$0xff] %v11097_v49  ;;  %vm513_vm8 = vcmp.eq.f32.partialorder %v512_v36, 8.507059e+37  ;;  %v4740_v35 = vpack.c.bf16 %v4727_v43, %v4726_v17  ;;  %v11100_v44 = vpop.f32.mrf.mxu2 }
 0xa8a   :  { %12616 = vst [vmem:[#allocation80_spill] sm:$0xff] %v11100_v44  ;;  %v4728_v17 = vmul.f32 %v11044_v41, %v12549_v21 }
 0xa8b   :  { %531 = vst.msk [vmem:[%s12204_s13 + $0x60] sm:$0xff] %vm518_vm12, %v472_v57  ;;  %v506_v53 = vmul.f32 %v8114_v55, %v505_v22  ;;  %v11091_v11 = vpop.f32.mrf.mxu0  ;;  %v12617_v57 = vld [vmem:[#allocation15_spill] sm:$0xff]  ;;  %v11110_v0 = vpop.f32.mrf.mxu3 }
 0xa8c   :  { %12614 = vst [vmem:[#allocation78_spill] sm:$0xff] %v11091_v11 }
 0xa8d   :  { %v507_v5 = vadd.f32 %v8114_v55, %v506_v53  ;;  %12619 = vst [vmem:[#allocation81_spill] sm:$0xff] %v11110_v0  ;;  %v4729_v53 = vmul.f32 %v11078_v26, %v12551_v4 }
 0xa8f   :  { %v511_v34 = vsel %vm510_vm7, %v8114_v55, %v507_v5 }
 0xa90   :  { %v516_v48 = vsel %vm513_vm8, %v515_v32, %v511_v34  ;;  %7617 = vmatmul.msk.bf16.gmra.mxu0 %vm4519_vm9, %v4627_v28  ;;  %7625 = vmatmul.msk.bf16.gmra.mxu1 %vm4519_vm9, %v4740_v35  ;;  %v11116_v30 = vpop.f32.mrf.mxu1  ;;  %v4628_v32 = vpack.c.bf16 %v4616_v3, %v4615_v60  ;;  %v4741_v28 = vpack.c.bf16 %v4729_v53, %v4728_v17 }
 0xa91   :  { %v517_v22 = vmul.f32 %v516_v48, %v12617_v57  ;;  %12621 = vst [vmem:[#allocation83_spill] sm:$0xff] %v11116_v30  ;;  %v11120_v43 = vpop.f32.mrf.mxu2  ;;  %v4617_v60 = vmul.f32 %v11100_v44, %v10463_v19  ;;  %v4730_v17 = vmul.f32 %v11097_v49, %v10463_v19 }
 0xa92   :  { %12622 = vst [vmem:[#allocation84_spill] sm:$0xff] %v11120_v43  ;;  %v4618_v21 = vmul.f32 %v11120_v43, %v10471_v9 }
 0xa93   :  { %534 = vst.msk [vmem:[%s12204_s13 + $0x78] sm:$0xff] %vm518_vm12, %v517_v22  ;;  %v11108_v33 = vpop.f32.mrf.mxu0  ;;  %v11130_v5 = vpop.f32.mrf.mxu3  ;;  %v4731_v22 = vmul.f32 %v11116_v30, %v10471_v9  ;;  %vm5108_vm12 = vcmask 1040384  }
 0xa94   :  { %12618 = vst [vmem:[#allocation15_spill] sm:$0xff] %v11108_v33  ;;  %v11114_v55 = vmul.f32 %v11097_v49, %v11108_v33 }
 0xa95   :  { %12624 = vst [vmem:[#allocation86_spill] sm:$0xff] %v11130_v5  ;;  %v4742_v5 = vpack.c.bf16 %v4731_v22, %v4730_v17 }
 0xa96   :  { %12620 = vst [vmem:[#allocation82_spill] sm:$0xff] %v11114_v55 }
 0xa98   :  { %v11133_v34 = vpop.f32.mrf.mxu1 }
 0xa99   :  { %12625 = vst [vmem:[#allocation87_spill] sm:$0xff] %v11133_v34  ;;  %v11142_v48 = vpop.f32.mrf.mxu2 }
 0xa9a   :  { %12628 = vst [vmem:[#allocation90_spill] sm:$0xff] %v11142_v48 }
 0xa9b   :  { %v11124_v36 = vpop.f32.mrf.mxu0  ;;  %v11144_v57 = vpop.f32.mrf.mxu3 }
 0xa9c   :  { %12623 = vst [vmem:[#allocation85_spill] sm:$0xff] %v11124_v36 }
 0xa9d   :  { %12629 = vst [vmem:[#allocation91_spill] sm:$0xff] %v11144_v57 }
 0xaa0   :  { %7618 = vmatmul.msk.bf16.gmra.mxu0 %vm4519_vm9, %v4628_v32  ;;  %7626 = vmatmul.msk.bf16.gmra.mxu1 %vm4519_vm9, %v4741_v28  ;;  %v11150_v3 = vpop.f32.mrf.mxu1  ;;  %v4629_v32 = vpack.c.bf16 %v4618_v21, %v4617_v60  ;;  %v4732_v60 = vmul.f32 %v11133_v34, %v10490_v37 }
 0xaa1   :  { %12630 = vst [vmem:[#allocation92_spill] sm:$0xff] %v11150_v3  ;;  %v11158_v28 = vpop.f32.mrf.mxu2  ;;  %v4733_v21 = vmul.f32 %v11150_v3, %v10501_v8 }
 0xaa2   :  { %12632 = vst [vmem:[#allocation94_spill] sm:$0xff] %v11158_v28  ;;  %v4620_v19 = vmul.f32 %v11158_v28, %v10501_v8 }
 0xaa3   :  { %v11136_v35 = vpop.f32.mrf.mxu0 }
 0xaa4   :  { %12626 = vst [vmem:[#allocation88_spill] sm:$0xff] %v11136_v35  ;;  %v11140_v4 = vmul.f32 %v11133_v34, %v11136_v35 }
 0xaa6   :  { %12627 = vst [vmem:[#allocation89_spill] sm:$0xff] %v11140_v4  ;;  %v11162_v4 = vpop.f32.mrf.mxu3 }
 0xaa7   :  { %12633 = vst [vmem:[#allocation95_spill] sm:$0xff] %v11162_v4  ;;  %v4002_v4 = vld [vmem:[%s12205_s11] sm:$0x3] }
 0xaa8   :  { %v11164_v9 = vpop.f32.mrf.mxu1 }
 0xaa9   :  { %12634 = vst [vmem:[#allocation96_spill] sm:$0xff] %v11164_v9  ;;  %v11172_v62 = vpop.f32.mrf.mxu2 }
 0xaaa   :  { %12637 = vst [vmem:[#allocation99_spill] sm:$0xff] %v11172_v62 }
 0xaab   :  { %v11152_v53 = vpop.f32.mrf.mxu0 }
 0xaac   :  { %12631 = vst [vmem:[#allocation93_spill] sm:$0xff] %v11152_v53 }
 0xaae   :  { %v11180_v22 = vpop.f32.mrf.mxu3 }
 0xaaf   :  { %12638 = vst [vmem:[#allocation100_spill] sm:$0xff] %v11180_v22 }
 0xab0   :  { %7619 = vmatmul.msk.bf16.gmra.mxu0 %vm4519_vm9, %v4629_v32  ;;  %7627 = vmatmul.msk.bf16.gmra.mxu1 %vm4519_vm9, %v4742_v5  ;;  %v4619_v5 = vmul.f32 %v11142_v48, %v10490_v37  ;;  %v4743_v32 = vpack.c.bf16 %v4733_v21, %v4732_v60  ;;  %v4621_v21 = vmul.f32 %v11172_v62, %v10522_v42  ;;  %v12653_v62 = vld [vmem:[#allocation55_spill] sm:$0xff] }
 0xab1   :  { %v11191_v20 = vpop.f32.mrf.mxu2  ;;  %v4734_v60 = vmul.f32 %v11164_v9, %v10522_v42 }
 0xab2   :  { %v4630_v17 = vpack.c.bf16 %v4620_v19, %v4619_v5  ;;  %12639 = vst [vmem:[#allocation101_spill] sm:$0xff] %v11191_v20 }
 0xab3   :  { %v11166_v7 = vpop.f32.mrf.mxu0 }
 0xab4   :  { %12635 = vst [vmem:[#allocation97_spill] sm:$0xff] %v11166_v7  ;;  %v11170_v55 = vmul.f32 %v11164_v9, %v11166_v7 }
 0xab6   :  { %12636 = vst [vmem:[#allocation98_spill] sm:$0xff] %v11170_v55  ;;  %v4003_v55 = vpack.c.bf16 %v4002_v4, %v4002_v4  ;;  %v11200_v37 = vpop.f32.mrf.mxu3  ;;  %v4622_v4 = vmul.f32 %v11191_v20, %v10533_v2 }
 0xab7   :  { %12640 = vst [vmem:[#allocation102_spill] sm:$0xff] %v11200_v37 }
 0xab8   :  { %v11189_v8 = vsel %vm5108_vm12, %v4003_v55, 0  ;;  %v11202_v55 = vpop.f32.mrf.mxu1 }
 0xab9   :  { %5119 = vmatpush.bf16.msra.mxu2 %v11189_v8  ;;  %5248 = vmatpush.bf16.msra.mxu3 %v11189_v8  ;;  %12641 = vst [vmem:[#allocation103_spill] sm:$0xff] %v11202_v55  ;;  %v4735_v19 = vmul.f32 %v11202_v55, %v10533_v2  ;;  %v11213_v5 = vpop.f32.mrf.mxu2  ;;  %v12654_v55 = vld [vmem:[#allocation44_spill] sm:$0xff] }
 0xaba   :  { %5377 = vmatpush.bf16.msra.mxu0 %v11189_v8  ;;  %6214 = vmatpush.bf16.msra.mxu1 %v11189_v8  ;;  %12642 = vst [vmem:[#allocation104_spill] sm:$0xff] %v11213_v5 }
 0xabb   :  { %v4744_v37 = vpack.c.bf16 %v4735_v19, %v4734_v60  ;;  %v11222_v2 = vpop.f32.mrf.mxu0 }
 0xabc   :  { %12643 = vst [vmem:[#allocation105_spill] sm:$0xff] %v11222_v2 }
 0xabd   :  { %5632 = vmatpush.bf16.msrb.mxu2 %v10608_v54  ;;  %5745 = vmatpush.bf16.msrb.mxu3 %v10608_v54 }
 0xabe   :  { %6085 = vmatpush.bf16.msrb.mxu0 %v11189_v8 }
 0xac0   :  { %7620 = vmatmul.msk.bf16.gmra.mxu0 %vm4519_vm9, %v4630_v17  ;;  %7628 = vmatmul.msk.bf16.gmra.mxu1 %vm4519_vm9, %v4743_v32  ;;  %v4631_v17 = vpack.c.bf16 %v4622_v4, %v4621_v21  ;;  %v4553_v32 = vpop.f32.mrf.mxu3  ;;  %v4623_v4 = vmul.f32 %v11213_v5, %v10543_v47 }
 0xac1   :  { %5633 = vmatpush.bf16.msrb.mxu2 %v10628_v1  ;;  %5746 = vmatpush.bf16.msrb.mxu3 %v10628_v1  ;;  %v11224_v7 = vpop.f32.mrf.mxu2 }
 0xac2   :  { %12644 = vst [vmem:[#allocation106_spill] sm:$0xff] %v11224_v7  ;;  %v4624_v42 = vmul.f32 %v11224_v7, %v10556_v59 }
 0xac4   :  { %v4632_v60 = vpack.c.bf16 %v4624_v42, %v4623_v4 }
 0xac5   :  { %5634 = vmatpush.bf16.msrb.mxu2 %v10642_v50  ;;  %5747 = vmatpush.bf16.msrb.mxu3 %v10642_v50 }
 0xac8   :  { %v4555_v53 = vpop.f32.mrf.mxu3 }
 0xac9   :  { %5635 = vmatpush.bf16.msrb.mxu2 %v10661_v40  ;;  %5748 = vmatpush.bf16.msrb.mxu3 %v10661_v40 }
 0xad0   :  { %7621 = vmatmul.msk.bf16.gmra.mxu0 %vm4519_vm9, %v4631_v17  ;;  %7629 = vmatmul.msk.bf16.gmra.mxu1 %vm4519_vm9, %v4744_v37  ;;  %v4558_v17 = vpop.f32.mrf.mxu3 }
 0xad8   :  { %v11248_v42 = vpop.f32.mrf.mxu3 }
 0xadd   :  { %v11230_v19 = vpop.f32.mrf.mxu0  ;;  %v11232_v21 = vpop.f32.mrf.mxu1 }
 0xade   :  { %12645 = vst [vmem:[#allocation107_spill] sm:$0xff] %v11230_v19  ;;  %v11236_v37 = vmul.f32 %v11232_v21, %v11230_v19  ;;  %v4736_v36 = vmul.f32 %v11232_v21, %v10543_v47 }
 0xadf   :  { %12646 = vst [vmem:[#allocation108_spill] sm:$0xff] %v11232_v21 }
 0xae0   :  { %12647 = vst [vmem:[#allocation109_spill] sm:$0xff] %v11236_v37  ;;  %7622 = vmatmul.msk.bf16.gmra.mxu0 %vm4519_vm9, %v4632_v60  ;;  %v4593_v37 = vmul.f32 0.17677669, %v4553_v32  ;;  %v11254_v32 = vpop.f32.mrf.mxu3 }
 0xae5   :  { %v11239_v2 = vpop.f32.mrf.mxu0  ;;  %v11241_v35 = vpop.f32.mrf.mxu1 }
 0xae6   :  { %12648 = vst [vmem:[#allocation110_spill] sm:$0xff] %v11239_v2  ;;  %v4737_v33 = vmul.f32 %v11241_v35, %v10556_v59  ;;  %v12650_v59 = vld [vmem:[#allocation43_spill] sm:$0xff] }
 0xae7   :  { %12649 = vst [vmem:[#allocation111_spill] sm:$0xff] %v11241_v35  ;;  %v4594_v35 = vmul.f32 0.17677669, %v4555_v53 }
 0xae8   :  { %v4745_v11 = vpack.c.bf16 %v4737_v33, %v4736_v36  ;;  %v5467_v33 = vmul.f32 %v12650_v59, %v12511_v16 }
 0xaea   :  { %7630 = vmatmul.msk.bf16.gmra.mxu1 %vm4519_vm9, %v4745_v11  ;;  %v5483_v7 = vpack.c.bf16 %v5468_v29, %v5467_v33 }
 0xaed   :  { %v4666_v4 = vpop.f32.mrf.mxu0  ;;  %v4779_v60 = vpop.f32.mrf.mxu1 }
 0xaee   :  { %v4706_v19 = vmul.f32 0.17677669, %v4666_v4  ;;  %v4819_v24 = vmul.f32 0.17677669, %v4779_v60 }
 0xaf0   :  { %v4835_v14 = vmax.f32 %v4593_v37, %v4706_v19 }
 0xaf2   :  { %v4851_v2 = vmax.f32 %v4835_v14, %v4819_v24 }
 0xaf4   :  { %v4867_v56 = vsub.f32 %v4593_v37, %v4851_v2  ;;  %v4915_v47 = vsub.f32 %v4706_v19, %v4851_v2  ;;  %v4963_v22 = vsub.f32 %v4819_v24, %v4851_v2 }
 0xaf5   :  { %v4668_v21 = vpop.f32.mrf.mxu0  ;;  %v4781_v5 = vpop.f32.mrf.mxu1 }
 0xaf6   :  { %v4883_v11 = vmul.f32 1.442695, %v4867_v56  ;;  %v4931_v36 = vmul.f32 1.442695, %v4915_v47  ;;  %v4707_v4 = vmul.f32 0.17677669, %v4668_v21 }
 0xaf7   :  { %v4979_v14 = vmul.f32 1.442695, %v4963_v22  ;;  %v4820_v25 = vmul.f32 0.17677669, %v4781_v5  ;;  %v4595_v47 = vmul.f32 0.17677669, %v4558_v17 }
 0xaf8   :  { %8115 = vpow2.f32 %v4883_v11  ;;  %v4836_v60 = vmax.f32 %v4594_v35, %v4707_v4 }
 0xaf9   :  { %8117 = vpow2.f32 %v4931_v36 }
 0xafa   :  { %v4852_v37 = vmax.f32 %v4836_v60, %v4820_v25  ;;  %7655 = vmatmul.msk.bf16.vlgmr.msrb.gmra.mxu1 %vm4519_vm9, %v5483_v7  ;;  %8119 = vpow2.f32 %v4979_v14 }
 0xafb   :  { %6711 = vmatpush.bf16.msrb.mxu1 %v10608_v54 }
 0xafc   :  { %v4868_v24 = vsub.f32 %v4594_v35, %v4852_v37  ;;  %v4916_v56 = vsub.f32 %v4707_v4, %v4852_v37  ;;  %v4964_v2 = vsub.f32 %v4820_v25, %v4852_v37  ;;  %v4565_v35 = vpop.f32.mrf.mxu3 }
 0xafd   :  { %v4671_v19 = vpop.f32.mrf.mxu0  ;;  %v4784_v29 = vpop.f32.mrf.mxu1 }
 0xafe   :  { %v11258_v53 = vpop.eup %8115  ;;  %v4708_v21 = vmul.f32 0.17677669, %v4671_v19  ;;  %v4885_v22 = vmul.f32 1.442695, %v4868_v24  ;;  %v4933_v11 = vmul.f32 1.442695, %v4916_v56 }
 0xaff   :  { %v11260_v33 = vpop.eup %8117  ;;  %v4981_v7 = vmul.f32 1.442695, %v4964_v2  ;;  %v4821_v60 = vmul.f32 0.17677669, %v4784_v29  ;;  %6712 = vmatpush.bf16.msrb.mxu1 %v10628_v1  ;;  %v12651_v24 = vld [vmem:[#allocation57_spill] sm:$0xff]  ;;  %v12652_v56 = vld [vmem:[#allocation46_spill] sm:$0xff] }
 0xb00   :  { %v5011_v5 = vadd.f32 %v11260_v33, %v11258_v53  ;;  %v4837_v36 = vmax.f32 %v4595_v47, %v4708_v21  ;;  %8121 = vpow2.f32 %v4885_v22  ;;  %v8120_v4 = vpop.eup %8119  ;;  %v5470_v19 = vmul.f32 %v12652_v56, %v12651_v24 }
 0xb01   :  { %8123 = vpow2.f32 %v4933_v11  ;;  %v5469_v22 = vmul.f32 %v12654_v55, %v12653_v62  ;;  %v4596_v11 = vmul.f32 0.17677669, %v11248_v42 }
 0xb02   :  { %v4853_v25 = vmax.f32 %v4837_v36, %v4821_v60  ;;  %v5027_v17 = vadd.f32 %v8120_v4, %v5011_v5  ;;  %8125 = vpow2.f32 %v4981_v7 }
 0xb03   :  { %6713 = vmatpush.bf16.msrb.mxu1 %v10642_v50 }
 0xb04   :  { %v4869_v14 = vsub.f32 %v4595_v47, %v4853_v25  ;;  %v4917_v37 = vsub.f32 %v4708_v21, %v4853_v25  ;;  %8127 = vrcp.f32 %v5027_v17  ;;  %v4965_v47 = vsub.f32 %v4821_v60, %v4853_v25  ;;  %v11272_v21 = vpop.f32.mrf.mxu2  ;;  %v11274_v0 = vpop.f32.mrf.mxu3 }
 0xb05   :  { %v4673_v16 = vpop.f32.mrf.mxu0  ;;  %v4786_v29 = vpop.f32.mrf.mxu1 }
 0xb06   :  { %v4887_v2 = vmul.f32 1.442695, %v4869_v14  ;;  %v4935_v57 = vmul.f32 1.442695, %v4917_v37  ;;  %v8122_v9 = vpop.eup %8121  ;;  %v4709_v36 = vmul.f32 0.17677669, %v4673_v16  ;;  %v5484_v14 = vpack.c.bf16 %v5470_v19, %v5469_v22 }
 0xb07   :  { %v8124_v5 = vpop.eup %8123  ;;  %6714 = vmatpush.bf16.msrb.mxu1 %v10661_v40  ;;  %v4822_v20 = vmul.f32 0.17677669, %v4786_v29  ;;  %v4983_v16 = vmul.f32 1.442695, %v4965_v47  ;;  %v12656_v47 = vld [vmem:[#allocation47_spill] sm:$0xff] }
 0xb08   :  { %v5012_v7 = vadd.f32 %v8124_v5, %v8122_v9  ;;  %8129 = vpow2.f32 %v4887_v2  ;;  %v4838_v24 = vmax.f32 %v4596_v11, %v4709_v36  ;;  %v8126_v37 = vpop.eup %8125 }
 0xb09   :  { %8131 = vpow2.f32 %v4935_v57  ;;  %v4597_v57 = vmul.f32 0.17677669, %v11254_v32 }
 0xb0a   :  { %v5028_v62 = vadd.f32 %v8126_v37, %v5012_v7  ;;  %7656 = vmatmul.msk.bf16.gmra.mxu1 %vm4519_vm9, %v5484_v14  ;;  %v4854_v42 = vmax.f32 %v4838_v24, %v4822_v20  ;;  %v8128_v25 = vpop.eup %8127  ;;  %v12655_v7 = vld [vmem:[#allocation59_spill] sm:$0xff] }
 0xb0b   :  { %v5471_v24 = vmul.f32 %v12656_v47, %v12655_v7 }
 0xb0c   :  { %8133 = vrcp.f32 %v5028_v62  ;;  %v4870_v17 = vsub.f32 %v4596_v11, %v4854_v42  ;;  %v4918_v34 = vsub.f32 %v4709_v36, %v4854_v42  ;;  %v4966_v48 = vsub.f32 %v4822_v20, %v4854_v42  ;;  %v12657_v11 = vld [vmem:[#allocation61_spill] sm:$0xff]  ;;  %v12658_v36 = vld [vmem:[#allocation3_spill] sm:$0xff]  ;;  %v11287_v32 = vpop.f32.mrf.mxu2  ;;  %v11292_v30 = vpop.f32.mrf.mxu3 }
 0xb0d   :  { %v4676_v60 = vpop.f32.mrf.mxu0  ;;  %v4789_v2 = vpop.f32.mrf.mxu1  ;;  %8135 = vpow2.f32 %v4983_v16  ;;  %v5472_v20 = vmul.f32 %v12658_v36, %v12657_v11  ;;  %v4598_v42 = vmul.f32 0.17677669, %v4565_v35  ;;  %12659 = vst [vmem:[#allocation43_spill] sm:$0xff] %v11287_v32  ;;  %v5193_v16 = vmul.f32 %v8128_v25, %v11260_v33 }
 0xb0e   :  { %v4710_v3 = vmul.f32 0.17677669, %v4676_v60  ;;  %v11277_v28 = vpop.eup %8129  ;;  %v4889_v29 = vmul.f32 1.442695, %v4870_v17  ;;  %v4937_v22 = vmul.f32 1.442695, %v4918_v34  ;;  %v5059_v60 = vmul.f32 %v8128_v25, %v11258_v53 }
 0xb0f   :  { %v11280_v19 = vpop.eup %8131  ;;  %v4985_v62 = vmul.f32 1.442695, %v4966_v48  ;;  %v4823_v13 = vmul.f32 0.17677669, %v4789_v2  ;;  %v5322_v48 = vmul.f32 %v8128_v25, %v8120_v4 }
 0xb10   :  { %v4839_v14 = vmax.f32 %v4597_v57, %v4710_v3  ;;  %8137 = vpow2.f32 %v4889_v29  ;;  %v5013_v34 = vadd.f32 %v11280_v19, %v11277_v28 }
 0xb11   :  { %8139 = vpow2.f32 %v4937_v22 }
 0xb12   :  { %v8134_v49 = vpop.eup %8133  ;;  %v4855_v17 = vmax.f32 %v4839_v14, %v4823_v13  ;;  %8141 = vpow2.f32 %v4985_v62 }
 0xb13   :  { %v5060_v7 = vmul.f32 %v8134_v49, %v8122_v9  ;;  %v5194_v2 = vmul.f32 %v8134_v49, %v8124_v5  ;;  %v5323_v44 = vmul.f32 %v8134_v49, %v8126_v37  ;;  %v11294_v11 = vpop.eup %8135 }
 0xb14   :  { %v4871_v35 = vsub.f32 %v4597_v57, %v4855_v17  ;;  %v4919_v53 = vsub.f32 %v4710_v3, %v4855_v17  ;;  %v5029_v22 = vadd.f32 %v11294_v11, %v5013_v34  ;;  %v4967_v5 = vsub.f32 %v4823_v13, %v4855_v17  ;;  %v11314_v17 = vpop.f32.mrf.mxu3 }
 0xb15   :  { %v4678_v29 = vpop.f32.mrf.mxu0  ;;  %v5338_v32 = vpack.c.bf16 %v5323_v44, %v5322_v48  ;;  %v4791_v43 = vpop.f32.mrf.mxu1  ;;  %v5075_v27 = vpack.c.bf16 %v5060_v7, %v5059_v60  ;;  %v5209_v38 = vpack.c.bf16 %v5194_v2, %v5193_v16  ;;  %v5485_v44 = vpack.c.bf16 %v5472_v20, %v5471_v24 }
 0xb16   :  { %v4711_v33 = vmul.f32 0.17677669, %v4678_v29  ;;  %v4891_v4 = vmul.f32 1.442695, %v4871_v35  ;;  %v4939_v9 = vmul.f32 1.442695, %v4919_v53  ;;  %v11297_v49 = vpop.eup %8137  ;;  %v11307_v24 = vpop.f32.mrf.mxu2 }
 0xb17   :  { %v4824_v25 = vmul.f32 0.17677669, %v4791_v43  ;;  %7631 = vmatmul.msk.bf16.vlgmr.msra.gmra.mxu2 %vm5083_vm10, %v5075_v27  ;;  %7639 = vmatmul.msk.bf16.vlgmr.msra.gmra.mxu3 %vm5083_vm10, %v5209_v38  ;;  %v8140_v3 = vpop.eup %8139  ;;  %v4987_v27 = vmul.f32 1.442695, %v4967_v5  ;;  %12660 = vst [vmem:[#allocation46_spill] sm:$0xff] %v11307_v24  ;;  %v12663_v5 = vld [vmem:[#allocation64_spill] sm:$0xff] }
 0xb18   :  { %v4840_v37 = vmax.f32 %v4598_v42, %v4711_v33  ;;  %8143 = vpow2.f32 %v4891_v4  ;;  %7647 = vmatmul.msk.bf16.vlgmr.msra.gmra.mxu0 %vm5083_vm10, %v5338_v32  ;;  %6485 = vmatpush.bf16.msra.mxu3 %v10608_v54  ;;  %v5014_v57 = vadd.f32 %v8140_v3, %v11297_v49  ;;  %v8142_v13 = vpop.eup %8141  ;;  %v4599_v34 = vmul.f32 0.17677669, %v11274_v0  ;;  %v12662_v4 = vld [vmem:[#allocation50_spill] sm:$0xff] }
 0xb19   :  { %8145 = vpow2.f32 %v4939_v9  ;;  %6343 = vmatpush.bf16.msra.mxu2 %v11189_v8  ;;  %6598 = vmatpush.bf16.msra.mxu0 %v10608_v54 }
 0xb1a   :  { %v4856_v7 = vmax.f32 %v4840_v37, %v4824_v25  ;;  %8147 = vrcp.f32 %v5029_v22  ;;  %7657 = vmatmul.msk.bf16.gmra.mxu1 %vm4519_vm9, %v5485_v44  ;;  %v5030_v38 = vadd.f32 %v8142_v13, %v5014_v57  ;;  %v12661_v22 = vld [vmem:[#allocation63_spill] sm:$0xff]  ;;  %v12664_v37 = vld [vmem:[#allocation6_spill] sm:$0xff]  ;;  %v4600_v44 = vmul.f32 0.17677669, %v11292_v30 }
 0xb1b   :  { %v5473_v9 = vmul.f32 %v12662_v4, %v12661_v22 }
 0xb1c   :  { %v4872_v43 = vsub.f32 %v4598_v42, %v4856_v7  ;;  %v4920_v62 = vsub.f32 %v4711_v33, %v4856_v7  ;;  %v4968_v14 = vsub.f32 %v4824_v25, %v4856_v7  ;;  %6486 = vmatpush.bf16.msra.mxu3 %v10628_v1  ;;  %8149 = vrcp.f32 %v5030_v38  ;;  %v4575_v41 = vpop.f32.mrf.mxu3 }
 0xb1d   :  { %v4681_v20 = vpop.f32.mrf.mxu0  ;;  %v4794_v16 = vpop.f32.mrf.mxu1  ;;  %6599 = vmatpush.bf16.msra.mxu0 %v10628_v1  ;;  %8151 = vpow2.f32 %v4987_v27  ;;  %v5474_v25 = vmul.f32 %v12664_v37, %v12663_v5 }
 0xb1e   :  { %v4893_v60 = vmul.f32 1.442695, %v4872_v43  ;;  %v4941_v32 = vmul.f32 1.442695, %v4920_v62  ;;  %v11311_v54 = vpop.eup %8143  ;;  %v4989_v42 = vmul.f32 1.442695, %v4968_v14 }
 0xb1f   :  { %v4712_v48 = vmul.f32 0.17677669, %v4681_v20  ;;  %v11316_v2 = vpop.eup %8145  ;;  %v4825_v29 = vmul.f32 0.17677669, %v4794_v16 }
 0xb20   :  { %8153 = vpow2.f32 %v4893_v60  ;;  %v8148_v35 = vpop.eup %8147  ;;  %6487 = vmatpush.bf16.msra.mxu3 %v10642_v50  ;;  %v5015_v1 = vadd.f32 %v11316_v2, %v11311_v54 }
 0xb21   :  { %8155 = vpow2.f32 %v4941_v32  ;;  %v4841_v53 = vmax.f32 %v4599_v34, %v4712_v48  ;;  %6600 = vmatpush.bf16.msra.mxu0 %v10642_v50  ;;  %v5061_v57 = vmul.f32 %v8148_v35, %v11277_v28  ;;  %v5195_v43 = vmul.f32 %v8148_v35, %v11280_v19 }
 0xb22   :  { %8157 = vpow2.f32 %v4989_v42  ;;  %v8150_v33 = vpop.eup %8149  ;;  %v5324_v62 = vmul.f32 %v8148_v35, %v11294_v11  ;;  %v11335_v42 = vpop.f32.mrf.mxu2 }
 0xb23   :  { %v4857_v0 = vmax.f32 %v4841_v53, %v4825_v29  ;;  %v11328_v7 = vpop.eup %8151  ;;  %v5062_v32 = vmul.f32 %v8150_v33, %v11297_v49  ;;  %v5196_v16 = vmul.f32 %v8150_v33, %v8140_v3  ;;  %v5325_v30 = vmul.f32 %v8150_v33, %v8142_v13  ;;  %12665 = vst [vmem:[#allocation44_spill] sm:$0xff] %v11335_v42  ;;  %v12669_v42 = vld [vmem:[#allocation40_spill] sm:$0xff] }
 0xb24   :  { %6488 = vmatpush.bf16.msra.mxu3 %v10661_v40  ;;  %v5486_v33 = vpack.c.bf16 %v5474_v25, %v5473_v9  ;;  %v4601_v9 = vmul.f32 0.17677669, %v11314_v17  ;;  %v12667_v17 = vld [vmem:[#allocation45_spill] sm:$0xff] }
 0xb25   :  { %v4873_v27 = vsub.f32 %v4599_v34, %v4857_v0  ;;  %v4921_v50 = vsub.f32 %v4712_v48, %v4857_v0  ;;  %v4683_v38 = vpop.f32.mrf.mxu0  ;;  %v4796_v60 = vpop.f32.mrf.mxu1  ;;  %6601 = vmatpush.bf16.msra.mxu0 %v10661_v40  ;;  %v5031_v34 = vadd.f32 %v11328_v7, %v5015_v1  ;;  %v4969_v53 = vsub.f32 %v4825_v29, %v4857_v0 }
 0xb26   :  { %v8154_v14 = vpop.eup %8153  ;;  %v4713_v20 = vmul.f32 0.17677669, %v4683_v38  ;;  %v4826_v5 = vmul.f32 0.17677669, %v4796_v60  ;;  %v5076_v22 = vpack.c.bf16 %v5062_v32, %v5061_v57  ;;  %v5210_v49 = vpack.c.bf16 %v5196_v16, %v5195_v43 }
 0xb27   :  { %v8156_v28 = vpop.eup %8155  ;;  %v4895_v48 = vmul.f32 1.442695, %v4873_v27  ;;  %v4943_v19 = vmul.f32 1.442695, %v4921_v50  ;;  %v5339_v3 = vpack.c.bf16 %v5325_v30, %v5324_v62  ;;  %v4991_v1 = vmul.f32 1.442695, %v4969_v53 }
 0xb28   :  { %v5016_v11 = vadd.f32 %v8156_v28, %v8154_v14  ;;  %v4842_v35 = vmax.f32 %v4600_v44, %v4713_v20  ;;  %v8158_v38 = vpop.eup %8157  ;;  %7632 = vmatmul.msk.bf16.gmra.mxu2 %vm5083_vm10, %v5076_v22  ;;  %7640 = vmatmul.msk.bf16.gmra.mxu3 %vm5083_vm10, %v5210_v49 }
 0xb29   :  { %8159 = vpow2.f32 %v4895_v48  ;;  %7648 = vmatmul.msk.bf16.gmra.mxu0 %vm5083_vm10, %v5339_v3  ;;  %v4578_v48 = vpop.f32.mrf.mxu3  ;;  %v4602_v3 = vmul.f32 0.17677669, %v4575_v41 }
 0xb2a   :  { %v5032_v13 = vadd.f32 %v8158_v38, %v5016_v11  ;;  %8161 = vpow2.f32 %v4943_v19  ;;  %v4858_v40 = vmax.f32 %v4842_v35, %v4826_v5  ;;  %7658 = vmatmul.msk.bf16.gmra.mxu1 %vm4519_vm9, %v5486_v33  ;;  %v11344_v22 = vpop.f32.mrf.mxu2  ;;  %v12668_v35 = vld [vmem:[#allocation38_spill] sm:$0xff] }
 0xb2b   :  { %8163 = vrcp.f32 %v5031_v34  ;;  %12666 = vst [vmem:[#allocation47_spill] sm:$0xff] %v11344_v22  ;;  %v5476_v49 = vmul.f32 %v12668_v35, %v12667_v17 }
 0xb2c   :  { %8165 = vrcp.f32 %v5032_v13  ;;  %v4874_v29 = vsub.f32 %v4600_v44, %v4858_v40  ;;  %v4922_v0 = vsub.f32 %v4713_v20, %v4858_v40  ;;  %v4970_v57 = vsub.f32 %v4826_v5, %v4858_v40 }
 0xb2d   :  { %v4686_v27 = vpop.f32.mrf.mxu0  ;;  %v4799_v62 = vpop.f32.mrf.mxu1  ;;  %8167 = vpow2.f32 %v4991_v1 }
 0xb2e   :  { %v4897_v50 = vmul.f32 1.442695, %v4874_v29  ;;  %v4945_v43 = vmul.f32 1.442695, %v4922_v0  ;;  %v4993_v25 = vmul.f32 1.442695, %v4970_v57 }
 0xb2f   :  { %v11342_v60 = vpop.eup %8159  ;;  %v4714_v32 = vmul.f32 0.17677669, %v4686_v27  ;;  %v4827_v20 = vmul.f32 0.17677669, %v4799_v62 }
 0xb30   :  { %v11347_v16 = vpop.eup %8161  ;;  %8169 = vpow2.f32 %v4897_v50 }
 0xb31   :  { %v8164_v44 = vpop.eup %8163  ;;  %8171 = vpow2.f32 %v4945_v43  ;;  %v4843_v5 = vmax.f32 %v4601_v9, %v4714_v32  ;;  %v5017_v34 = vadd.f32 %v11347_v16, %v11342_v60 }
 0xb32   :  { %v8166_v30 = vpop.eup %8165  ;;  %8173 = vpow2.f32 %v4993_v25  ;;  %v5063_v13 = vmul.f32 %v8164_v44, %v11311_v54  ;;  %v5197_v57 = vmul.f32 %v8164_v44, %v11316_v2  ;;  %v5326_v27 = vmul.f32 %v8164_v44, %v11328_v7  ;;  %v11361_v7 = vpop.f32.mrf.mxu2 }
 0xb33   :  { %v4859_v19 = vmax.f32 %v4843_v5, %v4827_v20  ;;  %v5064_v53 = vmul.f32 %v8166_v30, %v8154_v14  ;;  %v5198_v11 = vmul.f32 %v8166_v30, %v8156_v28  ;;  %v5327_v40 = vmul.f32 %v8166_v30, %v8158_v38  ;;  %v11354_v33 = vpop.eup %8167  ;;  %12671 = vst [vmem:[#allocation3_spill] sm:$0xff] %v11361_v7 }
 0xb34   :  { %v5033_v14 = vadd.f32 %v11354_v33, %v5017_v34 }
 0xb35   :  { %v4875_v1 = vsub.f32 %v4601_v9, %v4859_v19  ;;  %v4923_v29 = vsub.f32 %v4714_v32, %v4859_v19  ;;  %v4688_v0 = vpop.f32.mrf.mxu0  ;;  %v4971_v28 = vsub.f32 %v4827_v20, %v4859_v19  ;;  %v4801_v62 = vpop.f32.mrf.mxu1  ;;  %v5077_v25 = vpack.c.bf16 %v5064_v53, %v5063_v13  ;;  %v12670_v9 = vld [vmem:[#allocation10_spill] sm:$0xff] }
 0xb36   :  { %v8170_v50 = vpop.eup %8169  ;;  %v4715_v43 = vmul.f32 0.17677669, %v4688_v0  ;;  %v5211_v38 = vpack.c.bf16 %v5198_v11, %v5197_v57  ;;  %v5340_v30 = vpack.c.bf16 %v5327_v40, %v5326_v27  ;;  %v5475_v32 = vmul.f32 %v12670_v9, %v12669_v42  ;;  %v4580_v40 = vpop.f32.mrf.mxu3 }
 0xb37   :  { %v8172_v41 = vpop.eup %8171  ;;  %v4899_v5 = vmul.f32 1.442695, %v4875_v1  ;;  %v4947_v54 = vmul.f32 1.442695, %v4923_v29  ;;  %v4828_v2 = vmul.f32 0.17677669, %v4801_v62 }
 0xb38   :  { %v5018_v17 = vadd.f32 %v8172_v41, %v8170_v50  ;;  %v4844_v35 = vmax.f32 %v4602_v3, %v4715_v43  ;;  %v8174_v6 = vpop.eup %8173  ;;  %7633 = vmatmul.msk.bf16.gmra.mxu2 %vm5083_vm10, %v5077_v25  ;;  %v5487_v34 = vpack.c.bf16 %v5476_v49, %v5475_v32  ;;  %v4995_v19 = vmul.f32 1.442695, %v4971_v28  ;;  %7641 = vmatmul.msk.bf16.gmra.mxu3 %vm5083_vm10, %v5211_v38  ;;  %v12674_v32 = vld [vmem:[#allocation24_spill] sm:$0xff] }
 0xb39   :  { %8175 = vpow2.f32 %v4899_v5  ;;  %7649 = vmatmul.msk.bf16.gmra.mxu0 %vm5083_vm10, %v5340_v30  ;;  %v4603_v49 = vmul.f32 0.17677669, %v4578_v48  ;;  %v12673_v30 = vld [vmem:[#allocation4_spill] sm:$0xff] }
 0xb3a   :  { %v5034_v44 = vadd.f32 %v8174_v6, %v5018_v17  ;;  %8177 = vpow2.f32 %v4947_v54  ;;  %v4860_v20 = vmax.f32 %v4844_v35, %v4828_v2  ;;  %7659 = vmatmul.msk.bf16.gmra.mxu1 %vm4519_vm9, %v5487_v34 }
 0xb3b   :  { %8179 = vrcp.f32 %v5033_v14 }
 0xb3c   :  { %8181 = vrcp.f32 %v5034_v44  ;;  %v4876_v53 = vsub.f32 %v4602_v3, %v4860_v20  ;;  %v4924_v11 = vsub.f32 %v4715_v43, %v4860_v20  ;;  %v4972_v13 = vsub.f32 %v4828_v2, %v4860_v20  ;;  %v11371_v3 = vpop.f32.mrf.mxu2 }
 0xb3d   :  { %v4691_v1 = vpop.f32.mrf.mxu0  ;;  %v4804_v35 = vpop.f32.mrf.mxu1  ;;  %8183 = vpow2.f32 %v4995_v19  ;;  %12672 = vst [vmem:[#allocation50_spill] sm:$0xff] %v11371_v3  ;;  %v5478_v2 = vmul.f32 %v12674_v32, %v12673_v30  ;;  %v4604_v44 = vmul.f32 0.17677669, %v4580_v40 }
 0xb3e   :  { %v4901_v17 = vmul.f32 1.442695, %v4876_v53  ;;  %v4949_v29 = vmul.f32 1.442695, %v4924_v11  ;;  %v4997_v57 = vmul.f32 1.442695, %v4972_v13  ;;  %v4583_v7 = vpop.f32.mrf.mxu3 }
 0xb3f   :  { %v11367_v0 = vpop.eup %8175  ;;  %v4716_v27 = vmul.f32 0.17677669, %v4691_v1  ;;  %v4829_v62 = vmul.f32 0.17677669, %v4804_v35 }
 0xb40   :  { %v11369_v14 = vpop.eup %8177  ;;  %8185 = vpow2.f32 %v4901_v17 }
 0xb41   :  { %v8180_v28 = vpop.eup %8179  ;;  %8187 = vpow2.f32 %v4949_v29  ;;  %v4845_v43 = vmax.f32 %v4603_v49, %v4716_v27  ;;  %v5019_v5 = vadd.f32 %v11369_v14, %v11367_v0 }
 0xb42   :  { %v8182_v25 = vpop.eup %8181  ;;  %8189 = vpow2.f32 %v4997_v57  ;;  %v5065_v20 = vmul.f32 %v8180_v28, %v11342_v60  ;;  %v5199_v1 = vmul.f32 %v8180_v28, %v11347_v16  ;;  %v5328_v17 = vmul.f32 %v8180_v28, %v11354_v33 }
 0xb43   :  { %v4861_v54 = vmax.f32 %v4845_v43, %v4829_v62  ;;  %v5066_v38 = vmul.f32 %v8182_v25, %v8170_v50  ;;  %v5200_v48 = vmul.f32 %v8182_v25, %v8172_v41  ;;  %v5329_v34 = vmul.f32 %v8182_v25, %v8174_v6  ;;  %v11378_v19 = vpop.eup %8183 }
 0xb44   :  { %v5035_v50 = vadd.f32 %v11378_v19, %v5019_v5 }
 0xb45   :  { %v4877_v53 = vsub.f32 %v4603_v49, %v4861_v54  ;;  %v4925_v11 = vsub.f32 %v4716_v27, %v4861_v54  ;;  %v4693_v13 = vpop.f32.mrf.mxu0  ;;  %v4973_v41 = vsub.f32 %v4829_v62, %v4861_v54  ;;  %v4806_v57 = vpop.f32.mrf.mxu1  ;;  %v5078_v43 = vpack.c.bf16 %v5066_v38, %v5065_v20  ;;  %v12675_v49 = vld [vmem:[#allocation48_spill] sm:$0xff] }
 0xb46   :  { %v8186_v29 = vpop.eup %8185  ;;  %v4717_v35 = vmul.f32 0.17677669, %v4693_v13  ;;  %v5212_v25 = vpack.c.bf16 %v5200_v48, %v5199_v1  ;;  %v5341_v30 = vpack.c.bf16 %v5329_v34, %v5328_v17  ;;  %v12676_v27 = vld [vmem:[#allocation52_spill] sm:$0xff]  ;;  %v4830_v9 = vmul.f32 0.17677669, %v4806_v57  ;;  %v11386_v54 = vpop.f32.mrf.mxu2 }
 0xb47   :  { %v8188_v40 = vpop.eup %8187  ;;  %v4903_v60 = vmul.f32 1.442695, %v4877_v53  ;;  %v4951_v6 = vmul.f32 1.442695, %v4925_v11  ;;  %v5477_v42 = vmul.f32 %v12676_v27, %v12675_v49  ;;  %12677 = vst [vmem:[#allocation6_spill] sm:$0xff] %v11386_v54 }
 0xb48   :  { %v5020_v32 = vadd.f32 %v8188_v40, %v8186_v29  ;;  %v4846_v16 = vmax.f32 %v4604_v44, %v4717_v35  ;;  %v8190_v33 = vpop.eup %8189  ;;  %7634 = vmatmul.msk.bf16.gmra.mxu2 %vm5083_vm10, %v5078_v43  ;;  %v4999_v38 = vmul.f32 1.442695, %v4973_v41  ;;  %7642 = vmatmul.msk.bf16.gmra.mxu3 %vm5083_vm10, %v5212_v25  ;;  %v4585_v41 = vpop.f32.mrf.mxu3  ;;  %v12679_v25 = vld [vmem:[#allocation26_spill] sm:$0xff] }
 0xb49   :  { %8191 = vpow2.f32 %v4903_v60  ;;  %v5488_v5 = vpack.c.bf16 %v5478_v2, %v5477_v42  ;;  %7650 = vmatmul.msk.bf16.gmra.mxu0 %vm5083_vm10, %v5341_v30  ;;  %v4605_v42 = vmul.f32 0.17677669, %v4583_v7 }
 0xb4a   :  { %v5036_v28 = vadd.f32 %v8190_v33, %v5020_v32  ;;  %8193 = vpow2.f32 %v4951_v6  ;;  %v4862_v62 = vmax.f32 %v4846_v16, %v4830_v9  ;;  %v12680_v16 = vld [vmem:[#allocation34_spill] sm:$0xff] }
 0xb4b   :  { %8195 = vrcp.f32 %v5035_v50  ;;  %7660 = vmatmul.msk.bf16.gmra.mxu1 %vm4519_vm9, %v5488_v5 }
 0xb4c   :  { %8197 = vrcp.f32 %v5036_v28  ;;  %v4878_v48 = vsub.f32 %v4604_v44, %v4862_v62  ;;  %v4926_v20 = vsub.f32 %v4717_v35, %v4862_v62  ;;  %v4974_v34 = vsub.f32 %v4830_v9, %v4862_v62 }
 0xb4d   :  { %v4696_v32 = vpop.f32.mrf.mxu0  ;;  %v4809_v13 = vpop.f32.mrf.mxu1  ;;  %8199 = vpow2.f32 %v4999_v38  ;;  %v5480_v28 = vmul.f32 %v12680_v16, %v12679_v25  ;;  %v4606_v62 = vmul.f32 0.17677669, %v4585_v41 }
 0xb4e   :  { %v4905_v53 = vmul.f32 1.442695, %v4878_v48  ;;  %v4953_v11 = vmul.f32 1.442695, %v4926_v20  ;;  %v5001_v2 = vmul.f32 1.442695, %v4974_v34  ;;  %v11397_v43 = vpop.f32.mrf.mxu2 }
 0xb4f   :  { %v11391_v1 = vpop.eup %8191  ;;  %v4718_v17 = vmul.f32 0.17677669, %v4696_v32  ;;  %v4831_v9 = vmul.f32 0.17677669, %v4809_v13  ;;  %12678 = vst [vmem:[#allocation112_spill] sm:$0xff] %v11397_v43 }
 0xb50   :  { %v11393_v50 = vpop.eup %8193  ;;  %8201 = vpow2.f32 %v4905_v53 }
 0xb51   :  { %v8196_v30 = vpop.eup %8195  ;;  %8203 = vpow2.f32 %v4953_v11  ;;  %v4847_v44 = vmax.f32 %v4605_v42, %v4718_v17  ;;  %v5021_v57 = vadd.f32 %v11393_v50, %v11391_v1 }
 0xb52   :  { %v8198_v35 = vpop.eup %8197  ;;  %8205 = vpow2.f32 %v5001_v2  ;;  %v5067_v5 = vmul.f32 %v8196_v30, %v11367_v0  ;;  %v5201_v53 = vmul.f32 %v8196_v30, %v11369_v14  ;;  %v5330_v11 = vmul.f32 %v8196_v30, %v11378_v19 }
 0xb53   :  { %v4863_v60 = vmax.f32 %v4847_v44, %v4831_v9  ;;  %v5068_v7 = vmul.f32 %v8198_v35, %v8186_v29  ;;  %v5202_v6 = vmul.f32 %v8198_v35, %v8188_v40  ;;  %v5331_v38 = vmul.f32 %v8198_v35, %v8190_v33  ;;  %v8200_v48 = vpop.eup %8199  ;;  %v12681_v33 = vld [vmem:[#allocation16_spill] sm:$0xff] }
 0xb54   :  { %v5037_v2 = vadd.f32 %v8200_v48, %v5021_v57  ;;  %v12682_v35 = vld [vmem:[#allocation28_spill] sm:$0xff] }
 0xb55   :  { %v4879_v20 = vsub.f32 %v4605_v42, %v4863_v60  ;;  %v4927_v34 = vsub.f32 %v4718_v17, %v4863_v60  ;;  %v4698_v32 = vpop.f32.mrf.mxu0  ;;  %v4975_v44 = vsub.f32 %v4831_v9, %v4863_v60  ;;  %v4811_v40 = vpop.f32.mrf.mxu1  ;;  %v5079_v54 = vpack.c.bf16 %v5068_v7, %v5067_v5 }
 0xb56   :  { %v8202_v13 = vpop.eup %8201  ;;  %v4719_v29 = vmul.f32 0.17677669, %v4698_v32  ;;  %v5213_v16 = vpack.c.bf16 %v5202_v6, %v5201_v53  ;;  %v5342_v0 = vpack.c.bf16 %v5331_v38, %v5330_v11  ;;  %v5479_v42 = vmul.f32 %v12682_v35, %v12681_v33  ;;  %v11410_v5 = vpop.f32.mrf.mxu2 }
 0xb57   :  { %v8204_v49 = vpop.eup %8203  ;;  %v4907_v25 = vmul.f32 1.442695, %v4879_v20  ;;  %v4955_v41 = vmul.f32 1.442695, %v4927_v34  ;;  %v4832_v43 = vmul.f32 0.17677669, %v4811_v40 }
 0xb58   :  { %v5022_v17 = vadd.f32 %v8204_v49, %v8202_v13  ;;  %v4848_v27 = vmax.f32 %v4606_v62, %v4719_v29  ;;  %v8206_v14 = vpop.eup %8205  ;;  %7635 = vmatmul.msk.bf16.gmra.mxu2 %vm5083_vm10, %v5079_v54  ;;  %v5489_v9 = vpack.c.bf16 %v5480_v28, %v5479_v42  ;;  %v5003_v57 = vmul.f32 1.442695, %v4975_v44  ;;  %7643 = vmatmul.msk.bf16.gmra.mxu3 %vm5083_vm10, %v5213_v16 }
 0xb59   :  { %8207 = vpow2.f32 %v4907_v25  ;;  %7651 = vmatmul.msk.bf16.gmra.mxu0 %vm5083_vm10, %v5342_v0  ;;  %12683 = vst [vmem:[#allocation16_spill] sm:$0xff] %v11410_v5 }
 0xb5a   :  { %v5038_v19 = vadd.f32 %v8206_v14, %v5022_v17  ;;  %8209 = vpow2.f32 %v4955_v41  ;;  %v4864_v30 = vmax.f32 %v4848_v27, %v4832_v43  ;;  %v12685_v17 = vld [vmem:[#allocation41_spill] sm:$0xff] }
 0xb5b   :  { %8211 = vrcp.f32 %v5037_v2  ;;  %7661 = vmatmul.msk.bf16.gmra.mxu1 %vm4519_vm9, %v5489_v9 }
 0xb5c   :  { %8213 = vrcp.f32 %v5038_v19  ;;  %v4880_v60 = vsub.f32 %v4606_v62, %v4864_v30  ;;  %v4928_v7 = vsub.f32 %v4719_v29, %v4864_v30  ;;  %v4976_v6 = vsub.f32 %v4832_v43, %v4864_v30  ;;  %v4588_v62 = vpop.f32.mrf.mxu3  ;;  %v12686_v19 = vld [vmem:[#allocation17_spill] sm:$0xff] }
 0xb5d   :  { %8215 = vpow2.f32 %v5003_v57  ;;  %v4701_v16 = vpop.f32.mrf.mxu0  ;;  %v5482_v30 = vmul.f32 %v12686_v19, %v12685_v17 }
 0xb5e   :  { %v4909_v25 = vmul.f32 1.442695, %v4880_v60  ;;  %v4957_v38 = vmul.f32 1.442695, %v4928_v7  ;;  %v5005_v54 = vmul.f32 1.442695, %v4976_v6  ;;  %v11419_v29 = vpop.f32.mrf.mxu2 }
 0xb5f   :  { %v11412_v27 = vpop.eup %8207  ;;  %12684 = vst [vmem:[#allocation28_spill] sm:$0xff] %v11419_v29  ;;  %v4720_v40 = vmul.f32 0.17677669, %v4701_v16  ;;  %v4607_v60 = vmul.f32 0.17677669, %v4588_v62  ;;  %v12688_v6 = vld [vmem:[#allocation62_spill] sm:$0xff] }
 0xb60   :  { %v11414_v28 = vpop.eup %8209  ;;  %8217 = vpow2.f32 %v4909_v25 }
 0xb61   :  { %v8212_v20 = vpop.eup %8211  ;;  %8219 = vpow2.f32 %v4957_v38  ;;  %v5023_v43 = vadd.f32 %v11414_v28, %v11412_v27  ;;  %v4849_v16 = vmax.f32 %v4607_v60, %v4720_v40 }
 0xb62   :  { %v8214_v34 = vpop.eup %8213  ;;  %8221 = vpow2.f32 %v5005_v54  ;;  %v5069_v2 = vmul.f32 %v8212_v20, %v11391_v1  ;;  %v5203_v41 = vmul.f32 %v8212_v20, %v11393_v50  ;;  %v5332_v0 = vmul.f32 %v8212_v20, %v8200_v48 }
 0xb63   :  { %v5070_v32 = vmul.f32 %v8214_v34, %v8202_v13  ;;  %v5204_v53 = vmul.f32 %v8214_v34, %v8204_v49  ;;  %v5333_v11 = vmul.f32 %v8214_v34, %v8206_v14  ;;  %v8216_v44 = vpop.eup %8215  ;;  %v12687_v14 = vld [vmem:[#allocation51_spill] sm:$0xff] }
 0xb64   :  { %v5039_v7 = vadd.f32 %v8216_v44, %v5023_v43  ;;  %v5481_v1 = vmul.f32 %v12688_v6, %v12687_v14  ;;  %v4590_v43 = vpop.f32.mrf.mxu3 }
 0xb65   :  { %v5080_v9 = vpack.c.bf16 %v5070_v32, %v5069_v2  ;;  %v5214_v13 = vpack.c.bf16 %v5204_v53, %v5203_v41  ;;  %v5343_v49 = vpack.c.bf16 %v5333_v11, %v5332_v0  ;;  %v4703_v48 = vpop.f32.mrf.mxu0  ;;  %v4608_v0 = vmul.f32 0.17677669, %v4590_v43 }
 0xb66   :  { %v8218_v42 = vpop.eup %8217  ;;  %v5490_v20 = vpack.c.bf16 %v5482_v30, %v5481_v1  ;;  %8223 = vrcp.f32 %v5039_v7  ;;  %v4721_v32 = vmul.f32 0.17677669, %v4703_v48  ;;  %v11430_v41 = vpop.f32.mrf.mxu2 }
 0xb67   :  { %v8220_v57 = vpop.eup %8219  ;;  %v4814_v38 = vpop.f32.mrf.mxu1  ;;  %12689 = vst [vmem:[#allocation41_spill] sm:$0xff] %v11430_v41 }
 0xb68   :  { %v5024_v25 = vadd.f32 %v8220_v57, %v8218_v42  ;;  %v8222_v54 = vpop.eup %8221  ;;  %v4833_v34 = vmul.f32 0.17677669, %v4814_v38  ;;  %7636 = vmatmul.msk.bf16.gmra.mxu2 %vm5083_vm10, %v5080_v9  ;;  %7644 = vmatmul.msk.bf16.gmra.mxu3 %vm5083_vm10, %v5214_v13  ;;  %v4850_v1 = vmax.f32 %v4608_v0, %v4721_v32 }
 0xb69   :  { %7652 = vmatmul.msk.bf16.gmra.mxu0 %vm5083_vm10, %v5343_v49 }
 0xb6a   :  { %v5040_v50 = vadd.f32 %v8222_v54, %v5024_v25  ;;  %v4865_v62 = vmax.f32 %v4849_v16, %v4833_v34 }
 0xb6b   :  { %7662 = vmatmul.msk.bf16.gmra.mxu1 %vm4519_vm9, %v5490_v20 }
 0xb6c   :  { %8225 = vrcp.f32 %v5040_v50  ;;  %v4881_v53 = vsub.f32 %v4607_v60, %v4865_v62  ;;  %v4929_v11 = vsub.f32 %v4720_v40, %v4865_v62  ;;  %v4977_v2 = vsub.f32 %v4833_v34, %v4865_v62  ;;  %v8224_v7 = vpop.eup %8223 }
 0xb6d   :  { %v5071_v60 = vmul.f32 %v8224_v7, %v11412_v27  ;;  %v5205_v40 = vmul.f32 %v8224_v7, %v11414_v28 }
 0xb6e   :  { %v4911_v25 = vmul.f32 1.442695, %v4881_v53  ;;  %v4959_v9 = vmul.f32 1.442695, %v4929_v11  ;;  %v5007_v38 = vmul.f32 1.442695, %v4977_v2  ;;  %v5334_v53 = vmul.f32 %v8224_v7, %v8216_v44 }
 0xb6f   :  { %v4816_v30 = vpop.f32.mrf.mxu1 }
 0xb70   :  { %8227 = vpow2.f32 %v4911_v25  ;;  %v4834_v13 = vmul.f32 0.17677669, %v4816_v30  ;;  %v11434_v25 = vpop.f32.mrf.mxu2 }
 0xb71   :  { %8229 = vpow2.f32 %v4959_v9  ;;  %12690 = vst [vmem:[#allocation17_spill] sm:$0xff] %v11434_v25 }
 0xb72   :  { %v8226_v49 = vpop.eup %8225  ;;  %v4866_v16 = vmax.f32 %v4850_v1, %v4834_v13  ;;  %8231 = vpow2.f32 %v5007_v38 }
 0xb73   :  { %v5072_v50 = vmul.f32 %v8226_v49, %v8218_v42  ;;  %v5206_v20 = vmul.f32 %v8226_v49, %v8220_v57  ;;  %v5335_v34 = vmul.f32 %v8226_v49, %v8222_v54 }
 0xb74   :  { %v4882_v48 = vsub.f32 %v4608_v0, %v4866_v16  ;;  %v4930_v62 = vsub.f32 %v4721_v32, %v4866_v16  ;;  %v4978_v43 = vsub.f32 %v4834_v13, %v4866_v16 }
 0xb75   :  { %v5081_v11 = vpack.c.bf16 %v5072_v50, %v5071_v60  ;;  %v5215_v2 = vpack.c.bf16 %v5206_v20, %v5205_v40  ;;  %v5344_v1 = vpack.c.bf16 %v5335_v34, %v5334_v53 }
 0xb76   :  { %v8228_v41 = vpop.eup %8227  ;;  %v4913_v30 = vmul.f32 1.442695, %v4882_v48  ;;  %v4961_v9 = vmul.f32 1.442695, %v4930_v62  ;;  %v5009_v57 = vmul.f32 1.442695, %v4978_v43 }
 0xb77   :  { %v8230_v42 = vpop.eup %8229 }
 0xb78   :  { %8233 = vpow2.f32 %v4913_v30  ;;  %v5025_v27 = vadd.f32 %v8230_v42, %v8228_v41  ;;  %7637 = vmatmul.msk.bf16.gmra.mxu2 %vm5083_vm10, %v5081_v11  ;;  %7645 = vmatmul.msk.bf16.gmra.mxu3 %vm5083_vm10, %v5215_v2  ;;  %v8232_v28 = vpop.eup %8231  ;;  %v11439_v0 = vpop.f32.mrf.mxu2  ;;  %v5694_v2 = vmul.f32 %v10836_v46, %v10561_v31 }
 0xb79   :  { %8235 = vpow2.f32 %v4961_v9  ;;  %7653 = vmatmul.msk.bf16.gmra.mxu0 %vm5083_vm10, %v5344_v1  ;;  %12691 = vst [vmem:[#allocation51_spill] sm:$0xff] %v11439_v0 }
 0xb7a   :  { %8237 = vpow2.f32 %v5009_v57  ;;  %v5041_v44 = vadd.f32 %v8232_v28, %v5025_v27  ;;  %v5580_v57 = vmul.f32 %v10572_v63, %v12650_v59  ;;  %v5693_v27 = vmul.f32 %v10814_v39, %v12650_v59 }
 0xb7c   :  { %8239 = vrcp.f32 %v5041_v44 }
 0xb7e   :  { %v8234_v54 = vpop.eup %8233 }
 0xb7f   :  { %v8236_v32 = vpop.eup %8235 }
 0xb80   :  { %v5026_v7 = vadd.f32 %v8236_v32, %v8234_v54  ;;  %v8238_v13 = vpop.eup %8237  ;;  %v11441_v16 = vpop.f32.mrf.mxu2 }
 0xb81   :  { %12692 = vst [vmem:[#allocation62_spill] sm:$0xff] %v11441_v16 }
 0xb82   :  { %v5042_v49 = vadd.f32 %v8238_v13, %v5026_v7  ;;  %v8240_v38 = vpop.eup %8239 }
 0xb83   :  { %v5073_v20 = vmul.f32 %v8240_v38, %v8228_v41  ;;  %v5207_v60 = vmul.f32 %v8240_v38, %v8230_v42  ;;  %v5336_v48 = vmul.f32 %v8240_v38, %v8232_v28  ;;  %v5581_v41 = vmul.f32 %v10595_v45, %v10561_v31  ;;  %v12694_v28 = vld [vmem:[#allocation2_spill] sm:$0xff] }
 0xb84   :  { %8241 = vrcp.f32 %v5042_v49 }
 0xb85   :  { %v5596_v7 = vpack.c.bf16 %v5581_v41, %v5580_v57 }
 0xb88   :  { %v11446_v30 = vpop.f32.mrf.mxu2 }
 0xb89   :  { %12693 = vst [vmem:[#allocation113_spill] sm:$0xff] %v11446_v30  ;;  %v12710_v30 = vld [vmem:[#allocation23_spill] sm:$0xff] }
 0xb8a   :  { %v8242_v50 = vpop.eup %8241 }
 0xb8b   :  { %v5074_v40 = vmul.f32 %v8242_v50, %v8234_v54  ;;  %v5208_v34 = vmul.f32 %v8242_v50, %v8236_v32  ;;  %v5337_v62 = vmul.f32 %v8242_v50, %v8238_v13  ;;  %v12695_v54 = vld [vmem:[#allocation20_spill] sm:$0xff]  ;;  %v5709_v13 = vpack.c.bf16 %v5694_v2, %v5693_v27  ;;  %v12698_v2 = vld [vmem:[#allocation5_spill] sm:$0xff] }
 0xb8d   :  { %v5082_v43 = vpack.c.bf16 %v5074_v40, %v5073_v20  ;;  %v5216_v53 = vpack.c.bf16 %v5208_v34, %v5207_v60  ;;  %v5345_v11 = vpack.c.bf16 %v5337_v62, %v5336_v48  ;;  %v12696_v20 = vld [vmem:[#allocation49_spill] sm:$0xff]  ;;  %v12697_v40 = vld [vmem:[#allocation56_spill] sm:$0xff] }
 0xb8f   :  { %7638 = vmatmul.msk.bf16.gmra.mxu2 %vm5083_vm10, %v5082_v43  ;;  %7646 = vmatmul.msk.bf16.gmra.mxu3 %vm5083_vm10, %v5216_v53  ;;  %v5583_v43 = vmul.f32 %v10734_v12, %v12652_v56  ;;  %v5696_v53 = vmul.f32 %v10935_v23, %v12652_v56 }
 0xb90   :  { %7654 = vmatmul.msk.bf16.gmra.mxu0 %vm5083_vm10, %v5345_v11  ;;  %v5582_v11 = vmul.f32 %v10719_v10, %v12654_v55 }
 0xb92   :  { %v5597_v57 = vpack.c.bf16 %v5583_v43, %v5582_v11  ;;  %v5698_v11 = vmul.f32 %v11011_v18, %v12658_v36 }
 0xb95   :  { %v5379_v9 = vpop.f32.mrf.mxu0 }
 0xb96   :  { %v5419_v49 = vmul.f32 %v5379_v9, %v11272_v21  ;;  %v5695_v9 = vmul.f32 %v10873_v52, %v12654_v55  ;;  %v12702_v55 = vld [vmem:[#allocation22_spill] sm:$0xff] }
 0xb98   :  { %v5710_v27 = vpack.c.bf16 %v5696_v53, %v5695_v9  ;;  %v5585_v53 = vmul.f32 %v10776_v61, %v12658_v36  ;;  %v5697_v9 = vmul.f32 %v10974_v15, %v12656_v47 }
 0xb9a   :  { %v5121_v1 = vpop.f32.mrf.mxu2  ;;  %v5250_v42 = vpop.f32.mrf.mxu3 }
 0xb9b   :  { %v5161_v44 = vmul.f32 %v5121_v1, %v12694_v28  ;;  %v5290_v32 = vmul.f32 %v5250_v42, %v12695_v54 }
 0xb9d   :  { %v5306_v38 = vadd.f32 %v5290_v32, %v5161_v44  ;;  %v11459_v50 = vpop.f32.mrf.mxu0  ;;  %v12699_v44 = vld [vmem:[#allocation7_spill] sm:$0xff] }
 0xb9f   :  { %v11461_v31 = vadd.f32 %v5419_v49, %v5306_v38  ;;  %7663 = vmatmul.msk.bf16.vlgmr.msrb.gmra.mxu2 %vm4519_vm9, %v5596_v7  ;;  %7671 = vmatmul.msk.bf16.vlgmr.msrb.gmra.mxu3 %vm4519_vm9, %v5709_v13 }
 0xba0   :  { %7051 = vmatpush.bf16.msrb.mxu2 %v11189_v8  ;;  %7180 = vmatpush.bf16.msrb.mxu3 %v11189_v8 }
 0xba2   :  { %v5123_v39 = vpop.f32.mrf.mxu2  ;;  %v5252_v59 = vpop.f32.mrf.mxu3 }
 0xba3   :  { %v5162_v60 = vmul.f32 %v5123_v39, %v12696_v20  ;;  %v5291_v34 = vmul.f32 %v5252_v59, %v12697_v40  ;;  %v12703_v59 = vld [vmem:[#allocation65_spill] sm:$0xff] }
 0xba5   :  { %v11469_v48 = vadd.f32 %v5291_v34, %v5162_v60 }
 0xba6   :  { %v5384_v62 = vpop.f32.mrf.mxu0 }
 0xba7   :  { %v5421_v56 = vmul.f32 %v5384_v62, %v11307_v24  ;;  %v5584_v62 = vmul.f32 %v10764_v51, %v12656_v47  ;;  %v12709_v47 = vld [vmem:[#allocation12_spill] sm:$0xff] }
 0xba8   :  { %v12780_v51 = vld [vmem:[#allocation64_spill] sm:$0xff] }
 0xbab   :  { %v5126_v41 = vpop.f32.mrf.mxu2  ;;  %v5255_v42 = vpop.f32.mrf.mxu3 }
 0xbac   :  { %v5163_v1 = vmul.f32 %v5126_v41, %v12698_v2  ;;  %v5292_v32 = vmul.f32 %v5255_v42, %v12699_v44 }
 0xbae   :  { %v11481_v7 = vpop.f32.mrf.mxu0  ;;  %v5308_v13 = vadd.f32 %v5292_v32, %v5163_v1  ;;  %v12705_v1 = vld [vmem:[#allocation32_spill] sm:$0xff]  ;;  %v5711_v32 = vpack.c.bf16 %v5698_v11, %v5697_v9  ;;  %v5587_v9 = vmul.f32 %v10951_v58, %v12664_v37 }
 0xbaf   :  { %12700 = vst [vmem:[#allocation2_spill] sm:$0xff] %v11481_v7  ;;  %7664 = vmatmul.msk.bf16.gmra.mxu2 %vm4519_vm9, %v5597_v57  ;;  %7672 = vmatmul.msk.bf16.gmra.mxu3 %vm4519_vm9, %v5710_v27  ;;  %v5598_v27 = vpack.c.bf16 %v5585_v53, %v5584_v62 }
 0xbb0   :  { %v11486_v49 = vadd.f32 %v5421_v56, %v5308_v13  ;;  %v12706_v56 = vld [vmem:[#allocation67_spill] sm:$0xff] }
 0xbb2   :  { %12701 = vst [vmem:[#allocation20_spill] sm:$0xff] %v11486_v49 }
 0xbb3   :  { %v5128_v52 = vpop.f32.mrf.mxu2  ;;  %v5257_v39 = vpop.f32.mrf.mxu3 }
 0xbb4   :  { %v5164_v38 = vmul.f32 %v5128_v52, %v12702_v55  ;;  %v5293_v60 = vmul.f32 %v5257_v39, %v12703_v59 }
 0xbb6   :  { %v5389_v34 = vpop.f32.mrf.mxu0  ;;  %v11490_v43 = vadd.f32 %v5293_v60, %v5164_v38 }
 0xbb7   :  { %v5423_v36 = vmul.f32 %v5389_v34, %v11344_v22  ;;  %v12712_v34 = vld [vmem:[#allocation39_spill] sm:$0xff] }
 0xbb8   :  { %12704 = vst [vmem:[#allocation49_spill] sm:$0xff] %v11490_v43 }
 0xbbb   :  { %v5131_v41 = vpop.f32.mrf.mxu2  ;;  %v5260_v57 = vpop.f32.mrf.mxu3 }
 0xbbc   :  { %v5165_v42 = vmul.f32 %v5131_v41, %v12705_v1  ;;  %v5294_v13 = vmul.f32 %v5260_v57, %v12706_v56  ;;  %v5700_v57 = vmul.f32 %v11078_v26, %v12664_v37 }
 0xbbe   :  { %v11502_v52 = vpop.f32.mrf.mxu0  ;;  %v5310_v38 = vadd.f32 %v5294_v13, %v5165_v42  ;;  %v5586_v42 = vmul.f32 %v12712_v34, %v12662_v4 }
 0xbbf   :  { %12707 = vst [vmem:[#allocation56_spill] sm:$0xff] %v11502_v52  ;;  %7665 = vmatmul.msk.bf16.gmra.mxu2 %vm4519_vm9, %v5598_v27  ;;  %7673 = vmatmul.msk.bf16.gmra.mxu3 %vm4519_vm9, %v5711_v32  ;;  %v12713_v27 = vld [vmem:[#allocation29_spill] sm:$0xff] }
 0xbc0   :  { %v11507_v39 = vadd.f32 %v5423_v36, %v5310_v38  ;;  %v5699_v32 = vmul.f32 %v12713_v27, %v12662_v4  ;;  %v12714_v36 = vld [vmem:[#allocation18_spill] sm:$0xff] }
 0xbc1   :  { %v12718_v27 = vld [vmem:[#allocation54_spill] sm:$0xff] }
 0xbc2   :  { %12708 = vst [vmem:[#allocation5_spill] sm:$0xff] %v11507_v39  ;;  %v5712_v0 = vpack.c.bf16 %v5700_v57, %v5699_v32  ;;  %v12721_v32 = vld [vmem:[#allocation38_spill] sm:$0xff] }
 0xbc3   :  { %v5133_v15 = vpop.f32.mrf.mxu2  ;;  %v5262_v41 = vpop.f32.mrf.mxu3 }
 0xbc4   :  { %v5166_v60 = vmul.f32 %v5133_v15, %v12709_v47  ;;  %v5295_v53 = vmul.f32 %v5262_v41, %v12710_v30  ;;  %v5599_v41 = vpack.c.bf16 %v5587_v9, %v5586_v42 }
 0xbc6   :  { %v5394_v11 = vpop.f32.mrf.mxu0  ;;  %v11511_v62 = vadd.f32 %v5295_v53, %v5166_v60  ;;  %v12715_v60 = vld [vmem:[#allocation70_spill] sm:$0xff] }
 0xbc7   :  { %v5425_v37 = vmul.f32 %v5394_v11, %v11371_v3  ;;  %v12725_v11 = vld [vmem:[#allocation80_spill] sm:$0xff] }
 0xbc8   :  { %12711 = vst [vmem:[#allocation7_spill] sm:$0xff] %v11511_v62 }
 0xbcb   :  { %v5136_v13 = vpop.f32.mrf.mxu2  ;;  %v5265_v15 = vpop.f32.mrf.mxu3 }
 0xbcc   :  { %v5167_v38 = vmul.f32 %v5136_v13, %v12714_v36  ;;  %v5296_v53 = vmul.f32 %v5265_v15, %v12715_v60  ;;  %v12719_v36 = vld [vmem:[#allocation25_spill] sm:$0xff]  ;;  %v12722_v15 = vld [vmem:[#allocation84_spill] sm:$0xff]  ;;  %v12724_v60 = vld [vmem:[#allocation10_spill] sm:$0xff] }
 0xbce   :  { %v11523_v5 = vpop.f32.mrf.mxu0  ;;  %v5312_v62 = vadd.f32 %v5296_v53, %v5167_v38  ;;  %v5588_v38 = vmul.f32 %v12725_v11, %v12724_v60 }
 0xbcf   :  { %12716 = vst [vmem:[#allocation29_spill] sm:$0xff] %v11523_v5  ;;  %7666 = vmatmul.msk.bf16.gmra.mxu2 %vm4519_vm9, %v5599_v41  ;;  %7674 = vmatmul.msk.bf16.gmra.mxu3 %vm4519_vm9, %v5712_v0  ;;  %v5589_v5 = vmul.f32 %v12722_v15, %v12721_v32  ;;  %v12723_v41 = vld [vmem:[#allocation83_spill] sm:$0xff] }
 0xbd0   :  { %v11528_v52 = vadd.f32 %v5425_v37, %v5312_v62  ;;  %v5702_v0 = vmul.f32 %v12723_v41, %v12721_v32  ;;  %v12726_v62 = vld [vmem:[#allocation79_spill] sm:$0xff]  ;;  %v12730_v32 = vld [vmem:[#allocation112_spill] sm:$0xff] }
 0xbd1   :  { %v5701_v53 = vmul.f32 %v12726_v62, %v12724_v60 }
 0xbd2   :  { %12717 = vst [vmem:[#allocation114_spill] sm:$0xff] %v11528_v52 }
 0xbd3   :  { %v5138_v4 = vpop.f32.mrf.mxu2  ;;  %v5267_v13 = vpop.f32.mrf.mxu3 }
 0xbd4   :  { %v5168_v34 = vmul.f32 %v5138_v4, %v12718_v27  ;;  %v5297_v9 = vmul.f32 %v5267_v13, %v12719_v36  ;;  %v12727_v4 = vld [vmem:[#allocation30_spill] sm:$0xff]  ;;  %v5600_v13 = vpack.c.bf16 %v5589_v5, %v5588_v38  ;;  %v5713_v36 = vpack.c.bf16 %v5702_v0, %v5701_v53 }
 0xbd5   :  { %v12735_v5 = vld [vmem:[#allocation94_spill] sm:$0xff] }
 0xbd6   :  { %v5399_v57 = vpop.f32.mrf.mxu0  ;;  %v11532_v42 = vadd.f32 %v5297_v9, %v5168_v34  ;;  %v12728_v34 = vld [vmem:[#allocation11_spill] sm:$0xff] }
 0xbd7   :  { %v5427_v41 = vmul.f32 %v5399_v57, %v12730_v32 }
 0xbd8   :  { %12720 = vst [vmem:[#allocation115_spill] sm:$0xff] %v11532_v42 }
 0xbdb   :  { %v5141_v37 = vpop.f32.mrf.mxu2  ;;  %v5270_v27 = vpop.f32.mrf.mxu3 }
 0xbdc   :  { %v5169_v52 = vmul.f32 %v5141_v37, %v12727_v4  ;;  %v5298_v9 = vmul.f32 %v5270_v27, %v12728_v34  ;;  %v12734_v37 = vld [vmem:[#allocation24_spill] sm:$0xff] }
 0xbdd   :  { %v5591_v0 = vmul.f32 %v12735_v5, %v12734_v37  ;;  %v12736_v27 = vld [vmem:[#allocation92_spill] sm:$0xff] }
 0xbde   :  { %v11544_v42 = vpop.f32.mrf.mxu0  ;;  %v5314_v11 = vadd.f32 %v5298_v9, %v5169_v52  ;;  %v5704_v38 = vmul.f32 %v12736_v27, %v12734_v37 }
 0xbdf   :  { %12729 = vst [vmem:[#allocation38_spill] sm:$0xff] %v11544_v42  ;;  %7667 = vmatmul.msk.bf16.gmra.mxu2 %vm4519_vm9, %v5600_v13  ;;  %7675 = vmatmul.msk.bf16.gmra.mxu3 %vm4519_vm9, %v5713_v36  ;;  %v12737_v42 = vld [vmem:[#allocation52_spill] sm:$0xff]  ;;  %v12738_v13 = vld [vmem:[#allocation90_spill] sm:$0xff]  ;;  %v12739_v36 = vld [vmem:[#allocation87_spill] sm:$0xff] }
 0xbe0   :  { %v11549_v15 = vadd.f32 %v5427_v41, %v5314_v11  ;;  %v5590_v34 = vmul.f32 %v12738_v13, %v12737_v42  ;;  %v5703_v57 = vmul.f32 %v12739_v36, %v12737_v42  ;;  %v12740_v41 = vld [vmem:[#allocation9_spill] sm:$0xff] }
 0xbe2   :  { %12731 = vst [vmem:[#allocation10_spill] sm:$0xff] %v11549_v15  ;;  %v5601_v15 = vpack.c.bf16 %v5591_v0, %v5590_v34  ;;  %v12747_v34 = vld [vmem:[#allocation101_spill] sm:$0xff] }
 0xbe3   :  { %v11551_v60 = vpop.f32.mrf.mxu2  ;;  %v11553_v62 = vpop.f32.mrf.mxu3 }
 0xbe4   :  { %12732 = vst [vmem:[#allocation79_spill] sm:$0xff] %v11551_v60  ;;  %v5714_v60 = vpack.c.bf16 %v5704_v38, %v5703_v57  ;;  %v12748_v38 = vld [vmem:[#allocation103_spill] sm:$0xff] }
 0xbe5   :  { %12733 = vst [vmem:[#allocation116_spill] sm:$0xff] %v11553_v62  ;;  %v12741_v62 = vld [vmem:[#allocation81_spill] sm:$0xff] }
 0xbe6   :  { %v5404_v53 = vpop.f32.mrf.mxu0 }
 0xbe7   :  { %v5429_v37 = vmul.f32 %v5404_v53, %v11419_v29  ;;  %v12750_v53 = vld [vmem:[#allocation96_spill] sm:$0xff] }
 0xbeb   :  { %v5146_v52 = vpop.f32.mrf.mxu2  ;;  %v5275_v9 = vpop.f32.mrf.mxu3 }
 0xbec   :  { %v5171_v11 = vmul.f32 %v5146_v52, %v12740_v41  ;;  %v5300_v32 = vmul.f32 %v5275_v9, %v12741_v62  ;;  %v12746_v52 = vld [vmem:[#allocation34_spill] sm:$0xff]  ;;  %v12773_v41 = vld [vmem:[#allocation72_spill] sm:$0xff] }
 0xbed   :  { %v5593_v0 = vmul.f32 %v12747_v34, %v12746_v52  ;;  %v5706_v57 = vmul.f32 %v12748_v38, %v12746_v52  ;;  %v12751_v9 = vld [vmem:[#allocation66_spill] sm:$0xff] }
 0xbee   :  { %v5316_v27 = vadd.f32 %v5300_v32, %v5171_v11  ;;  %v11570_v13 = vpop.f32.mrf.mxu0  ;;  %v5705_v32 = vmul.f32 %v12750_v53, %v12682_v35 }
 0xbef   :  { %7668 = vmatmul.msk.bf16.gmra.mxu2 %vm4519_vm9, %v5601_v15  ;;  %7676 = vmatmul.msk.bf16.gmra.mxu3 %vm4519_vm9, %v5714_v60  ;;  %12743 = vst [vmem:[#allocation52_spill] sm:$0xff] %v11570_v13  ;;  %v12749_v15 = vld [vmem:[#allocation99_spill] sm:$0xff] }
 0xbf0   :  { %v11568_v5 = vadd.f32 %v5429_v37, %v5316_v27  ;;  %v5592_v60 = vmul.f32 %v12749_v15, %v12682_v35  ;;  %v5524_v15 = vpop.f32.mrf.mxu1  ;;  %v12754_v35 = vld [vmem:[#allocation106_spill] sm:$0xff] }
 0xbf1   :  { %v5595_v53 = vmul.f32 %v12754_v35, %v12686_v19  ;;  %v12762_v35 = vld [vmem:[#allocation100_spill] sm:$0xff] }
 0xbf2   :  { %12742 = vst [vmem:[#allocation24_spill] sm:$0xff] %v11568_v5  ;;  %v5602_v5 = vpack.c.bf16 %v5593_v0, %v5592_v60 }
 0xbf3   :  { %v11572_v42 = vpop.f32.mrf.mxu2  ;;  %v11574_v36 = vpop.f32.mrf.mxu3 }
 0xbf4   :  { %12744 = vst [vmem:[#allocation87_spill] sm:$0xff] %v11572_v42  ;;  %v5715_v42 = vpack.c.bf16 %v5706_v57, %v5705_v32 }
 0xbf5   :  { %12745 = vst [vmem:[#allocation117_spill] sm:$0xff] %v11574_v36  ;;  %v12752_v36 = vld [vmem:[#allocation91_spill] sm:$0xff] }
 0xbf6   :  { %v5409_v11 = vpop.f32.mrf.mxu0 }
 0xbf7   :  { %v5431_v52 = vmul.f32 %v5409_v11, %v11434_v25 }
 0xbfb   :  { %v5151_v27 = vpop.f32.mrf.mxu2  ;;  %v5280_v13 = vpop.f32.mrf.mxu3 }
 0xbfc   :  { %v5173_v37 = vmul.f32 %v5151_v27, %v12751_v9  ;;  %v5302_v29 = vmul.f32 %v5280_v13, %v12752_v36  ;;  %v12755_v27 = vld [vmem:[#allocation111_spill] sm:$0xff] }
 0xbfd   :  { %v5708_v9 = vmul.f32 %v12755_v27, %v12686_v19 }
 0xbfe   :  { %v5318_v38 = vadd.f32 %v5302_v29, %v5173_v37  ;;  %v11595_v0 = vpop.f32.mrf.mxu0  ;;  %v12760_v29 = vld [vmem:[#allocation108_spill] sm:$0xff] }
 0xbff   :  { %7669 = vmatmul.msk.bf16.gmra.mxu2 %vm4519_vm9, %v5602_v5  ;;  %7677 = vmatmul.msk.bf16.gmra.mxu3 %vm4519_vm9, %v5715_v42  ;;  %12756 = vst [vmem:[#allocation96_spill] sm:$0xff] %v11595_v0  ;;  %v12759_v5 = vld [vmem:[#allocation104_spill] sm:$0xff]  ;;  %v5707_v60 = vmul.f32 %v12760_v29, %v12688_v6  ;;  %v12761_v0 = vld [vmem:[#allocation69_spill] sm:$0xff] }
 0xc00   :  { %v11589_v34 = vadd.f32 %v5431_v52, %v5318_v38  ;;  %v5594_v42 = vmul.f32 %v12759_v5, %v12688_v6  ;;  %v5526_v38 = vpop.f32.mrf.mxu1  ;;  %v12764_v6 = vld [vmem:[#allocation53_spill] sm:$0xff] }
 0xc01   :  { %v5716_v11 = vpack.c.bf16 %v5708_v9, %v5707_v60  ;;  %v12768_v60 = vld [vmem:[#allocation42_spill] sm:$0xff] }
 0xc02   :  { %12753 = vst [vmem:[#allocation34_spill] sm:$0xff] %v11589_v34  ;;  %v5603_v32 = vpack.c.bf16 %v5595_v53, %v5594_v42  ;;  %v12765_v53 = vld [vmem:[#allocation19_spill] sm:$0xff] }
 0xc03   :  { %v11597_v57 = vpop.f32.mrf.mxu2  ;;  %v11599_v13 = vpop.f32.mrf.mxu3  ;;  %v6434_v9 = vmul.f32 %v12765_v53, %v12764_v6  ;;  %v12771_v6 = vld [vmem:[#allocation31_spill] sm:$0xff] }
 0xc04   :  { %12757 = vst [vmem:[#allocation118_spill] sm:$0xff] %v11597_v57 }
 0xc05   :  { %12758 = vst [vmem:[#allocation119_spill] sm:$0xff] %v11599_v13 }
 0xc08   :  { %v5529_v13 = vpop.f32.mrf.mxu1 }
 0xc0d   :  { %v5414_v19 = vpop.f32.mrf.mxu0 }
 0xc0e   :  { %v5433_v5 = vmul.f32 %v5414_v19, %v11441_v16  ;;  %v5564_v19 = vmul.f32 0.17677669, %v5524_v15  ;;  %v5565_v15 = vmul.f32 0.17677669, %v5526_v38 }
 0xc0f   :  { %7670 = vmatmul.msk.bf16.gmra.mxu2 %vm4519_vm9, %v5603_v32  ;;  %7678 = vmatmul.msk.bf16.gmra.mxu3 %vm4519_vm9, %v5716_v11  ;;  %v12769_v32 = vld [vmem:[#allocation33_spill] sm:$0xff] }
 0xc10   :  { %v6433_v11 = vmul.f32 %v12769_v32, %v12768_v60 }
 0xc12   :  { %v5156_v37 = vpop.f32.mrf.mxu2  ;;  %v5285_v52 = vpop.f32.mrf.mxu3  ;;  %v6449_v36 = vpack.c.bf16 %v6434_v9, %v6433_v11  ;;  %v12772_v11 = vld [vmem:[#allocation55_spill] sm:$0xff] }
 0xc13   :  { %v5175_v27 = vmul.f32 %v5156_v37, %v12761_v0  ;;  %v5304_v34 = vmul.f32 %v5285_v52, %v12762_v35  ;;  %v5531_v37 = vpop.f32.mrf.mxu1 }
 0xc15   :  { %v5320_v57 = vadd.f32 %v5304_v34, %v5175_v27 }
 0xc17   :  { %v11610_v25 = vadd.f32 %v5433_v5, %v5320_v57 }
 0xc19   :  { %12763 = vst [vmem:[#allocation108_spill] sm:$0xff] %v11610_v25  ;;  %v12770_v25 = vld [vmem:[#allocation57_spill] sm:$0xff] }
 0xc1a   :  { %v11614_v42 = vpop.f32.mrf.mxu2  ;;  %v11616_v29 = vpop.f32.mrf.mxu3  ;;  %v6436_v16 = vmul.f32 %v12771_v6, %v12770_v25 }
 0xc1b   :  { %12766 = vst [vmem:[#allocation53_spill] sm:$0xff] %v11614_v42  ;;  %v11623_v42 = vpop.f32.mrf.mxu1 }
 0xc1c   :  { %12767 = vst [vmem:[#allocation19_spill] sm:$0xff] %v11616_v29 }
 0xc1f   :  { %7703 = vmatmul.msk.bf16.vlgmr.msra.gmra.mxu3 %vm4519_vm9, %v6449_v36  ;;  %v6435_v36 = vmul.f32 %v12773_v41, %v12772_v11 }
 0xc22   :  { %v5637_v52 = vpop.f32.mrf.mxu2  ;;  %v5750_v35 = vpop.f32.mrf.mxu3 }
 0xc23   :  { %v5677_v34 = vmul.f32 0.17677669, %v5637_v52  ;;  %v5790_v57 = vmul.f32 0.17677669, %v5750_v35  ;;  %v6450_v35 = vpack.c.bf16 %v6436_v16, %v6435_v36  ;;  %v11630_v38 = vpop.f32.mrf.mxu1 }
 0xc25   :  { %v5806_v27 = vmax.f32 %v5564_v19, %v5677_v34 }
 0xc27   :  { %v5822_v5 = vmax.f32 %v5806_v27, %v5790_v57 }
 0xc29   :  { %v5838_v29 = vsub.f32 %v5564_v19, %v5822_v5  ;;  %v5886_v0 = vsub.f32 %v5677_v34, %v5822_v5  ;;  %v5934_v62 = vsub.f32 %v5790_v57, %v5822_v5 }
 0xc2a   :  { %v5639_v60 = vpop.f32.mrf.mxu2  ;;  %v5752_v9 = vpop.f32.mrf.mxu3 }
 0xc2b   :  { %v5854_v4 = vmul.f32 1.442695, %v5838_v29  ;;  %v5902_v3 = vmul.f32 1.442695, %v5886_v0  ;;  %v5678_v52 = vmul.f32 0.17677669, %v5639_v60 }
 0xc2c   :  { %v5950_v27 = vmul.f32 1.442695, %v5934_v62  ;;  %v5791_v25 = vmul.f32 0.17677669, %v5752_v9  ;;  %v5566_v0 = vmul.f32 0.17677669, %v5529_v13 }
 0xc2d   :  { %8243 = vpow2.f32 %v5854_v4  ;;  %v5807_v26 = vmax.f32 %v5565_v15, %v5678_v52 }
 0xc2e   :  { %8245 = vpow2.f32 %v5902_v3 }
 0xc2f   :  { %7704 = vmatmul.msk.bf16.gmra.mxu3 %vm4519_vm9, %v6450_v35  ;;  %v5823_v19 = vmax.f32 %v5807_v26, %v5791_v25  ;;  %8247 = vpow2.f32 %v5950_v27  ;;  %v12775_v35 = vld [vmem:[#allocation75_spill] sm:$0xff] }
 0xc31   :  { %v5839_v34 = vsub.f32 %v5565_v15, %v5823_v19  ;;  %v5887_v57 = vsub.f32 %v5678_v52, %v5823_v19  ;;  %v5935_v5 = vsub.f32 %v5791_v25, %v5823_v19  ;;  %v12774_v52 = vld [vmem:[#allocation61_spill] sm:$0xff] }
 0xc32   :  { %v5642_v58 = vpop.f32.mrf.mxu2  ;;  %v5755_v39 = vpop.f32.mrf.mxu3  ;;  %v6438_v27 = vmul.f32 %v12775_v35, %v12774_v52 }
 0xc33   :  { %v11628_v11 = vpop.eup %8243  ;;  %v5679_v4 = vmul.f32 0.17677669, %v5642_v58  ;;  %v5856_v3 = vmul.f32 1.442695, %v5839_v34  ;;  %v5904_v62 = vmul.f32 1.442695, %v5887_v57 }
 0xc34   :  { %v8246_v16 = vpop.eup %8245  ;;  %v5952_v60 = vmul.f32 1.442695, %v5935_v5  ;;  %v5792_v26 = vmul.f32 0.17677669, %v5755_v39  ;;  %v12776_v34 = vld [vmem:[#allocation59_spill] sm:$0xff]  ;;  %v12777_v57 = vld [vmem:[#allocation21_spill] sm:$0xff] }
 0xc35   :  { %v5982_v29 = vadd.f32 %v8246_v16, %v11628_v11  ;;  %v5808_v9 = vmax.f32 %v5566_v0, %v5679_v4  ;;  %8249 = vpow2.f32 %v5856_v3  ;;  %v8248_v15 = vpop.eup %8247  ;;  %v6437_v47 = vmul.f32 %v12777_v57, %v12776_v34 }
 0xc36   :  { %8251 = vpow2.f32 %v5904_v62  ;;  %v5567_v39 = vmul.f32 0.17677669, %v5531_v37 }
 0xc37   :  { %v5824_v36 = vmax.f32 %v5808_v9, %v5792_v26  ;;  %v5998_v25 = vadd.f32 %v8248_v15, %v5982_v29  ;;  %8253 = vpow2.f32 %v5952_v60  ;;  %v11637_v9 = vpop.f32.mrf.mxu1  ;;  %v6451_v52 = vpack.c.bf16 %v6438_v27, %v6437_v47 }
 0xc39   :  { %v5840_v13 = vsub.f32 %v5566_v0, %v5824_v36  ;;  %v5888_v19 = vsub.f32 %v5679_v4, %v5824_v36  ;;  %8255 = vrcp.f32 %v5998_v25  ;;  %v5936_v56 = vsub.f32 %v5792_v26, %v5824_v36 }
 0xc3a   :  { %v5644_v58 = vpop.f32.mrf.mxu2  ;;  %v5757_v30 = vpop.f32.mrf.mxu3 }
 0xc3b   :  { %v5858_v22 = vmul.f32 1.442695, %v5840_v13  ;;  %v5906_v5 = vmul.f32 1.442695, %v5888_v19  ;;  %v8250_v43 = vpop.eup %8249  ;;  %v5680_v3 = vmul.f32 0.17677669, %v5644_v58 }
 0xc3c   :  { %v8252_v62 = vpop.eup %8251  ;;  %v5793_v60 = vmul.f32 0.17677669, %v5757_v30  ;;  %v5954_v13 = vmul.f32 1.442695, %v5936_v56 }
 0xc3d   :  { %v5983_v29 = vadd.f32 %v8252_v62, %v8250_v43  ;;  %8257 = vpow2.f32 %v5858_v22  ;;  %v5809_v0 = vmax.f32 %v5567_v39, %v5680_v3  ;;  %v8254_v4 = vpop.eup %8253  ;;  %v5568_v22 = vmul.f32 0.17677669, %v11623_v42 }
 0xc3e   :  { %8259 = vpow2.f32 %v5906_v5 }
 0xc3f   :  { %7705 = vmatmul.msk.bf16.gmra.mxu3 %vm4519_vm9, %v6451_v52  ;;  %v5999_v34 = vadd.f32 %v8254_v4, %v5983_v29  ;;  %v5825_v19 = vmax.f32 %v5809_v0, %v5793_v60  ;;  %v8256_v1 = vpop.eup %8255  ;;  %v12778_v29 = vld [vmem:[#allocation63_spill] sm:$0xff] }
 0xc40   :  { %v12779_v0 = vld [vmem:[#allocation35_spill] sm:$0xff] }
 0xc41   :  { %8261 = vrcp.f32 %v5999_v34  ;;  %v5841_v7 = vsub.f32 %v5567_v39, %v5825_v19  ;;  %v5889_v57 = vsub.f32 %v5680_v3, %v5825_v19  ;;  %v5937_v25 = vsub.f32 %v5793_v60, %v5825_v19  ;;  %v12781_v39 = vld [vmem:[#allocation78_spill] sm:$0xff]  ;;  %v11649_v60 = vpop.f32.mrf.mxu1 }
 0xc42   :  { %v5647_v37 = vpop.f32.mrf.mxu2  ;;  %v5760_v58 = vpop.f32.mrf.mxu3  ;;  %8263 = vpow2.f32 %v5954_v13  ;;  %v6439_v34 = vmul.f32 %v12779_v0, %v12778_v29  ;;  %v6440_v3 = vmul.f32 %v12781_v39, %v12780_v51  ;;  %v6030_v19 = vmul.f32 %v8256_v1, %v11628_v11 }
 0xc43   :  { %v5681_v26 = vmul.f32 0.17677669, %v5647_v37  ;;  %v11640_v47 = vpop.eup %8257  ;;  %v5860_v30 = vmul.f32 1.442695, %v5841_v7  ;;  %v5908_v27 = vmul.f32 1.442695, %v5889_v57  ;;  %v6159_v37 = vmul.f32 %v8256_v1, %v8246_v16 }
 0xc44   :  { %v11643_v36 = vpop.eup %8259  ;;  %v5956_v5 = vmul.f32 1.442695, %v5937_v25  ;;  %v5794_v52 = vmul.f32 0.17677669, %v5760_v58  ;;  %v6288_v13 = vmul.f32 %v8256_v1, %v8248_v15  ;;  %v5569_v11 = vmul.f32 0.17677669, %v11630_v38 }
 0xc45   :  { %v5810_v56 = vmax.f32 %v5568_v22, %v5681_v26  ;;  %8265 = vpow2.f32 %v5860_v30  ;;  %v5984_v7 = vadd.f32 %v11643_v36, %v11640_v47 }
 0xc46   :  { %8267 = vpow2.f32 %v5908_v27 }
 0xc47   :  { %v8262_v42 = vpop.eup %8261  ;;  %v5826_v57 = vmax.f32 %v5810_v56, %v5794_v52  ;;  %8269 = vpow2.f32 %v5956_v5 }
 0xc48   :  { %v6031_v58 = vmul.f32 %v8262_v42, %v8250_v43  ;;  %v6160_v25 = vmul.f32 %v8262_v42, %v8252_v62  ;;  %v6289_v18 = vmul.f32 %v8262_v42, %v8254_v4  ;;  %v8264_v61 = vpop.eup %8263  ;;  %v6452_v62 = vpack.c.bf16 %v6440_v3, %v6439_v34 }
 0xc49   :  { %v5842_v29 = vsub.f32 %v5568_v22, %v5826_v57  ;;  %v5890_v0 = vsub.f32 %v5681_v26, %v5826_v57  ;;  %v5938_v51 = vsub.f32 %v5794_v52, %v5826_v57  ;;  %v6000_v59 = vadd.f32 %v8264_v61, %v5984_v7 }
 0xc4a   :  { %v5649_v39 = vpop.f32.mrf.mxu2  ;;  %v5762_v35 = vpop.f32.mrf.mxu3  ;;  %v6304_v30 = vpack.c.bf16 %v6289_v18, %v6288_v13  ;;  %v6046_v49 = vpack.c.bf16 %v6031_v58, %v6030_v19  ;;  %v6175_v56 = vpack.c.bf16 %v6160_v25, %v6159_v37  ;;  %v5570_v19 = vmul.f32 0.17677669, %v11637_v9 }
 0xc4b   :  { %v5682_v16 = vmul.f32 0.17677669, %v5649_v39  ;;  %v5862_v55 = vmul.f32 1.442695, %v5842_v29  ;;  %v5910_v27 = vmul.f32 1.442695, %v5890_v0  ;;  %v8266_v1 = vpop.eup %8265 }
 0xc4c   :  { %v5795_v15 = vmul.f32 0.17677669, %v5762_v35  ;;  %7679 = vmatmul.msk.bf16.vlgmr.msrb.gmra.mxu0 %vm5083_vm10, %v6046_v49  ;;  %7695 = vmatmul.msk.bf16.vlgmr.msra.gmra.mxu2 %vm5083_vm10, %v6304_v30  ;;  %v8268_v4 = vpop.eup %8267  ;;  %v5958_v26 = vmul.f32 1.442695, %v5938_v51  ;;  %v11660_v35 = vpop.f32.mrf.mxu1  ;;  %v12782_v29 = vld [vmem:[#allocation40_spill] sm:$0xff]  ;;  %v12783_v51 = vld [vmem:[#allocation15_spill] sm:$0xff] }
 0xc4d   :  { %v5811_v43 = vmax.f32 %v5569_v11, %v5682_v16  ;;  %8271 = vpow2.f32 %v5862_v55  ;;  %7687 = vmatmul.msk.bf16.vlgmr.msra.gmra.mxu1 %vm5083_vm10, %v6175_v56  ;;  %7309 = vmatpush.bf16.msrb.mxu0 %v11189_v8  ;;  %v5985_v18 = vadd.f32 %v8268_v4, %v8266_v1  ;;  %v8270_v22 = vpop.eup %8269 }
 0xc4e   :  { %8273 = vpow2.f32 %v5910_v27  ;;  %v12785_v27 = vld [vmem:[#allocation85_spill] sm:$0xff] }
 0xc4f   :  { %v5827_v38 = vmax.f32 %v5811_v43, %v5795_v15  ;;  %7706 = vmatmul.msk.bf16.gmra.mxu3 %vm4519_vm9, %v6452_v62  ;;  %8275 = vrcp.f32 %v6000_v59  ;;  %v6001_v49 = vadd.f32 %v8270_v22, %v5985_v18  ;;  %v5571_v43 = vmul.f32 0.17677669, %v11649_v60 }
 0xc50   :  { %8277 = vpow2.f32 %v5958_v26 }
 0xc51   :  { %v5843_v5 = vsub.f32 %v5569_v11, %v5827_v38  ;;  %v5891_v52 = vsub.f32 %v5682_v16, %v5827_v38  ;;  %v5939_v0 = vsub.f32 %v5795_v15, %v5827_v38  ;;  %8279 = vrcp.f32 %v6001_v49  ;;  %v12784_v16 = vld [vmem:[#allocation45_spill] sm:$0xff] }
 0xc52   :  { %v5652_v55 = vpop.f32.mrf.mxu2  ;;  %v5765_v34 = vpop.f32.mrf.mxu3  ;;  %v6441_v11 = vmul.f32 %v12783_v51, %v12782_v29  ;;  %v6442_v56 = vmul.f32 %v12785_v27, %v12784_v16 }
 0xc53   :  { %v5864_v39 = vmul.f32 1.442695, %v5843_v5  ;;  %v5912_v3 = vmul.f32 1.442695, %v5891_v52  ;;  %v11662_v8 = vpop.eup %8271  ;;  %v5960_v42 = vmul.f32 1.442695, %v5939_v0 }
 0xc54   :  { %v5683_v37 = vmul.f32 0.17677669, %v5652_v55  ;;  %v11665_v7 = vpop.eup %8273  ;;  %v5796_v58 = vmul.f32 0.17677669, %v5765_v34  ;;  %v5546_v55 = vpop.f32.mrf.mxu1  ;;  %v6453_v24 = vpack.c.bf16 %v6442_v56, %v6441_v11 }
 0xc55   :  { %8281 = vpow2.f32 %v5864_v39  ;;  %v8276_v59 = vpop.eup %8275  ;;  %v5986_v57 = vadd.f32 %v11665_v7, %v11662_v8 }
 0xc56   :  { %8283 = vpow2.f32 %v5912_v3  ;;  %v5812_v13 = vmax.f32 %v5570_v19, %v5683_v37  ;;  %v11669_v25 = vpop.eup %8277  ;;  %v6032_v15 = vmul.f32 %v8276_v59, %v11640_v47  ;;  %v6161_v62 = vmul.f32 %v8276_v59, %v11643_v36 }
 0xc57   :  { %8285 = vpow2.f32 %v5960_v42  ;;  %v8280_v9 = vpop.eup %8279  ;;  %v6002_v26 = vadd.f32 %v11669_v25, %v5986_v57  ;;  %v6290_v52 = vmul.f32 %v8276_v59, %v8264_v61 }
 0xc58   :  { %v5828_v30 = vmax.f32 %v5812_v13, %v5796_v58  ;;  %v6033_v3 = vmul.f32 %v8280_v9, %v8266_v1  ;;  %v6162_v42 = vmul.f32 %v8280_v9, %v8268_v4  ;;  %v6291_v47 = vmul.f32 %v8280_v9, %v8270_v22 }
 0xc5a   :  { %v5844_v18 = vsub.f32 %v5570_v19, %v5828_v30  ;;  %v5892_v38 = vsub.f32 %v5683_v37, %v5828_v30  ;;  %v5654_v49 = vpop.f32.mrf.mxu2  ;;  %v5767_v5 = vpop.f32.mrf.mxu3  ;;  %v5940_v34 = vsub.f32 %v5796_v58, %v5828_v30  ;;  %v6047_v27 = vpack.c.bf16 %v6033_v3, %v6032_v15 }
 0xc5b   :  { %v8282_v0 = vpop.eup %8281  ;;  %v5684_v39 = vmul.f32 0.17677669, %v5654_v49  ;;  %v5797_v16 = vmul.f32 0.17677669, %v5767_v5  ;;  %v6176_v57 = vpack.c.bf16 %v6162_v42, %v6161_v62  ;;  %v6305_v37 = vpack.c.bf16 %v6291_v47, %v6290_v52  ;;  %v12786_v5 = vld [vmem:[#allocation48_spill] sm:$0xff] }
 0xc5c   :  { %v8284_v13 = vpop.eup %8283  ;;  %v5866_v29 = vmul.f32 1.442695, %v5844_v18  ;;  %v5914_v60 = vmul.f32 1.442695, %v5892_v38  ;;  %7680 = vmatmul.msk.bf16.gmra.mxu0 %vm5083_vm10, %v6047_v27  ;;  %v5962_v1 = vmul.f32 1.442695, %v5940_v34  ;;  %v5549_v18 = vpop.f32.mrf.mxu1 }
 0xc5d   :  { %v5987_v51 = vadd.f32 %v8284_v13, %v8282_v0  ;;  %v5813_v36 = vmax.f32 %v5571_v43, %v5684_v39  ;;  %v8286_v19 = vpop.eup %8285  ;;  %7688 = vmatmul.msk.bf16.gmra.mxu1 %vm5083_vm10, %v6176_v57  ;;  %7696 = vmatmul.msk.bf16.gmra.mxu2 %vm5083_vm10, %v6305_v37  ;;  %v5572_v27 = vmul.f32 0.17677669, %v11660_v35  ;;  %v12787_v52 = vld [vmem:[#allocation88_spill] sm:$0xff] }
 0xc5e   :  { %8287 = vpow2.f32 %v5866_v29  ;;  %v6443_v34 = vmul.f32 %v12787_v52, %v12786_v5  ;;  %v12788_v29 = vld [vmem:[#allocation4_spill] sm:$0xff] }
 0xc5f   :  { %v6003_v61 = vadd.f32 %v8286_v19, %v5987_v51  ;;  %8289 = vpow2.f32 %v5914_v60  ;;  %v5829_v59 = vmax.f32 %v5813_v36, %v5797_v16  ;;  %7707 = vmatmul.msk.bf16.gmra.mxu3 %vm4519_vm9, %v6453_v24  ;;  %v12789_v60 = vld [vmem:[#allocation93_spill] sm:$0xff] }
 0xc60   :  { %8291 = vrcp.f32 %v6002_v26 }
 0xc61   :  { %8293 = vrcp.f32 %v6003_v61  ;;  %v5845_v4 = vsub.f32 %v5571_v43, %v5829_v59  ;;  %v5893_v22 = vsub.f32 %v5684_v39, %v5829_v59  ;;  %v5941_v58 = vsub.f32 %v5797_v16, %v5829_v59 }
 0xc62   :  { %v5657_v30 = vpop.f32.mrf.mxu2  ;;  %v5770_v9 = vpop.f32.mrf.mxu3  ;;  %8295 = vpow2.f32 %v5962_v1  ;;  %v6444_v16 = vmul.f32 %v12789_v60, %v12788_v29  ;;  %v5573_v61 = vmul.f32 0.17677669, %v5546_v55 }
 0xc63   :  { %v5868_v11 = vmul.f32 1.442695, %v5845_v4  ;;  %v5916_v51 = vmul.f32 1.442695, %v5893_v22  ;;  %v5964_v15 = vmul.f32 1.442695, %v5941_v58 }
 0xc64   :  { %v11683_v56 = vpop.eup %8287  ;;  %v5685_v62 = vmul.f32 0.17677669, %v5657_v30  ;;  %v5798_v38 = vmul.f32 0.17677669, %v5770_v9  ;;  %v5551_v5 = vpop.f32.mrf.mxu1 }
 0xc65   :  { %v11686_v26 = vpop.eup %8289  ;;  %8297 = vpow2.f32 %v5868_v11 }
 0xc66   :  { %v8292_v24 = vpop.eup %8291  ;;  %8299 = vpow2.f32 %v5916_v51  ;;  %v5814_v43 = vmax.f32 %v5572_v27, %v5685_v62  ;;  %v5988_v39 = vadd.f32 %v11686_v26, %v11683_v56 }
 0xc67   :  { %v8294_v49 = vpop.eup %8293  ;;  %8301 = vpow2.f32 %v5964_v15  ;;  %v6034_v47 = vmul.f32 %v8292_v24, %v11662_v8  ;;  %v6163_v36 = vmul.f32 %v8292_v24, %v11665_v7  ;;  %v6292_v58 = vmul.f32 %v8292_v24, %v11669_v25 }
 0xc68   :  { %v5830_v35 = vmax.f32 %v5814_v43, %v5798_v38  ;;  %v6035_v3 = vmul.f32 %v8294_v49, %v8282_v0  ;;  %v6164_v42 = vmul.f32 %v8294_v49, %v8284_v13  ;;  %v6293_v57 = vmul.f32 %v8294_v49, %v8286_v19  ;;  %v11696_v37 = vpop.eup %8295 }
 0xc69   :  { %v6004_v0 = vadd.f32 %v11696_v37, %v5988_v39 }
 0xc6a   :  { %v5846_v59 = vsub.f32 %v5572_v27, %v5830_v35  ;;  %v5894_v1 = vsub.f32 %v5685_v62, %v5830_v35  ;;  %v5659_v4 = vpop.f32.mrf.mxu2  ;;  %v5772_v22 = vpop.f32.mrf.mxu3  ;;  %v6048_v9 = vpack.c.bf16 %v6035_v3, %v6034_v47  ;;  %v6177_v11 = vpack.c.bf16 %v6164_v42, %v6163_v36 }
 0xc6b   :  { %v8298_v30 = vpop.eup %8297  ;;  %v5686_v13 = vmul.f32 0.17677669, %v5659_v4  ;;  %v5942_v7 = vsub.f32 %v5798_v38, %v5830_v35  ;;  %v6306_v19 = vpack.c.bf16 %v6293_v57, %v6292_v58  ;;  %v5799_v55 = vmul.f32 0.17677669, %v5772_v22 }
 0xc6c   :  { %v8300_v51 = vpop.eup %8299  ;;  %v5870_v8 = vmul.f32 1.442695, %v5846_v59  ;;  %v5918_v15 = vmul.f32 1.442695, %v5894_v1  ;;  %v6454_v62 = vpack.c.bf16 %v6444_v16, %v6443_v34  ;;  %7681 = vmatmul.msk.bf16.gmra.mxu0 %vm5083_vm10, %v6048_v9  ;;  %v5574_v36 = vmul.f32 0.17677669, %v5549_v18 }
 0xc6d   :  { %v5989_v43 = vadd.f32 %v8300_v51, %v8298_v30  ;;  %v5815_v49 = vmax.f32 %v5573_v61, %v5686_v13  ;;  %v8302_v27 = vpop.eup %8301  ;;  %7689 = vmatmul.msk.bf16.gmra.mxu1 %vm5083_vm10, %v6177_v11  ;;  %v5966_v24 = vmul.f32 1.442695, %v5942_v7  ;;  %7697 = vmatmul.msk.bf16.gmra.mxu2 %vm5083_vm10, %v6306_v19  ;;  %v12792_v7 = vld [vmem:[#allocation105_spill] sm:$0xff] }
 0xc6e   :  { %8303 = vpow2.f32 %v5870_v8 }
 0xc6f   :  { %v6005_v29 = vadd.f32 %v8302_v27, %v5989_v43  ;;  %8305 = vpow2.f32 %v5918_v15  ;;  %v5831_v25 = vmax.f32 %v5815_v49, %v5799_v55  ;;  %7708 = vmatmul.msk.bf16.gmra.mxu3 %vm4519_vm9, %v6454_v62  ;;  %v12791_v15 = vld [vmem:[#allocation26_spill] sm:$0xff]  ;;  %v5554_v43 = vpop.f32.mrf.mxu1 }
 0xc70   :  { %8307 = vrcp.f32 %v6004_v0  ;;  %v12790_v0 = vld [vmem:[#allocation97_spill] sm:$0xff]  ;;  %v6446_v19 = vmul.f32 %v12792_v7, %v12791_v15 }
 0xc71   :  { %8309 = vrcp.f32 %v6005_v29  ;;  %v5847_v38 = vsub.f32 %v5573_v61, %v5831_v25  ;;  %v5895_v39 = vsub.f32 %v5686_v13, %v5831_v25  ;;  %v5943_v35 = vsub.f32 %v5799_v55, %v5831_v25 }
 0xc72   :  { %v5662_v3 = vpop.f32.mrf.mxu2  ;;  %v5775_v34 = vpop.f32.mrf.mxu3  ;;  %8311 = vpow2.f32 %v5966_v24  ;;  %v6445_v13 = vmul.f32 %v12790_v0, %v12681_v33  ;;  %v5575_v25 = vmul.f32 0.17677669, %v5551_v5 }
 0xc73   :  { %v5872_v42 = vmul.f32 1.442695, %v5847_v38  ;;  %v5920_v16 = vmul.f32 1.442695, %v5895_v39  ;;  %v5968_v57 = vmul.f32 1.442695, %v5943_v35 }
 0xc74   :  { %v11704_v47 = vpop.eup %8303  ;;  %v5687_v59 = vmul.f32 0.17677669, %v5662_v3  ;;  %v5800_v58 = vmul.f32 0.17677669, %v5775_v34 }
 0xc75   :  { %v11706_v1 = vpop.eup %8305  ;;  %8313 = vpow2.f32 %v5872_v42 }
 0xc76   :  { %v8308_v4 = vpop.eup %8307  ;;  %8315 = vpow2.f32 %v5920_v16  ;;  %v5816_v22 = vmax.f32 %v5574_v36, %v5687_v59  ;;  %v5990_v9 = vadd.f32 %v11706_v1, %v11704_v47 }
 0xc77   :  { %v8310_v61 = vpop.eup %8309  ;;  %8317 = vpow2.f32 %v5968_v57  ;;  %v6036_v49 = vmul.f32 %v8308_v4, %v11683_v56  ;;  %v6165_v55 = vmul.f32 %v8308_v4, %v11686_v26  ;;  %v6294_v35 = vmul.f32 %v8308_v4, %v11696_v37 }
 0xc78   :  { %v5832_v11 = vmax.f32 %v5816_v22, %v5800_v58  ;;  %v6037_v18 = vmul.f32 %v8310_v61, %v8298_v30  ;;  %v6166_v8 = vmul.f32 %v8310_v61, %v8300_v51  ;;  %v6295_v62 = vmul.f32 %v8310_v61, %v8302_v27  ;;  %v11716_v29 = vpop.eup %8311 }
 0xc79   :  { %v6006_v51 = vadd.f32 %v11716_v29, %v5990_v9 }
 0xc7a   :  { %v5848_v33 = vsub.f32 %v5574_v36, %v5832_v11  ;;  %v5896_v24 = vsub.f32 %v5687_v59, %v5832_v11  ;;  %v5664_v38 = vpop.f32.mrf.mxu2  ;;  %v5777_v39 = vpop.f32.mrf.mxu3  ;;  %v6049_v34 = vpack.c.bf16 %v6037_v18, %v6036_v49  ;;  %v6178_v42 = vpack.c.bf16 %v6166_v8, %v6165_v55 }
 0xc7b   :  { %v8314_v30 = vpop.eup %8313  ;;  %v5688_v3 = vmul.f32 0.17677669, %v5664_v38  ;;  %v5944_v26 = vsub.f32 %v5800_v58, %v5832_v11  ;;  %v6307_v27 = vpack.c.bf16 %v6295_v62, %v6294_v35  ;;  %v5801_v5 = vmul.f32 0.17677669, %v5777_v39 }
 0xc7c   :  { %v8316_v16 = vpop.eup %8315  ;;  %v5874_v56 = vmul.f32 1.442695, %v5848_v33  ;;  %v5922_v57 = vmul.f32 1.442695, %v5896_v24  ;;  %v6455_v59 = vpack.c.bf16 %v6446_v19, %v6445_v13  ;;  %7682 = vmatmul.msk.bf16.gmra.mxu0 %vm5083_vm10, %v6049_v34  ;;  %v5556_v13 = vpop.f32.mrf.mxu1  ;;  %v5576_v62 = vmul.f32 0.17677669, %v5554_v43 }
 0xc7d   :  { %v5991_v22 = vadd.f32 %v8316_v16, %v8314_v30  ;;  %v5817_v61 = vmax.f32 %v5575_v25, %v5688_v3  ;;  %v8318_v36 = vpop.eup %8317  ;;  %7690 = vmatmul.msk.bf16.gmra.mxu1 %vm5083_vm10, %v6178_v42  ;;  %v5970_v4 = vmul.f32 1.442695, %v5944_v26  ;;  %7698 = vmatmul.msk.bf16.gmra.mxu2 %vm5083_vm10, %v6307_v27  ;;  %v12794_v26 = vld [vmem:[#allocation110_spill] sm:$0xff] }
 0xc7e   :  { %8319 = vpow2.f32 %v5874_v56  ;;  %v6448_v27 = vmul.f32 %v12794_v26, %v12685_v17 }
 0xc7f   :  { %v6007_v15 = vadd.f32 %v8318_v36, %v5991_v22  ;;  %8321 = vpow2.f32 %v5922_v57  ;;  %v5833_v37 = vmax.f32 %v5817_v61, %v5801_v5  ;;  %7709 = vmatmul.msk.bf16.gmra.mxu3 %vm4519_vm9, %v6455_v59 }
 0xc80   :  { %8323 = vrcp.f32 %v6006_v51 }
 0xc81   :  { %8325 = vrcp.f32 %v6007_v15  ;;  %v5849_v58 = vsub.f32 %v5575_v25, %v5833_v37  ;;  %v5897_v9 = vsub.f32 %v5688_v3, %v5833_v37  ;;  %v5945_v11 = vsub.f32 %v5801_v5, %v5833_v37  ;;  %v12793_v3 = vld [vmem:[#allocation107_spill] sm:$0xff] }
 0xc82   :  { %v5667_v18 = vpop.f32.mrf.mxu2  ;;  %v5780_v8 = vpop.f32.mrf.mxu3  ;;  %8327 = vpow2.f32 %v5970_v4  ;;  %v6447_v34 = vmul.f32 %v12793_v3, %v12687_v14  ;;  %v5577_v15 = vmul.f32 0.17677669, %v5556_v13 }
 0xc83   :  { %v5876_v19 = vmul.f32 1.442695, %v5849_v58  ;;  %v5924_v49 = vmul.f32 1.442695, %v5897_v9  ;;  %v5972_v33 = vmul.f32 1.442695, %v5945_v11 }
 0xc84   :  { %v11724_v55 = vpop.eup %8319  ;;  %v5689_v24 = vmul.f32 0.17677669, %v5667_v18  ;;  %v5802_v25 = vmul.f32 0.17677669, %v5780_v8 }
 0xc85   :  { %v11726_v38 = vpop.eup %8321  ;;  %8329 = vpow2.f32 %v5876_v19 }
 0xc86   :  { %v8324_v39 = vpop.eup %8323  ;;  %8331 = vpow2.f32 %v5924_v49  ;;  %v5818_v35 = vmax.f32 %v5576_v62, %v5689_v24  ;;  %v5992_v42 = vadd.f32 %v11726_v38, %v11724_v55  ;;  %v5559_v49 = vpop.f32.mrf.mxu1 }
 0xc87   :  { %v8326_v51 = vpop.eup %8325  ;;  %8333 = vpow2.f32 %v5972_v33  ;;  %v6038_v22 = vmul.f32 %v8324_v39, %v11704_v47  ;;  %v6167_v61 = vmul.f32 %v8324_v39, %v11706_v1  ;;  %v6296_v9 = vmul.f32 %v8324_v39, %v11716_v29 }
 0xc88   :  { %v5834_v56 = vmax.f32 %v5818_v35, %v5802_v25  ;;  %v6039_v43 = vmul.f32 %v8326_v51, %v8314_v30  ;;  %v6168_v57 = vmul.f32 %v8326_v51, %v8316_v16  ;;  %v6297_v5 = vmul.f32 %v8326_v51, %v8318_v36  ;;  %v11736_v59 = vpop.eup %8327 }
 0xc89   :  { %v6008_v30 = vadd.f32 %v11736_v59, %v5992_v42  ;;  %v6456_v35 = vpack.c.bf16 %v6448_v27, %v6447_v34 }
 0xc8a   :  { %v5850_v37 = vsub.f32 %v5576_v62, %v5834_v56  ;;  %v5898_v14 = vsub.f32 %v5689_v24, %v5834_v56  ;;  %v5669_v4 = vpop.f32.mrf.mxu2  ;;  %v5782_v58 = vpop.f32.mrf.mxu3  ;;  %v6050_v18 = vpack.c.bf16 %v6039_v43, %v6038_v22  ;;  %v6179_v17 = vpack.c.bf16 %v6168_v57, %v6167_v61 }
 0xc8b   :  { %v8330_v11 = vpop.eup %8329  ;;  %v5690_v16 = vmul.f32 0.17677669, %v5669_v4  ;;  %v5946_v1 = vsub.f32 %v5802_v25, %v5834_v56  ;;  %v6308_v36 = vpack.c.bf16 %v6297_v5, %v6296_v9  ;;  %v5803_v62 = vmul.f32 0.17677669, %v5782_v58 }
 0xc8c   :  { %v8332_v8 = vpop.eup %8331  ;;  %v5878_v47 = vmul.f32 1.442695, %v5850_v37  ;;  %v5926_v19 = vmul.f32 1.442695, %v5898_v14  ;;  %7683 = vmatmul.msk.bf16.gmra.mxu0 %vm5083_vm10, %v6050_v18  ;;  %v5578_v61 = vmul.f32 0.17677669, %v5559_v49 }
 0xc8d   :  { %v5993_v33 = vadd.f32 %v8332_v8, %v8330_v11  ;;  %v5819_v13 = vmax.f32 %v5577_v15, %v5690_v16  ;;  %v8334_v24 = vpop.eup %8333  ;;  %7691 = vmatmul.msk.bf16.gmra.mxu1 %vm5083_vm10, %v6179_v17  ;;  %v5974_v39 = vmul.f32 1.442695, %v5946_v1  ;;  %7699 = vmatmul.msk.bf16.gmra.mxu2 %vm5083_vm10, %v6308_v36 }
 0xc8e   :  { %8335 = vpow2.f32 %v5878_v47 }
 0xc8f   :  { %v6009_v51 = vadd.f32 %v8334_v24, %v5993_v33  ;;  %8337 = vpow2.f32 %v5926_v19  ;;  %v5835_v29 = vmax.f32 %v5819_v13, %v5803_v62  ;;  %7710 = vmatmul.msk.bf16.gmra.mxu3 %vm4519_vm9, %v6456_v35 }
 0xc90   :  { %8339 = vrcp.f32 %v6008_v30  ;;  %v5561_v30 = vpop.f32.mrf.mxu1 }
 0xc91   :  { %8341 = vrcp.f32 %v6009_v51  ;;  %v5851_v25 = vsub.f32 %v5577_v15, %v5835_v29  ;;  %v5899_v42 = vsub.f32 %v5690_v16, %v5835_v29  ;;  %v5947_v56 = vsub.f32 %v5803_v62, %v5835_v29 }
 0xc92   :  { %v5672_v43 = vpop.f32.mrf.mxu2  ;;  %v5785_v57 = vpop.f32.mrf.mxu3  ;;  %8343 = vpow2.f32 %v5974_v39  ;;  %v5579_v33 = vmul.f32 0.17677669, %v5561_v30 }
 0xc93   :  { %v5880_v34 = vmul.f32 1.442695, %v5851_v25  ;;  %v5928_v27 = vmul.f32 1.442695, %v5899_v42  ;;  %v5976_v5 = vmul.f32 1.442695, %v5947_v56 }
 0xc94   :  { %v11744_v22 = vpop.eup %8335  ;;  %v5691_v37 = vmul.f32 0.17677669, %v5672_v43  ;;  %v5804_v9 = vmul.f32 0.17677669, %v5785_v57 }
 0xc95   :  { %v11746_v14 = vpop.eup %8337  ;;  %8345 = vpow2.f32 %v5880_v34 }
 0xc96   :  { %v8340_v4 = vpop.eup %8339  ;;  %8347 = vpow2.f32 %v5928_v27  ;;  %v5820_v58 = vmax.f32 %v5578_v61, %v5691_v37  ;;  %v5994_v16 = vadd.f32 %v11746_v14, %v11744_v22 }
 0xc97   :  { %v8342_v15 = vpop.eup %8341  ;;  %8349 = vpow2.f32 %v5976_v5  ;;  %v6040_v19 = vmul.f32 %v8340_v4, %v11724_v55  ;;  %v6169_v1 = vmul.f32 %v8340_v4, %v11726_v38  ;;  %v6298_v29 = vmul.f32 %v8340_v4, %v11736_v59 }
 0xc98   :  { %v5836_v18 = vmax.f32 %v5820_v58, %v5804_v9  ;;  %v6041_v17 = vmul.f32 %v8342_v15, %v8330_v11  ;;  %v6170_v47 = vmul.f32 %v8342_v15, %v8332_v8  ;;  %v6299_v36 = vmul.f32 %v8342_v15, %v8334_v24  ;;  %v8344_v49 = vpop.eup %8343 }
 0xc99   :  { %v6010_v25 = vadd.f32 %v8344_v49, %v5994_v16 }
 0xc9a   :  { %v5852_v13 = vsub.f32 %v5578_v61, %v5836_v18  ;;  %v5900_v62 = vsub.f32 %v5691_v37, %v5836_v18  ;;  %v5674_v35 = vpop.f32.mrf.mxu2  ;;  %v5787_v51 = vpop.f32.mrf.mxu3  ;;  %v6051_v56 = vpack.c.bf16 %v6041_v17, %v6040_v19  ;;  %v6180_v43 = vpack.c.bf16 %v6170_v47, %v6169_v1 }
 0xc9b   :  { %v8346_v39 = vpop.eup %8345  ;;  %v5692_v42 = vmul.f32 0.17677669, %v5674_v35  ;;  %v5948_v55 = vsub.f32 %v5804_v9, %v5836_v18  ;;  %v6309_v34 = vpack.c.bf16 %v6299_v36, %v6298_v29  ;;  %v5805_v27 = vmul.f32 0.17677669, %v5787_v51 }
 0xc9c   :  { %v8348_v11 = vpop.eup %8347  ;;  %v5882_v8 = vmul.f32 1.442695, %v5852_v13  ;;  %v5930_v57 = vmul.f32 1.442695, %v5900_v62  ;;  %7684 = vmatmul.msk.bf16.gmra.mxu0 %vm5083_vm10, %v6051_v56 }
 0xc9d   :  { %v5995_v38 = vadd.f32 %v8348_v11, %v8346_v39  ;;  %v5821_v24 = vmax.f32 %v5579_v33, %v5692_v42  ;;  %v8350_v5 = vpop.eup %8349  ;;  %7692 = vmatmul.msk.bf16.gmra.mxu1 %vm5083_vm10, %v6180_v43  ;;  %v5978_v59 = vmul.f32 1.442695, %v5948_v55  ;;  %7700 = vmatmul.msk.bf16.gmra.mxu2 %vm5083_vm10, %v6309_v34 }
 0xc9e   :  { %8351 = vpow2.f32 %v5882_v8 }
 0xc9f   :  { %v6011_v61 = vadd.f32 %v8350_v5, %v5995_v38  ;;  %8353 = vpow2.f32 %v5930_v57  ;;  %v5837_v37 = vmax.f32 %v5821_v24, %v5805_v27 }
 0xca0   :  { %8355 = vrcp.f32 %v6010_v25 }
 0xca1   :  { %8357 = vrcp.f32 %v6011_v61  ;;  %v5853_v4 = vsub.f32 %v5579_v33, %v5837_v37  ;;  %v5901_v58 = vsub.f32 %v5692_v42, %v5837_v37  ;;  %v5949_v9 = vsub.f32 %v5805_v27, %v5837_v37 }
 0xca2   :  { %8359 = vpow2.f32 %v5978_v59 }
 0xca3   :  { %v5884_v15 = vmul.f32 1.442695, %v5853_v4  ;;  %v5932_v30 = vmul.f32 1.442695, %v5901_v58  ;;  %v5980_v18 = vmul.f32 1.442695, %v5949_v9  ;;  %v11764_v4 = vpop.f32.mrf.mxu0  ;;  %v6547_v58 = vmul.f32 %v12765_v53, %v10595_v45 }
 0xca4   :  { %v8352_v16 = vpop.eup %8351  ;;  %v6660_v9 = vmul.f32 %v10836_v46, %v12765_v53 }
 0xca5   :  { %v8354_v17 = vpop.eup %8353  ;;  %8361 = vpow2.f32 %v5884_v15 }
 0xca6   :  { %v8356_v47 = vpop.eup %8355  ;;  %8363 = vpow2.f32 %v5932_v30  ;;  %v5996_v1 = vadd.f32 %v8354_v17, %v8352_v16  ;;  %v6546_v30 = vmul.f32 %v12769_v32, %v10572_v63 }
 0xca7   :  { %v8358_v19 = vpop.eup %8357  ;;  %8365 = vpow2.f32 %v5980_v18  ;;  %v6042_v35 = vmul.f32 %v8356_v47, %v11744_v22  ;;  %v6171_v33 = vmul.f32 %v8356_v47, %v11746_v14  ;;  %v6300_v29 = vmul.f32 %v8356_v47, %v8344_v49 }
 0xca8   :  { %v6043_v36 = vmul.f32 %v8358_v19, %v8346_v39  ;;  %v6172_v13 = vmul.f32 %v8358_v19, %v8348_v11  ;;  %v6301_v62 = vmul.f32 %v8358_v19, %v8350_v5  ;;  %v8360_v51 = vpop.eup %8359  ;;  %v6562_v47 = vpack.c.bf16 %v6547_v58, %v6546_v30  ;;  %v12795_v19 = vld [vmem:[#allocation71_spill] sm:$0xff] }
 0xca9   :  { %v6012_v8 = vadd.f32 %v8360_v51, %v5996_v1  ;;  %v6675_v1 = vpack.c.bf16 %v6660_v9, %v12795_v19  ;;  %v12802_v9 = vld [vmem:[#allocation60_spill] sm:$0xff] }
 0xcaa   :  { %v6052_v42 = vpack.c.bf16 %v6043_v36, %v6042_v35  ;;  %v6181_v56 = vpack.c.bf16 %v6172_v13, %v6171_v33  ;;  %v6310_v57 = vpack.c.bf16 %v6301_v62, %v6300_v29 }
 0xcab   :  { %v8362_v25 = vpop.eup %8361  ;;  %8367 = vrcp.f32 %v6012_v8  ;;  %v6548_v8 = vmul.f32 %v12773_v41, %v10719_v10  ;;  %v12798_v41 = vld [vmem:[#allocation46_spill] sm:$0xff] }
 0xcac   :  { %v8364_v43 = vpop.eup %8363  ;;  %7685 = vmatmul.msk.bf16.gmra.mxu0 %vm5083_vm10, %v6052_v42  ;;  %v12796_v42 = vld [vmem:[#allocation43_spill] sm:$0xff] }
 0xcad   :  { %v5997_v55 = vadd.f32 %v8364_v43, %v8362_v25  ;;  %v8366_v34 = vpop.eup %8365  ;;  %7693 = vmatmul.msk.bf16.gmra.mxu1 %vm5083_vm10, %v6181_v56  ;;  %7701 = vmatmul.msk.bf16.gmra.mxu2 %vm5083_vm10, %v6310_v57  ;;  %v5420_v56 = vmul.f32 %v11459_v50, %v12796_v42 }
 0xcaf   :  { %v6013_v38 = vadd.f32 %v8366_v34, %v5997_v55  ;;  %v5436_v57 = vadd.f32 %v5420_v56, %v11469_v48 }
 0xcb1   :  { %8369 = vrcp.f32 %v6013_v38  ;;  %v8368_v22 = vpop.eup %8367 }
 0xcb2   :  { %v6044_v24 = vmul.f32 %v8368_v22, %v8352_v16  ;;  %v6173_v27 = vmul.f32 %v8368_v22, %v8354_v17  ;;  %v6302_v5 = vmul.f32 %v8368_v22, %v8360_v51  ;;  %v6549_v51 = vmul.f32 %v12771_v6, %v10734_v12 }
 0xcb4   :  { %v6563_v38 = vpack.c.bf16 %v6549_v51, %v6548_v8 }
 0xcb7   :  { %v8370_v14 = vpop.eup %8369 }
 0xcb8   :  { %v6045_v49 = vmul.f32 %v8370_v14, %v8362_v25  ;;  %v6174_v39 = vmul.f32 %v8370_v14, %v8364_v43  ;;  %v6303_v11 = vmul.f32 %v8370_v14, %v8366_v34  ;;  %v6662_v25 = vmul.f32 %v10935_v23, %v12771_v6  ;;  %v12797_v6 = vld [vmem:[#allocation73_spill] sm:$0xff] }
 0xcba   :  { %v6053_v61 = vpack.c.bf16 %v6045_v49, %v6044_v24  ;;  %v6182_v37 = vpack.c.bf16 %v6174_v39, %v6173_v27  ;;  %v6311_v59 = vpack.c.bf16 %v6303_v11, %v6302_v5  ;;  %v6676_v14 = vpack.c.bf16 %v6662_v25, %v12797_v6  ;;  %v12799_v11 = vld [vmem:[#allocation22_spill] sm:$0xff]  ;;  %v12800_v27 = vld [vmem:[#allocation65_spill] sm:$0xff] }
 0xcbb   :  { %v12811_v25 = vld [vmem:[#allocation37_spill] sm:$0xff] }
 0xcbc   :  { %7686 = vmatmul.msk.bf16.gmra.mxu0 %vm5083_vm10, %v6053_v61 }
 0xcbd   :  { %7694 = vmatmul.msk.bf16.gmra.mxu1 %vm5083_vm10, %v6182_v37  ;;  %7702 = vmatmul.msk.bf16.gmra.mxu2 %vm5083_vm10, %v6311_v59  ;;  %v12801_v59 = vld [vmem:[#allocation20_spill] sm:$0xff] }
 0xcc9   :  { %v6087_v15 = vpop.f32.mrf.mxu0 }
 0xcca   :  { %v6127_v16 = vmul.f32 %v6087_v15, %v12694_v28  ;;  %v6216_v18 = vpop.f32.mrf.mxu1  ;;  %v12803_v15 = vld [vmem:[#allocation75_spill] sm:$0xff] }
 0xccb   :  { %v6256_v17 = vmul.f32 %v6216_v18, %v12695_v54  ;;  %v6551_v30 = vmul.f32 %v12803_v15, %v12802_v9  ;;  %v12819_v9 = vld [vmem:[#allocation77_spill] sm:$0xff] }
 0xccc   :  { %7711 = vmatmul.msk.bf16.vlgmr.msra.gmra.mxu0 %vm4519_vm9, %v6562_v47  ;;  %v12806_v47 = vld [vmem:[#allocation21_spill] sm:$0xff] }
 0xccd   :  { %v6272_v36 = vadd.f32 %v6256_v17, %v6127_v16  ;;  %7719 = vmatmul.msk.bf16.vlgmr.msrb.gmra.mxu1 %vm4519_vm9, %v6675_v1  ;;  %v12804_v16 = vld [vmem:[#allocation74_spill] sm:$0xff]  ;;  %v12805_v17 = vld [vmem:[#allocation36_spill] sm:$0xff] }
 0xcce   :  { %v6664_v18 = vmul.f32 %v12804_v16, %v12803_v15  ;;  %v6550_v19 = vmul.f32 %v12806_v47, %v12805_v17  ;;  %v12821_v16 = vld [vmem:[#allocation35_spill] sm:$0xff] }
 0xccf   :  { %v6345_v45 = vpop.f32.mrf.mxu2  ;;  %v12822_v47 = vld [vmem:[#allocation3_spill] sm:$0xff] }
 0xcd0   :  { %v6385_v46 = vmul.f32 %v6345_v45, %v11272_v21  ;;  %v12808_v45 = vld [vmem:[#allocation2_spill] sm:$0xff]  ;;  %v6677_v56 = vpack.c.bf16 %v6664_v18, %v12811_v25  ;;  %v12826_v25 = vld [vmem:[#allocation76_spill] sm:$0xff] }
 0xcd1   :  { %v6089_v53 = vpop.f32.mrf.mxu0 }
 0xcd2   :  { %v6401_v13 = vadd.f32 %v6385_v46, %v6272_v36  ;;  %v6128_v63 = vmul.f32 %v6089_v53, %v12696_v20  ;;  %v6218_v32 = vpop.f32.mrf.mxu1  ;;  %v12807_v36 = vld [vmem:[#allocation44_spill] sm:$0xff] }
 0xcd3   :  { %v6257_v62 = vmul.f32 %v6218_v32, %v12697_v40  ;;  %v5422_v46 = vmul.f32 %v12808_v45, %v12807_v36  ;;  %v12809_v32 = vld [vmem:[#allocation32_spill] sm:$0xff] }
 0xcd4   :  { %v11781_v35 = vadd.f32 %v6401_v13, %v11461_v31 }
 0xcd5   :  { %v6273_v33 = vadd.f32 %v6257_v62, %v6128_v63 }
 0xcd7   :  { %v6347_v29 = vpop.f32.mrf.mxu2 }
 0xcd8   :  { %v6386_v43 = vmul.f32 %v6347_v29, %v12796_v42  ;;  %v6564_v29 = vpack.c.bf16 %v6551_v30, %v6550_v19  ;;  %v12820_v30 = vld [vmem:[#allocation39_spill] sm:$0xff]  ;;  %v12823_v19 = vld [vmem:[#allocation56_spill] sm:$0xff] }
 0xcd9   :  { %v6092_v55 = vpop.f32.mrf.mxu0  ;;  %v6552_v18 = vmul.f32 %v12821_v16, %v12820_v30  ;;  %v12833_v30 = vld [vmem:[#allocation84_spill] sm:$0xff]  ;;  %v12834_v16 = vld [vmem:[#allocation85_spill] sm:$0xff] }
 0xcda   :  { %v6402_v31 = vadd.f32 %v6386_v43, %v6273_v33  ;;  %v6221_v34 = vpop.f32.mrf.mxu1  ;;  %v6129_v12 = vmul.f32 %v6092_v55, %v12698_v2  ;;  %v12810_v33 = vld [vmem:[#allocation67_spill] sm:$0xff]  ;;  %v12812_v43 = vld [vmem:[#allocation49_spill] sm:$0xff] }
 0xcdb   :  { %v6258_v23 = vmul.f32 %v6221_v34, %v12699_v44  ;;  %v5438_v8 = vadd.f32 %v5422_v46, %v12812_v43  ;;  %v12827_v43 = vld [vmem:[#allocation7_spill] sm:$0xff] }
 0xcdc   :  { %v11793_v22 = vadd.f32 %v6402_v31, %v5436_v57  ;;  %7712 = vmatmul.msk.bf16.gmra.mxu0 %vm4519_vm9, %v6563_v38  ;;  %v12813_v38 = vld [vmem:[#allocation47_spill] sm:$0xff] }
 0xcdd   :  { %v6274_v50 = vadd.f32 %v6258_v23, %v6129_v12  ;;  %7720 = vmatmul.msk.bf16.gmra.mxu1 %vm4519_vm9, %v6676_v14  ;;  %v12814_v14 = vld [vmem:[#allocation12_spill] sm:$0xff] }
 0xce0   :  { %v6350_v10 = vpop.f32.mrf.mxu2 }
 0xce1   :  { %v6387_v48 = vmul.f32 %v6350_v10, %v12798_v41  ;;  %v6094_v49 = vpop.f32.mrf.mxu0  ;;  %v12815_v10 = vld [vmem:[#allocation23_spill] sm:$0xff] }
 0xce2   :  { %v6223_v39 = vpop.f32.mrf.mxu1  ;;  %v6130_v24 = vmul.f32 %v6094_v49, %v12799_v11 }
 0xce3   :  { %v6259_v5 = vmul.f32 %v6223_v39, %v12800_v27  ;;  %v6403_v61 = vadd.f32 %v6387_v48, %v6274_v50 }
 0xce5   :  { %v6275_v37 = vadd.f32 %v6259_v5, %v6130_v24  ;;  %v11804_v58 = vadd.f32 %v6403_v61, %v12801_v59  ;;  %v12816_v24 = vld [vmem:[#allocation5_spill] sm:$0xff] }
 0xce6   :  { %v12817_v61 = vld [vmem:[#allocation13_spill] sm:$0xff] }
 0xce8   :  { %v6352_v1 = vpop.f32.mrf.mxu2 }
 0xce9   :  { %v6388_v53 = vmul.f32 %v6352_v1, %v12807_v36  ;;  %v6097_v13 = vpop.f32.mrf.mxu0  ;;  %v5424_v1 = vmul.f32 %v12823_v19, %v12822_v47 }
 0xcea   :  { %v6226_v63 = vpop.f32.mrf.mxu1  ;;  %v6131_v62 = vmul.f32 %v6097_v13, %v12809_v32  ;;  %v12824_v13 = vld [vmem:[#allocation18_spill] sm:$0xff] }
 0xceb   :  { %v6260_v51 = vmul.f32 %v6226_v63, %v12810_v33  ;;  %v6404_v57 = vadd.f32 %v6388_v53, %v6275_v37  ;;  %v12818_v37 = vld [vmem:[#allocation78_spill] sm:$0xff] }
 0xcec   :  { %7713 = vmatmul.msk.bf16.gmra.mxu0 %vm4519_vm9, %v6564_v29  ;;  %v6553_v59 = vmul.f32 %v12818_v37, %v12817_v61  ;;  %v6666_v15 = vmul.f32 %v12819_v9, %v12818_v37  ;;  %v12830_v61 = vld [vmem:[#allocation25_spill] sm:$0xff] }
 0xced   :  { %v6276_v31 = vadd.f32 %v6260_v51, %v6131_v62  ;;  %7721 = vmatmul.msk.bf16.gmra.mxu1 %vm4519_vm9, %v6677_v56  ;;  %v11821_v55 = vadd.f32 %v6404_v57, %v5438_v8  ;;  %v12825_v62 = vld [vmem:[#allocation70_spill] sm:$0xff]  ;;  %v5440_v8 = vadd.f32 %v5424_v1, %v12827_v43  ;;  %v12836_v1 = vld [vmem:[#allocation80_spill] sm:$0xff] }
 0xcee   :  { %v6565_v29 = vpack.c.bf16 %v6553_v59, %v6552_v18  ;;  %v6678_v56 = vpack.c.bf16 %v6666_v15, %v12826_v25  ;;  %v12831_v15 = vld [vmem:[#allocation114_spill] sm:$0xff]  ;;  %v6555_v18 = vmul.f32 %v12834_v16, %v12833_v30 }
 0xcf0   :  { %v6355_v34 = vpop.f32.mrf.mxu2 }
 0xcf1   :  { %v6389_v12 = vmul.f32 %v6355_v34, %v12813_v38  ;;  %v6099_v23 = vpop.f32.mrf.mxu0 }
 0xcf2   :  { %v6228_v6 = vpop.f32.mrf.mxu1  ;;  %v6132_v50 = vmul.f32 %v6099_v23, %v12814_v14  ;;  %v12828_v23 = vld [vmem:[#allocation50_spill] sm:$0xff] }
 0xcf3   :  { %v6261_v48 = vmul.f32 %v6228_v6, %v12815_v10  ;;  %v6405_v49 = vadd.f32 %v6389_v12, %v6276_v31 }
 0xcf5   :  { %v6277_v39 = vadd.f32 %v6261_v48, %v6132_v50  ;;  %v11827_v5 = vadd.f32 %v6405_v49, %v12816_v24  ;;  %v12829_v49 = vld [vmem:[#allocation54_spill] sm:$0xff] }
 0xcf8   :  { %v6357_v17 = vpop.f32.mrf.mxu2 }
 0xcf9   :  { %v6390_v45 = vmul.f32 %v6357_v17, %v12822_v47  ;;  %v6102_v46 = vpop.f32.mrf.mxu0  ;;  %v12835_v17 = vld [vmem:[#allocation83_spill] sm:$0xff] }
 0xcfa   :  { %v6231_v53 = vpop.f32.mrf.mxu1  ;;  %v6133_v63 = vmul.f32 %v6102_v46, %v12824_v13  ;;  %v6668_v19 = vmul.f32 %v12835_v17, %v12834_v16  ;;  %v12845_v17 = vld [vmem:[#allocation112_spill] sm:$0xff] }
 0xcfb   :  { %v6262_v51 = vmul.f32 %v6231_v53, %v12825_v62  ;;  %v6406_v57 = vadd.f32 %v6390_v45, %v6277_v39  ;;  %v12837_v45 = vld [vmem:[#allocation15_spill] sm:$0xff] }
 0xcfc   :  { %7714 = vmatmul.msk.bf16.gmra.mxu0 %vm4519_vm9, %v6565_v29  ;;  %v6554_v46 = vmul.f32 %v12837_v45, %v12836_v1 }
 0xcfd   :  { %v6278_v31 = vadd.f32 %v6262_v51, %v6133_v63  ;;  %7722 = vmatmul.msk.bf16.gmra.mxu1 %vm4519_vm9, %v6678_v56  ;;  %v11844_v34 = vadd.f32 %v6406_v57, %v5440_v8  ;;  %v12838_v63 = vld [vmem:[#allocation6_spill] sm:$0xff]  ;;  %v12839_v51 = vld [vmem:[#allocation29_spill] sm:$0xff] }
 0xcfe   :  { %v5426_v29 = vmul.f32 %v12839_v51, %v12838_v63  ;;  %v12840_v8 = vld [vmem:[#allocation30_spill] sm:$0xff] }
 0xcff   :  { %v12846_v51 = vld [vmem:[#allocation58_spill] sm:$0xff] }
 0xd00   :  { %v6360_v12 = vpop.f32.mrf.mxu2 }
 0xd01   :  { %v6391_v6 = vmul.f32 %v6360_v12, %v12828_v23  ;;  %v6104_v50 = vpop.f32.mrf.mxu0 }
 0xd02   :  { %v6233_v48 = vpop.f32.mrf.mxu1  ;;  %v6134_v24 = vmul.f32 %v6104_v50, %v12829_v49  ;;  %v12842_v50 = vld [vmem:[#allocation82_spill] sm:$0xff] }
 0xd03   :  { %v6263_v37 = vmul.f32 %v6233_v48, %v12830_v61  ;;  %v6407_v59 = vadd.f32 %v6391_v6, %v6278_v31  ;;  %v12841_v31 = vld [vmem:[#allocation11_spill] sm:$0xff]  ;;  %v6566_v6 = vpack.c.bf16 %v6555_v18, %v6554_v46  ;;  %v6679_v48 = vpack.c.bf16 %v6668_v19, %v12842_v50  ;;  %v12848_v46 = vld [vmem:[#allocation8_spill] sm:$0xff] }
 0xd04   :  { %v12849_v19 = vld [vmem:[#allocation116_spill] sm:$0xff] }
 0xd05   :  { %v6279_v9 = vadd.f32 %v6263_v37, %v6134_v24  ;;  %v11850_v39 = vadd.f32 %v6407_v59, %v12831_v15  ;;  %v12843_v24 = vld [vmem:[#allocation115_spill] sm:$0xff] }
 0xd06   :  { %v5442_v37 = vadd.f32 %v5426_v29, %v12843_v24 }
 0xd07   :  { %12832 = vst [vmem:[#allocation42_spill] sm:$0xff] %v11850_v39 }
 0xd08   :  { %v6362_v53 = vpop.f32.mrf.mxu2 }
 0xd09   :  { %v6392_v25 = vmul.f32 %v6362_v53, %v12838_v63  ;;  %v6107_v56 = vpop.f32.mrf.mxu0 }
 0xd0a   :  { %v6236_v43 = vpop.f32.mrf.mxu1  ;;  %v6135_v57 = vmul.f32 %v6107_v56, %v12840_v8  ;;  %v12847_v56 = vld [vmem:[#allocation79_spill] sm:$0xff] }
 0xd0b   :  { %v6264_v12 = vmul.f32 %v6236_v43, %v12841_v31  ;;  %v6408_v59 = vadd.f32 %v6392_v25, %v6279_v9  ;;  %v5170_v18 = vmul.f32 %v12847_v56, %v12846_v51  ;;  %v5299_v43 = vmul.f32 %v12849_v19, %v12848_v46  ;;  %v12850_v9 = vld [vmem:[#allocation10_spill] sm:$0xff]  ;;  %v12855_v19 = vld [vmem:[#allocation16_spill] sm:$0xff]  ;;  %v12859_v31 = vld [vmem:[#allocation89_spill] sm:$0xff] }
 0xd0c   :  { %7715 = vmatmul.msk.bf16.gmra.mxu0 %vm4519_vm9, %v6566_v6  ;;  %v12852_v6 = vld [vmem:[#allocation94_spill] sm:$0xff] }
 0xd0d   :  { %v6280_v15 = vadd.f32 %v6264_v12, %v6135_v57  ;;  %7723 = vmatmul.msk.bf16.gmra.mxu1 %vm4519_vm9, %v6679_v48  ;;  %v11867_v30 = vadd.f32 %v6408_v59, %v5442_v37  ;;  %v6557_v50 = vmul.f32 %v12789_v60, %v12852_v6  ;;  %v12853_v48 = vld [vmem:[#allocation92_spill] sm:$0xff]  ;;  %v5315_v37 = vadd.f32 %v5299_v43, %v5170_v18  ;;  %v12854_v59 = vld [vmem:[#allocation90_spill] sm:$0xff] }
 0xd0e   :  { %v6670_v24 = vmul.f32 %v12853_v48, %v12789_v60 }
 0xd0f   :  { %12844 = vst [vmem:[#allocation33_spill] sm:$0xff] %v11867_v30 }
 0xd10   :  { %v6365_v16 = vpop.f32.mrf.mxu2  ;;  %v6680_v60 = vpack.c.bf16 %v6670_v24, %v12859_v31 }
 0xd11   :  { %v6393_v1 = vmul.f32 %v6365_v16, %v12845_v17  ;;  %v6109_v45 = vpop.f32.mrf.mxu0  ;;  %v6556_v16 = vmul.f32 %v12787_v52, %v12854_v59 }
 0xd12   :  { %v6238_v53 = vpop.f32.mrf.mxu1  ;;  %v6136_v57 = vmul.f32 %v6109_v45, %v12846_v51 }
 0xd13   :  { %v6409_v29 = vadd.f32 %v6393_v1, %v6280_v15  ;;  %v6265_v12 = vmul.f32 %v6238_v53, %v12848_v46  ;;  %v12856_v15 = vld [vmem:[#allocation38_spill] sm:$0xff]  ;;  %v12857_v53 = vld [vmem:[#allocation9_spill] sm:$0xff]  ;;  %v6567_v17 = vpack.c.bf16 %v6557_v50, %v6556_v16 }
 0xd14   :  { %v5428_v1 = vmul.f32 %v12856_v15, %v12855_v19  ;;  %v12864_v50 = vld [vmem:[#allocation86_spill] sm:$0xff]  ;;  %v12865_v16 = vld [vmem:[#allocation117_spill] sm:$0xff] }
 0xd15   :  { %v11875_v25 = vadd.f32 %v6409_v29, %v12850_v9  ;;  %v6281_v29 = vadd.f32 %v6265_v12, %v6136_v57  ;;  %v12861_v12 = vld [vmem:[#allocation28_spill] sm:$0xff]  ;;  %v5301_v31 = vmul.f32 %v12865_v16, %v12864_v50 }
 0xd16   :  { %v5444_v18 = vadd.f32 %v5428_v1, %v5315_v37  ;;  %v12866_v37 = vld [vmem:[#allocation24_spill] sm:$0xff] }
 0xd17   :  { %12851 = vst [vmem:[#allocation57_spill] sm:$0xff] %v11875_v25  ;;  %v12858_v25 = vld [vmem:[#allocation81_spill] sm:$0xff]  ;;  %v12872_v16 = vld [vmem:[#allocation52_spill] sm:$0xff] }
 0xd18   :  { %v6367_v56 = vpop.f32.mrf.mxu2 }
 0xd19   :  { %v6394_v9 = vmul.f32 %v6367_v56, %v12855_v19  ;;  %v6112_v45 = vpop.f32.mrf.mxu0 }
 0xd1a   :  { %v6241_v51 = vpop.f32.mrf.mxu1  ;;  %v6137_v46 = vmul.f32 %v6112_v45, %v12857_v53  ;;  %v12862_v45 = vld [vmem:[#allocation14_spill] sm:$0xff]  ;;  %v12863_v53 = vld [vmem:[#allocation87_spill] sm:$0xff] }
 0xd1b   :  { %v6266_v6 = vmul.f32 %v6241_v51, %v12858_v25  ;;  %v6410_v43 = vadd.f32 %v6394_v9, %v6281_v29  ;;  %v5172_v51 = vmul.f32 %v12863_v53, %v12862_v45  ;;  %v12868_v29 = vld [vmem:[#allocation101_spill] sm:$0xff] }
 0xd1c   :  { %7716 = vmatmul.msk.bf16.gmra.mxu0 %vm4519_vm9, %v6567_v17  ;;  %v6559_v9 = vmul.f32 %v12792_v7, %v12868_v29 }
 0xd1d   :  { %v6282_v48 = vadd.f32 %v6266_v6, %v6137_v46  ;;  %7724 = vmatmul.msk.bf16.gmra.mxu1 %vm4519_vm9, %v6680_v60  ;;  %v11893_v52 = vadd.f32 %v6410_v43, %v5444_v18  ;;  %v12869_v6 = vld [vmem:[#allocation103_spill] sm:$0xff]  ;;  %v5317_v18 = vadd.f32 %v5301_v31, %v5172_v51  ;;  %v12875_v51 = vld [vmem:[#allocation98_spill] sm:$0xff] }
 0xd1e   :  { %v6672_v60 = vmul.f32 %v12869_v6, %v12792_v7  ;;  %v12870_v43 = vld [vmem:[#allocation99_spill] sm:$0xff] }
 0xd1f   :  { %12860 = vst [vmem:[#allocation31_spill] sm:$0xff] %v11893_v52  ;;  %v6558_v53 = vmul.f32 %v12790_v0, %v12870_v43 }
 0xd20   :  { %v6370_v57 = vpop.f32.mrf.mxu2  ;;  %v6681_v31 = vpack.c.bf16 %v6672_v60, %v12875_v51  ;;  %v12881_v60 = vld [vmem:[#allocation119_spill] sm:$0xff] }
 0xd21   :  { %v6395_v59 = vmul.f32 %v6370_v57, %v12861_v12  ;;  %v6114_v56 = vpop.f32.mrf.mxu0  ;;  %v11911_v57 = vpop.f32.mrf.mxu3  ;;  %v6568_v7 = vpack.c.bf16 %v6559_v9, %v6558_v53  ;;  %v12880_v53 = vld [vmem:[#allocation95_spill] sm:$0xff] }
 0xd22   :  { %v6243_v15 = vpop.f32.mrf.mxu1  ;;  %v6138_v17 = vmul.f32 %v6114_v56, %v12862_v45  ;;  %v12873_v45 = vld [vmem:[#allocation66_spill] sm:$0xff] }
 0xd23   :  { %v6411_v24 = vadd.f32 %v6395_v59, %v6282_v48  ;;  %v6267_v1 = vmul.f32 %v6243_v15, %v12864_v50  ;;  %v12871_v59 = vld [vmem:[#allocation41_spill] sm:$0xff] }
 0xd25   :  { %v11901_v46 = vadd.f32 %v6411_v24, %v12866_v37  ;;  %v5430_v24 = vmul.f32 %v12872_v16, %v12871_v59  ;;  %v6283_v37 = vadd.f32 %v6267_v1, %v6138_v17  ;;  %v12877_v1 = vld [vmem:[#allocation17_spill] sm:$0xff] }
 0xd27   :  { %12867 = vst [vmem:[#allocation55_spill] sm:$0xff] %v11901_v46  ;;  %v12874_v46 = vld [vmem:[#allocation91_spill] sm:$0xff]  ;;  %v5446_v6 = vadd.f32 %v5430_v24, %v5317_v18  ;;  %v5303_v18 = vmul.f32 %v12881_v60, %v12880_v53 }
 0xd28   :  { %v6372_v48 = vpop.f32.mrf.mxu2  ;;  %v12887_v60 = vld [vmem:[#allocation51_spill] sm:$0xff] }
 0xd29   :  { %v6396_v56 = vmul.f32 %v6372_v48, %v12871_v59  ;;  %v6117_v15 = vpop.f32.mrf.mxu0 }
 0xd2a   :  { %v6246_v50 = vpop.f32.mrf.mxu1  ;;  %v6139_v29 = vmul.f32 %v6117_v15, %v12873_v45  ;;  %v6492_v15 = vpop.f32.mrf.mxu3  ;;  %v12878_v45 = vld [vmem:[#allocation68_spill] sm:$0xff] }
 0xd2b   :  { %v6268_v12 = vmul.f32 %v6246_v50, %v12874_v46  ;;  %v6412_v0 = vadd.f32 %v6396_v56, %v6283_v37  ;;  %v12879_v50 = vld [vmem:[#allocation118_spill] sm:$0xff] }
 0xd2c   :  { %7717 = vmatmul.msk.bf16.gmra.mxu0 %vm4519_vm9, %v6568_v7  ;;  %v5174_v9 = vmul.f32 %v12879_v50, %v12878_v45  ;;  %v12884_v7 = vld [vmem:[#allocation106_spill] sm:$0xff] }
 0xd2d   :  { %v6284_v43 = vadd.f32 %v6268_v12, %v6139_v29  ;;  %7725 = vmatmul.msk.bf16.gmra.mxu1 %vm4519_vm9, %v6681_v31  ;;  %v11921_v16 = vadd.f32 %v6412_v0, %v5446_v6  ;;  %v12882_v12 = vld [vmem:[#allocation34_spill] sm:$0xff]  ;;  %v6561_v51 = vmul.f32 %v12794_v26, %v12884_v7  ;;  %v12885_v31 = vld [vmem:[#allocation111_spill] sm:$0xff] }
 0xd2e   :  { %v6674_v6 = vmul.f32 %v12885_v31, %v12794_v26  ;;  %v5319_v0 = vadd.f32 %v5303_v18, %v5174_v9 }
 0xd2f   :  { %12876 = vst [vmem:[#allocation72_spill] sm:$0xff] %v11921_v16  ;;  %v12891_v16 = vld [vmem:[#allocation109_spill] sm:$0xff] }
 0xd30   :  { %v6375_v17 = vpop.f32.mrf.mxu2  ;;  %v6682_v26 = vpack.c.bf16 %v6674_v6, %v12891_v16  ;;  %v12897_v16 = vld [vmem:[#allocation19_spill] sm:$0xff] }
 0xd31   :  { %v6397_v48 = vmul.f32 %v6375_v17, %v12877_v1  ;;  %v6119_v59 = vpop.f32.mrf.mxu0  ;;  %v12886_v17 = vld [vmem:[#allocation104_spill] sm:$0xff] }
 0xd32   :  { %v6248_v25 = vpop.f32.mrf.mxu1  ;;  %v6140_v56 = vmul.f32 %v6119_v59, %v12878_v45  ;;  %v6560_v50 = vmul.f32 %v12793_v3, %v12886_v17  ;;  %v6495_v31 = vpop.f32.mrf.mxu3 }
 0xd33   :  { %v6413_v24 = vadd.f32 %v6397_v48, %v6284_v43  ;;  %v6269_v29 = vmul.f32 %v6248_v25, %v12880_v53  ;;  %v12888_v43 = vld [vmem:[#allocation96_spill] sm:$0xff]  ;;  %v12889_v25 = vld [vmem:[#allocation69_spill] sm:$0xff] }
 0xd34   :  { %v5432_v48 = vmul.f32 %v12888_v43, %v12887_v60  ;;  %v6569_v46 = vpack.c.bf16 %v6561_v51, %v6560_v50  ;;  %v12896_v50 = vld [vmem:[#allocation102_spill] sm:$0xff] }
 0xd35   :  { %v11929_v37 = vadd.f32 %v6413_v24, %v12882_v12  ;;  %v6285_v24 = vadd.f32 %v6269_v29, %v6140_v56  ;;  %v12893_v29 = vld [vmem:[#allocation62_spill] sm:$0xff]  ;;  %v5305_v6 = vmul.f32 %v12897_v16, %v12896_v50 }
 0xd36   :  { %v5448_v9 = vadd.f32 %v5432_v48, %v5319_v0  ;;  %v12898_v48 = vld [vmem:[#allocation108_spill] sm:$0xff] }
 0xd37   :  { %12883 = vst [vmem:[#allocation61_spill] sm:$0xff] %v11929_v37  ;;  %v12890_v37 = vld [vmem:[#allocation100_spill] sm:$0xff] }
 0xd38   :  { %v6377_v1 = vpop.f32.mrf.mxu2 }
 0xd39   :  { %v6398_v12 = vmul.f32 %v6377_v1, %v12887_v60  ;;  %v6122_v59 = vpop.f32.mrf.mxu0 }
 0xd3a   :  { %v6251_v45 = vpop.f32.mrf.mxu1  ;;  %v6141_v53 = vmul.f32 %v6122_v59, %v12889_v25  ;;  %v12894_v25 = vld [vmem:[#allocation27_spill] sm:$0xff] }
 0xd3b   :  { %v6270_v7 = vmul.f32 %v6251_v45, %v12890_v37  ;;  %v6414_v18 = vadd.f32 %v6398_v12, %v6285_v24  ;;  %v12895_v45 = vld [vmem:[#allocation53_spill] sm:$0xff]  ;;  %v6497_v12 = vpop.f32.mrf.mxu3 }
 0xd3c   :  { %7718 = vmatmul.msk.bf16.gmra.mxu0 %vm4519_vm9, %v6569_v46  ;;  %v5176_v51 = vmul.f32 %v12895_v45, %v12894_v25 }
 0xd3d   :  { %v6286_v3 = vadd.f32 %v6270_v7, %v6141_v53  ;;  %7726 = vmatmul.msk.bf16.gmra.mxu1 %vm4519_vm9, %v6682_v26  ;;  %v11947_v56 = vadd.f32 %v6414_v18, %v5448_v9  ;;  %v12900_v9 = vld [vmem:[#allocation113_spill] sm:$0xff] }
 0xd3e   :  { %v5321_v7 = vadd.f32 %v5305_v6, %v5176_v51  ;;  %v5434_v18 = vmul.f32 %v11764_v4, %v12900_v9 }
 0xd3f   :  { %12892 = vst [vmem:[#allocation59_spill] sm:$0xff] %v11947_v56 }
 0xd40   :  { %v6380_v1 = vpop.f32.mrf.mxu2  ;;  %v5450_v16 = vadd.f32 %v5434_v18, %v5321_v7 }
 0xd41   :  { %v6399_v17 = vmul.f32 %v6380_v1, %v12893_v29  ;;  %v6124_v43 = vpop.f32.mrf.mxu0 }
 0xd42   :  { %v6253_v59 = vpop.f32.mrf.mxu1  ;;  %v6142_v46 = vmul.f32 %v6124_v43, %v12894_v25 }
 0xd43   :  { %v6415_v0 = vadd.f32 %v6399_v17, %v6286_v3  ;;  %v6271_v24 = vmul.f32 %v6253_v59, %v12896_v50  ;;  %v6530_v3 = vmul.f32 0.17677669, %v11911_v57  ;;  %v11965_v51 = vpop.f32.mrf.mxu3 }
 0xd45   :  { %v11955_v53 = vadd.f32 %v6415_v0, %v12898_v48  ;;  %v6287_v1 = vadd.f32 %v6271_v24, %v6142_v46 }
 0xd47   :  { %12899 = vst [vmem:[#allocation63_spill] sm:$0xff] %v11955_v53  ;;  %v6531_v53 = vmul.f32 0.17677669, %v6492_v15 }
 0xd48   :  { %v6382_v26 = vpop.f32.mrf.mxu2 }
 0xd49   :  { %v6400_v45 = vmul.f32 %v6382_v26, %v12900_v9  ;;  %v6603_v29 = vpop.f32.mrf.mxu0 }
 0xd4a   :  { %v6716_v37 = vpop.f32.mrf.mxu1  ;;  %v6643_v17 = vmul.f32 0.17677669, %v6603_v29 }
 0xd4b   :  { %v6416_v0 = vadd.f32 %v6400_v45, %v6287_v1  ;;  %v6756_v43 = vmul.f32 0.17677669, %v6716_v37 }
 0xd4c   :  { %v6772_v48 = vmax.f32 %v6530_v3, %v6643_v17 }
 0xd4d   :  { %v11963_v25 = vadd.f32 %v6416_v0, %v5450_v16  ;;  %v6532_v0 = vmul.f32 0.17677669, %v6495_v31 }
 0xd4e   :  { %v6788_v59 = vmax.f32 %v6772_v48, %v6756_v43  ;;  %v6502_v48 = vpop.f32.mrf.mxu3 }
 0xd4f   :  { %12901 = vst [vmem:[#allocation64_spill] sm:$0xff] %v11963_v25  ;;  %v6533_v25 = vmul.f32 0.17677669, %v6497_v12 }
 0xd50   :  { %v6804_v6 = vsub.f32 %v6530_v3, %v6788_v59  ;;  %v6852_v50 = vsub.f32 %v6643_v17, %v6788_v59  ;;  %v6900_v4 = vsub.f32 %v6756_v43, %v6788_v59 }
 0xd51   :  { %v6605_v46 = vpop.f32.mrf.mxu0 }
 0xd52   :  { %v6718_v24 = vpop.f32.mrf.mxu1  ;;  %v6820_v26 = vmul.f32 1.442695, %v6804_v6  ;;  %v6868_v9 = vmul.f32 1.442695, %v6852_v50  ;;  %v6644_v56 = vmul.f32 0.17677669, %v6605_v46 }
 0xd53   :  { %v6916_v57 = vmul.f32 1.442695, %v6900_v4  ;;  %v6757_v7 = vmul.f32 0.17677669, %v6718_v24 }
 0xd54   :  { %8371 = vpow2.f32 %v6820_v26  ;;  %v6773_v29 = vmax.f32 %v6531_v53, %v6644_v56 }
 0xd55   :  { %8373 = vpow2.f32 %v6868_v9 }
 0xd56   :  { %v6789_v37 = vmax.f32 %v6773_v29, %v6757_v7  ;;  %8375 = vpow2.f32 %v6916_v57  ;;  %v11967_v60 = vpop.f32.mrf.mxu3 }
 0xd58   :  { %v6805_v18 = vsub.f32 %v6531_v53, %v6789_v37  ;;  %v6853_v1 = vsub.f32 %v6644_v56, %v6789_v37  ;;  %v6901_v45 = vsub.f32 %v6757_v7, %v6789_v37 }
 0xd59   :  { %v6608_v16 = vpop.f32.mrf.mxu0 }
 0xd5a   :  { %v6721_v3 = vpop.f32.mrf.mxu1  ;;  %v8372_v17 = vpop.eup %8371  ;;  %v6645_v43 = vmul.f32 0.17677669, %v6608_v16  ;;  %v6822_v50 = vmul.f32 1.442695, %v6805_v18  ;;  %v6870_v15 = vmul.f32 1.442695, %v6853_v1 }
 0xd5b   :  { %v8374_v59 = vpop.eup %8373  ;;  %v6918_v46 = vmul.f32 1.442695, %v6901_v45  ;;  %v6758_v4 = vmul.f32 0.17677669, %v6721_v3 }
 0xd5c   :  { %v6948_v6 = vadd.f32 %v8374_v59, %v8372_v17  ;;  %v6774_v9 = vmax.f32 %v6532_v0, %v6645_v43  ;;  %8377 = vpow2.f32 %v6822_v50  ;;  %v8376_v26 = vpop.eup %8375 }
 0xd5d   :  { %8379 = vpow2.f32 %v6870_v15 }
 0xd5e   :  { %v6790_v24 = vmax.f32 %v6774_v9, %v6758_v4  ;;  %v6964_v53 = vadd.f32 %v8376_v26, %v6948_v6  ;;  %8381 = vpow2.f32 %v6918_v46 }
 0xd60   :  { %v6806_v56 = vsub.f32 %v6532_v0, %v6790_v24  ;;  %v6854_v57 = vsub.f32 %v6645_v43, %v6790_v24  ;;  %8383 = vrcp.f32 %v6964_v53  ;;  %v6902_v45 = vsub.f32 %v6758_v4, %v6790_v24 }
 0xd61   :  { %v6610_v29 = vpop.f32.mrf.mxu0  ;;  %v6534_v4 = vmul.f32 0.17677669, %v11965_v51 }
 0xd62   :  { %v6723_v7 = vpop.f32.mrf.mxu1  ;;  %v6824_v31 = vmul.f32 1.442695, %v6806_v56  ;;  %v6872_v37 = vmul.f32 1.442695, %v6854_v57  ;;  %v8378_v16 = vpop.eup %8377  ;;  %v6646_v18 = vmul.f32 0.17677669, %v6610_v29 }
 0xd63   :  { %v8380_v1 = vpop.eup %8379  ;;  %v6759_v6 = vmul.f32 0.17677669, %v6723_v7  ;;  %v6920_v43 = vmul.f32 1.442695, %v6902_v45 }
 0xd64   :  { %v6949_v3 = vadd.f32 %v8380_v1, %v8378_v16  ;;  %8385 = vpow2.f32 %v6824_v31  ;;  %v6775_v50 = vmax.f32 %v6533_v25, %v6646_v18  ;;  %v8382_v15 = vpop.eup %8381 }
 0xd65   :  { %8387 = vpow2.f32 %v6872_v37 }
 0xd66   :  { %v6965_v0 = vadd.f32 %v8382_v15, %v6949_v3  ;;  %v6791_v46 = vmax.f32 %v6775_v50, %v6759_v6  ;;  %v8384_v57 = vpop.eup %8383  ;;  %v6535_v3 = vmul.f32 0.17677669, %v6502_v48  ;;  %v11974_v50 = vpop.f32.mrf.mxu3 }
 0xd68   :  { %8389 = vrcp.f32 %v6965_v0  ;;  %v6807_v12 = vsub.f32 %v6533_v25, %v6791_v46  ;;  %v6855_v29 = vsub.f32 %v6646_v18, %v6791_v46  ;;  %v6903_v52 = vsub.f32 %v6759_v6, %v6791_v46 }
 0xd69   :  { %v6613_v9 = vpop.f32.mrf.mxu0  ;;  %8391 = vpow2.f32 %v6920_v43  ;;  %v6996_v0 = vmul.f32 %v8384_v57, %v8372_v17  ;;  %v7125_v18 = vmul.f32 %v8384_v57, %v8374_v59  ;;  %v7254_v46 = vmul.f32 %v8384_v57, %v8376_v26 }
 0xd6a   :  { %v6726_v56 = vpop.f32.mrf.mxu1  ;;  %v6647_v19 = vmul.f32 0.17677669, %v6613_v9  ;;  %v11969_v8 = vpop.eup %8385  ;;  %v6826_v53 = vmul.f32 1.442695, %v6807_v12  ;;  %v6874_v7 = vmul.f32 1.442695, %v6855_v29 }
 0xd6b   :  { %v11972_v24 = vpop.eup %8387  ;;  %v6922_v31 = vmul.f32 1.442695, %v6903_v52  ;;  %v6760_v45 = vmul.f32 0.17677669, %v6726_v56 }
 0xd6c   :  { %v6776_v37 = vmax.f32 %v6534_v4, %v6647_v19  ;;  %8393 = vpow2.f32 %v6826_v53  ;;  %v6950_v6 = vadd.f32 %v11972_v24, %v11969_v8 }
 0xd6d   :  { %8395 = vpow2.f32 %v6874_v7 }
 0xd6e   :  { %v8390_v25 = vpop.eup %8389  ;;  %v6792_v51 = vmax.f32 %v6776_v37, %v6760_v45  ;;  %8397 = vpow2.f32 %v6922_v31 }
 0xd6f   :  { %v6997_v9 = vmul.f32 %v8390_v25, %v8378_v16  ;;  %v7126_v43 = vmul.f32 %v8390_v25, %v8380_v1  ;;  %v7255_v12 = vmul.f32 %v8390_v25, %v8382_v15  ;;  %v8392_v63 = vpop.eup %8391 }
 0xd70   :  { %v6808_v52 = vsub.f32 %v6534_v4, %v6792_v51  ;;  %v6856_v29 = vsub.f32 %v6647_v19, %v6792_v51  ;;  %v6904_v56 = vsub.f32 %v6760_v45, %v6792_v51  ;;  %v6966_v49 = vadd.f32 %v8392_v63, %v6950_v6  ;;  %v11981_v4 = vpop.f32.mrf.mxu3 }
 0xd71   :  { %v6615_v48 = vpop.f32.mrf.mxu0  ;;  %v7012_v17 = vpack.c.bf16 %v6997_v9, %v6996_v0  ;;  %v7141_v53 = vpack.c.bf16 %v7126_v43, %v7125_v18  ;;  %v7270_v61 = vpack.c.bf16 %v7255_v12, %v7254_v46 }
 0xd72   :  { %v6728_v30 = vpop.f32.mrf.mxu1  ;;  %v6648_v59 = vmul.f32 0.17677669, %v6615_v48  ;;  %v6828_v39 = vmul.f32 1.442695, %v6808_v52  ;;  %v6876_v23 = vmul.f32 1.442695, %v6856_v29  ;;  %v8394_v7 = vpop.eup %8393 }
 0xd73   :  { %v6761_v26 = vmul.f32 0.17677669, %v6728_v30  ;;  %7727 = vmatmul.msk.bf16.vlgmr.msrb.gmra.mxu2 %vm5083_vm10, %v7012_v17  ;;  %7735 = vmatmul.msk.bf16.vlgmr.msrb.gmra.mxu3 %vm5083_vm10, %v7141_v53  ;;  %v8396_v16 = vpop.eup %8395  ;;  %v6924_v19 = vmul.f32 1.442695, %v6904_v56  ;;  %v6537_v48 = vmul.f32 0.17677669, %v11974_v50 }
 0xd74   :  { %v6777_v37 = vmax.f32 %v6535_v3, %v6648_v59  ;;  %8399 = vpow2.f32 %v6828_v39  ;;  %7743 = vmatmul.msk.bf16.vlgmr.msrb.gmra.mxu0 %vm5083_vm10, %v7270_v61  ;;  %v6951_v1 = vadd.f32 %v8396_v16, %v8394_v7  ;;  %v8398_v57 = vpop.eup %8397  ;;  %v6536_v61 = vmul.f32 0.17677669, %v11967_v60 }
 0xd75   :  { %8401 = vpow2.f32 %v6876_v23 }
 0xd76   :  { %v6793_v15 = vmax.f32 %v6777_v37, %v6761_v26  ;;  %8403 = vrcp.f32 %v6966_v49  ;;  %v6967_v31 = vadd.f32 %v8398_v57, %v6951_v1 }
 0xd77   :  { %8405 = vpow2.f32 %v6924_v19 }
 0xd78   :  { %v6809_v45 = vsub.f32 %v6535_v3, %v6793_v15  ;;  %v6857_v0 = vsub.f32 %v6648_v59, %v6793_v15  ;;  %v6905_v30 = vsub.f32 %v6761_v26, %v6793_v15  ;;  %8407 = vrcp.f32 %v6967_v31  ;;  %v6512_v31 = vpop.f32.mrf.mxu3 }
 0xd79   :  { %v6618_v25 = vpop.f32.mrf.mxu0 }
 0xd7a   :  { %v6731_v18 = vpop.f32.mrf.mxu1  ;;  %v6830_v6 = vmul.f32 1.442695, %v6809_v45  ;;  %v6878_v39 = vmul.f32 1.442695, %v6857_v0  ;;  %v11983_v51 = vpop.eup %8399  ;;  %v6926_v23 = vmul.f32 1.442695, %v6905_v30 }
 0xd7b   :  { %v6649_v46 = vmul.f32 0.17677669, %v6618_v25  ;;  %v11986_v9 = vpop.eup %8401  ;;  %v6762_v12 = vmul.f32 0.17677669, %v6731_v18 }
 0xd7c   :  { %8409 = vpow2.f32 %v6830_v6  ;;  %v8404_v49 = vpop.eup %8403  ;;  %v6952_v3 = vadd.f32 %v11986_v9, %v11983_v51 }
 0xd7d   :  { %8411 = vpow2.f32 %v6878_v39  ;;  %v6778_v43 = vmax.f32 %v6536_v61, %v6649_v46  ;;  %v11990_v52 = vpop.eup %8405  ;;  %v6998_v60 = vmul.f32 %v8404_v49, %v11969_v8  ;;  %v7127_v17 = vmul.f32 %v8404_v49, %v11972_v24 }
 0xd7e   :  { %8413 = vpow2.f32 %v6926_v23  ;;  %v8408_v56 = vpop.eup %8407  ;;  %v6968_v53 = vadd.f32 %v11990_v52, %v6952_v3  ;;  %v7256_v1 = vmul.f32 %v8404_v49, %v8392_v63 }
 0xd7f   :  { %v6794_v29 = vmax.f32 %v6778_v43, %v6762_v12  ;;  %v6999_v30 = vmul.f32 %v8408_v56, %v8394_v7  ;;  %v7128_v25 = vmul.f32 %v8408_v56, %v8396_v16  ;;  %v7257_v8 = vmul.f32 %v8408_v56, %v8398_v57 }
 0xd81   :  { %v6810_v59 = vsub.f32 %v6536_v61, %v6794_v29  ;;  %v6858_v37 = vsub.f32 %v6649_v46, %v6794_v29  ;;  %v6620_v26 = vpop.f32.mrf.mxu0  ;;  %v6906_v45 = vsub.f32 %v6762_v12, %v6794_v29  ;;  %v7013_v43 = vpack.c.bf16 %v6999_v30, %v6998_v60 }
 0xd82   :  { %v6733_v19 = vpop.f32.mrf.mxu1  ;;  %v8410_v15 = vpop.eup %8409  ;;  %v6650_v0 = vmul.f32 0.17677669, %v6620_v26  ;;  %v7142_v3 = vpack.c.bf16 %v7128_v25, %v7127_v17  ;;  %v7271_v46 = vpack.c.bf16 %v7257_v8, %v7256_v1 }
 0xd83   :  { %v8412_v18 = vpop.eup %8411  ;;  %v6832_v6 = vmul.f32 1.442695, %v6810_v59  ;;  %v6880_v50 = vmul.f32 1.442695, %v6858_v37  ;;  %v6763_v39 = vmul.f32 0.17677669, %v6733_v19  ;;  %7728 = vmatmul.msk.bf16.gmra.mxu2 %vm5083_vm10, %v7013_v43 }
 0xd84   :  { %v6953_v23 = vadd.f32 %v8412_v18, %v8410_v15  ;;  %v6779_v24 = vmax.f32 %v6537_v48, %v6650_v0  ;;  %v8414_v61 = vpop.eup %8413  ;;  %7736 = vmatmul.msk.bf16.gmra.mxu3 %vm5083_vm10, %v7142_v3  ;;  %v6928_v7 = vmul.f32 1.442695, %v6906_v45  ;;  %7744 = vmatmul.msk.bf16.gmra.mxu0 %vm5083_vm10, %v7271_v46  ;;  %v6538_v59 = vmul.f32 0.17677669, %v11981_v4 }
 0xd85   :  { %8415 = vpow2.f32 %v6832_v6 }
 0xd86   :  { %v6969_v62 = vadd.f32 %v8414_v61, %v6953_v23  ;;  %8417 = vpow2.f32 %v6880_v50  ;;  %v6795_v63 = vmax.f32 %v6779_v24, %v6763_v39  ;;  %v6539_v23 = vmul.f32 0.17677669, %v6512_v31 }
 0xd87   :  { %8419 = vrcp.f32 %v6968_v53  ;;  %v6515_v53 = vpop.f32.mrf.mxu3 }
 0xd88   :  { %8421 = vrcp.f32 %v6969_v62  ;;  %v6811_v16 = vsub.f32 %v6537_v48, %v6795_v63  ;;  %v6859_v57 = vsub.f32 %v6650_v0, %v6795_v63  ;;  %v6907_v49 = vsub.f32 %v6763_v39, %v6795_v63 }
 0xd89   :  { %v6623_v12 = vpop.f32.mrf.mxu0  ;;  %8423 = vpow2.f32 %v6928_v7 }
 0xd8a   :  { %v6736_v29 = vpop.f32.mrf.mxu1  ;;  %v6834_v56 = vmul.f32 1.442695, %v6811_v16  ;;  %v6882_v60 = vmul.f32 1.442695, %v6859_v57  ;;  %v6930_v37 = vmul.f32 1.442695, %v6907_v49 }
 0xd8b   :  { %v11999_v17 = vpop.eup %8415  ;;  %v6651_v26 = vmul.f32 0.17677669, %v6623_v12  ;;  %v6764_v48 = vmul.f32 0.17677669, %v6736_v29 }
 0xd8c   :  { %v12002_v19 = vpop.eup %8417  ;;  %8425 = vpow2.f32 %v6834_v56 }
 0xd8d   :  { %v8420_v1 = vpop.eup %8419  ;;  %8427 = vpow2.f32 %v6882_v60  ;;  %v6780_v62 = vmax.f32 %v6538_v59, %v6651_v26  ;;  %v6954_v0 = vadd.f32 %v12002_v19, %v11999_v17 }
 0xd8e   :  { %v8422_v45 = vpop.eup %8421  ;;  %8429 = vpow2.f32 %v6930_v37  ;;  %v7000_v4 = vmul.f32 %v8420_v1, %v11983_v51  ;;  %v7129_v50 = vmul.f32 %v8420_v1, %v11986_v9  ;;  %v7258_v63 = vmul.f32 %v8420_v1, %v11990_v52 }
 0xd8f   :  { %v6796_v30 = vmax.f32 %v6780_v62, %v6764_v48  ;;  %v7001_v25 = vmul.f32 %v8422_v45, %v8410_v15  ;;  %v7130_v6 = vmul.f32 %v8422_v45, %v8412_v18  ;;  %v7259_v39 = vmul.f32 %v8422_v45, %v8414_v61  ;;  %v12008_v8 = vpop.eup %8423 }
 0xd90   :  { %v6970_v16 = vadd.f32 %v12008_v8, %v6954_v0 }
 0xd91   :  { %v6812_v24 = vsub.f32 %v6538_v59, %v6796_v30  ;;  %v6860_v43 = vsub.f32 %v6651_v26, %v6796_v30  ;;  %v6625_v3 = vpop.f32.mrf.mxu0  ;;  %v7014_v15 = vpack.c.bf16 %v7001_v25, %v7000_v4  ;;  %v7143_v18 = vpack.c.bf16 %v7130_v6, %v7129_v50  ;;  %v6517_v59 = vpop.f32.mrf.mxu3 }
 0xd92   :  { %v6738_v46 = vpop.f32.mrf.mxu1  ;;  %v8426_v7 = vpop.eup %8425  ;;  %v6652_v57 = vmul.f32 0.17677669, %v6625_v3  ;;  %v6908_v9 = vsub.f32 %v6764_v48, %v6796_v30  ;;  %v7272_v61 = vpack.c.bf16 %v7259_v39, %v7258_v63  ;;  %v6540_v4 = vmul.f32 0.17677669, %v6515_v53 }
 0xd93   :  { %v8428_v49 = vpop.eup %8427  ;;  %v6836_v51 = vmul.f32 1.442695, %v6812_v24  ;;  %v6884_v12 = vmul.f32 1.442695, %v6860_v43  ;;  %v6765_v31 = vmul.f32 0.17677669, %v6738_v46  ;;  %7729 = vmatmul.msk.bf16.gmra.mxu2 %vm5083_vm10, %v7014_v15 }
 0xd94   :  { %v6955_v29 = vadd.f32 %v8428_v49, %v8426_v7  ;;  %v6781_v56 = vmax.f32 %v6539_v23, %v6652_v57  ;;  %v8430_v60 = vpop.eup %8429  ;;  %7737 = vmatmul.msk.bf16.gmra.mxu3 %vm5083_vm10, %v7143_v18  ;;  %v6932_v26 = vmul.f32 1.442695, %v6908_v9  ;;  %7745 = vmatmul.msk.bf16.gmra.mxu0 %vm5083_vm10, %v7272_v61  ;;  %v6541_v61 = vmul.f32 0.17677669, %v6517_v59 }
 0xd95   :  { %8431 = vpow2.f32 %v6836_v51 }
 0xd96   :  { %v6971_v37 = vadd.f32 %v8430_v60, %v6955_v29  ;;  %8433 = vpow2.f32 %v6884_v12  ;;  %v6797_v52 = vmax.f32 %v6781_v56, %v6765_v31 }
 0xd97   :  { %8435 = vrcp.f32 %v6970_v16 }
 0xd98   :  { %8437 = vrcp.f32 %v6971_v37  ;;  %v6813_v1 = vsub.f32 %v6539_v23, %v6797_v52  ;;  %v6861_v62 = vsub.f32 %v6652_v57, %v6797_v52  ;;  %v6909_v48 = vsub.f32 %v6765_v31, %v6797_v52 }
 0xd99   :  { %v6628_v45 = vpop.f32.mrf.mxu0  ;;  %8439 = vpow2.f32 %v6932_v26  ;;  %v6520_v18 = vpop.f32.mrf.mxu3 }
 0xd9a   :  { %v6741_v0 = vpop.f32.mrf.mxu1  ;;  %v6838_v30 = vmul.f32 1.442695, %v6813_v1  ;;  %v6886_v25 = vmul.f32 1.442695, %v6861_v62  ;;  %v6934_v50 = vmul.f32 1.442695, %v6909_v48 }
 0xd9b   :  { %v12015_v6 = vpop.eup %8431  ;;  %v6653_v39 = vmul.f32 0.17677669, %v6628_v45  ;;  %v6766_v46 = vmul.f32 0.17677669, %v6741_v0 }
 0xd9c   :  { %v12017_v24 = vpop.eup %8433  ;;  %8441 = vpow2.f32 %v6838_v30 }
 0xd9d   :  { %v8436_v43 = vpop.eup %8435  ;;  %8443 = vpow2.f32 %v6886_v25  ;;  %v6782_v3 = vmax.f32 %v6540_v4, %v6653_v39  ;;  %v6956_v63 = vadd.f32 %v12017_v24, %v12015_v6 }
 0xd9e   :  { %v8438_v23 = vpop.eup %8437  ;;  %8445 = vpow2.f32 %v6934_v50  ;;  %v7002_v53 = vmul.f32 %v8436_v43, %v11999_v17  ;;  %v7131_v51 = vmul.f32 %v8436_v43, %v12002_v19  ;;  %v7260_v52 = vmul.f32 %v8436_v43, %v12008_v8 }
 0xd9f   :  { %v6798_v16 = vmax.f32 %v6782_v3, %v6766_v46  ;;  %v7003_v57 = vmul.f32 %v8438_v23, %v8426_v7  ;;  %v7132_v15 = vmul.f32 %v8438_v23, %v8428_v49  ;;  %v7261_v12 = vmul.f32 %v8438_v23, %v8430_v60  ;;  %v12023_v9 = vpop.eup %8439 }
 0xda0   :  { %v6972_v1 = vadd.f32 %v12023_v9, %v6956_v63 }
 0xda1   :  { %v6814_v29 = vsub.f32 %v6540_v4, %v6798_v16  ;;  %v6862_v56 = vsub.f32 %v6653_v39, %v6798_v16  ;;  %v6630_v31 = vpop.f32.mrf.mxu0  ;;  %v7015_v49 = vpack.c.bf16 %v7003_v57, %v7002_v53  ;;  %v7144_v62 = vpack.c.bf16 %v7132_v15, %v7131_v51  ;;  %v6522_v63 = vpop.f32.mrf.mxu3 }
 0xda2   :  { %v6743_v37 = vpop.f32.mrf.mxu1  ;;  %v8442_v26 = vpop.eup %8441  ;;  %v6654_v7 = vmul.f32 0.17677669, %v6630_v31  ;;  %v6910_v19 = vsub.f32 %v6766_v46, %v6798_v16  ;;  %v7273_v60 = vpack.c.bf16 %v7261_v12, %v7260_v52  ;;  %v6542_v53 = vmul.f32 0.17677669, %v6520_v18 }
 0xda3   :  { %v8444_v48 = vpop.eup %8443  ;;  %v6840_v17 = vmul.f32 1.442695, %v6814_v29  ;;  %v6888_v45 = vmul.f32 1.442695, %v6862_v56  ;;  %v6767_v59 = vmul.f32 0.17677669, %v6743_v37  ;;  %7730 = vmatmul.msk.bf16.gmra.mxu2 %vm5083_vm10, %v7015_v49 }
 0xda4   :  { %v6957_v0 = vadd.f32 %v8444_v48, %v8442_v26  ;;  %v6783_v30 = vmax.f32 %v6541_v61, %v6654_v7  ;;  %v8446_v25 = vpop.eup %8445  ;;  %7738 = vmatmul.msk.bf16.gmra.mxu3 %vm5083_vm10, %v7144_v62  ;;  %v6936_v8 = vmul.f32 1.442695, %v6910_v19  ;;  %7746 = vmatmul.msk.bf16.gmra.mxu0 %vm5083_vm10, %v7273_v60  ;;  %v6543_v19 = vmul.f32 0.17677669, %v6522_v63 }
 0xda5   :  { %8447 = vpow2.f32 %v6840_v17 }
 0xda6   :  { %v6973_v4 = vadd.f32 %v8446_v25, %v6957_v0  ;;  %8449 = vpow2.f32 %v6888_v45  ;;  %v6799_v50 = vmax.f32 %v6783_v30, %v6767_v59 }
 0xda7   :  { %8451 = vrcp.f32 %v6972_v1 }
 0xda8   :  { %8453 = vrcp.f32 %v6973_v4  ;;  %v6815_v39 = vsub.f32 %v6541_v61, %v6799_v50  ;;  %v6863_v43 = vsub.f32 %v6654_v7, %v6799_v50  ;;  %v6911_v3 = vsub.f32 %v6767_v59, %v6799_v50 }
 0xda9   :  { %v6633_v46 = vpop.f32.mrf.mxu0  ;;  %8455 = vpow2.f32 %v6936_v8 }
 0xdaa   :  { %v6746_v23 = vpop.f32.mrf.mxu1  ;;  %v6842_v16 = vmul.f32 1.442695, %v6815_v39  ;;  %v6890_v57 = vmul.f32 1.442695, %v6863_v43  ;;  %v6938_v51 = vmul.f32 1.442695, %v6911_v3 }
 0xdab   :  { %v12030_v15 = vpop.eup %8447  ;;  %v6655_v12 = vmul.f32 0.17677669, %v6633_v46  ;;  %v6768_v61 = vmul.f32 0.17677669, %v6746_v23  ;;  %v6525_v46 = vpop.f32.mrf.mxu3 }
 0xdac   :  { %v12032_v29 = vpop.eup %8449  ;;  %8457 = vpow2.f32 %v6842_v16 }
 0xdad   :  { %v8452_v56 = vpop.eup %8451  ;;  %8459 = vpow2.f32 %v6890_v57  ;;  %v6784_v31 = vmax.f32 %v6542_v53, %v6655_v12  ;;  %v6958_v52 = vadd.f32 %v12032_v29, %v12030_v15 }
 0xdae   :  { %v8454_v37 = vpop.eup %8453  ;;  %8461 = vpow2.f32 %v6938_v51  ;;  %v7004_v18 = vmul.f32 %v8452_v56, %v12015_v6  ;;  %v7133_v62 = vmul.f32 %v8452_v56, %v12017_v24  ;;  %v7262_v4 = vmul.f32 %v8452_v56, %v12023_v9 }
 0xdaf   :  { %v6800_v1 = vmax.f32 %v6784_v31, %v6768_v61  ;;  %v7005_v7 = vmul.f32 %v8454_v37, %v8442_v26  ;;  %v7134_v49 = vmul.f32 %v8454_v37, %v8444_v48  ;;  %v7263_v17 = vmul.f32 %v8454_v37, %v8446_v25  ;;  %v12038_v45 = vpop.eup %8455 }
 0xdb0   :  { %v6974_v8 = vadd.f32 %v12038_v45, %v6958_v52 }
 0xdb1   :  { %v6816_v60 = vsub.f32 %v6542_v53, %v6800_v1  ;;  %v6864_v0 = vsub.f32 %v6655_v12, %v6800_v1  ;;  %v6635_v30 = vpop.f32.mrf.mxu0  ;;  %v7016_v26 = vpack.c.bf16 %v7005_v7, %v7004_v18  ;;  %v7145_v48 = vpack.c.bf16 %v7134_v49, %v7133_v62 }
 0xdb2   :  { %v6748_v59 = vpop.f32.mrf.mxu1  ;;  %v8458_v50 = vpop.eup %8457  ;;  %v6656_v39 = vmul.f32 0.17677669, %v6635_v30  ;;  %v6912_v24 = vsub.f32 %v6768_v61, %v6800_v1  ;;  %v7274_v25 = vpack.c.bf16 %v7263_v17, %v7262_v4  ;;  %v6544_v49 = vmul.f32 0.17677669, %v6525_v46 }
 0xdb3   :  { %v8460_v43 = vpop.eup %8459  ;;  %v6844_v6 = vmul.f32 1.442695, %v6816_v60  ;;  %v6892_v3 = vmul.f32 1.442695, %v6864_v0  ;;  %v6769_v16 = vmul.f32 0.17677669, %v6748_v59  ;;  %7731 = vmatmul.msk.bf16.gmra.mxu2 %vm5083_vm10, %v7016_v26  ;;  %v6527_v59 = vpop.f32.mrf.mxu3 }
 0xdb4   :  { %v6959_v23 = vadd.f32 %v8460_v43, %v8458_v50  ;;  %v6785_v63 = vmax.f32 %v6543_v19, %v6656_v39  ;;  %v8462_v57 = vpop.eup %8461  ;;  %7739 = vmatmul.msk.bf16.gmra.mxu3 %vm5083_vm10, %v7145_v48  ;;  %v6940_v51 = vmul.f32 1.442695, %v6912_v24  ;;  %7747 = vmatmul.msk.bf16.gmra.mxu0 %vm5083_vm10, %v7274_v25  ;;  %v6545_v25 = vmul.f32 0.17677669, %v6527_v59 }
 0xdb5   :  { %8463 = vpow2.f32 %v6844_v6 }
 0xdb6   :  { %v6975_v53 = vadd.f32 %v8462_v57, %v6959_v23  ;;  %8465 = vpow2.f32 %v6892_v3  ;;  %v6801_v9 = vmax.f32 %v6785_v63, %v6769_v16 }
 0xdb7   :  { %8467 = vrcp.f32 %v6974_v8 }
 0xdb8   :  { %8469 = vrcp.f32 %v6975_v53  ;;  %v6817_v12 = vsub.f32 %v6543_v19, %v6801_v9  ;;  %v6865_v56 = vsub.f32 %v6656_v39, %v6801_v9  ;;  %v6913_v31 = vsub.f32 %v6769_v16, %v6801_v9 }
 0xdb9   :  { %v6638_v61 = vpop.f32.mrf.mxu0  ;;  %8471 = vpow2.f32 %v6940_v51 }
 0xdba   :  { %v6751_v37 = vpop.f32.mrf.mxu1  ;;  %v6846_v52 = vmul.f32 1.442695, %v6817_v12  ;;  %v6894_v1 = vmul.f32 1.442695, %v6865_v56  ;;  %v6942_v18 = vmul.f32 1.442695, %v6913_v31 }
 0xdbb   :  { %v12045_v7 = vpop.eup %8463  ;;  %v6657_v62 = vmul.f32 0.17677669, %v6638_v61  ;;  %v6770_v30 = vmul.f32 0.17677669, %v6751_v37 }
 0xdbc   :  { %v12047_v17 = vpop.eup %8465  ;;  %8473 = vpow2.f32 %v6846_v52 }
 0xdbd   :  { %v8468_v60 = vpop.eup %8467  ;;  %8475 = vpow2.f32 %v6894_v1  ;;  %v6786_v0 = vmax.f32 %v6544_v49, %v6657_v62  ;;  %v6960_v4 = vadd.f32 %v12047_v17, %v12045_v7 }
 0xdbe   :  { %v8470_v19 = vpop.eup %8469  ;;  %8477 = vpow2.f32 %v6942_v18  ;;  %v7006_v48 = vmul.f32 %v8468_v60, %v12030_v15  ;;  %v7135_v6 = vmul.f32 %v8468_v60, %v12032_v29  ;;  %v7264_v53 = vmul.f32 %v8468_v60, %v12038_v45 }
 0xdbf   :  { %v6802_v8 = vmax.f32 %v6786_v0, %v6770_v30  ;;  %v7007_v39 = vmul.f32 %v8470_v19, %v8458_v50  ;;  %v7136_v26 = vmul.f32 %v8470_v19, %v8460_v43  ;;  %v7265_v3 = vmul.f32 %v8470_v19, %v8462_v57  ;;  %v8472_v24 = vpop.eup %8471 }
 0xdc0   :  { %v6976_v51 = vadd.f32 %v8472_v24, %v6960_v4 }
 0xdc1   :  { %v6818_v46 = vsub.f32 %v6544_v49, %v6802_v8  ;;  %v6866_v23 = vsub.f32 %v6657_v62, %v6802_v8  ;;  %v6640_v63 = vpop.f32.mrf.mxu0  ;;  %v7017_v56 = vpack.c.bf16 %v7007_v39, %v7006_v48  ;;  %v7146_v31 = vpack.c.bf16 %v7136_v26, %v7135_v6 }
 0xdc2   :  { %v6753_v16 = vpop.f32.mrf.mxu1  ;;  %v8474_v9 = vpop.eup %8473  ;;  %v6658_v12 = vmul.f32 0.17677669, %v6640_v63  ;;  %v6914_v15 = vsub.f32 %v6770_v30, %v6802_v8  ;;  %v7275_v37 = vpack.c.bf16 %v7265_v3, %v7264_v53 }
 0xdc3   :  { %v8476_v50 = vpop.eup %8475  ;;  %v6848_v43 = vmul.f32 1.442695, %v6818_v46  ;;  %v6896_v61 = vmul.f32 1.442695, %v6866_v23  ;;  %v6771_v52 = vmul.f32 0.17677669, %v6753_v16  ;;  %7732 = vmatmul.msk.bf16.gmra.mxu2 %vm5083_vm10, %v7017_v56 }
 0xdc4   :  { %v6961_v29 = vadd.f32 %v8476_v50, %v8474_v9  ;;  %v6787_v57 = vmax.f32 %v6545_v25, %v6658_v12  ;;  %v8478_v1 = vpop.eup %8477  ;;  %7740 = vmatmul.msk.bf16.gmra.mxu3 %vm5083_vm10, %v7146_v31  ;;  %v6944_v45 = vmul.f32 1.442695, %v6914_v15  ;;  %7748 = vmatmul.msk.bf16.gmra.mxu0 %vm5083_vm10, %v7275_v37 }
 0xdc5   :  { %8479 = vpow2.f32 %v6848_v43 }
 0xdc6   :  { %v6977_v49 = vadd.f32 %v8478_v1, %v6961_v29  ;;  %8481 = vpow2.f32 %v6896_v61  ;;  %v6803_v18 = vmax.f32 %v6787_v57, %v6771_v52 }
 0xdc7   :  { %8483 = vrcp.f32 %v6976_v51 }
 0xdc8   :  { %8485 = vrcp.f32 %v6977_v49  ;;  %v6819_v62 = vsub.f32 %v6545_v25, %v6803_v18  ;;  %v6867_v60 = vsub.f32 %v6658_v12, %v6803_v18  ;;  %v6915_v0 = vsub.f32 %v6771_v52, %v6803_v18 }
 0xdc9   :  { %8487 = vpow2.f32 %v6944_v45 }
 0xdca   :  { %v6850_v30 = vmul.f32 1.442695, %v6819_v62  ;;  %v6898_v19 = vmul.f32 1.442695, %v6867_v60  ;;  %v6946_v4 = vmul.f32 1.442695, %v6915_v0 }
 0xdcb   :  { %v8480_v59 = vpop.eup %8479 }
 0xdcc   :  { %v8482_v8 = vpop.eup %8481  ;;  %8489 = vpow2.f32 %v6850_v30 }
 0xdcd   :  { %v8484_v39 = vpop.eup %8483  ;;  %8491 = vpow2.f32 %v6898_v19  ;;  %v6962_v48 = vadd.f32 %v8482_v8, %v8480_v59 }
 0xdce   :  { %v8486_v26 = vpop.eup %8485  ;;  %8493 = vpow2.f32 %v6946_v4  ;;  %v7008_v23 = vmul.f32 %v8484_v39, %v12045_v7  ;;  %v7137_v25 = vmul.f32 %v8484_v39, %v12047_v17  ;;  %v7266_v16 = vmul.f32 %v8484_v39, %v8472_v24 }
 0xdcf   :  { %v7009_v6 = vmul.f32 %v8486_v26, %v8474_v9  ;;  %v7138_v3 = vmul.f32 %v8486_v26, %v8476_v50  ;;  %v7267_v46 = vmul.f32 %v8486_v26, %v8478_v1  ;;  %v8488_v63 = vpop.eup %8487 }
 0xdd0   :  { %v6978_v31 = vadd.f32 %v8488_v63, %v6962_v48 }
 0xdd1   :  { %v7018_v51 = vpack.c.bf16 %v7009_v6, %v7008_v23  ;;  %v7147_v12 = vpack.c.bf16 %v7138_v3, %v7137_v25  ;;  %v7276_v43 = vpack.c.bf16 %v7267_v46, %v7266_v16 }
 0xdd2   :  { %v8490_v53 = vpop.eup %8489  ;;  %8495 = vrcp.f32 %v6978_v31 }
 0xdd3   :  { %v8492_v56 = vpop.eup %8491  ;;  %7733 = vmatmul.msk.bf16.gmra.mxu2 %vm5083_vm10, %v7018_v51 }
 0xdd4   :  { %v6963_v61 = vadd.f32 %v8492_v56, %v8490_v53  ;;  %v8494_v15 = vpop.eup %8493  ;;  %7741 = vmatmul.msk.bf16.gmra.mxu3 %vm5083_vm10, %v7147_v12  ;;  %7749 = vmatmul.msk.bf16.gmra.mxu0 %vm5083_vm10, %v7276_v43 }
 0xdd6   :  { %v6979_v37 = vadd.f32 %v8494_v15, %v6963_v61 }
 0xdd8   :  { %8497 = vrcp.f32 %v6979_v37  ;;  %v8496_v7 = vpop.eup %8495 }
 0xdd9   :  { %v7010_v29 = vmul.f32 %v8496_v7, %v8480_v59  ;;  %v7139_v57 = vmul.f32 %v8496_v7, %v8482_v8  ;;  %v7268_v52 = vmul.f32 %v8496_v7, %v8488_v63 }
 0xdde   :  { %v8498_v17 = vpop.eup %8497 }
 0xddf   :  { %v7011_v24 = vmul.f32 %v8498_v17, %v8490_v53  ;;  %v7140_v9 = vmul.f32 %v8498_v17, %v8492_v56  ;;  %v7269_v50 = vmul.f32 %v8498_v17, %v8494_v15 }
 0xde1   :  { %v7019_v1 = vpack.c.bf16 %v7011_v24, %v7010_v29  ;;  %v7148_v49 = vpack.c.bf16 %v7140_v9, %v7139_v57  ;;  %v7277_v18 = vpack.c.bf16 %v7269_v50, %v7268_v52 }
 0xde3   :  { %7734 = vmatmul.msk.bf16.gmra.mxu2 %vm5083_vm10, %v7019_v1 }
 0xde4   :  { %7742 = vmatmul.msk.bf16.gmra.mxu3 %vm5083_vm10, %v7148_v49  ;;  %7750 = vmatmul.msk.bf16.gmra.mxu0 %vm5083_vm10, %v7277_v18 }
 0xdf1   :  { %v7311_v45 = vpop.f32.mrf.mxu0 }
 0xdf2   :  { %v7351_v19 = vmul.f32 %v7311_v45, %v11272_v21 }
 0xdf6   :  { %v7053_v62 = vpop.f32.mrf.mxu2  ;;  %v7182_v60 = vpop.f32.mrf.mxu3 }
 0xdf7   :  { %v7093_v0 = vmul.f32 %v7053_v62, %v12694_v28  ;;  %v7222_v30 = vmul.f32 %v7182_v60, %v12695_v54 }
 0xdf9   :  { %v7238_v59 = vadd.f32 %v7222_v30, %v7093_v0  ;;  %v7313_v4 = vpop.f32.mrf.mxu0 }
 0xdfa   :  { %v7352_v28 = vmul.f32 %v7313_v4, %v12796_v42 }
 0xdfb   :  { %v7367_v8 = vadd.f32 %v7351_v19, %v7238_v59 }
 0xdfd   :  { %v7383_v39 = vadd.f32 %v7367_v8, %v11781_v35 }
 0xdfe   :  { %v7055_v26 = vpop.f32.mrf.mxu2  ;;  %v7184_v48 = vpop.f32.mrf.mxu3 }
 0xdff   :  { %v7399_v6 = vmul.f32 0.33333334, %v7383_v39  ;;  %v7094_v3 = vmul.f32 %v7055_v26, %v12696_v20  ;;  %v7223_v46 = vmul.f32 %v7184_v48, %v12697_v40  ;;  %v12904_v39 = vld [vmem:[#allocation42_spill] sm:$0xff] }
 0xe01   :  { %7415 = vst.msk [vmem:[%s12206_s12] sm:$0xff] %vm4519_vm9, %v7399_v6  ;;  %v7239_v21 = vadd.f32 %v7223_v46, %v7094_v3  ;;  %v7316_v23 = vpop.f32.mrf.mxu0  ;;  %v12905_v3 = vld [vmem:[#allocation54_spill] sm:$0xff] }
 0xe02   :  { %v7353_v53 = vmul.f32 %v7316_v23, %v12798_v41 }
 0xe03   :  { %v7368_v54 = vadd.f32 %v7352_v28, %v7239_v21  ;;  %v12907_v21 = vld [vmem:[#allocation6_spill] sm:$0xff] }
 0xe05   :  { %v7384_v25 = vadd.f32 %v7368_v54, %v11793_v22 }
 0xe06   :  { %v7058_v63 = vpop.f32.mrf.mxu2 }
 0xe07   :  { %v7400_v35 = vmul.f32 0.33333334, %v7384_v25  ;;  %v7187_v16 = vpop.f32.mrf.mxu3  ;;  %v7095_v20 = vmul.f32 %v7058_v63, %v12698_v2  ;;  %v12908_v63 = vld [vmem:[#allocation33_spill] sm:$0xff] }
 0xe08   :  { %v7224_v40 = vmul.f32 %v7187_v16, %v12699_v44 }
 0xe09   :  { %7416 = vst.msk [vmem:[%s12206_s12 + $0x8] sm:$0xff] %vm4519_vm9, %v7400_v35  ;;  %v7318_v51 = vpop.f32.mrf.mxu0 }
 0xe0a   :  { %v7240_v42 = vadd.f32 %v7224_v40, %v7095_v20  ;;  %v7354_v2 = vmul.f32 %v7318_v51, %v12807_v36 }
 0xe0c   :  { %v7369_v12 = vadd.f32 %v7353_v53, %v7240_v42  ;;  %v12909_v42 = vld [vmem:[#allocation30_spill] sm:$0xff] }
 0xe0e   :  { %v7385_v56 = vadd.f32 %v7369_v12, %v11804_v58  ;;  %v7060_v22 = vpop.f32.mrf.mxu2  ;;  %v12910_v12 = vld [vmem:[#allocation11_spill] sm:$0xff] }
 0xe0f   :  { %v7189_v31 = vpop.f32.mrf.mxu3  ;;  %v7096_v61 = vmul.f32 %v7060_v22, %v12799_v11  ;;  %v12911_v22 = vld [vmem:[#allocation112_spill] sm:$0xff] }
 0xe10   :  { %v7401_v43 = vmul.f32 0.33333334, %v7385_v56  ;;  %v7225_v15 = vmul.f32 %v7189_v31, %v12800_v27 }
 0xe11   :  { %v7321_v41 = vpop.f32.mrf.mxu0 }
 0xe12   :  { %7417 = vst.msk [vmem:[%s12206_s12 + $0x10] sm:$0xff] %vm4519_vm9, %v7401_v43  ;;  %v7241_v44 = vadd.f32 %v7225_v15, %v7096_v61  ;;  %v7355_v27 = vmul.f32 %v7321_v41, %v12813_v38 }
 0xe14   :  { %v7370_v37 = vadd.f32 %v7354_v2, %v7241_v44  ;;  %v12912_v2 = vld [vmem:[#allocation57_spill] sm:$0xff] }
 0xe16   :  { %v7386_v7 = vadd.f32 %v7370_v37, %v11821_v55  ;;  %v7063_v58 = vpop.f32.mrf.mxu2 }
 0xe17   :  { %v7192_v17 = vpop.f32.mrf.mxu3  ;;  %v7097_v9 = vmul.f32 %v7063_v58, %v12809_v32  ;;  %v12913_v58 = vld [vmem:[#allocation58_spill] sm:$0xff] }
 0xe18   :  { %v7402_v24 = vmul.f32 0.33333334, %v7386_v7  ;;  %v7226_v11 = vmul.f32 %v7192_v17, %v12810_v33 }
 0xe19   :  { %v7323_v50 = vpop.f32.mrf.mxu0 }
 0xe1a   :  { %7418 = vst.msk [vmem:[%s12206_s12 + $0x18] sm:$0xff] %vm4519_vm9, %v7402_v24  ;;  %v7242_v36 = vadd.f32 %v7226_v11, %v7097_v9  ;;  %v7356_v33 = vmul.f32 %v7323_v50, %v12822_v47  ;;  %v12914_v24 = vld [vmem:[#allocation8_spill] sm:$0xff] }
 0xe1b   :  { %v12915_v11 = vld [vmem:[#allocation16_spill] sm:$0xff] }
 0xe1c   :  { %v7371_v29 = vadd.f32 %v7355_v27, %v7242_v36 }
 0xe1e   :  { %v7387_v57 = vadd.f32 %v7371_v29, %v11827_v5  ;;  %v7065_v55 = vpop.f32.mrf.mxu2 }
 0xe1f   :  { %v7194_v52 = vpop.f32.mrf.mxu3  ;;  %v7098_v49 = vmul.f32 %v7065_v55, %v12814_v14  ;;  %v12902_v14 = vld [vmem:[#allocation70_spill] sm:$0xff] }
 0xe20   :  { %v7403_v1 = vmul.f32 0.33333334, %v7387_v57  ;;  %v7227_v32 = vmul.f32 %v7194_v52, %v12815_v10  ;;  %v12903_v10 = vld [vmem:[#allocation50_spill] sm:$0xff]  ;;  %v12916_v57 = vld [vmem:[#allocation31_spill] sm:$0xff] }
 0xe21   :  { %v7326_v18 = vpop.f32.mrf.mxu0 }
 0xe22   :  { %7419 = vst.msk [vmem:[%s12206_s12 + $0x20] sm:$0xff] %vm4519_vm9, %v7403_v1  ;;  %v7243_v38 = vadd.f32 %v7227_v32, %v7098_v49  ;;  %v7357_v59 = vmul.f32 %v7326_v18, %v12903_v10  ;;  %v12917_v32 = vld [vmem:[#allocation9_spill] sm:$0xff] }
 0xe24   :  { %v7372_v45 = vadd.f32 %v7356_v33, %v7243_v38  ;;  %v12918_v38 = vld [vmem:[#allocation81_spill] sm:$0xff] }
 0xe26   :  { %v7388_v62 = vadd.f32 %v7372_v45, %v11844_v34  ;;  %v7068_v5 = vpop.f32.mrf.mxu2  ;;  %v12919_v45 = vld [vmem:[#allocation28_spill] sm:$0xff] }
 0xe27   :  { %v7197_v60 = vpop.f32.mrf.mxu3  ;;  %v7099_v30 = vmul.f32 %v7068_v5, %v12824_v13  ;;  %v12906_v13 = vld [vmem:[#allocation25_spill] sm:$0xff] }
 0xe28   :  { %v7404_v0 = vmul.f32 0.33333334, %v7388_v62  ;;  %v7228_v19 = vmul.f32 %v7197_v60, %v12902_v14 }
 0xe29   :  { %v7328_v4 = vpop.f32.mrf.mxu0 }
 0xe2a   :  { %7420 = vst.msk [vmem:[%s12206_s12 + $0x28] sm:$0xff] %vm4519_vm9, %v7404_v0  ;;  %v7244_v47 = vadd.f32 %v7228_v19, %v7099_v30  ;;  %v7358_v54 = vmul.f32 %v7328_v4, %v12907_v21  ;;  %v12920_v30 = vld [vmem:[#allocation55_spill] sm:$0xff] }
 0xe2c   :  { %v7373_v8 = vadd.f32 %v7357_v59, %v7244_v47  ;;  %v12921_v47 = vld [vmem:[#allocation14_spill] sm:$0xff] }
 0xe2e   :  { %v7389_v26 = vadd.f32 %v7373_v8, %v12904_v39  ;;  %v7070_v34 = vpop.f32.mrf.mxu2  ;;  %v12922_v8 = vld [vmem:[#allocation86_spill] sm:$0xff] }
 0xe2f   :  { %v7199_v48 = vpop.f32.mrf.mxu3  ;;  %v7100_v46 = vmul.f32 %v7070_v34, %v12905_v3 }
 0xe30   :  { %v7405_v6 = vmul.f32 0.33333334, %v7389_v26  ;;  %v7229_v28 = vmul.f32 %v7199_v48, %v12906_v13  ;;  %v12923_v26 = vld [vmem:[#allocation41_spill] sm:$0xff] }
 0xe31   :  { %v7331_v25 = vpop.f32.mrf.mxu0 }
 0xe32   :  { %7421 = vst.msk [vmem:[%s12206_s12 + $0x30] sm:$0xff] %vm4519_vm9, %v7405_v6  ;;  %v7245_v23 = vadd.f32 %v7229_v28, %v7100_v46  ;;  %v7359_v31 = vmul.f32 %v7331_v25, %v12911_v22  ;;  %v12924_v46 = vld [vmem:[#allocation72_spill] sm:$0xff] }
 0xe34   :  { %v7374_v35 = vadd.f32 %v7358_v54, %v7245_v23  ;;  %v12925_v23 = vld [vmem:[#allocation66_spill] sm:$0xff] }
 0xe36   :  { %v7390_v16 = vadd.f32 %v7374_v35, %v12908_v63  ;;  %v7073_v20 = vpop.f32.mrf.mxu2  ;;  %v12926_v35 = vld [vmem:[#allocation91_spill] sm:$0xff] }
 0xe37   :  { %v7202_v40 = vpop.f32.mrf.mxu3  ;;  %v7101_v51 = vmul.f32 %v7073_v20, %v12909_v42 }
 0xe38   :  { %v7406_v53 = vmul.f32 0.33333334, %v7390_v16  ;;  %v7230_v56 = vmul.f32 %v7202_v40, %v12910_v12  ;;  %v12927_v16 = vld [vmem:[#allocation17_spill] sm:$0xff] }
 0xe39   :  { %v7333_v61 = vpop.f32.mrf.mxu0 }
 0xe3a   :  { %7422 = vst.msk [vmem:[%s12206_s12 + $0x38] sm:$0xff] %vm4519_vm9, %v7406_v53  ;;  %v7246_v43 = vadd.f32 %v7230_v56, %v7101_v51  ;;  %v7360_v27 = vmul.f32 %v7333_v61, %v12915_v11  ;;  %v12928_v51 = vld [vmem:[#allocation61_spill] sm:$0xff] }
 0xe3c   :  { %v7375_v15 = vadd.f32 %v7359_v31, %v7246_v43  ;;  %v12929_v43 = vld [vmem:[#allocation68_spill] sm:$0xff] }
 0xe3e   :  { %v7391_v44 = vadd.f32 %v7375_v15, %v12912_v2  ;;  %v7075_v41 = vpop.f32.mrf.mxu2  ;;  %v12930_v15 = vld [vmem:[#allocation95_spill] sm:$0xff] }
 0xe3f   :  { %v7204_v37 = vpop.f32.mrf.mxu3  ;;  %v7102_v17 = vmul.f32 %v7075_v41, %v12913_v58 }
 0xe40   :  { %v7407_v7 = vmul.f32 0.33333334, %v7391_v44  ;;  %v7231_v9 = vmul.f32 %v7204_v37, %v12914_v24  ;;  %v12931_v44 = vld [vmem:[#allocation51_spill] sm:$0xff] }
 0xe41   :  { %v7336_v50 = vpop.f32.mrf.mxu0 }
 0xe42   :  { %7423 = vst.msk [vmem:[%s12206_s12 + $0x40] sm:$0xff] %vm4519_vm9, %v7407_v7  ;;  %v7247_v36 = vadd.f32 %v7231_v9, %v7102_v17  ;;  %v7361_v62 = vmul.f32 %v7336_v50, %v12919_v45  ;;  %v12932_v17 = vld [vmem:[#allocation59_spill] sm:$0xff] }
 0xe44   :  { %v7376_v29 = vadd.f32 %v7360_v27, %v7247_v36  ;;  %v12933_v36 = vld [vmem:[#allocation69_spill] sm:$0xff] }
 0xe46   :  { %v7392_v55 = vadd.f32 %v7376_v29, %v12916_v57  ;;  %v7078_v52 = vpop.f32.mrf.mxu2  ;;  %v12934_v29 = vld [vmem:[#allocation100_spill] sm:$0xff] }
 0xe47   :  { %v7207_v1 = vpop.f32.mrf.mxu3  ;;  %v7103_v33 = vmul.f32 %v7078_v52, %v12917_v32  ;;  %v12936_v32 = vld [vmem:[#allocation63_spill] sm:$0xff] }
 0xe48   :  { %v7408_v49 = vmul.f32 0.33333334, %v7392_v55  ;;  %v7232_v18 = vmul.f32 %v7207_v1, %v12918_v38  ;;  %v12935_v55 = vld [vmem:[#allocation62_spill] sm:$0xff] }
 0xe49   :  { %v7338_v60 = vpop.f32.mrf.mxu0 }
 0xe4a   :  { %7424 = vst.msk [vmem:[%s12206_s12 + $0x48] sm:$0xff] %vm4519_vm9, %v7408_v49  ;;  %v7248_v5 = vadd.f32 %v7232_v18, %v7103_v33  ;;  %v7362_v34 = vmul.f32 %v7338_v60, %v12923_v26 }
 0xe4c   :  { %v7377_v0 = vadd.f32 %v7361_v62, %v7248_v5  ;;  %v12937_v5 = vld [vmem:[#allocation27_spill] sm:$0xff] }
 0xe4e   :  { %v7393_v14 = vadd.f32 %v7377_v0, %v12920_v30  ;;  %v7080_v19 = vpop.f32.mrf.mxu2  ;;  %v12938_v0 = vld [vmem:[#allocation102_spill] sm:$0xff] }
 0xe4f   :  { %v7209_v10 = vpop.f32.mrf.mxu3  ;;  %v7104_v4 = vmul.f32 %v7080_v19, %v12921_v47  ;;  %v12940_v47 = vld [vmem:[#allocation64_spill] sm:$0xff] }
 0xe50   :  { %v7409_v59 = vmul.f32 0.33333334, %v7393_v14  ;;  %v7233_v39 = vmul.f32 %v7209_v10, %v12922_v8  ;;  %v12939_v14 = vld [vmem:[#allocation113_spill] sm:$0xff] }
 0xe51   :  { %v7341_v6 = vpop.f32.mrf.mxu0 }
 0xe52   :  { %7425 = vst.msk [vmem:[%s12206_s12 + $0x50] sm:$0xff] %vm4519_vm9, %v7409_v59  ;;  %v7249_v48 = vadd.f32 %v7233_v39, %v7104_v4  ;;  %v7363_v20 = vmul.f32 %v7341_v6, %v12927_v16 }
 0xe54   :  { %v7378_v3 = vadd.f32 %v7362_v34, %v7249_v48 }
 0xe56   :  { %v7394_v13 = vadd.f32 %v7378_v3, %v12924_v46  ;;  %v7083_v28 = vpop.f32.mrf.mxu2 }
 0xe57   :  { %v7212_v21 = vpop.f32.mrf.mxu3  ;;  %v7105_v25 = vmul.f32 %v7083_v28, %v12925_v23 }
 0xe58   :  { %v7410_v54 = vmul.f32 0.33333334, %v7394_v13  ;;  %v7234_v63 = vmul.f32 %v7212_v21, %v12926_v35 }
 0xe59   :  { %v7343_v53 = vpop.f32.mrf.mxu0 }
 0xe5a   :  { %7426 = vst.msk [vmem:[%s12206_s12 + $0x58] sm:$0xff] %vm4519_vm9, %v7410_v54  ;;  %v7250_v40 = vadd.f32 %v7234_v63, %v7105_v25  ;;  %v7364_v41 = vmul.f32 %v7343_v53, %v12931_v44 }
 0xe5c   :  { %v7379_v42 = vadd.f32 %v7363_v20, %v7250_v40 }
 0xe5e   :  { %v7395_v12 = vadd.f32 %v7379_v42, %v12928_v51  ;;  %v7085_v56 = vpop.f32.mrf.mxu2 }
 0xe5f   :  { %v7214_v22 = vpop.f32.mrf.mxu3  ;;  %v7106_v61 = vmul.f32 %v7085_v56, %v12929_v43 }
 0xe60   :  { %v7411_v31 = vmul.f32 0.33333334, %v7395_v12  ;;  %v7235_v2 = vmul.f32 %v7214_v22, %v12930_v15 }
 0xe61   :  { %v7346_v58 = vpop.f32.mrf.mxu0 }
 0xe62   :  { %7427 = vst.msk [vmem:[%s12206_s12 + $0x60] sm:$0xff] %vm4519_vm9, %v7411_v31  ;;  %v7251_v37 = vadd.f32 %v7235_v2, %v7106_v61  ;;  %v7365_v52 = vmul.f32 %v7346_v58, %v12935_v55 }
 0xe64   :  { %v7380_v7 = vadd.f32 %v7364_v41, %v7251_v37 }
 0xe66   :  { %v7396_v24 = vadd.f32 %v7380_v7, %v12932_v17  ;;  %v7088_v9 = vpop.f32.mrf.mxu2 }
 0xe67   :  { %v7217_v11 = vpop.f32.mrf.mxu3  ;;  %v7107_v50 = vmul.f32 %v7088_v9, %v12933_v36 }
 0xe68   :  { %v7412_v27 = vmul.f32 0.33333334, %v7396_v24  ;;  %v7236_v57 = vmul.f32 %v7217_v11, %v12934_v29 }
 0xe69   :  { %v7348_v38 = vpop.f32.mrf.mxu0 }
 0xe6a   :  { %7428 = vst.msk [vmem:[%s12206_s12 + $0x68] sm:$0xff] %vm4519_vm9, %v7412_v27  ;;  %v7252_v1 = vadd.f32 %v7236_v57, %v7107_v50  ;;  %v7366_v19 = vmul.f32 %v7348_v38, %v12939_v14 }
 0xe6c   :  { %v7381_v49 = vadd.f32 %v7365_v52, %v7252_v1 }
 0xe6e   :  { %v7397_v33 = vadd.f32 %v7381_v49, %v12936_v32  ;;  %v7090_v18 = vpop.f32.mrf.mxu2 }
 0xe6f   :  { %v7219_v45 = vpop.f32.mrf.mxu3  ;;  %v7108_v60 = vmul.f32 %v7090_v18, %v12937_v5 }
 0xe70   :  { %v7413_v62 = vmul.f32 0.33333334, %v7397_v33  ;;  %v7237_v30 = vmul.f32 %v7219_v45, %v12938_v0 }
 0xe72   :  { %7429 = vst.msk [vmem:[%s12206_s12 + $0x70] sm:$0xff] %vm4519_vm9, %v7413_v62  ;;  %v7253_v10 = vadd.f32 %v7237_v30, %v7108_v60 }
 0xe74   :  { %v7382_v59 = vadd.f32 %v7366_v19, %v7253_v10 }
 0xe76   :  { %v7398_v4 = vadd.f32 %v7382_v59, %v12940_v47 }
 0xe78   :  { %v7414_v8 = vmul.f32 0.33333334, %v7398_v4 }
 0xe7a   :  { %7430 = vst.msk [vmem:[%s12206_s12 + $0x78] sm:$0xff] %vm4519_vm9, %v7414_v8 }

</bundles_post_ra>
